<compile_context>
chip_gen: v7x
topology: tpu7x:2x2x1
jax: 0.10.0
libtpu: 0.0.40
codegen_flags: <defaults>
</compile_context>

<pallas_src>
import jax
import jax.numpy as jnp
from jax.experimental import pallas as pl
from jax.experimental.pallas import tpu as pltpu


def _round_up(v, m):
    return ((v + m - 1) // m) * m


def _vmem_cap_bytes():
    """Generation-dispatched VMEM budget cap (~75% of physical per-core VMEM)."""
    phys = 64 * 1024 * 1024                      # conservative default: v7x per-TC VMEM
    try:
        phys = int(pltpu.get_tpu_info().vmem_capacity_bytes)
    except Exception:
        pass
    return (3 * phys) // 4                        # ~48 MiB v7x, ~96 MiB v5e/v6e


# ----------------------------- Pallas kernel ---------------------------------
def _masked_mlp_kernel(x_ref, idx_ref, mask_ref, w1_ref, pw1_ref, w2_ref, o_ref):
    # x_ref:   (tm, D)  input dtype (f32), cast to the matmul operand dtype in-kernel
    # idx_ref: (tm, 1)  int32   positional indices for this row tile
    # mask_ref:(tm, 1)  float32 token mask
    # w1_ref:  (D, H)   compute dtype (VMEM-resident)
    # pw1_ref: (P, H)   compute dtype (VMEM-resident; = pos_table @ W1, gather fused into W1)
    # w2_ref:  (H, D)   compute dtype (VMEM-resident)
    # o_ref:   (tm, D)  output dtype
    cd = w1_ref.dtype
    P = pw1_ref.shape[0]

    # Per-tile downcast on the VPU (hidden under the MXU); x streams from HBM as f32.
    x = x_ref[...].astype(cd)

    # Main matmul + fused positional-gather matmul: two independent MXU ops summed in
    # the f32 accumulator (no serialized gather -> add -> downcast before the big dot).
    h = jnp.dot(x, w1_ref[...], preferred_element_type=jnp.float32)          # (tm, H)

    iota = jax.lax.broadcasted_iota(jnp.int32, (1, P), 1)
    onehot = (idx_ref[...] == iota).astype(cd)                               # exact 0/1
    h = h + jnp.dot(onehot, pw1_ref[...], preferred_element_type=jnp.float32)

    h = jax.nn.gelu(h, approximate=True)          # tanh path -> EUP slot, computed in f32

    out = jnp.dot(h.astype(cd), w2_ref[...], preferred_element_type=jnp.float32)
    out = out * mask_ref[...]                     # mask applied on the f32 accumulator
    o_ref[...] = out.astype(o_ref.dtype)


# ----------------------------- pallas_call wrapper ----------------------------
def masked_mlp_pallas(x, idx, mask, w1_c, pos_w1_c, w2_c, *, tm=512, out_dtype=None,
                      single_buffer_weights=True):
    """fn(x, idx, mask) with pre-cast resident weights (w1_c, pos_w1_c, w2_c)."""
    B, N, D = x.shape
    H = w1_c.shape[1]
    P = pos_w1_c.shape[0]
    M = B * N
    cd = w1_c.dtype
    out_dtype = x.dtype if out_dtype is None else out_dtype

    # Row-tile selection: multiple of 8, don't over-pad tiny inputs, and keep >= ~8 grid
    # steps so BlockSpec double-buffering hides the x-tile DMA / writeback on both v7x TCs.
    tm = max(8, min(tm, _round_up(M, 8), _round_up(pl.cdiv(M, 8), 8)))
    assert tm % 8 == 0
    num_tiles = pl.cdiv(M, tm)

    # Flatten tokens to rows (free reshape).  No jnp.pad copy of x: if M % tm != 0 Pallas
    # masks the partial tail block (OOB reads are garbage, but rows are independent and
    # every OOB row's write is discarded), so tail rows never reach the (M, D) output.
    x2d = x.reshape(M, D)
    idx2d = idx.reshape(M, 1).astype(jnp.int32)
    mask2d = mask.reshape(M, 1).astype(jnp.float32)

    isz_c = jnp.dtype(cd).itemsize
    isz_x = jnp.dtype(x.dtype).itemsize
    isz_o = jnp.dtype(out_dtype).itemsize

    # VMEM budget (bytes).  (tm, 1) blocks pad their lane dim to 128 in VMEM.
    w_bufs = 1 if single_buffer_weights else 2
    vmem_needed = (
        2 * tm * D * isz_x                            # streamed x tiles (double-buffered)
        + 2 * 2 * tm * 128 * 4                        # idx + mask tiles (lane-padded)
        + w_bufs * (D * H + P * H + H * D) * isz_c    # resident W1, pos@W1, W2
        + 2 * tm * D * isz_o                          # output tiles
        + 4 * tm * max(D, H, P) * 4                   # f32 intermediates / regalloc headroom
    )
    vmem_cap = _vmem_cap_bytes()
    # Resident-weight design: fail loudly instead of silently clamping the limit.
    # TODO(synk): for weight sets that don't fit (e.g. D=H=4096 on v7x's 64 MiB) add an
    # H-tiled "arbitrary" grid axis with an f32 accumulator instead of resident weights.
    assert vmem_needed <= vmem_cap, (
        f"resident weights + tiles need {vmem_needed / 2**20:.1f} MiB VMEM, "
        f"budget is {vmem_cap / 2**20:.1f} MiB; tile the hidden dim or lower tm")
    vmem_limit = int(min(max(2 * vmem_needed, 32 * 1024 * 1024), vmem_cap))

    cost = pl.CostEstimate(
        flops=2 * M * (D * H + P * H + H * D),
        transcendentals=M * H,
        bytes_accessed=(M * D * isz_x + M * 8
                        + (D * H + P * H + H * D) * isz_c
                        + M * D * isz_o),
    )

    def build(single_buf):
        def const_spec(shape):
            if single_buf:
                # Constant-index blocks never re-DMA; a second buffer is pure VMEM waste.
                return pl.BlockSpec(shape, lambda i: (0, 0), pipeline_mode=pl.Buffered(1))
            return pl.BlockSpec(shape, lambda i: (0, 0))

        return pl.pallas_call(
            _masked_mlp_kernel,
            out_shape=jax.ShapeDtypeStruct((M, D), out_dtype),
            grid_spec=pltpu.PrefetchScalarGridSpec(
                num_scalar_prefetch=0,
                grid=(num_tiles,),
                in_specs=[
                    pl.BlockSpec((tm, D), lambda i: (i, 0)),   # x rows (streamed, f32)
                    pl.BlockSpec((tm, 1), lambda i: (i, 0)),   # idx rows
                    pl.BlockSpec((tm, 1), lambda i: (i, 0)),   # mask rows
                    const_spec((D, H)),                        # W1        (resident)
                    const_spec((P, H)),                        # pos @ W1  (resident)
                    const_spec((H, D)),                        # W2        (resident)
                ],
                # Lane-dense output: D is a multiple of 128 here (pad D in a wrapper otherwise).
                out_specs=pl.BlockSpec((tm, D), lambda i: (i, 0)),
            ),
            compiler_params=pltpu.CompilerParams(
                dimension_semantics=("parallel",),    # shards row tiles across v7x's 2 TCs
                vmem_limit_bytes=vmem_limit,
            ),
            cost_estimate=cost,
        )

    args = (x2d, idx2d, mask2d, w1_c, pos_w1_c, w2_c)
    if single_buffer_weights:
        try:
            out2d = build(True)(*args)
        except Exception:
            # pipeline_mode / Buffered(1) not accepted by this jax build -> default buffering.
            out2d = build(False)(*args)
    else:
        out2d = build(False)(*args)

    return out2d.reshape(B, N, D)


# ----------------------------- module factory ---------------------------------
def make_masked_mlp_fn(pos_table, w1, w2, *, compute_dtype=jnp.bfloat16, tm=512,
                       out_dtype=None):
    """Build fn(x, idx, mask) with all one-time work hoisted out of the per-call path."""
    cd = compute_dtype
    # Fuse the positional gather into W1:  (x + pos[idx]) @ W1 == x @ W1 + (pos @ W1)[idx]
    pos_w1 = jnp.dot(pos_table.astype(jnp.float32), w1.astype(jnp.float32))   # (P, H)
    w1_c = jax.device_put(w1.astype(cd))
    pw1_c = jax.device_put(pos_w1.astype(cd))
    w2_c = jax.device_put(w2.astype(cd))

    def fn(x, idx, mask):
        return masked_mlp_pallas(x, idx, mask, w1_c, pw1_c, w2_c, tm=tm, out_dtype=out_dtype)

    return fn, (w1_c, pw1_c, w2_c)


# ----------------------------- Residual3 wrapper ------------------------------
class Residual3:
    """Exact semantics of the PyTorch module: forward simply delegates to fn."""

    def __init__(self, fn):
        self.fn = fn

    def __call__(self, x, idx, mask):
        return self.fn(x, idx, mask)


# ----------------------------- references (plain JAX) -------------------------
def masked_mlp_ref(x, idx, mask, pos_table, w1, w2):
    """Full-f32 math reference (no fusion, no bf16)."""
    h = jax.nn.gelu(jnp.dot(x + pos_table[idx], w1), approximate=True)
    return jnp.dot(h, w2) * mask[..., None]


def masked_mlp_ref_matched(x, idx, mask, w1_c, pw1_c, w2_c):
    """Reference mirroring the kernel's fusion + operand-cast scheme."""
    f32 = jnp.float32
    h = (jnp.dot(x.astype(w1_c.dtype), w1_c, preferred_element_type=f32)
         + jnp.take(pw1_c, idx, axis=0).astype(f32))
    h = jax.nn.gelu(h, approximate=True)
    return (jnp.dot(h.astype(w2_c.dtype), w2_c, preferred_element_type=f32)
            * mask[..., None].astype(f32))


if __name__ == "__main__":
    # Small but TPU-aligned shapes.  M = B*N = 4096 rows -> 8 parallel grid steps at tm=512.
    B, N, D, H, P = 4, 1024, 128, 256, 128

    key = jax.random.PRNGKey(0)
    kx, kp, kw1, kw2, ki, km = jax.random.split(key, 6)

    x = jax.random.normal(kx, (B, N, D), dtype=jnp.float32)
    pos_table = jax.random.normal(kp, (P, D), dtype=jnp.float32) * 0.02
    w1 = jax.random.normal(kw1, (D, H), dtype=jnp.float32) * (1.0 / D ** 0.5)
    w2 = jax.random.normal(kw2, (H, D), dtype=jnp.float32) * (1.0 / H ** 0.5)
    idx = jax.random.randint(ki, (B, N), 0, P, dtype=jnp.int32)
    mask = (jax.random.uniform(km, (B, N)) > 0.3).astype(jnp.float32)

    fn, (w1_c, pw1_c, w2_c) = make_masked_mlp_fn(pos_table, w1, w2)
    module = Residual3(fn)

    out = jax.block_until_ready(module(x, idx, mask))
    assert out.shape == (B, N, D) and out.dtype == x.dtype

    # Matched-precision reference (same fusion + bf16-operand / f32-accumulation scheme).
    ref_m = masked_mlp_ref_matched(x, idx, mask, w1_c, pw1_c, w2_c)
    assert jnp.allclose(out, ref_m, atol=2e-2, rtol=2e-2), "mismatch vs matched ref"

    # Loose sanity check against the full-f32 reference (bf16 operand rounding only).
    ref_f32 = masked_mlp_ref(x, idx, mask, pos_table, w1, w2)
    assert jnp.allclose(out, ref_f32, atol=7e-2, rtol=7e-2), "mismatch vs f32 ref"

    print("KERNEL_OK")
</pallas_src>

<mosaic_0001>
module attributes {stable_mosaic.version = 11 : i64} {
  func.func @_masked_mlp_kernel(%arg0: i32, %arg1: memref<512x128xf32, #tpu.memory_space<vmem>>, %arg2: memref<512x1xi32, #tpu.memory_space<vmem>>, %arg3: memref<512x1xf32, #tpu.memory_space<vmem>>, %arg4: memref<128x256xbf16, #tpu.memory_space<vmem>>, %arg5: memref<128x256xbf16, #tpu.memory_space<vmem>>, %arg6: memref<256x128xbf16, #tpu.memory_space<vmem>>, %arg7: memref<512x128xf32, #tpu.memory_space<vmem>>) attributes {dimension_semantics = [#tpu.dimension_semantics<parallel>], iteration_bounds = array<i64: 8>, scalar_prefetch = 0 : i64, scratch_operands = 0 : i64, tpu.core_type = #tpu.core_type<tc>, window_params = [{transform_indices = @transform_0, window_bounds = array<i64: 512, 128>}, {transform_indices = @transform_1, window_bounds = array<i64: 512, 1>}, {transform_indices = @transform_2, window_bounds = array<i64: 512, 1>}, {pipeline_mode = #tpu.pipeline_mode<synchronous>, transform_indices = @transform_3, window_bounds = array<i64: 128, 256>}, {pipeline_mode = #tpu.pipeline_mode<synchronous>, transform_indices = @transform_4, window_bounds = array<i64: 128, 256>}, {pipeline_mode = #tpu.pipeline_mode<synchronous>, transform_indices = @transform_5, window_bounds = array<i64: 256, 128>}, {transform_indices = @transform_6, window_bounds = array<i64: 512, 128>}]} {
    %c0 = arith.constant 0 : index
    %c0_0 = arith.constant 0 : index
    %0 = vector.load %arg1[%c0, %c0_0] : memref<512x128xf32, #tpu.memory_space<vmem>>, vector<512x128xf32>
    %1 = arith.truncf %0 : vector<512x128xf32> to vector<512x128xbf16>
    %c0_1 = arith.constant 0 : index
    %c0_2 = arith.constant 0 : index
    %2 = vector.load %arg4[%c0_1, %c0_2] : memref<128x256xbf16, #tpu.memory_space<vmem>>, vector<128x256xbf16>
    %cst = arith.constant dense<0.000000e+00> : vector<512x256xf32>
    %3 = tpu.matmul %1, %2, %cst {dimension_numbers = #tpu.dot_dimension_numbers<[1], [0], [0], [1], [0, 0, 1, 1], [], []>} : vector<512x128xbf16>, vector<128x256xbf16>, vector<512x256xf32> -> vector<512x256xf32>
    %4 = tpu.iota {dimensions = array<i32: 1>} : vector<1x128xi32>
    %c0_3 = arith.constant 0 : index
    %c0_4 = arith.constant 0 : index
    %5 = vector.load %arg2[%c0_3, %c0_4] : memref<512x1xi32, #tpu.memory_space<vmem>>, vector<512x1xi32>
    %6 = vector.broadcast %5 : vector<512x1xi32> to vector<512x128xi32>
    %7 = vector.broadcast %4 : vector<1x128xi32> to vector<512x128xi32>
    %8 = arith.cmpi eq, %6, %7 : vector<512x128xi32>
    %9 = arith.extui %8 : vector<512x128xi1> to vector<512x128xi32>
    %10 = arith.sitofp %9 : vector<512x128xi32> to vector<512x128xf32>
    %11 = arith.truncf %10 : vector<512x128xf32> to vector<512x128xbf16>
    %c0_5 = arith.constant 0 : index
    %c0_6 = arith.constant 0 : index
    %12 = vector.load %arg5[%c0_5, %c0_6] : memref<128x256xbf16, #tpu.memory_space<vmem>>, vector<128x256xbf16>
    %cst_7 = arith.constant dense<0.000000e+00> : vector<512x256xf32>
    %13 = tpu.matmul %11, %12, %cst_7 {dimension_numbers = #tpu.dot_dimension_numbers<[1], [0], [0], [1], [0, 0, 1, 1], [], []>} : vector<512x128xbf16>, vector<128x256xbf16>, vector<512x256xf32> -> vector<512x256xf32>
    %14 = arith.addf %3, %13 : vector<512x256xf32>
    %15 = arith.mulf %14, %14 : vector<512x256xf32>
    %16 = arith.mulf %14, %15 : vector<512x256xf32>
    %cst_8 = arith.constant 4.471500e-02 : f32
    %17 = vector.broadcast %cst_8 : f32 to vector<512x256xf32>
    %18 = arith.mulf %17, %16 : vector<512x256xf32>
    %19 = arith.addf %14, %18 : vector<512x256xf32>
    %cst_9 = arith.constant 0.797884583 : f32
    %20 = vector.broadcast %cst_9 : f32 to vector<512x256xf32>
    %21 = arith.mulf %20, %19 : vector<512x256xf32>
    %22 = math.tanh %21 : vector<512x256xf32>
    %cst_10 = arith.constant 1.000000e+00 : f32
    %23 = vector.broadcast %cst_10 : f32 to vector<512x256xf32>
    %24 = arith.addf %23, %22 : vector<512x256xf32>
    %cst_11 = arith.constant 5.000000e-01 : f32
    %25 = vector.broadcast %cst_11 : f32 to vector<512x256xf32>
    %26 = arith.mulf %25, %24 : vector<512x256xf32>
    %27 = arith.mulf %14, %26 : vector<512x256xf32>
    %28 = arith.truncf %27 : vector<512x256xf32> to vector<512x256xbf16>
    %c0_12 = arith.constant 0 : index
    %c0_13 = arith.constant 0 : index
    %29 = vector.load %arg6[%c0_12, %c0_13] : memref<256x128xbf16, #tpu.memory_space<vmem>>, vector<256x128xbf16>
    %cst_14 = arith.constant dense<0.000000e+00> : vector<512x128xf32>
    %30 = tpu.matmul %28, %29, %cst_14 {dimension_numbers = #tpu.dot_dimension_numbers<[1], [0], [0], [1], [0, 0, 1, 1], [], []>} : vector<512x256xbf16>, vector<256x128xbf16>, vector<512x128xf32> -> vector<512x128xf32>
    %c0_15 = arith.constant 0 : index
    %c0_16 = arith.constant 0 : index
    %31 = vector.load %arg3[%c0_15, %c0_16] : memref<512x1xf32, #tpu.memory_space<vmem>>, vector<512x1xf32>
    %32 = vector.broadcast %31 : vector<512x1xf32> to vector<512x128xf32>
    %33 = arith.mulf %30, %32 : vector<512x128xf32>
    %c0_17 = arith.constant 0 : index
    %c0_18 = arith.constant 0 : index
    %34 = vector.load %arg7[%c0_17, %c0_18] : memref<512x128xf32, #tpu.memory_space<vmem>>, vector<512x128xf32>
    tpu.vector_store %arg7[%c0_17, %c0_18], %33 {strides = array<i32>} : memref<512x128xf32, #tpu.memory_space<vmem>>, vector<512x128xf32>,
    return
  }
  func.func @transform_0(%arg0: i32) -> (i32, i32) {
    %c0_i32 = arith.constant 0 : i32
    %c0_i32_0 = arith.constant 0 : i32
    return %arg0, %c0_i32 : i32, i32
  }
  func.func @transform_1(%arg0: i32) -> (i32, i32) {
    %c0_i32 = arith.constant 0 : i32
    %c0_i32_0 = arith.constant 0 : i32
    return %arg0, %c0_i32 : i32, i32
  }
  func.func @transform_2(%arg0: i32) -> (i32, i32) {
    %c0_i32 = arith.constant 0 : i32
    %c0_i32_0 = arith.constant 0 : i32
    return %arg0, %c0_i32 : i32, i32
  }
  func.func @transform_3(%arg0: i32) -> (i32, i32) {
    %c0_i32 = arith.constant 0 : i32
    %c0_i32_0 = arith.constant 0 : i32
    %c0_i32_1 = arith.constant 0 : i32
    return %c0_i32, %c0_i32_0 : i32, i32
  }
  func.func @transform_4(%arg0: i32) -> (i32, i32) {
    %c0_i32 = arith.constant 0 : i32
    %c0_i32_0 = arith.constant 0 : i32
    %c0_i32_1 = arith.constant 0 : i32
    return %c0_i32, %c0_i32_0 : i32, i32
  }
  func.func @transform_5(%arg0: i32) -> (i32, i32) {
    %c0_i32 = arith.constant 0 : i32
    %c0_i32_0 = arith.constant 0 : i32
    %c0_i32_1 = arith.constant 0 : i32
    return %c0_i32, %c0_i32_0 : i32, i32
  }
  func.func @transform_6(%arg0: i32) -> (i32, i32) {
    %c0_i32 = arith.constant 0 : i32
    %c0_i32_0 = arith.constant 0 : i32
    return %arg0, %c0_i32 : i32, i32
  }
}

module attributes {stable_mosaic.version = 11 : i64} {
  func.func @_masked_mlp_kernel(%arg0: i32, %arg1: memref<512x128xf32, #tpu.memory_space<vmem>>, %arg2: memref<512x1xi32, #tpu.memory_space<vmem>>, %arg3: memref<512x1xf32, #tpu.memory_space<vmem>>, %arg4: memref<128x256xbf16, #tpu.memory_space<vmem>>, %arg5: memref<128x256xbf16, #tpu.memory_space<vmem>>, %arg6: memref<256x128xbf16, #tpu.memory_space<vmem>>, %arg7: memref<512x128xf32, #tpu.memory_space<vmem>>) attributes {dimension_semantics = [#tpu.dimension_semantics<parallel>], iteration_bounds = array<i64: 8>, scalar_prefetch = 0 : i64, scratch_operands = 0 : i64, tpu.core_type = #tpu.core_type<tc>, window_params = [{transform_indices = @transform_0, window_bounds = array<i64: 512, 128>}, {transform_indices = @transform_1, window_bounds = array<i64: 512, 1>}, {transform_indices = @transform_2, window_bounds = array<i64: 512, 1>}, {pipeline_mode = #tpu.pipeline_mode<synchronous>, transform_indices = @transform_3, window_bounds = array<i64: 128, 256>}, {pipeline_mode = #tpu.pipeline_mode<synchronous>, transform_indices = @transform_4, window_bounds = array<i64: 128, 256>}, {pipeline_mode = #tpu.pipeline_mode<synchronous>, transform_indices = @transform_5, window_bounds = array<i64: 256, 128>}, {transform_indices = @transform_6, window_bounds = array<i64: 512, 128>}]} {
    %c0 = arith.constant 0 : index
    %c0_0 = arith.constant 0 : index
    %0 = vector.load %arg1[%c0, %c0_0] : memref<512x128xf32, #tpu.memory_space<vmem>>, vector<512x128xf32>
    %1 = arith.truncf %0 : vector<512x128xf32> to vector<512x128xbf16>
    %c0_1 = arith.constant 0 : index
    %c0_2 = arith.constant 0 : index
    %2 = vector.load %arg4[%c0_1, %c0_2] : memref<128x256xbf16, #tpu.memory_space<vmem>>, vector<128x256xbf16>
    %cst = arith.constant dense<0.000000e+00> : vector<512x256xf32>
    %3 = tpu.matmul %1, %2, %cst {dimension_numbers = #tpu.dot_dimension_numbers<[1], [0], [0], [1], [0, 0, 1, 1], [], []>} : vector<512x128xbf16>, vector<128x256xbf16>, vector<512x256xf32> -> vector<512x256xf32>
    %4 = tpu.iota {dimensions = array<i32: 1>} : vector<1x128xi32>
    %c0_3 = arith.constant 0 : index
    %c0_4 = arith.constant 0 : index
    %5 = vector.load %arg2[%c0_3, %c0_4] : memref<512x1xi32, #tpu.memory_space<vmem>>, vector<512x1xi32>
    %6 = vector.broadcast %5 : vector<512x1xi32> to vector<512x128xi32>
    %7 = vector.broadcast %4 : vector<1x128xi32> to vector<512x128xi32>
    %8 = arith.cmpi eq, %6, %7 : vector<512x128xi32>
    %9 = arith.extui %8 : vector<512x128xi1> to vector<512x128xi32>
    %10 = arith.sitofp %9 : vector<512x128xi32> to vector<512x128xf32>
    %11 = arith.truncf %10 : vector<512x128xf32> to vector<512x128xbf16>
    %c0_5 = arith.constant 0 : index
    %c0_6 = arith.constant 0 : index
    %12 = vector.load %arg5[%c0_5, %c0_6] : memref<128x256xbf16, #tpu.memory_space<vmem>>, vector<128x256xbf16>
    %cst_7 = arith.constant dense<0.000000e+00> : vector<512x256xf32>
    %13 = tpu.matmul %11, %12, %cst_7 {dimension_numbers = #tpu.dot_dimension_numbers<[1], [0], [0], [1], [0, 0, 1, 1], [], []>} : vector<512x128xbf16>, vector<128x256xbf16>, vector<512x256xf32> -> vector<512x256xf32>
    %14 = arith.addf %3, %13 : vector<512x256xf32>
    %15 = arith.mulf %14, %14 : vector<512x256xf32>
    %16 = arith.mulf %14, %15 : vector<512x256xf32>
    %cst_8 = arith.constant 4.471500e-02 : f32
    %17 = vector.broadcast %cst_8 : f32 to vector<512x256xf32>
    %18 = arith.mulf %17, %16 : vector<512x256xf32>
    %19 = arith.addf %14, %18 : vector<512x256xf32>
    %cst_9 = arith.constant 0.797884583 : f32
    %20 = vector.broadcast %cst_9 : f32 to vector<512x256xf32>
    %21 = arith.mulf %20, %19 : vector<512x256xf32>
    %22 = math.tanh %21 : vector<512x256xf32>
    %cst_10 = arith.constant 1.000000e+00 : f32
    %23 = vector.broadcast %cst_10 : f32 to vector<512x256xf32>
    %24 = arith.addf %23, %22 : vector<512x256xf32>
    %cst_11 = arith.constant 5.000000e-01 : f32
    %25 = vector.broadcast %cst_11 : f32 to vector<512x256xf32>
    %26 = arith.mulf %25, %24 : vector<512x256xf32>
    %27 = arith.mulf %14, %26 : vector<512x256xf32>
    %28 = arith.truncf %27 : vector<512x256xf32> to vector<512x256xbf16>
    %c0_12 = arith.constant 0 : index
    %c0_13 = arith.constant 0 : index
    %29 = vector.load %arg6[%c0_12, %c0_13] : memref<256x128xbf16, #tpu.memory_space<vmem>>, vector<256x128xbf16>
    %cst_14 = arith.constant dense<0.000000e+00> : vector<512x128xf32>
    %30 = tpu.matmul %28, %29, %cst_14 {dimension_numbers = #tpu.dot_dimension_numbers<[1], [0], [0], [1], [0, 0, 1, 1], [], []>} : vector<512x256xbf16>, vector<256x128xbf16>, vector<512x128xf32> -> vector<512x128xf32>
    %c0_15 = arith.constant 0 : index
    %c0_16 = arith.constant 0 : index
    %31 = vector.load %arg3[%c0_15, %c0_16] : memref<512x1xf32, #tpu.memory_space<vmem>>, vector<512x1xf32>
    %32 = vector.broadcast %31 : vector<512x1xf32> to vector<512x128xf32>
    %33 = arith.mulf %30, %32 : vector<512x128xf32>
    %c0_17 = arith.constant 0 : index
    %c0_18 = arith.constant 0 : index
    %34 = vector.load %arg7[%c0_17, %c0_18] : memref<512x128xf32, #tpu.memory_space<vmem>>, vector<512x128xf32>
    tpu.vector_store %arg7[%c0_17, %c0_18], %33 {strides = array<i32>} : memref<512x128xf32, #tpu.memory_space<vmem>>, vector<512x128xf32>,
    return
  }
  func.func @transform_0(%arg0: i32) -> (i32, i32) {
    %c0_i32 = arith.constant 0 : i32
    %c0_i32_0 = arith.constant 0 : i32
    return %arg0, %c0_i32 : i32, i32
  }
  func.func @transform_1(%arg0: i32) -> (i32, i32) {
    %c0_i32 = arith.constant 0 : i32
    %c0_i32_0 = arith.constant 0 : i32
    return %arg0, %c0_i32 : i32, i32
  }
  func.func @transform_2(%arg0: i32) -> (i32, i32) {
    %c0_i32 = arith.constant 0 : i32
    %c0_i32_0 = arith.constant 0 : i32
    return %arg0, %c0_i32 : i32, i32
  }
  func.func @transform_3(%arg0: i32) -> (i32, i32) {
    %c0_i32 = arith.constant 0 : i32
    %c0_i32_0 = arith.constant 0 : i32
    %c0_i32_1 = arith.constant 0 : i32
    return %c0_i32, %c0_i32_0 : i32, i32
  }
  func.func @transform_4(%arg0: i32) -> (i32, i32) {
    %c0_i32 = arith.constant 0 : i32
    %c0_i32_0 = arith.constant 0 : i32
    %c0_i32_1 = arith.constant 0 : i32
    return %c0_i32, %c0_i32_0 : i32, i32
  }
  func.func @transform_5(%arg0: i32) -> (i32, i32) {
    %c0_i32 = arith.constant 0 : i32
    %c0_i32_0 = arith.constant 0 : i32
    %c0_i32_1 = arith.constant 0 : i32
    return %c0_i32, %c0_i32_0 : i32, i32
  }
  func.func @transform_6(%arg0: i32) -> (i32, i32) {
    %c0_i32 = arith.constant 0 : i32
    %c0_i32_0 = arith.constant 0 : i32
    return %arg0, %c0_i32 : i32, i32
  }
}

</mosaic_0001>

<bundles_post_ra>
// kernel: tpu_custom_call.1
= control target key start
LH: loop header
LB: loop body
LE: loop exit
PB: predicated region body
PF: predicated region fallthrough
CT: control target
= control target key end

     0   :  { %11 = vsyncpa [#allocation3], 0  ;;  %s7300_s0 = inlined_call_operand.vmem [shape: f32[4096,128], index: 0, kind: input, shape index: {}]   ;;  %s7301_s1 = inlined_call_operand.vmem [shape: s32[4096,1], index: 1, kind: input, shape index: {}]   ;;  %s7302_s2 = inlined_call_operand.vmem [shape: f32[4096,1], index: 2, kind: input, shape index: {}]   ;;  %s7303_s3 = inlined_call_operand.vmem [shape: bf16[128,256], index: 3, kind: input, shape index: {}]   ;;  %s7304_s4 = inlined_call_operand.vmem [shape: bf16[128,256], index: 4, kind: input, shape index: {}]   ;;  %s7305_s5 = inlined_call_operand.vmem [shape: bf16[256,128], index: 5, kind: input, shape index: {}]   ;;  %s7306_s6 = inlined_call_operand.hbm [shape: f32[4096,128], index: 6, kind: output, shape index: {}]  }
   0x1   :  { %13 = vsyncpa [#allocation3 + $0x1], 0  ;;  %s4825_s21 = smov 0   ;;  %s4827_s22 = smov 0  }
   0x2   :  { %s4829_s23 = smov 0   ;;  %s4831_s24 = smov 0  }
   0x3 LB: > { %s4846_s25 = sadd.s32 4294967295, %s4783_s24   ;;  %s4019_s26 = sadd.s32 4294967294, %s4783_s24   ;;  %s4783_s24 = sphi %s4831_s24, %s7441_s24   ;;  %s4779_s23 = sphi %s4829_s23, %s7440_s23   ;;  %s4775_s22 = sphi %s4827_s22, %s7439_s22   ;;  %s4771_s21 = sphi %s4825_s21, %s7438_s21  }
   0x4   : > { %s4850_s27 = sadd.s32 1, %s4783_s24   ;;  %s167_s28 = sadd.s32 1, %s4779_s23 }
   0x5   : > { %s164_s29 = ssub.s32 %s4783_s24, %s4850_s27  ;;  %p177_p0 = scmp.ne.s32.totalorder %s4779_s23, %s4775_s22 }
   0x6   : > { %p165_p1 = scmp.eq.s32.totalorder %s164_s29, 0  ;;  %p178_p2 = scmp.eq.s32.totalorder %s4846_s25, 7 }
   0x7   : > { %p183_p3 = scmp.ne.s32.totalorder %s4775_s22, %s4771_s21  ;;  %p184_p4 = scmp.eq.s32.totalorder %s4019_s26, 7 }
   0x8   : > { %s4861_s30 = scalar_select %p165_p1, %s4779_s23, %s167_s28  }
   0x9   : > { %p4863_p5 = por %p178_p2, %p177_p0  ;;  %p4867_p6 = por %p184_p4, %p183_p3 }
   0xa   : > { %p4022_p7 = scmp.ge.s32.totalorder %s4783_s24, 1  ;;  %p238_p8 = scmp.lt.s32.totalorder %s4783_s24, 9 }
   0xc   : > { %p239_p9 = pnand %p4022_p7, %p238_p8 }
   0xe   : > { %242 = sbr.rel (%p239_p9) target bundleno = 1082 (0x43a), region = 44 }
  0x15   : > { %s4024_s9 = sshll.u32 %s4846_s25, 6  ;;  %v4401_v0 = vld [vmem:[%s7304_s4 + $0x4] ss:$8 sps:$4 sm:$0xff]   ;;  %v7307_v1 = vmov 0   ;;  %v4403_v2 = vld [vmem:[%s7304_s4] ss:$8 sps:$4 sm:$0xff]  }
  0x16   : > { %4400 = vset.pattern.permute.xlu1 %v7307_v1  ;;  %4399 = vset.pattern.permute.xlu0 %v7307_v1  ;;  %p279_p10 = scmp.lt.s32.totalorder %s4024_s9, 511  ;;  %v4404_v3 = vld [vmem:[%s7304_s4 + $0x14] ss:$8 sps:$4 sm:$0xff]   ;;  %v4406_v4 = vld [vmem:[%s7304_s4 + $0x10] ss:$8 sps:$4 sm:$0xff]   ;;  %s4211_s26 = sshll.u32 %s4846_s25, 13 }
  0x17   : > { %988 = vmatprep.subr.bf16.mxu0 %v4401_v0  ;;  %1020 = vmatprep.mubr.bf16.mxu0 %v7307_v1  ;;  %v4407_v5 = vld [vmem:[%s7304_s4 + $0x24] ss:$8 sps:$4 sm:$0xff]   ;;  %v4409_v8 = vld [vmem:[%s7304_s4 + $0x20] ss:$8 sps:$4 sm:$0xff]   ;;  %v4410_v11 = vld [vmem:[%s7304_s4 + $0x34] ss:$8 sps:$4 sm:$0xff]   ;;  %s7251_s11 = scalar_lea.hbm %s7306_s6, %s4211_s26 }
  0x18   : > { %s7443_s9 = smov (!%p279_p10, %s4024_s9), 511  ;;  %989 = vmatpush1.bf16.msra.mxu0 %v4403_v2  ;;  %4212 = vmatprep.subr.bf16.mxu1 %v4401_v0  ;;  %v4412_v12 = vld [vmem:[%s7304_s4 + $0x30] ss:$8 sps:$4 sm:$0xff]   ;;  %v4413_v15 = vld [vmem:[%s7304_s4 + $0x44] ss:$8 sps:$4 sm:$0xff]   ;;  %s4787_s13 = smov [#allocation2]  }
  0x19   : > { %990 = vmatprep.subr.bf16.mxu0 %v4404_v3  ;;  %4220 = vmatpush1.bf16.msra.mxu1 %v4403_v2  ;;  %s4889_s18 = sshll.u32 %s7443_s9, 3  ;;  %v4415_v16 = vld [vmem:[%s7304_s4 + $0x40] ss:$8 sps:$4 sm:$0xff]   ;;  %v4416_v24 = vld [vmem:[%s7304_s4 + $0x54] ss:$8 sps:$4 sm:$0xff]   ;;  %s4725_s14 = sshll.u32 %s4787_s13, 4  ;;  %s4726_s14 = int_to_ptr.vmem [resolvable:$false] %s4725_s14 }
  0x1a   : > { %4213 = vmatprep.subr.bf16.mxu1 %v4404_v3  ;;  %1180 = vmatprep.mubr.bf16.mxu1 %v7307_v1  ;;  %s4899_s29 = scalar_lea.vmem %s7301_s1, %s4889_s18  ;;  %v4418_v25 = vld [vmem:[%s7304_s4 + $0x50] ss:$8 sps:$4 sm:$0xff]   ;;  %v4419_v27 = vld [vmem:[%s7304_s4 + $0x64] ss:$8 sps:$4 sm:$0xff]   ;;  %v4421_v28 = vld [vmem:[%s7304_s4 + $0x60] ss:$8 sps:$4 sm:$0xff]   ;;  %s5006_s9 = scalar_lea.vmem %s7302_s2, %s4889_s18 }
  0x1b   : > { %v414_v6 = vld [vmem:[%s4899_s29 + $0x10] sm:$0xff]  ;;  %v412_v7 = vld [vmem:[%s4899_s29] sm:$0xff]  ;;  %v415_v9 = vld [vmem:[%s4899_s29 + $0x18] sm:$0xff]  ;;  %s5290_s17 = scalar_lea.vmem %s7300_s0, %s4889_s18  ;;  %s4727_s15 = scalar_lea.vmem %s4726_s14, 16384 }
  0x1c   : > { %991 = vmatpush1.bf16.msra.mxu0 %v4406_v4  ;;  %483 = vperm.xlu1 %4400, %v414_v6   ;;  %v413_v10 = vld [vmem:[%s4899_s29 + $0x8] sm:$0xff]  ;;  %v416_v14 = vld [vmem:[%s4899_s29 + $0x20] sm:$0xff]  ;;  %v419_v17 = vld [vmem:[%s4899_s29 + $0x38] sm:$0xff] }
  0x1d   : > { %477 = vperm.xlu0 %4399, %v412_v7   ;;  %992 = vmatprep.subr.bf16.mxu0 %v4407_v5  ;;  %v417_v13 = vld [vmem:[%s4899_s29 + $0x28] sm:$0xff]  ;;  %v418_v18 = vld [vmem:[%s4899_s29 + $0x30] sm:$0xff]  ;;  %v420_v20 = vld [vmem:[%s4899_s29 + $0x40] sm:$0xff] }
  0x1e   : > { %4221 = vmatpush1.bf16.msra.mxu1 %v4406_v4  ;;  %v421_v19 = vld [vmem:[%s4899_s29 + $0x48] sm:$0xff]  ;;  %v423_v21 = vld [vmem:[%s4899_s29 + $0x58] sm:$0xff]  ;;  %v422_v22 = vld [vmem:[%s4899_s29 + $0x50] sm:$0xff] }
  0x1f   : > { %4214 = vmatprep.subr.bf16.mxu1 %v4407_v5  ;;  %v425_v23 = vld [vmem:[%s4899_s29 + $0x68] sm:$0xff]  ;;  %v424_v26 = vld [vmem:[%s4899_s29 + $0x60] sm:$0xff]  ;;  %v427_v29 = vld [vmem:[%s4899_s29 + $0x78] sm:$0xff] }
  0x20   : > { %993 = vmatpush1.bf16.msra.mxu0 %v4409_v8  ;;  %486 = vperm.xlu1 %4400, %v415_v9   ;;  %v426_v30 = vld [vmem:[%s4899_s29 + $0x70] sm:$0xff]  ;;  %v429_v33 = vld [vmem:[%s4899_s29 + $0x88] sm:$0xff]  ;;  %v428_v34 = vld [vmem:[%s4899_s29 + $0x80] sm:$0xff] }
  0x21   : > { %480 = vperm.xlu0 %4399, %v413_v10   ;;  %994 = vmatprep.subr.bf16.mxu0 %v4410_v11  ;;  %v4422_v31 = vld [vmem:[%s7304_s4 + $0x74] ss:$8 sps:$4 sm:$0xff]   ;;  %v4424_v32 = vld [vmem:[%s7304_s4 + $0x70] ss:$8 sps:$4 sm:$0xff]   ;;  %v4427_v35 = vld [vmem:[%s7303_s3 + $0x4] ss:$8 sps:$4 sm:$0xff]  }
  0x22   : > { %4222 = vmatpush1.bf16.msra.mxu1 %v4409_v8  ;;  %v431_v36 = vld [vmem:[%s4899_s29 + $0x98] sm:$0xff]  ;;  %v430_v37 = vld [vmem:[%s4899_s29 + $0x90] sm:$0xff]  ;;  %v433_v38 = vld [vmem:[%s4899_s29 + $0xa8] sm:$0xff] }
  0x23   : > { %4215 = vmatprep.subr.bf16.mxu1 %v4410_v11  ;;  %v432_v39 = vld [vmem:[%s4899_s29 + $0xa0] sm:$0xff]  ;;  %v435_v40 = vld [vmem:[%s4899_s29 + $0xb8] sm:$0xff]  ;;  %v434_v41 = vld [vmem:[%s4899_s29 + $0xb0] sm:$0xff] }
  0x24   : > { %995 = vmatpush1.bf16.msra.mxu0 %v4412_v12  ;;  %492 = vperm.xlu1 %4400, %v417_v13   ;;  %v437_v42 = vld [vmem:[%s4899_s29 + $0xc8] sm:$0xff]  ;;  %v436_v43 = vld [vmem:[%s4899_s29 + $0xc0] sm:$0xff]  ;;  %v439_v44 = vld [vmem:[%s4899_s29 + $0xd8] sm:$0xff] }
  0x25   : > { %489 = vperm.xlu0 %4399, %v416_v14   ;;  %996 = vmatprep.subr.bf16.mxu0 %v4413_v15  ;;  %v438_v45 = vld [vmem:[%s4899_s29 + $0xd0] sm:$0xff]  ;;  %v441_v46 = vld [vmem:[%s4899_s29 + $0xe8] sm:$0xff]  ;;  %v440_v47 = vld [vmem:[%s4899_s29 + $0xe0] sm:$0xff] }
  0x26   : > { %4223 = vmatpush1.bf16.msra.mxu1 %v4412_v12  ;;  %v443_v48 = vld [vmem:[%s4899_s29 + $0xf8] sm:$0xff]  ;;  %v442_v49 = vld [vmem:[%s4899_s29 + $0xf0] sm:$0xff]  ;;  %v445_v50 = vld [vmem:[%s4899_s29 + $0x108] sm:$0xff] }
  0x27   : > { %4216 = vmatprep.subr.bf16.mxu1 %v4413_v15  ;;  %v444_v51 = vld [vmem:[%s4899_s29 + $0x100] sm:$0xff]  ;;  %v447_v52 = vld [vmem:[%s4899_s29 + $0x118] sm:$0xff]  ;;  %v446_v53 = vld [vmem:[%s4899_s29 + $0x110] sm:$0xff] }
  0x28   : > { %997 = vmatpush1.bf16.msra.mxu0 %v4415_v16  ;;  %498 = vperm.xlu1 %4400, %v419_v17   ;;  %v449_v54 = vld [vmem:[%s4899_s29 + $0x128] sm:$0xff]  ;;  %v448_v55 = vld [vmem:[%s4899_s29 + $0x120] sm:$0xff]  ;;  %v451_v56 = vld [vmem:[%s4899_s29 + $0x138] sm:$0xff] }
  0x29   : > { %495 = vperm.xlu0 %4399, %v418_v18   ;;  %998 = vmatprep.subr.bf16.mxu0 %v4416_v24  ;;  %v450_v57 = vld [vmem:[%s4899_s29 + $0x130] sm:$0xff]  ;;  %v453_v58 = vld [vmem:[%s4899_s29 + $0x148] sm:$0xff]  ;;  %v452_v59 = vld [vmem:[%s4899_s29 + $0x140] sm:$0xff] }
  0x2a   : > { %4224 = vmatpush1.bf16.msra.mxu1 %v4415_v16  ;;  %v455_v60 = vld [vmem:[%s4899_s29 + $0x158] sm:$0xff]  ;;  %v454_v61 = vld [vmem:[%s4899_s29 + $0x150] sm:$0xff]  ;;  %v457_v62 = vld [vmem:[%s4899_s29 + $0x168] sm:$0xff] }
  0x2b   : > { %4217 = vmatprep.subr.bf16.mxu1 %v4416_v24  ;;  %v456_v63 = vld [vmem:[%s4899_s29 + $0x160] sm:$0xff]  ;;  %v459_v0 = vld [vmem:[%s4899_s29 + $0x178] sm:$0xff]  ;;  %v458_v2 = vld [vmem:[%s4899_s29 + $0x170] sm:$0xff] }
  0x2c   : > { %504 = vperm.xlu1 %4400, %v421_v19   ;;  %999 = vmatpush1.bf16.msra.mxu0 %v4418_v25  ;;  %v461_v3 = vld [vmem:[%s4899_s29 + $0x188] sm:$0xff]  ;;  %v460_v4 = vld [vmem:[%s4899_s29 + $0x180] sm:$0xff]  ;;  %v463_v5 = vld [vmem:[%s4899_s29 + $0x198] sm:$0xff]  ;;  %v410_v19 = vlaneseq }
  0x2d   : > { %501 = vperm.xlu0 %4399, %v420_v20   ;;  %1000 = vmatprep.subr.bf16.mxu0 %v4419_v27  ;;  %v462_v6 = vld [vmem:[%s4899_s29 + $0x190] sm:$0xff]  ;;  %v465_v7 = vld [vmem:[%s4899_s29 + $0x1a8] sm:$0xff]  ;;  %v464_v8 = vld [vmem:[%s4899_s29 + $0x1a0] sm:$0xff] }
  0x2e   : > { %4225 = vmatpush1.bf16.msra.mxu1 %v4418_v25  ;;  %v467_v9 = vld [vmem:[%s4899_s29 + $0x1b8] sm:$0xff]  ;;  %v466_v10 = vld [vmem:[%s4899_s29 + $0x1b0] sm:$0xff]  ;;  %v469_v11 = vld [vmem:[%s4899_s29 + $0x1c8] sm:$0xff]  ;;  %v5010_v24 = vand.u32 127, %v410_v19 }
  0x2f   : > { %4218 = vmatprep.subr.bf16.mxu1 %v4419_v27  ;;  %v468_v12 = vld [vmem:[%s4899_s29 + $0x1c0] sm:$0xff]  ;;  %v471_v13 = vld [vmem:[%s4899_s29 + $0x1d8] sm:$0xff]  ;;  %v470_v14 = vld [vmem:[%s4899_s29 + $0x1d0] sm:$0xff] }
  0x30   : > { %510 = vperm.xlu1 %4400, %v423_v21   ;;  %1001 = vmatpush1.bf16.msra.mxu0 %v4421_v28  ;;  %v473_v15 = vld [vmem:[%s4899_s29 + $0x1e8] sm:$0xff]  ;;  %v472_v16 = vld [vmem:[%s4899_s29 + $0x1e0] sm:$0xff]  ;;  %v475_v17 = vld [vmem:[%s4899_s29 + $0x1f8] sm:$0xff] }
  0x31   : > { %507 = vperm.xlu0 %4399, %v422_v22   ;;  %1002 = vmatprep.subr.bf16.mxu0 %v4422_v31  ;;  %v474_v18 = vld [vmem:[%s4899_s29 + $0x1f0] sm:$0xff]  ;;  %v3408_v20 = vld [vmem:[%s5006_s9 + $0x8] sm:$0xff]  ;;  %v3407_v21 = vld [vmem:[%s5006_s9] sm:$0xff] }
  0x32   : > { %4226 = vmatpush1.bf16.msra.mxu1 %v4421_v28  ;;  %v3410_v25 = vld [vmem:[%s5006_s9 + $0x18] sm:$0xff]  ;;  %v3429_v19 = vld [vmem:[%s5006_s9 + $0xb0] sm:$0xff] }
  0x33   : > { %4219 = vmatprep.subr.bf16.mxu1 %v4422_v31  ;;  %v3411_v31 = vld [vmem:[%s5006_s9 + $0x20] sm:$0xff] }
  0x34   : > { %516 = vperm.xlu1 %4400, %v425_v23   ;;  %1003 = vmatpush1.bf16.msra.mxu0 %v4424_v32 }
  0x35   : > { %513 = vperm.xlu0 %4399, %v424_v26   ;;  %1421 = vmatprep.subr.bf16.mxu0 %v4427_v35  ;;  %v3409_v26 = vld [vmem:[%s5006_s9 + $0x10] sm:$0xff] }
  0x36   : > { %4227 = vmatpush1.bf16.msra.mxu1 %v4424_v32  ;;  %v4430_v32 = vld [vmem:[%s7303_s3 + $0x14] ss:$8 sps:$4 sm:$0xff]  }
  0x37   : > { %3118 = vmatprep.subr.bf16.mxu1 %v7307_v1 }
  0x38   : > { %522 = vperm.xlu1 %4400, %v427_v29   ;;  %v4425_v29 = vld [vmem:[%s7303_s3] ss:$8 sps:$4 sm:$0xff]  }
  0x39   : > { %519 = vperm.xlu0 %4399, %v426_v30   ;;  %v3412_v30 = vld [vmem:[%s5006_s9 + $0x28] sm:$0xff] }
  0x3c   : > { %528 = vperm.xlu1 %4400, %v429_v33   ;;  %v4786_v33 = vmov 1.0|1.0  }
  0x3d   : > { %525 = vperm.xlu0 %4399, %v428_v34  }
  0x40   : > { %534 = vperm.xlu1 %4400, %v431_v36   ;;  %v4428_v36 = vld [vmem:[%s7303_s3 + $0x10] ss:$8 sps:$4 sm:$0xff]  }
  0x41   : > { %531 = vperm.xlu0 %4399, %v430_v37   ;;  %v3414_v37 = vld [vmem:[%s5006_s9 + $0x38] sm:$0xff] }
  0x44   : > { %540 = vperm.xlu1 %4400, %v433_v38   ;;  %v4433_v38 = vld [vmem:[%s7303_s3 + $0x24] ss:$8 sps:$4 sm:$0xff]  }
  0x45   : > { %537 = vperm.xlu0 %4399, %v432_v39   ;;  %v3413_v39 = vld [vmem:[%s5006_s9 + $0x30] sm:$0xff] }
  0x48   : > { %546 = vperm.xlu1 %4400, %v435_v40  }
  0x49   : > { %543 = vperm.xlu0 %4399, %v434_v41  }
  0x4c   : > { %552 = vperm.xlu1 %4400, %v437_v42   ;;  %v3416_v42 = vld [vmem:[%s5006_s9 + $0x48] sm:$0xff] }
  0x4d   : > { %549 = vperm.xlu0 %4399, %v436_v43   ;;  %v4431_v43 = vld [vmem:[%s7303_s3 + $0x20] ss:$8 sps:$4 sm:$0xff]  }
  0x50   : > { %558 = vperm.xlu1 %4400, %v439_v44   ;;  %v3415_v44 = vld [vmem:[%s5006_s9 + $0x40] sm:$0xff] }
  0x51   : > { %555 = vperm.xlu0 %4399, %v438_v45   ;;  %v4436_v45 = vld [vmem:[%s7303_s3 + $0x34] ss:$8 sps:$4 sm:$0xff]  }
  0x54   : > { %564 = vperm.xlu1 %4400, %v441_v46  }
  0x55   : > { %561 = vperm.xlu0 %4399, %v440_v47  }
  0x58   : > { %570 = vperm.xlu1 %4400, %v443_v48   ;;  %v3418_v48 = vld [vmem:[%s5006_s9 + $0x58] sm:$0xff] }
  0x59   : > { %567 = vperm.xlu0 %4399, %v442_v49   ;;  %v4434_v49 = vld [vmem:[%s7303_s3 + $0x30] ss:$8 sps:$4 sm:$0xff]  }
  0x5c   : > { %576 = vperm.xlu1 %4400, %v445_v50   ;;  %v3417_v50 = vld [vmem:[%s5006_s9 + $0x50] sm:$0xff] }
  0x5d   : > { %573 = vperm.xlu0 %4399, %v444_v51   ;;  %v4439_v51 = vld [vmem:[%s7303_s3 + $0x44] ss:$8 sps:$4 sm:$0xff]  }
  0x60   : > { %582 = vperm.xlu1 %4400, %v447_v52  }
  0x61   : > { %579 = vperm.xlu0 %4399, %v446_v53  }
  0x64   : > { %588 = vperm.xlu1 %4400, %v449_v54   ;;  %v3420_v54 = vld [vmem:[%s5006_s9 + $0x68] sm:$0xff] }
  0x65   : > { %585 = vperm.xlu0 %4399, %v448_v55   ;;  %v4437_v55 = vld [vmem:[%s7303_s3 + $0x40] ss:$8 sps:$4 sm:$0xff]  }
  0x68   : > { %594 = vperm.xlu1 %4400, %v451_v56   ;;  %v3419_v56 = vld [vmem:[%s5006_s9 + $0x60] sm:$0xff] }
  0x69   : > { %591 = vperm.xlu0 %4399, %v450_v57   ;;  %v4442_v57 = vld [vmem:[%s7303_s3 + $0x54] ss:$8 sps:$4 sm:$0xff]  }
  0x6c   : > { %600 = vperm.xlu1 %4400, %v453_v58  }
  0x6d   : > { %597 = vperm.xlu0 %4399, %v452_v59  }
  0x70   : > { %606 = vperm.xlu1 %4400, %v455_v60   ;;  %v3422_v60 = vld [vmem:[%s5006_s9 + $0x78] sm:$0xff] }
  0x71   : > { %603 = vperm.xlu0 %4399, %v454_v61   ;;  %v4440_v61 = vld [vmem:[%s7303_s3 + $0x50] ss:$8 sps:$4 sm:$0xff]  }
  0x74   : > { %612 = vperm.xlu1 %4400, %v457_v62   ;;  %v3421_v62 = vld [vmem:[%s5006_s9 + $0x70] sm:$0xff] }
  0x75   : > { %609 = vperm.xlu0 %4399, %v456_v63   ;;  %v4445_v63 = vld [vmem:[%s7303_s3 + $0x64] ss:$8 sps:$4 sm:$0xff]  }
  0x78   : > { %618 = vperm.xlu1 %4400, %v459_v0  }
  0x79   : > { %615 = vperm.xlu0 %4399, %v458_v2  }
  0x7c   : > { %624 = vperm.xlu1 %4400, %v461_v3   ;;  %v3424_v3 = vld [vmem:[%s5006_s9 + $0x88] sm:$0xff] }
  0x7d   : > { %621 = vperm.xlu0 %4399, %v460_v4   ;;  %v4443_v4 = vld [vmem:[%s7303_s3 + $0x60] ss:$8 sps:$4 sm:$0xff]  }
  0x80   : > { %630 = vperm.xlu1 %4400, %v463_v5   ;;  %v3423_v5 = vld [vmem:[%s5006_s9 + $0x80] sm:$0xff] }
  0x81   : > { %627 = vperm.xlu0 %4399, %v462_v6   ;;  %v4448_v6 = vld [vmem:[%s7303_s3 + $0x74] ss:$8 sps:$4 sm:$0xff]  }
  0x84   : > { %636 = vperm.xlu1 %4400, %v465_v7  }
  0x85   : > { %633 = vperm.xlu0 %4399, %v464_v8  }
  0x88   : > { %642 = vperm.xlu1 %4400, %v467_v9   ;;  %v3426_v9 = vld [vmem:[%s5006_s9 + $0x98] sm:$0xff] }
  0x89   : > { %639 = vperm.xlu0 %4399, %v466_v10   ;;  %v4446_v10 = vld [vmem:[%s7303_s3 + $0x70] ss:$8 sps:$4 sm:$0xff]  }
  0x8c   : > { %648 = vperm.xlu1 %4400, %v469_v11   ;;  %v3425_v11 = vld [vmem:[%s5006_s9 + $0x90] sm:$0xff] }
  0x8d   : > { %645 = vperm.xlu0 %4399, %v468_v12  }
  0x90   : > { %654 = vperm.xlu1 %4400, %v471_v13  }
  0x91   : > { %651 = vperm.xlu0 %4399, %v470_v14   ;;  %v3428_v14 = vld [vmem:[%s5006_s9 + $0xa8] sm:$0xff] }
  0x94   : > { %660 = vperm.xlu1 %4400, %v473_v15   ;;  %v3427_v15 = vld [vmem:[%s5006_s9 + $0xa0] sm:$0xff] }
  0x95   : > { %657 = vperm.xlu0 %4399, %v472_v16  }
  0x98   : > { %666 = vperm.xlu1 %4400, %v475_v17  }
  0x99   : > { %663 = vperm.xlu0 %4399, %v474_v18   ;;  %v3430_v18 = vld [vmem:[%s5006_s9 + $0xb8] sm:$0xff] }
  0x9b   : > { %v484_v22 = vpop.permute.xlu1 %483 }
  0x9c   : > { %v478_v23 = vpop.permute.xlu0 %477  ;;  %3478 = vperm.xlu1 %4400, %v3408_v20   ;;  %vm670_vm3 = vcmp.eq.s32.totalorder %v484_v22, %v5010_v24  ;;  %v3432_v22 = vld [vmem:[%s5006_s9 + $0xc8] sm:$0xff] }
  0x9d   : > { %3473 = vperm.xlu0 %4399, %v3407_v21   ;;  %vm668_vm1 = vcmp.eq.s32.totalorder %v478_v23, %v5010_v24  ;;  %v3431_v23 = vld [vmem:[%s5006_s9 + $0xc0] sm:$0xff] }
  0x9f   : > { %v487_v27 = vpop.permute.xlu1 %486 }
  0xa0   : > { %v481_v28 = vpop.permute.xlu0 %480  ;;  %3488 = vperm.xlu1 %4400, %v3410_v25   ;;  %vm671_vm4 = vcmp.eq.s32.totalorder %v487_v27, %v5010_v24  ;;  %v3434_v27 = vld [vmem:[%s5006_s9 + $0xd8] sm:$0xff] }
  0xa1   : > { %vm669_vm0 = vcmp.eq.s32.totalorder %v481_v28, %v5010_v24  ;;  %3483 = vperm.xlu0 %4399, %v3409_v26   ;;  %vm4112_vm5 = vmpackc.low %vm671_vm4, %vm670_vm3  ;;  %v3433_v28 = vld [vmem:[%s5006_s9 + $0xd0] sm:$0xff] }
  0xa2   : > { %vm4110_vm2 = vmpackc.low %vm669_vm0, %vm668_vm1 }
  0xa3   : > { %4111 = vmatmul.mubr.msk.bf16.vlgmr.msra.gmra.mrb[0].mxu0 %vm4110_vm2, %v4786_v33  ;;  %v493_v34 = vpop.permute.xlu1 %492 }
  0xa4   : > { %v490_v35 = vpop.permute.xlu0 %489  ;;  %1422 = vmatpush1.bf16.msra.mxu0 %v4425_v29  ;;  %3498 = vperm.xlu1 %4400, %v3412_v30   ;;  %vm673_vm6 = vcmp.eq.s32.totalorder %v493_v34, %v5010_v24 }
  0xa5   : > { %3493 = vperm.xlu0 %4399, %v3411_v31   ;;  %1030 = vmatprep.mubr.bf16.mxu0 %v7307_v1  ;;  %vm672_vm7 = vcmp.eq.s32.totalorder %v490_v35, %v5010_v24  ;;  %v3436_v31 = vld [vmem:[%s5006_s9 + $0xe8] sm:$0xff] }
  0xa6   : > { %1423 = vmatprep.subr.bf16.mxu0 %v4430_v32  ;;  %vm4114_vm8 = vmpackc.low %vm673_vm6, %vm672_vm7  ;;  %v3435_v32 = vld [vmem:[%s5006_s9 + $0xe0] sm:$0xff] }
  0xa7   : > { %v499_v40 = vpop.permute.xlu1 %498 }
  0xa8   : > { %v496_v41 = vpop.permute.xlu0 %495  ;;  %3508 = vperm.xlu1 %4400, %v3414_v37   ;;  %1424 = vmatpush1.bf16.msra.mxu0 %v4428_v36  ;;  %vm675_vm9 = vcmp.eq.s32.totalorder %v499_v40, %v5010_v24  ;;  %v3438_v36 = vld [vmem:[%s5006_s9 + $0xf8] sm:$0xff]  ;;  %v3437_v37 = vld [vmem:[%s5006_s9 + $0xf0] sm:$0xff] }
  0xa9   : > { %3503 = vperm.xlu0 %4399, %v3413_v39   ;;  %1425 = vmatprep.subr.bf16.mxu0 %v4433_v38  ;;  %vm674_vm10 = vcmp.eq.s32.totalorder %v496_v41, %v5010_v24  ;;  %v3440_v41 = vld [vmem:[%s5006_s9 + $0x108] sm:$0xff] }
  0xaa   : > { %vm4116_vm11 = vmpackc.low %vm675_vm9, %vm674_vm10 }
  0xab   : > { %4113 = vmatmul.mubr.msk.bf16.gmra.mrb[4].mxu0 %vm4112_vm5, %v4786_v33  ;;  %v5045_v46 = vpop.permute.xlu1 %504 }
  0xac   : > { %v5047_v47 = vpop.permute.xlu0 %501  ;;  %3518 = vperm.xlu1 %4400, %v3416_v42   ;;  %1040 = vmatprep.mubr.bf16.mxu0 %v7307_v1  ;;  %vm677_vm12 = vcmp.eq.s32.totalorder %v5045_v46, %v5010_v24  ;;  %v3439_v42 = vld [vmem:[%s5006_s9 + $0x100] sm:$0xff]  ;;  %v3441_v46 = vld [vmem:[%s5006_s9 + $0x110] sm:$0xff] }
  0xad   : > { %3513 = vperm.xlu0 %4399, %v3415_v44   ;;  %1426 = vmatpush1.bf16.msra.mxu0 %v4431_v43  ;;  %vm676_vm13 = vcmp.eq.s32.totalorder %v5047_v47, %v5010_v24 }
  0xae   : > { %1427 = vmatprep.subr.bf16.mxu0 %v4436_v45  ;;  %vm4118_vm14 = vmpackc.low %vm677_vm12, %vm676_vm13  ;;  %v3442_v45 = vld [vmem:[%s5006_s9 + $0x118] sm:$0xff] }
  0xaf   : > { %v5060_v52 = vpop.permute.xlu1 %510 }
  0xb0   : > { %v5062_v53 = vpop.permute.xlu0 %507  ;;  %3528 = vperm.xlu1 %4400, %v3418_v48   ;;  %vm679_vm15 = vcmp.eq.s32.totalorder %v5060_v52, %v5010_v24  ;;  %v3445_v52 = vld [vmem:[%s5006_s9 + $0x130] sm:$0xff] }
  0xb1   : > { %3523 = vperm.xlu0 %4399, %v3417_v50   ;;  %1428 = vmatpush1.bf16.msra.mxu0 %v4434_v49  ;;  %vm678_vm0 = vcmp.eq.s32.totalorder %v5062_v53, %v5010_v24  ;;  %v3444_v49 = vld [vmem:[%s5006_s9 + $0x128] sm:$0xff]  ;;  %v3443_v50 = vld [vmem:[%s5006_s9 + $0x120] sm:$0xff] }
  0xb2   : > { %1429 = vmatprep.subr.bf16.mxu0 %v4439_v51  ;;  %vm4120_vm1 = vmpackc.low %vm679_vm15, %vm678_vm0  ;;  %v3446_v51 = vld [vmem:[%s5006_s9 + $0x138] sm:$0xff] }
  0xb3   : > { %4115 = vmatmul.mubr.msk.bf16.gmra.mrb[8].mxu0 %vm4114_vm8, %v4786_v33  ;;  %v5073_v58 = vpop.permute.xlu1 %516 }
  0xb4   : > { %v5075_v59 = vpop.permute.xlu0 %513  ;;  %3538 = vperm.xlu1 %4400, %v3420_v54   ;;  %1050 = vmatprep.mubr.bf16.mxu0 %v7307_v1  ;;  %vm681_vm2 = vcmp.eq.s32.totalorder %v5073_v58, %v5010_v24  ;;  %v3449_v58 = vld [vmem:[%s5006_s9 + $0x150] sm:$0xff] }
  0xb5   : > { %3533 = vperm.xlu0 %4399, %v3419_v56   ;;  %1430 = vmatpush1.bf16.msra.mxu0 %v4437_v55  ;;  %vm680_vm3 = vcmp.eq.s32.totalorder %v5075_v59, %v5010_v24  ;;  %v3448_v55 = vld [vmem:[%s5006_s9 + $0x148] sm:$0xff]  ;;  %v3447_v56 = vld [vmem:[%s5006_s9 + $0x140] sm:$0xff] }
  0xb6   : > { %1431 = vmatprep.subr.bf16.mxu0 %v4442_v57  ;;  %vm4122_vm4 = vmpackc.low %vm681_vm2, %vm680_vm3  ;;  %v3450_v57 = vld [vmem:[%s5006_s9 + $0x158] sm:$0xff] }
  0xb7   : > { %v5088_v0 = vpop.permute.xlu1 %522 }
  0xb8   : > { %v5090_v2 = vpop.permute.xlu0 %519  ;;  %3548 = vperm.xlu1 %4400, %v3422_v60   ;;  %vm683_vm5 = vcmp.eq.s32.totalorder %v5088_v0, %v5010_v24  ;;  %v3453_v0 = vld [vmem:[%s5006_s9 + $0x170] sm:$0xff] }
  0xb9   : > { %3543 = vperm.xlu0 %4399, %v3421_v62   ;;  %1432 = vmatpush1.bf16.msra.mxu0 %v4440_v61  ;;  %vm682_vm6 = vcmp.eq.s32.totalorder %v5090_v2, %v5010_v24  ;;  %v3452_v61 = vld [vmem:[%s5006_s9 + $0x168] sm:$0xff]  ;;  %v3451_v62 = vld [vmem:[%s5006_s9 + $0x160] sm:$0xff] }
  0xba   : > { %1433 = vmatprep.subr.bf16.mxu0 %v4445_v63  ;;  %vm4124_vm10 = vmpackc.low %vm683_vm5, %vm682_vm6  ;;  %v3454_v63 = vld [vmem:[%s5006_s9 + $0x178] sm:$0xff] }
  0xbb   : > { %4117 = vmatmul.mubr.msk.bf16.gmra.mrb[12].mxu0 %vm4116_vm11, %v4786_v33  ;;  %v5101_v7 = vpop.permute.xlu1 %528 }
  0xbc   : > { %v5103_v8 = vpop.permute.xlu0 %525  ;;  %3558 = vperm.xlu1 %4400, %v3424_v3   ;;  %1060 = vmatprep.mubr.bf16.mxu0 %v7307_v1 }
  0xbd   : > { %3553 = vperm.xlu0 %4399, %v3423_v5   ;;  %1434 = vmatpush1.bf16.msra.mxu0 %v4443_v4  ;;  %vm684_vm15 = vcmp.eq.s32.totalorder %v5103_v8, %v5010_v24  ;;  %v3456_v4 = vld [vmem:[%s5006_s9 + $0x188] sm:$0xff]  ;;  %v3455_v5 = vld [vmem:[%s5006_s9 + $0x180] sm:$0xff] }
  0xbe   : > { %1435 = vmatprep.subr.bf16.mxu0 %v4448_v6  ;;  %v3458_v6 = vld [vmem:[%s5006_s9 + $0x198] sm:$0xff] }
  0xbf   : > { %v5115_v12 = vpop.permute.xlu1 %534 }
  0xc0   : > { %v5117_v13 = vpop.permute.xlu0 %531  ;;  %3568 = vperm.xlu1 %4400, %v3426_v9  }
  0xc1   : > { %3563 = vperm.xlu0 %4399, %v3425_v11   ;;  %1436 = vmatpush1.bf16.msra.mxu0 %v4446_v10  ;;  %vm686_vm5 = vcmp.eq.s32.totalorder %v5117_v13, %v5010_v24  ;;  %v3460_v10 = vld [vmem:[%s5006_s9 + $0x1a8] sm:$0xff]  ;;  %v3459_v11 = vld [vmem:[%s5006_s9 + $0x1a0] sm:$0xff]  ;;  %v3461_v13 = vld [vmem:[%s5006_s9 + $0x1b0] sm:$0xff] }
  0xc3   : > { %4119 = vmatmul.mubr.msk.bf16.gmra.mrb[16].mxu0 %vm4118_vm14, %v4786_v33  ;;  %v5122_v16 = vpop.permute.xlu1 %540  ;;  %vm685_vm14 = vcmp.eq.s32.totalorder %v5101_v7, %v5010_v24  ;;  %v3457_v7 = vld [vmem:[%s5006_s9 + $0x190] sm:$0xff] }
  0xc4   : > { %v5124_v17 = vpop.permute.xlu0 %537  ;;  %3578 = vperm.xlu1 %4400, %v3428_v14   ;;  %1070 = vmatprep.mubr.bf16.mxu0 %v7307_v1  ;;  %vm4126_vm0 = vmpackc.low %vm685_vm14, %vm684_vm15 }
  0xc5   : > { %3573 = vperm.xlu0 %4399, %v3427_v15  }
  0xc7   : > { %v5133_v20 = vpop.permute.xlu1 %546 }
  0xc8   : > { %v5135_v21 = vpop.permute.xlu0 %543  ;;  %3588 = vperm.xlu1 %4400, %v3430_v18   ;;  %v3466_v18 = vld [vmem:[%s5006_s9 + $0x1d8] sm:$0xff] }
  0xc9   : > { %3583 = vperm.xlu0 %4399, %v3429_v19   ;;  %v3465_v19 = vld [vmem:[%s5006_s9 + $0x1d0] sm:$0xff] }
  0xcb   : > { %4121 = vmatmul.mubr.msk.bf16.gmra.mrb[20].mxu0 %vm4120_vm1, %v4786_v33  ;;  %v5140_v25 = vpop.permute.xlu1 %552 }
  0xcc   : > { %v5142_v26 = vpop.permute.xlu0 %549  ;;  %3598 = vperm.xlu1 %4400, %v3432_v22   ;;  %1080 = vmatprep.mubr.bf16.mxu0 %v7307_v1  ;;  %v3468_v22 = vld [vmem:[%s5006_s9 + $0x1e8] sm:$0xff] }
  0xcd   : > { %3593 = vperm.xlu0 %4399, %v3431_v23   ;;  %v3467_v23 = vld [vmem:[%s5006_s9 + $0x1e0] sm:$0xff] }
  0xcf   : > { %v5151_v29 = vpop.permute.xlu1 %558 }
  0xd0   : > { %v5153_v30 = vpop.permute.xlu0 %555  ;;  %3608 = vperm.xlu1 %4400, %v3434_v27  }
  0xd1   : > { %3603 = vperm.xlu0 %4399, %v3433_v28  }
  0xd3   : > { %4123 = vmatmul.mubr.msk.bf16.gmra.mrb[24].mxu0 %vm4122_vm4, %v4786_v33  ;;  %v5158_v34 = vpop.permute.xlu1 %564  ;;  %vm687_vm4 = vcmp.eq.s32.totalorder %v5115_v12, %v5010_v24  ;;  %v3462_v12 = vld [vmem:[%s5006_s9 + $0x1b8] sm:$0xff] }
  0xd4   : > { %v5160_v35 = vpop.permute.xlu0 %561  ;;  %3618 = vperm.xlu1 %4400, %v3436_v31   ;;  %1090 = vmatprep.mubr.bf16.mxu0 %v7307_v1  ;;  %vm4128_vm6 = vmpackc.low %vm687_vm4, %vm686_vm5  ;;  %v299_v31 = vld [vmem:[%s5290_s17 + $0x8] sm:$0xff] }
  0xd5   : > { %3613 = vperm.xlu0 %4399, %v3435_v32   ;;  %v4450_v32 = vld [vmem:[%s7305_s5 + $0x8] sm:$0xff]  }
  0xd7   : > { %v571_v38 = vpop.permute.xlu1 %570 }
  0xd8   : > { %v568_v39 = vpop.permute.xlu0 %567  ;;  %vm699_vm7 = vcmp.eq.s32.totalorder %v571_v38, %v5010_v24  ;;  %3628 = vperm.xlu1 %4400, %v3438_v36   ;;  %v301_v38 = vld [vmem:[%s5290_s17 + $0x18] sm:$0xff] }
  0xd9   : > { %vm698_vm8 = vcmp.eq.s32.totalorder %v568_v39, %v5010_v24  ;;  %3623 = vperm.xlu0 %4399, %v3437_v37   ;;  %v300_v37 = vld [vmem:[%s5290_s17 + $0x10] sm:$0xff] }
  0xda   : > { %vm5171_vm9 = vmpackc.low %vm699_vm7, %vm698_vm8  ;;  %v4451_v39 = vld [vmem:[%s7305_s5 + $0x10] sm:$0xff]  }
  0xdb   : > { %4125 = vmatmul.mubr.msk.bf16.gmra.mrb[28].mxu0 %vm4124_vm10, %v4786_v33  ;;  %v577_v43 = vpop.permute.xlu1 %576 }
  0xdc   : > { %v574_v44 = vpop.permute.xlu0 %573  ;;  %vm701_vm11 = vcmp.eq.s32.totalorder %v577_v43, %v5010_v24  ;;  %3638 = vperm.xlu1 %4400, %v3440_v41   ;;  %1100 = vmatprep.mubr.bf16.mxu0 %v7307_v1  ;;  %v302_v43 = vld [vmem:[%s5290_s17 + $0x20] sm:$0xff] }
  0xdd   : > { %vm700_vm12 = vcmp.eq.s32.totalorder %v574_v44, %v5010_v24  ;;  %3633 = vperm.xlu0 %4399, %v3439_v42   ;;  %v363_v42 = vpack.c.bf16 %v301_v38, %v300_v37  ;;  %v303_v44 = vld [vmem:[%s5290_s17 + $0x28] sm:$0xff]  ;;  %v326_v37 = vld [vmem:[%s5290_s17 + $0xe0] sm:$0xff] }
  0xde   : > { %vm4142_vm13 = vmpackc.low %vm701_vm11, %vm700_vm12  ;;  %vm689_vm11 = vcmp.eq.s32.totalorder %v5122_v16, %v5010_v24  ;;  %vm688_vm12 = vcmp.eq.s32.totalorder %v5124_v17, %v5010_v24  ;;  %v3464_v16 = vld [vmem:[%s5006_s9 + $0x1c8] sm:$0xff]  ;;  %v3463_v17 = vld [vmem:[%s5006_s9 + $0x1c0] sm:$0xff] }
  0xdf   : > { %4143 = vmatmul.mubr.msk.bf16.vlgmr.msra.gmra.mrb[0].mxu1 %vm4142_vm13, %v4786_v33  ;;  %v583_v47 = vpop.permute.xlu1 %582  ;;  %vm4130_vm13 = vmpackc.low %vm689_vm11, %vm688_vm12  ;;  %v327_v38 = vld [vmem:[%s5290_s17 + $0xe8] sm:$0xff] }
  0xe0   : > { %v580_v48 = vpop.permute.xlu0 %579  ;;  %1190 = vmatprep.mubr.bf16.mxu1 %v7307_v1  ;;  %3648 = vperm.xlu1 %4400, %v3442_v45   ;;  %vm703_vm1 = vcmp.eq.s32.totalorder %v583_v47, %v5010_v24  ;;  %v364_v47 = vpack.c.bf16 %v303_v44, %v302_v43  ;;  %v4464_v44 = vld [vmem:[%s7305_s5 + $0x78] sm:$0xff]  }
  0xe1   : > { %3643 = vperm.xlu0 %4399, %v3441_v46   ;;  %vm702_vm2 = vcmp.eq.s32.totalorder %v580_v48, %v5010_v24  ;;  %v4452_v48 = vld [vmem:[%s7305_s5 + $0x18] sm:$0xff]  }
  0xe2   : > { %vm4144_vm3 = vmpackc.low %vm703_vm1, %vm702_vm2  ;;  %vm691_vm1 = vcmp.eq.s32.totalorder %v5133_v20, %v5010_v24  ;;  %vm690_vm2 = vcmp.eq.s32.totalorder %v5135_v21, %v5010_v24 }
  0xe3   : > { %4127 = vmatmul.mubr.msk.bf16.gmra.mrb[32].mxu0 %vm4126_vm0, %v4786_v33  ;;  %v589_v53 = vpop.permute.xlu1 %588 }
  0xe4   : > { %3658 = vperm.xlu1 %4400, %v3444_v49   ;;  %1110 = vmatprep.mubr.bf16.mxu0 %v7307_v1  ;;  %v586_v54 = vpop.permute.xlu0 %585  ;;  %vm705_vm7 = vcmp.eq.s32.totalorder %v589_v53, %v5010_v24  ;;  %v304_v49 = vld [vmem:[%s5290_s17 + $0x30] sm:$0xff] }
  0xe5   : > { %3653 = vperm.xlu0 %4399, %v3443_v50   ;;  %vm704_vm8 = vcmp.eq.s32.totalorder %v586_v54, %v5010_v24  ;;  %v305_v50 = vld [vmem:[%s5290_s17 + $0x38] sm:$0xff]  ;;  %v4453_v54 = vld [vmem:[%s7305_s5 + $0x20] sm:$0xff]  }
  0xe6   : > { %vm4146_vm10 = vmpackc.low %vm705_vm7, %vm704_vm8  ;;  %vm693_vm7 = vcmp.eq.s32.totalorder %v5140_v25, %v5010_v24  ;;  %vm692_vm8 = vcmp.eq.s32.totalorder %v5142_v26, %v5010_v24  ;;  %v3470_v25 = vld [vmem:[%s5006_s9 + $0x1f8] sm:$0xff]  ;;  %v3469_v26 = vld [vmem:[%s5006_s9 + $0x1f0] sm:$0xff]  ;;  %v365_v53 = vpack.c.bf16 %v305_v50, %v304_v49 }
  0xe7   : > { %4145 = vmatmul.mubr.msk.bf16.gmra.mrb[4].mxu1 %vm4144_vm3, %v4786_v33  ;;  %v595_v59 = vpop.permute.xlu1 %594  ;;  %vm4132_vm3 = vmpackc.low %vm691_vm1, %vm690_vm2  ;;  %v333_v49 = vld [vmem:[%s5290_s17 + $0x118] sm:$0xff] }
  0xe8   : > { %1200 = vmatprep.mubr.bf16.mxu1 %v7307_v1  ;;  %3668 = vperm.xlu1 %4400, %v3446_v51   ;;  %v592_v60 = vpop.permute.xlu0 %591  ;;  %vm707_vm14 = vcmp.eq.s32.totalorder %v595_v59, %v5010_v24 }
  0xe9   : > { %3663 = vperm.xlu0 %4399, %v3445_v52   ;;  %vm706_vm15 = vcmp.eq.s32.totalorder %v592_v60, %v5010_v24  ;;  %v4454_v60 = vld [vmem:[%s7305_s5 + $0x28] sm:$0xff]  }
  0xea   : > { %vm4148_vm0 = vmpackc.low %vm707_vm14, %vm706_vm15  ;;  %vm695_vm14 = vcmp.eq.s32.totalorder %v5151_v29, %v5010_v24  ;;  %vm694_vm15 = vcmp.eq.s32.totalorder %v5153_v30, %v5010_v24  ;;  %v4449_v29 = vld [vmem:[%s7305_s5] sm:$0xff]  }
  0xeb   : > { %4129 = vmatmul.mubr.msk.bf16.gmra.mrb[36].mxu0 %vm4128_vm6, %v4786_v33  ;;  %v601_v2 = vpop.permute.xlu1 %600  ;;  %3119 = vmatpush1.bf16.msra.mxu1 %v4449_v29  ;;  %v298_v30 = vld [vmem:[%s5290_s17] sm:$0xff]  ;;  %v323_v29 = vld [vmem:[%s5290_s17 + $0xc8] sm:$0xff] }
  0xec   : > { %3678 = vperm.xlu1 %4400, %v3448_v55   ;;  %1120 = vmatprep.mubr.bf16.mxu0 %v7307_v1  ;;  %v598_v3 = vpop.permute.xlu0 %597  ;;  %vm709_vm4 = vcmp.eq.s32.totalorder %v601_v2, %v5010_v24  ;;  %v362_v36 = vpack.c.bf16 %v299_v31, %v298_v30  ;;  %v306_v55 = vld [vmem:[%s5290_s17 + $0x40] sm:$0xff]  ;;  %v324_v31 = vld [vmem:[%s5290_s17 + $0xd0] sm:$0xff] }
  0xed   : > { %3673 = vperm.xlu0 %4399, %v3447_v56   ;;  %vm708_vm5 = vcmp.eq.s32.totalorder %v598_v3, %v5010_v24  ;;  %3120 = vmatprep.subr.bf16.mxu1 %v7307_v1  ;;  %v307_v56 = vld [vmem:[%s5290_s17 + $0x48] sm:$0xff]  ;;  %v4455_v3 = vld [vmem:[%s7305_s5 + $0x30] sm:$0xff]  }
  0xee   : > { %vm4150_vm6 = vmpackc.low %vm709_vm4, %vm708_vm5  ;;  %vm697_vm4 = vcmp.eq.s32.totalorder %v5158_v34, %v5010_v24  ;;  %vm696_vm5 = vcmp.eq.s32.totalorder %v5160_v35, %v5010_v24  ;;  %v366_v59 = vpack.c.bf16 %v307_v56, %v306_v55 }
  0xef   : > { %4147 = vmatmul.mubr.msk.bf16.gmra.mrb[8].mxu1 %vm4146_vm10, %v4786_v33  ;;  %v607_v8 = vpop.permute.xlu1 %606  ;;  %vm4134_vm10 = vmpackc.low %vm693_vm7, %vm692_vm8 }
  0xf0   : > { %1210 = vmatprep.mubr.bf16.mxu1 %v7307_v1  ;;  %3688 = vperm.xlu1 %4400, %v3450_v57   ;;  %v604_v9 = vpop.permute.xlu0 %603  ;;  %vm711_vm11 = vcmp.eq.s32.totalorder %v607_v8, %v5010_v24 }
  0xf1   : > { %3683 = vperm.xlu0 %4399, %v3449_v58   ;;  %vm710_vm12 = vcmp.eq.s32.totalorder %v604_v9, %v5010_v24  ;;  %3121 = vmatpush1.bf16.msra.mxu1 %v4450_v32  ;;  %v4456_v9 = vld [vmem:[%s7305_s5 + $0x38] sm:$0xff]  }
  0xf2   : > { %3122 = vmatprep.subr.bf16.mxu1 %v7307_v1  ;;  %v325_v32 = vld [vmem:[%s5290_s17 + $0xd8] sm:$0xff] }
  0xf3   : > { %4131 = vmatmul.mubr.msk.bf16.gmra.mrb[40].mxu0 %vm4130_vm13, %v4786_v33  ;;  %vm4152_vm13 = vmpackc.low %vm711_vm11, %vm710_vm12  ;;  %v613_v14 = vpop.permute.xlu1 %612 }
  0xf4   : > { %3698 = vperm.xlu1 %4400, %v3452_v61   ;;  %1130 = vmatprep.mubr.bf16.mxu0 %v7307_v1  ;;  %v610_v15 = vpop.permute.xlu0 %609  ;;  %vm713_vm1 = vcmp.eq.s32.totalorder %v613_v14, %v5010_v24  ;;  %v308_v61 = vld [vmem:[%s5290_s17 + $0x50] sm:$0xff]  ;;  %v315_v14 = vld [vmem:[%s5290_s17 + $0x88] sm:$0xff] }
  0xf5   : > { %3693 = vperm.xlu0 %4399, %v3451_v62   ;;  %vm712_vm2 = vcmp.eq.s32.totalorder %v610_v15, %v5010_v24  ;;  %3123 = vmatpush1.bf16.msra.mxu1 %v4451_v39  ;;  %v309_v62 = vld [vmem:[%s5290_s17 + $0x58] sm:$0xff]  ;;  %v376_v39 = vpack.c.bf16 %v327_v38, %v326_v37  ;;  %v348_v37 = vld [vmem:[%s5290_s17 + $0x190] sm:$0xff] }
  0xf6   : > { %3124 = vmatprep.subr.bf16.mxu1 %v7307_v1  ;;  %v367_v2 = vpack.c.bf16 %v309_v62, %v308_v61  ;;  %v349_v38 = vld [vmem:[%s5290_s17 + $0x198] sm:$0xff] }
  0xf7   : > { %4149 = vmatmul.mubr.msk.bf16.gmra.mrb[12].mxu1 %vm4148_vm0, %v4786_v33  ;;  %vm4136_vm0 = vmpackc.low %vm695_vm14, %vm694_vm15  ;;  %v619_v20 = vpop.permute.xlu1 %618 }
  0xf8   : > { %1220 = vmatprep.mubr.bf16.mxu1 %v7307_v1  ;;  %3708 = vperm.xlu1 %4400, %v3454_v63   ;;  %v616_v21 = vpop.permute.xlu0 %615  ;;  %vm715_vm7 = vcmp.eq.s32.totalorder %v619_v20, %v5010_v24  ;;  %v318_v20 = vld [vmem:[%s5290_s17 + $0xa0] sm:$0xff] }
  0xf9   : > { %3703 = vperm.xlu0 %4399, %v3453_v0   ;;  %vm714_vm8 = vcmp.eq.s32.totalorder %v616_v21, %v5010_v24  ;;  %3125 = vmatpush1.bf16.msra.mxu1 %v4452_v48  ;;  %v319_v21 = vld [vmem:[%s5290_s17 + $0xa8] sm:$0xff]  ;;  %v332_v48 = vld [vmem:[%s5290_s17 + $0x110] sm:$0xff] }
  0xfa   : > { %3126 = vmatprep.subr.bf16.mxu1 %v7307_v1  ;;  %v379_v50 = vpack.c.bf16 %v333_v49, %v332_v48 }
  0xfb   : > { %4133 = vmatmul.mubr.msk.bf16.gmra.mrb[44].mxu0 %vm4132_vm3, %v4786_v33  ;;  %vm4154_vm3 = vmpackc.low %vm713_vm1, %vm712_vm2  ;;  %v625_v27 = vpop.permute.xlu1 %624 }
  0xfc   : > { %3718 = vperm.xlu1 %4400, %v3456_v4   ;;  %1140 = vmatprep.mubr.bf16.mxu0 %v7307_v1  ;;  %v622_v28 = vpop.permute.xlu0 %621  ;;  %vm717_vm11 = vcmp.eq.s32.totalorder %v625_v27, %v5010_v24  ;;  %v310_v4 = vld [vmem:[%s5290_s17 + $0x60] sm:$0xff] }
  0xfd   : > { %3713 = vperm.xlu0 %4399, %v3455_v5   ;;  %vm716_vm12 = vcmp.eq.s32.totalorder %v622_v28, %v5010_v24  ;;  %3127 = vmatpush1.bf16.msra.mxu1 %v4453_v54  ;;  %v311_v5 = vld [vmem:[%s5290_s17 + $0x68] sm:$0xff]  ;;  %v322_v28 = vld [vmem:[%s5290_s17 + $0xc0] sm:$0xff] }
  0xfe   : > { %3128 = vmatprep.subr.bf16.mxu1 %v7307_v1  ;;  %v368_v8 = vpack.c.bf16 %v311_v5, %v310_v4  ;;  %v374_v30 = vpack.c.bf16 %v323_v29, %v322_v28  ;;  %v346_v29 = vld [vmem:[%s5290_s17 + $0x180] sm:$0xff] }
  0xff   : > { %4151 = vmatmul.mubr.msk.bf16.gmra.mrb[16].mxu1 %vm4150_vm6, %v4786_v33  ;;  %vm4138_vm6 = vmpackc.low %vm697_vm4, %vm696_vm5  ;;  %v631_v34 = vpop.permute.xlu1 %630 }
 0x100   : > { %1230 = vmatprep.mubr.bf16.mxu1 %v7307_v1  ;;  %3728 = vperm.xlu1 %4400, %v3458_v6   ;;  %v628_v35 = vpop.permute.xlu0 %627 }
 0x101   : > { %3723 = vperm.xlu0 %4399, %v3457_v7   ;;  %vm718_vm14 = vcmp.eq.s32.totalorder %v628_v35, %v5010_v24  ;;  %3129 = vmatpush1.bf16.msra.mxu1 %v4454_v60  ;;  %v4461_v35 = vld [vmem:[%s7305_s5 + $0x60] sm:$0xff]  }
 0x102   : > { %3130 = vmatprep.subr.bf16.mxu1 %v7307_v1 }
 0x103   : > { %4135 = vmatmul.mubr.msk.bf16.gmra.mrb[48].mxu0 %vm4134_vm10, %v4786_v33  ;;  %vm4156_vm10 = vmpackc.low %vm715_vm7, %vm714_vm8  ;;  %v637_v40 = vpop.permute.xlu1 %636 }
 0x104   : > { %3738 = vperm.xlu1 %4400, %v3460_v10   ;;  %1150 = vmatprep.mubr.bf16.mxu0 %v7307_v1  ;;  %v634_v41 = vpop.permute.xlu0 %633  ;;  %v312_v10 = vld [vmem:[%s5290_s17 + $0x70] sm:$0xff] }
 0x105   : > { %3733 = vperm.xlu0 %4399, %v3459_v11   ;;  %vm720_vm1 = vcmp.eq.s32.totalorder %v634_v41, %v5010_v24  ;;  %3131 = vmatpush1.bf16.msra.mxu1 %v4455_v3  ;;  %v313_v11 = vld [vmem:[%s5290_s17 + $0x78] sm:$0xff]  ;;  %v328_v41 = vld [vmem:[%s5290_s17 + $0xf0] sm:$0xff]  ;;  %v339_v3 = vld [vmem:[%s5290_s17 + $0x148] sm:$0xff] }
 0x106   : > { %3132 = vmatprep.subr.bf16.mxu1 %v7307_v1 }
 0x107   : > { %4153 = vmatmul.mubr.msk.bf16.gmra.mrb[20].mxu1 %vm4152_vm13, %v4786_v33  ;;  %vm4158_vm13 = vmpackc.low %vm717_vm11, %vm716_vm12  ;;  %v643_v45 = vpop.permute.xlu1 %642 }
 0x108   : > { %1240 = vmatprep.mubr.bf16.mxu1 %v7307_v1  ;;  %3748 = vperm.xlu1 %4400, %v3462_v12   ;;  %v640_v46 = vpop.permute.xlu0 %639  ;;  %v369_v12 = vpack.c.bf16 %v313_v11, %v312_v10  ;;  %v341_v10 = vld [vmem:[%s5290_s17 + $0x158] sm:$0xff] }
 0x109   : > { %3743 = vperm.xlu0 %4399, %v3461_v13   ;;  %vm722_vm4 = vcmp.eq.s32.totalorder %v640_v46, %v5010_v24  ;;  %3133 = vmatpush1.bf16.msra.mxu1 %v4456_v9  ;;  %v4457_v13 = vld [vmem:[%s7305_s5 + $0x40] sm:$0xff]   ;;  %v331_v46 = vld [vmem:[%s5290_s17 + $0x108] sm:$0xff]  ;;  %v340_v9 = vld [vmem:[%s5290_s17 + $0x150] sm:$0xff] }
 0x10a   : > { %3134 = vmatprep.subr.bf16.mxu1 %v7307_v1  ;;  %v383_v11 = vpack.c.bf16 %v341_v10, %v340_v9 }
 0x10b   : > { %4137 = vmatmul.mubr.msk.bf16.gmra.mrb[52].mxu0 %vm4136_vm0, %v4786_v33  ;;  %vm721_vm0 = vcmp.eq.s32.totalorder %v637_v40, %v5010_v24  ;;  %v649_v51 = vpop.permute.xlu1 %648  ;;  %v4463_v40 = vld [vmem:[%s7305_s5 + $0x70] sm:$0xff]  }
 0x10c   : > { %3758 = vperm.xlu1 %4400, %v3464_v16   ;;  %1160 = vmatprep.mubr.bf16.mxu0 %v7307_v1  ;;  %vm4162_vm2 = vmpackc.low %vm721_vm0, %vm720_vm1  ;;  %v646_v52 = vpop.permute.xlu0 %645  ;;  %v316_v16 = vld [vmem:[%s5290_s17 + $0x90] sm:$0xff] }
 0x10d   : > { %3753 = vperm.xlu0 %4399, %v3463_v17   ;;  %vm724_vm7 = vcmp.eq.s32.totalorder %v646_v52, %v5010_v24  ;;  %3135 = vmatpush1.bf16.msra.mxu1 %v4457_v13  ;;  %v317_v17 = vld [vmem:[%s5290_s17 + $0x98] sm:$0xff]  ;;  %v335_v52 = vld [vmem:[%s5290_s17 + $0x128] sm:$0xff] }
 0x10e   : > { %3136 = vmatprep.subr.bf16.mxu1 %v7307_v1 }
 0x10f   : > { %4155 = vmatmul.mubr.msk.bf16.gmra.mrb[24].mxu1 %vm4154_vm3, %v4786_v33  ;;  %vm723_vm3 = vcmp.eq.s32.totalorder %v643_v45, %v5010_v24  ;;  %v655_v57 = vpop.permute.xlu1 %654  ;;  %v330_v45 = vld [vmem:[%s5290_s17 + $0x100] sm:$0xff] }
 0x110   : > { %1250 = vmatprep.mubr.bf16.mxu1 %v7307_v1  ;;  %3768 = vperm.xlu1 %4400, %v3466_v18   ;;  %vm4164_vm5 = vmpackc.low %vm723_vm3, %vm722_vm4  ;;  %v652_v58 = vpop.permute.xlu0 %651  ;;  %v371_v18 = vpack.c.bf16 %v317_v17, %v316_v16 }
 0x111   : > { %3763 = vperm.xlu0 %4399, %v3465_v19   ;;  %vm726_vm11 = vcmp.eq.s32.totalorder %v652_v58, %v5010_v24  ;;  %v4459_v19 = vld [vmem:[%s7305_s5 + $0x50] sm:$0xff]  }
 0x112   : > { %v336_v58 = vld [vmem:[%s5290_s17 + $0x130] sm:$0xff] }
 0x113   : > { %4139 = vmatmul.mubr.msk.bf16.gmra.mrb[56].mxu0 %vm4138_vm6, %v4786_v33  ;;  %vm725_vm6 = vcmp.eq.s32.totalorder %v649_v51, %v5010_v24  ;;  %v661_v63 = vpop.permute.xlu1 %660  ;;  %v334_v51 = vld [vmem:[%s5290_s17 + $0x120] sm:$0xff] }
 0x114   : > { %3778 = vperm.xlu1 %4400, %v3468_v22   ;;  %1170 = vmatprep.mubr.bf16.mxu0 %v7307_v1  ;;  %vm4166_vm8 = vmpackc.low %vm725_vm6, %vm724_vm7  ;;  %v658_v0 = vpop.permute.xlu0 %657  ;;  %v372_v22 = vpack.c.bf16 %v319_v21, %v318_v20  ;;  %v344_v21 = vld [vmem:[%s5290_s17 + $0x170] sm:$0xff] }
 0x115   : > { %3773 = vperm.xlu0 %4399, %v3467_v23   ;;  %v4460_v23 = vld [vmem:[%s7305_s5 + $0x58] sm:$0xff]  }
 0x117   : > { %4157 = vmatmul.mubr.msk.bf16.gmra.mrb[28].mxu1 %vm4156_vm10, %v4786_v33  ;;  %vm727_vm10 = vcmp.eq.s32.totalorder %v655_v57, %v5010_v24  ;;  %v667_v6 = vpop.permute.xlu1 %666 }
 0x118   : > { %1260 = vmatprep.mubr.bf16.mxu1 %v7307_v1  ;;  %3788 = vperm.xlu1 %4400, %v3470_v25   ;;  %vm4168_vm12 = vmpackc.low %vm727_vm10, %vm726_vm11  ;;  %v664_v7 = vpop.permute.xlu0 %663  ;;  %v320_v25 = vld [vmem:[%s5290_s17 + $0xb0] sm:$0xff] }
 0x119   : > { %3783 = vperm.xlu0 %4399, %v3469_v26   ;;  %vm730_vm0 = vcmp.eq.s32.totalorder %v664_v7, %v5010_v24  ;;  %v321_v26 = vld [vmem:[%s5290_s17 + $0xb8] sm:$0xff] }
 0x11a   : > { %v373_v27 = vpack.c.bf16 %v321_v26, %v320_v25 }
 0x11b   : > { %4141 = vmatmul.mubr.msk.bf16.gmra.mrb[60].mxu0 %vm5171_vm9, %v4786_v33  ;;  %vm719_vm9 = vcmp.eq.s32.totalorder %v631_v34, %v5010_v24  ;;  %v375_v34 = vpack.c.bf16 %v325_v32, %v324_v31 }
 0x11c   : > { %1453 = vmatprep.mubr.bf16.mxu0 %v7307_v1  ;;  %vm4160_vm15 = vmpackc.low %vm719_vm9, %vm718_vm14  ;;  %vm728_vm9 = vcmp.eq.s32.totalorder %v658_v0, %v5010_v24 }
 0x11f   : > { %4159 = vmatmul.mubr.msk.bf16.gmra.mrb[32].mxu1 %vm4158_vm13, %v4786_v33  ;;  %vm729_vm13 = vcmp.eq.s32.totalorder %v661_v63, %v5010_v24 }
 0x120   : > { %1270 = vmatprep.mubr.bf16.mxu1 %v7307_v1  ;;  %vm4170_vm14 = vmpackc.low %vm729_vm13, %vm728_vm9 }
 0x123   : > { %1454 = vmatmul.mubr.bf16.vlgmr.msra.gmra.mrb[0].mxu0 %v362_v36  ;;  %v4462_v36 = vld [vmem:[%s7305_s5 + $0x68] sm:$0xff]  }
 0x124   : > { %1463 = vmatprep.mubr.bf16.mxu0 %v7307_v1 }
 0x127   : > { %4161 = vmatmul.mubr.msk.bf16.gmra.mrb[36].mxu1 %vm4160_vm15, %v4786_v33  ;;  %vm731_vm15 = vcmp.eq.s32.totalorder %v667_v6, %v5010_v24  ;;  %v314_v24 = vld [vmem:[%s5290_s17 + $0x80] sm:$0xff] }
 0x128   : > { %1280 = vmatprep.mubr.bf16.mxu1 %v7307_v1  ;;  %vm4172_vm1 = vmpackc.low %vm731_vm15, %vm730_vm0  ;;  %v370_v15 = vpack.c.bf16 %v315_v14, %v314_v24 }
 0x12b   : > { %1464 = vmatmul.mubr.bf16.gmra.mrb[4].mxu0 %v363_v42  ;;  %v329_v42 = vld [vmem:[%s5290_s17 + $0xf8] sm:$0xff] }
 0x12c   : > { %1473 = vmatprep.mubr.bf16.mxu0 %v7307_v1  ;;  %v377_v43 = vpack.c.bf16 %v329_v42, %v328_v41 }
 0x12f   : > { %4163 = vmatmul.mubr.msk.bf16.gmra.mrb[40].mxu1 %vm4162_vm2, %v4786_v33 }
 0x130   : > { %1290 = vmatprep.mubr.bf16.mxu1 %v7307_v1 }
 0x133   : > { %1474 = vmatmul.mubr.bf16.gmra.mrb[8].mxu0 %v364_v47  ;;  %v378_v47 = vpack.c.bf16 %v331_v46, %v330_v45  ;;  %v351_v45 = vld [vmem:[%s5290_s17 + $0x1a8] sm:$0xff] }
 0x134   : > { %1483 = vmatprep.mubr.bf16.mxu0 %v7307_v1 }
 0x137   : > { %4165 = vmatmul.mubr.msk.bf16.gmra.mrb[44].mxu1 %vm4164_vm5, %v4786_v33 }
 0x138   : > { %1300 = vmatprep.mubr.bf16.mxu1 %v7307_v1 }
 0x13b   : > { %1484 = vmatmul.mubr.bf16.gmra.mrb[12].mxu0 %v365_v53  ;;  %v380_v53 = vpack.c.bf16 %v335_v52, %v334_v51  ;;  %v352_v51 = vld [vmem:[%s5290_s17 + $0x1b0] sm:$0xff]  ;;  %v353_v52 = vld [vmem:[%s5290_s17 + $0x1b8] sm:$0xff] }
 0x13c   : > { %1493 = vmatprep.mubr.bf16.mxu0 %v7307_v1 }
 0x13f   : > { %4167 = vmatmul.mubr.msk.bf16.gmra.mrb[48].mxu1 %vm4166_vm8, %v4786_v33 }
 0x140   : > { %1310 = vmatprep.mubr.bf16.mxu1 %v7307_v1 }
 0x143   : > { %1494 = vmatmul.mubr.bf16.gmra.mrb[16].mxu0 %v366_v59  ;;  %v337_v59 = vld [vmem:[%s5290_s17 + $0x138] sm:$0xff] }
 0x144   : > { %1503 = vmatprep.mubr.bf16.mxu0 %v7307_v1  ;;  %v381_v60 = vpack.c.bf16 %v337_v59, %v336_v58 }
 0x147   : > { %4169 = vmatmul.mubr.msk.bf16.gmra.mrb[52].mxu1 %vm4168_vm12, %v4786_v33 }
 0x148   : > { %1320 = vmatprep.mubr.bf16.mxu1 %v7307_v1 }
 0x14b   : > { %1504 = vmatmul.mubr.bf16.gmra.mrb[20].mxu0 %v367_v2  ;;  %v338_v2 = vld [vmem:[%s5290_s17 + $0x140] sm:$0xff] }
 0x14c   : > { %1513 = vmatprep.mubr.bf16.mxu0 %v7307_v1  ;;  %v382_v4 = vpack.c.bf16 %v339_v3, %v338_v2 }
 0x14f   : > { %4171 = vmatmul.mubr.msk.bf16.gmra.mrb[56].mxu1 %vm4170_vm14, %v4786_v33 }
 0x150   : > { %1330 = vmatprep.mubr.bf16.mxu1 %v7307_v1 }
 0x153   : > { %1514 = vmatmul.mubr.bf16.gmra.mrb[24].mxu0 %v368_v8 }
 0x154   : > { %1523 = vmatprep.mubr.bf16.mxu0 %v7307_v1 }
 0x157   : > { %4173 = vmatmul.mubr.msk.bf16.gmra.mrb[60].mxu1 %vm4172_vm1, %v4786_v33  ;;  %v4458_v33 = vld [vmem:[%s7305_s5 + $0x48] sm:$0xff]  }
 0x158   : > { %3137 = vmatpush1.bf16.msra.mxu1 %v4458_v33  ;;  %v343_v33 = vld [vmem:[%s5290_s17 + $0x168] sm:$0xff] }
 0x159   : > { %3138 = vmatprep.subr.bf16.mxu1 %v7307_v1 }
 0x15b   : > { %1524 = vmatmul.mubr.bf16.gmra.mrb[28].mxu0 %v369_v12 }
 0x15c   : > { %1533 = vmatprep.mubr.bf16.mxu0 %v7307_v1  ;;  %3139 = vmatpush1.bf16.msra.mxu1 %v4459_v19 }
 0x15d   : > { %3140 = vmatprep.subr.bf16.mxu1 %v7307_v1 }
 0x160   : > { %3141 = vmatpush1.bf16.msra.mxu1 %v4460_v23 }
 0x161   : > { %3142 = vmatprep.subr.bf16.mxu1 %v7307_v1 }
 0x163   : > { %1534 = vmatmul.mubr.bf16.gmra.mrb[32].mxu0 %v370_v15  ;;  %v342_v15 = vld [vmem:[%s5290_s17 + $0x160] sm:$0xff] }
 0x164   : > { %1543 = vmatprep.mubr.bf16.mxu0 %v7307_v1  ;;  %3143 = vmatpush1.bf16.msra.mxu1 %v4461_v35  ;;  %v384_v16 = vpack.c.bf16 %v343_v33, %v342_v15 }
 0x165   : > { %3144 = vmatprep.subr.bf16.mxu1 %v7307_v1 }
 0x168   : > { %3145 = vmatpush1.bf16.msra.mxu1 %v4462_v36 }
 0x169   : > { %3146 = vmatprep.subr.bf16.mxu1 %v7307_v1 }
 0x16b   : > { %1544 = vmatmul.mubr.bf16.gmra.mrb[36].mxu0 %v371_v18 }
 0x16c   : > { %1553 = vmatprep.mubr.bf16.mxu0 %v7307_v1  ;;  %3147 = vmatpush1.bf16.msra.mxu1 %v4463_v40 }
 0x16d   : > { %3148 = vmatprep.subr.bf16.mxu1 %v7307_v1 }
 0x170   : > { %3149 = vmatpush1.bf16.msra.mxu1 %v4464_v44  ;;  %v350_v44 = vld [vmem:[%s5290_s17 + $0x1a0] sm:$0xff] }
 0x171   : > { %v388_v46 = vpack.c.bf16 %v351_v45, %v350_v44 }
 0x173   : > { %1554 = vmatmul.mubr.bf16.gmra.mrb[40].mxu0 %v372_v22  ;;  %v345_v22 = vld [vmem:[%s5290_s17 + $0x178] sm:$0xff] }
 0x174   : > { %1563 = vmatprep.mubr.bf16.mxu0 %v7307_v1  ;;  %v385_v23 = vpack.c.bf16 %v345_v22, %v344_v21 }
 0x17b   : > { %1564 = vmatmul.mubr.bf16.gmra.mrb[44].mxu0 %v373_v27 }
 0x17c   : > { %1573 = vmatprep.mubr.bf16.mxu0 %v7307_v1 }
 0x183   : > { %1574 = vmatmul.mubr.bf16.gmra.mrb[48].mxu0 %v374_v30  ;;  %v347_v30 = vld [vmem:[%s5290_s17 + $0x188] sm:$0xff] }
 0x184   : > { %1583 = vmatprep.mubr.bf16.mxu0 %v7307_v1  ;;  %v386_v31 = vpack.c.bf16 %v347_v30, %v346_v29 }
 0x18b   : > { %1584 = vmatmul.mubr.bf16.gmra.mrb[52].mxu0 %v375_v34 }
 0x18c   : > { %1593 = vmatprep.mubr.bf16.mxu0 %v7307_v1 }
 0x193   : > { %1594 = vmatmul.mubr.bf16.gmra.mrb[56].mxu0 %v376_v39  ;;  %v387_v39 = vpack.c.bf16 %v349_v38, %v348_v37  ;;  %v354_v37 = vld [vmem:[%s5290_s17 + $0x1c0] sm:$0xff]  ;;  %v355_v38 = vld [vmem:[%s5290_s17 + $0x1c8] sm:$0xff] }
 0x194   : > { %1603 = vmatprep.mubr.bf16.mxu0 %v7307_v1 }
 0x19b   : > { %1604 = vmatmul.mubr.bf16.gmra.mrb[60].mxu0 %v377_v43 }
 0x19c   : > { %1613 = vmatprep.mubr.bf16.mxu0 %v7307_v1 }
 0x1a3   : > { %1614 = vmatmul.mubr.bf16.gmra.mrb[64].mxu0 %v378_v47 }
 0x1a4   : > { %1623 = vmatprep.mubr.bf16.mxu0 %v7307_v1 }
 0x1ab   : > { %1624 = vmatmul.mubr.bf16.gmra.mrb[68].mxu0 %v379_v50 }
 0x1ac   : > { %1633 = vmatprep.mubr.bf16.mxu0 %v7307_v1 }
 0x1b2   : > { %v5443_v54 = vpop.f32.mrb[0].mxu1 }
 0x1b3   : > { %v5445_v55 = vpop.f32.mrb[1].mxu1  ;;  %1634 = vmatmul.mubr.bf16.gmra.mrb[72].mxu0 %v380_v53 }
 0x1b4   : > { %v5447_v56 = vpop.f32.mrb[2].mxu1  ;;  %1643 = vmatprep.mubr.bf16.mxu0 %v7307_v1 }
 0x1b5   : > { %v5449_v57 = vpop.f32.mrb[3].mxu1 }
 0x1ba   : > { %v5454_v61 = vpop.f32.mrb[4].mxu1 }
 0x1bb   : > { %v5456_v62 = vpop.f32.mrb[5].mxu1  ;;  %1644 = vmatmul.mubr.bf16.gmra.mrb[76].mxu0 %v381_v60  ;;  %v389_v60 = vpack.c.bf16 %v353_v52, %v352_v51 }
 0x1bc   : > { %v5458_v63 = vpop.f32.mrb[6].mxu1  ;;  %1653 = vmatprep.mubr.bf16.mxu0 %v7307_v1 }
 0x1bd   : > { %v5460_v0 = vpop.f32.mrb[7].mxu1 }
 0x1c2   : > { %v5465_v5 = vpop.f32.mrb[8].mxu1 }
 0x1c3   : > { %v5467_v6 = vpop.f32.mrb[9].mxu1  ;;  %1654 = vmatmul.mubr.bf16.gmra.mrb[80].mxu0 %v382_v4 }
 0x1c4   : > { %v5469_v7 = vpop.f32.mrb[10].mxu1  ;;  %1663 = vmatprep.mubr.bf16.mxu0 %v7307_v1 }
 0x1c5   : > { %v5471_v8 = vpop.f32.mrb[11].mxu1 }
 0x1ca   : > { %v5476_v12 = vpop.f32.mrb[12].mxu1 }
 0x1cb   : > { %v5478_v13 = vpop.f32.mrb[13].mxu1  ;;  %1664 = vmatmul.mubr.bf16.gmra.mrb[84].mxu0 %v383_v11 }
 0x1cc   : > { %v5480_v24 = vpop.f32.mrb[14].mxu1  ;;  %1673 = vmatprep.mubr.bf16.mxu0 %v7307_v1 }
 0x1cd   : > { %v5482_v14 = vpop.f32.mrb[15].mxu1 }
 0x1ce   : > { %7314 = vst [vmem:[#allocation5_spill] sm:$0xff] %v5482_v14 }
 0x1d2   : > { %v5487_v17 = vpop.f32.mrb[16].mxu1 }
 0x1d3   : > { %7315 = vst [vmem:[#allocation6_spill] sm:$0xff] %v5487_v17  ;;  %v5489_v18 = vpop.f32.mrb[17].mxu1  ;;  %1674 = vmatmul.mubr.bf16.gmra.mrb[88].mxu0 %v384_v16 }
 0x1d4   : > { %7316 = vst [vmem:[#allocation7_spill] sm:$0xff] %v5489_v18  ;;  %v5491_v19 = vpop.f32.mrb[18].mxu1  ;;  %1683 = vmatprep.mubr.bf16.mxu0 %v7307_v1 }
 0x1d5   : > { %7317 = vst [vmem:[#allocation8_spill] sm:$0xff] %v5491_v19  ;;  %v5493_v20 = vpop.f32.mrb[19].mxu1 }
 0x1d6   : > { %7318 = vst [vmem:[#allocation9_spill] sm:$0xff] %v5493_v20 }
 0x1da   : > { %v5498_v25 = vpop.f32.mrb[20].mxu1 }
 0x1db   : > { %7319 = vst [vmem:[#allocation10_spill] sm:$0xff] %v5498_v25  ;;  %v5500_v26 = vpop.f32.mrb[21].mxu1  ;;  %1684 = vmatmul.mubr.bf16.gmra.mrb[92].mxu0 %v385_v23 }
 0x1dc   : > { %7320 = vst [vmem:[#allocation11_spill] sm:$0xff] %v5500_v26  ;;  %v5502_v27 = vpop.f32.mrb[22].mxu1  ;;  %1693 = vmatprep.mubr.bf16.mxu0 %v7307_v1 }
 0x1dd   : > { %7321 = vst [vmem:[#allocation12_spill] sm:$0xff] %v5502_v27  ;;  %v5504_v28 = vpop.f32.mrb[23].mxu1 }
 0x1de   : > { %7322 = vst [vmem:[#allocation13_spill] sm:$0xff] %v5504_v28 }
 0x1e2   : > { %v5509_v32 = vpop.f32.mrb[24].mxu1 }
 0x1e3   : > { %7323 = vst [vmem:[#allocation14_spill] sm:$0xff] %v5509_v32  ;;  %v5511_v34 = vpop.f32.mrb[25].mxu1  ;;  %1694 = vmatmul.mubr.bf16.gmra.mrb[96].mxu0 %v386_v31 }
 0x1e4   : > { %7324 = vst [vmem:[#allocation15_spill] sm:$0xff] %v5511_v34  ;;  %v5513_v35 = vpop.f32.mrb[26].mxu1  ;;  %1703 = vmatprep.mubr.bf16.mxu0 %v7307_v1 }
 0x1e5   : > { %7325 = vst [vmem:[#allocation16_spill] sm:$0xff] %v5513_v35  ;;  %v5515_v36 = vpop.f32.mrb[27].mxu1 }
 0x1e6   : > { %7326 = vst [vmem:[#allocation17_spill] sm:$0xff] %v5515_v36 }
 0x1ea   : > { %v5520_v40 = vpop.f32.mrb[28].mxu1 }
 0x1eb   : > { %7327 = vst [vmem:[#allocation18_spill] sm:$0xff] %v5520_v40  ;;  %v5522_v41 = vpop.f32.mrb[29].mxu1  ;;  %1704 = vmatmul.mubr.bf16.gmra.mrb[100].mxu0 %v387_v39 }
 0x1ec   : > { %7328 = vst [vmem:[#allocation19_spill] sm:$0xff] %v5522_v41  ;;  %v5524_v42 = vpop.f32.mrb[30].mxu1  ;;  %1713 = vmatprep.mubr.bf16.mxu0 %v7307_v1 }
 0x1ed   : > { %7329 = vst [vmem:[#allocation20_spill] sm:$0xff] %v5524_v42  ;;  %v5526_v43 = vpop.f32.mrb[31].mxu1 }
 0x1ee   : > { %7330 = vst [vmem:[#allocation21_spill] sm:$0xff] %v5526_v43 }
 0x1f2   : > { %v5531_v47 = vpop.f32.mrb[32].mxu1 }
 0x1f3   : > { %7331 = vst [vmem:[#allocation22_spill] sm:$0xff] %v5531_v47  ;;  %v5533_v48 = vpop.f32.mrb[33].mxu1  ;;  %1714 = vmatmul.mubr.bf16.gmra.mrb[104].mxu0 %v388_v46 }
 0x1f4   : > { %7332 = vst [vmem:[#allocation23_spill] sm:$0xff] %v5533_v48  ;;  %v5535_v49 = vpop.f32.mrb[34].mxu1  ;;  %1723 = vmatprep.mubr.bf16.mxu0 %v7307_v1 }
 0x1f5   : > { %7333 = vst [vmem:[#allocation24_spill] sm:$0xff] %v5535_v49  ;;  %v5537_v50 = vpop.f32.mrb[35].mxu1 }
 0x1f6   : > { %7334 = vst [vmem:[#allocation25_spill] sm:$0xff] %v5537_v50  ;;  %v5542_v53 = vpop.f32.mrb[0].mxu0 }
 0x1f7   : > { %v1774_v58 = vmul.f32 %v5542_v53, %v5542_v53  ;;  %v5546_v59 = vpop.f32.mrb[1].mxu0 }
 0x1f8   : > { %v1775_v2 = vmul.f32 %v5546_v59, %v5546_v59  ;;  %v5550_v3 = vpop.f32.mrb[2].mxu0 }
 0x1f9   : > { %v1902_v4 = vmul.f32 %v1774_v58, %v5542_v53  ;;  %v1776_v9 = vmul.f32 %v5550_v3, %v5550_v3  ;;  %v5555_v10 = vpop.f32.mrb[3].mxu0 }
 0x1fa   : > { %v5557_v11 = vpop.f32.mrb[36].mxu1  ;;  %v1903_v15 = vmul.f32 %v1775_v2, %v5546_v59  ;;  %v1777_v33 = vmul.f32 %v5555_v10, %v5555_v10 }
 0x1fb   : > { %7335 = vst [vmem:[#allocation26_spill] sm:$0xff] %v5557_v11  ;;  %v5562_v16 = vpop.f32.mrb[37].mxu1  ;;  %v2030_v21 = vmul.f32 0.044715, %v1902_v4  ;;  %v1904_v22 = vmul.f32 %v1776_v9, %v5550_v3  ;;  %1724 = vmatmul.mubr.bf16.gmra.mrb[108].mxu0 %v389_v60  ;;  %v390_v4 = vpack.c.bf16 %v355_v38, %v354_v37 }
 0x1fc   : > { %7336 = vst [vmem:[#allocation27_spill] sm:$0xff] %v5562_v16  ;;  %v5565_v23 = vpop.f32.mrb[38].mxu1  ;;  %v2031_v29 = vmul.f32 0.044715, %v1903_v15  ;;  %v1905_v30 = vmul.f32 %v1777_v33, %v5555_v10  ;;  %1733 = vmatprep.mubr.bf16.mxu0 %v7307_v1 }
 0x1fd   : > { %7337 = vst [vmem:[#allocation28_spill] sm:$0xff] %v5565_v23  ;;  %v5568_v31 = vpop.f32.mrb[39].mxu1  ;;  %v2158_v39 = vadd.f32 %v2030_v21, %v5542_v53  ;;  %v2032_v44 = vmul.f32 0.044715, %v1904_v22 }
 0x1fe   : > { %7338 = vst [vmem:[#allocation29_spill] sm:$0xff] %v5568_v31  ;;  %v2159_v45 = vadd.f32 %v2031_v29, %v5546_v59  ;;  %v2033_v46 = vmul.f32 0.044715, %v1905_v30  ;;  %v5575_v51 = vpop.f32.mrb[4].mxu0  ;;  %v357_v31 = vld [vmem:[%s5290_s17 + $0x1d8] sm:$0xff] }
 0x1ff   : > { %v2286_v52 = vmul.f32 0.7978846, %v2158_v39  ;;  %v2160_v58 = vadd.f32 %v2032_v44, %v5550_v3  ;;  %v1778_v60 = vmul.f32 %v5575_v51, %v5575_v51  ;;  %v5580_v2 = vpop.f32.mrb[5].mxu0 }
 0x200   : > { %v2287_v9 = vmul.f32 0.7978846, %v2159_v45  ;;  %v2161_v15 = vadd.f32 %v2033_v46, %v5555_v10  ;;  %v1779_v33 = vmul.f32 %v5580_v2, %v5580_v2  ;;  %v5585_v21 = vpop.f32.mrb[6].mxu0 }
 0x201   : > { %4465 = vtanh.f32 %v2286_v52  ;;  %v2288_v22 = vmul.f32 0.7978846, %v2160_v58  ;;  %v1906_v29 = vmul.f32 %v1778_v60, %v5575_v51  ;;  %v1780_v30 = vmul.f32 %v5585_v21, %v5585_v21  ;;  %v5590_v39 = vpop.f32.mrb[7].mxu0 }
 0x202   : > { %v5592_v44 = vpop.f32.mrb[40].mxu1  ;;  %4467 = vtanh.f32 %v2287_v9  ;;  %v2289_v37 = vmul.f32 0.7978846, %v2161_v15  ;;  %v1907_v38 = vmul.f32 %v1779_v33, %v5580_v2  ;;  %v1781_v45 = vmul.f32 %v5590_v39, %v5590_v39  ;;  %v356_v33 = vld [vmem:[%s5290_s17 + $0x1d0] sm:$0xff] }
 0x203   : > { %7339 = vst [vmem:[#allocation30_spill] sm:$0xff] %v5592_v44  ;;  %v5597_v46 = vpop.f32.mrb[41].mxu1  ;;  %4469 = vtanh.f32 %v2288_v22  ;;  %v2034_v52 = vmul.f32 0.044715, %v1906_v29  ;;  %v1908_v58 = vmul.f32 %v1780_v30, %v5585_v21  ;;  %1734 = vmatmul.mubr.bf16.gmra.mrb[112].mxu0 %v390_v4  ;;  %v7343_v15 = vmov 0  }
 0x204   : > { %7340 = vst [vmem:[#allocation31_spill] sm:$0xff] %v5597_v46  ;;  %v5600_v60 = vpop.f32.mrb[42].mxu1  ;;  %4471 = vtanh.f32 %v2289_v37  ;;  %v2035_v1 = vmul.f32 0.044715, %v1907_v38  ;;  %v1909_v9 = vmul.f32 %v1781_v45, %v5590_v39  ;;  %1743 = vmatprep.mubr.bf16.mxu0 %v7343_v15 }
 0x205   : > { %7341 = vst [vmem:[#allocation32_spill] sm:$0xff] %v5600_v60  ;;  %v5603_v44 = vpop.f32.mrb[43].mxu1  ;;  %v2162_v22 = vadd.f32 %v2034_v52, %v5575_v51  ;;  %v2036_v29 = vmul.f32 0.044715, %v1908_v58  ;;  %v391_v60 = vpack.c.bf16 %v357_v31, %v356_v33  ;;  %v5623_v58 = vld [vmem:[%s5290_s17 + $0x1e0] sm:$0xff] }
 0x206   : > { %7342 = vst [vmem:[#allocation33_spill] sm:$0xff] %v5603_v44  ;;  %v2163_v30 = vadd.f32 %v2035_v1, %v5580_v2  ;;  %v2037_v4 = vmul.f32 0.044715, %v1909_v9  ;;  %v5610_v46 = vpop.f32.mrb[8].mxu0  ;;  %v5626_v9 = vld [vmem:[%s5290_s17 + $0x1e8] sm:$0xff] }
 0x207   : > { %v2290_v37 = vmul.f32 0.7978846, %v2162_v22  ;;  %v2164_v38 = vadd.f32 %v2036_v29, %v5585_v21  ;;  %v1782_v45 = vmul.f32 %v5610_v46, %v5610_v46  ;;  %v5615_v44 = vpop.f32.mrb[9].mxu0 }
 0x208   : > { %v2291_v23 = vmul.f32 0.7978846, %v2163_v30  ;;  %v2165_v16 = vadd.f32 %v2037_v4, %v5590_v39  ;;  %v1783_v52 = vmul.f32 %v5615_v44, %v5615_v44  ;;  %v5620_v1 = vpop.f32.mrb[10].mxu0 }
 0x209   : > { %4473 = vtanh.f32 %v2290_v37  ;;  %v2292_v22 = vmul.f32 0.7978846, %v2164_v38  ;;  %v1910_v29 = vmul.f32 %v1782_v45, %v5610_v46  ;;  %v1784_v31 = vmul.f32 %v5620_v1, %v5620_v1  ;;  %v5631_v33 = vpop.f32.mrb[11].mxu0  ;;  %v5641_v37 = vld [vmem:[%s5290_s17 + $0x1f0] sm:$0xff]  ;;  %v5644_v38 = vld [vmem:[%s5290_s17 + $0x1f8] sm:$0xff]  ;;  %s275_s17 = sand.u32 1, %s4775_s22  }
 0x20a   : > { %v5633_v30 = vpop.f32.mrb[44].mxu1  ;;  %4475 = vtanh.f32 %v2291_v23  ;;  %v2293_v4 = vmul.f32 0.7978846, %v2165_v16  ;;  %v1911_v11 = vmul.f32 %v1783_v52, %v5615_v44  ;;  %v1785_v50 = vmul.f32 %v5631_v33, %v5631_v33  ;;  %s4023_s19 = sshll.u32 %s275_s17, 9  ;;  %s7259_s25 = scalar_lea.sflag [#allocation3], %s275_s17 }
 0x20b   : > { %7344 = vst [vmem:[#allocation34_spill] sm:$0xff] %v5633_v30  ;;  %v5638_v49 = vpop.f32.mrb[45].mxu1  ;;  %v4466_v45 = vpop.eup %4465  ;;  %4477 = vtanh.f32 %v2292_v22  ;;  %v2038_v48 = vmul.f32 0.044715, %v1910_v29  ;;  %v1912_v47 = vmul.f32 %v1784_v31, %v5620_v1  ;;  %1744 = vmatmul.mubr.bf16.gmra.mrb[116].mxu0 %v391_v60  ;;  %v392_v16 = vpack.c.bf16 %v5626_v9, %v5623_v58  ;;  %s7069_s20 = scalar_lea.vmem [#allocation2], %s4023_s19 }
 0x20c   : > { %7345 = vst [vmem:[#allocation35_spill] sm:$0xff] %v5638_v49  ;;  %v5647_v30 = vpop.f32.mrb[46].mxu1  ;;  %v4468_v23 = vpop.eup %4467  ;;  %v2542_v52 = vadd.f32 1.0, %v4466_v45  ;;  %4479 = vtanh.f32 %v2293_v4  ;;  %v2039_v43 = vmul.f32 0.044715, %v1911_v11  ;;  %v1913_v49 = vmul.f32 %v1785_v50, %v5631_v33  ;;  %1753 = vmatprep.mubr.bf16.mxu0 %v7343_v15  ;;  %s3933_s28 = sshll.u32 %s7069_s20, 4  ;;  %s7253_s28 = int_to_ptr.vmem [resolvable:$true] %s3933_s28 }
 0x20d   : > { %7346 = vst [vmem:[#allocation36_spill] sm:$0xff] %v5647_v30  ;;  %v5652_v42 = vpop.f32.mrb[47].mxu1  ;;  %v4470_v22 = vpop.eup %4469  ;;  %v2543_v29 = vadd.f32 1.0, %v4468_v23  ;;  %v2166_v31 = vadd.f32 %v2038_v48, %v5610_v46  ;;  %v2040_v60 = vmul.f32 0.044715, %v1912_v47  ;;  %s4721_s12 = scalar_lea.vmem %s7253_s28, 8192  ;;  %p4728_p0 = scmp.lt.s32.totalorder %s7253_s28, %s4726_s14 }
 0x20e   : > { %7347 = vst [vmem:[#allocation37_spill] sm:$0xff] %v5652_v42  ;;  %v4472_v41 = vpop.eup %4471  ;;  %v2670_v58 = vmul.f32 0.5, %v2542_v52  ;;  %v2544_v9 = vadd.f32 1.0, %v4470_v22  ;;  %v2167_v4 = vadd.f32 %v2039_v43, %v5615_v44  ;;  %v2041_v11 = vmul.f32 0.044715, %v1913_v49  ;;  %v5659_v45 = vpop.f32.mrb[12].mxu0  ;;  %p4722_p11 = scmp.ne.s32.totalorder %s7253_s28, %s4721_s12  ;;  %p4729_p1 = scmp.lt.s32.totalorder %s4727_s15, %s4721_s12 }
 0x20f   : > { %v2671_v50 = vmul.f32 0.5, %v2543_v29  ;;  %v2545_v42 = vadd.f32 1.0, %v4472_v41  ;;  %v2294_v40 = vmul.f32 0.7978846, %v2166_v31  ;;  %v2168_v36 = vadd.f32 %v2040_v60, %v5620_v1  ;;  %v5662_v23 = vpop.f32.mrb[13].mxu0 }
 0x210   : > { %v2798_v47 = vmul.f32 %v2670_v58, %v5542_v53  ;;  %v2672_v48 = vmul.f32 0.5, %v2544_v9  ;;  %v2295_v35 = vmul.f32 0.7978846, %v2167_v4  ;;  %v2169_v30 = vadd.f32 %v2041_v11, %v5631_v33  ;;  %v5666_v52 = vpop.f32.mrb[14].mxu0  ;;  %p4723_p12 = pnand %p4722_p11, %p4863_p5  ;;  %p4730_p2 = por %p4729_p1, %p4728_p0 }
 0x211   : > { %v2799_v43 = vmul.f32 %v2671_v50, %v5546_v59  ;;  %v2673_v49 = vmul.f32 0.5, %v2545_v42  ;;  %4481 = vtanh.f32 %v2294_v40  ;;  %v2296_v22 = vmul.f32 0.7978846, %v2168_v36  ;;  %v5669_v29 = vpop.f32.mrb[15].mxu0 }
 0x212   : > { %v5671_v41 = vpop.f32.mrb[48].mxu1  ;;  %v2800_v31 = vmul.f32 %v2672_v48, %v5550_v3  ;;  %4483 = vtanh.f32 %v2295_v35  ;;  %v2297_v60 = vmul.f32 0.7978846, %v2169_v30  ;;  %v1786_v53 = vmul.f32 %v5659_v45, %v5659_v45  ;;  %p4724_p13 = pneg %p4723_p12 }
 0x213   : > { %7348 = vst [vmem:[#allocation38_spill] sm:$0xff] %v5671_v41  ;;  %v5676_v58 = vpop.f32.mrb[49].mxu1  ;;  %v4474_v9 = vpop.eup %4473  ;;  %v2801_v4 = vmul.f32 %v2673_v49, %v5555_v10  ;;  %4485 = vtanh.f32 %v2296_v22  ;;  %v1787_v36 = vmul.f32 %v5662_v23, %v5662_v23  ;;  %v1788_v40 = vmul.f32 %v5666_v52, %v5666_v52  ;;  %1754 = vmatmul.mubr.bf16.gmra.mrb[120].mxu0 %v392_v16 }
 0x214   : > { %7349 = vst [vmem:[#allocation39_spill] sm:$0xff] %v5676_v58  ;;  %v5683_v42 = vpop.f32.mrb[50].mxu1  ;;  %v4476_v35 = vpop.eup %4475  ;;  %v2926_v59 = vpack.c.bf16 %v2800_v31, %v2798_v47  ;;  %v2546_v3 = vadd.f32 1.0, %v4474_v9  ;;  %4487 = vtanh.f32 %v2297_v60  ;;  %v1914_v30 = vmul.f32 %v1786_v53, %v5659_v45  ;;  %1763 = vmatprep.mubr.bf16.mxu0 %v7343_v15  ;;  %p4731_p3 = pnand %p4730_p2, %p4724_p13 }
 0x215   : > { %7350 = vst [vmem:[#allocation40_spill] sm:$0xff] %v5683_v42  ;;  %v5686_v11 = vpop.f32.mrb[51].mxu1  ;;  %v4478_v10 = vpop.eup %4477  ;;  %v2547_v50 = vadd.f32 1.0, %v4476_v35  ;;  %v1915_v48 = vmul.f32 %v1787_v36, %v5662_v23  ;;  %v1916_v49 = vmul.f32 %v1788_v40, %v5666_v52  ;;  %v1789_v16 = vmul.f32 %v5669_v29, %v5669_v29 }
 0x216   : > { %7351 = vst [vmem:[#allocation41_spill] sm:$0xff] %v5686_v11  ;;  %v4480_v22 = vpop.eup %4479  ;;  %v2674_v42 = vmul.f32 0.5, %v2546_v3  ;;  %v2548_v47 = vadd.f32 1.0, %v4478_v10  ;;  %v2042_v31 = vmul.f32 0.044715, %v1914_v30  ;;  %v5693_v60 = vpop.f32.mrb[16].mxu0  ;;  %v2927_v53 = vpack.c.bf16 %v2801_v4, %v2799_v43 }
 0x217   : > { %v2675_v9 = vmul.f32 0.5, %v2547_v50  ;;  %v2549_v11 = vadd.f32 1.0, %v4480_v22  ;;  %v2043_v58 = vmul.f32 0.044715, %v1915_v48  ;;  %v2044_v15 = vmul.f32 0.044715, %v1916_v49 }
 0x218   : > { %v5696_v35 = vmul.f32 %v2674_v42, %v5575_v51  ;;  %v2676_v36 = vmul.f32 0.5, %v2548_v47  ;;  %v2170_v40 = vadd.f32 %v2042_v31, %v5659_v45  ;;  %v1917_v41 = vmul.f32 %v1789_v16, %v5669_v29  ;;  %v5700_v34 = vpop.f32.mrb[17].mxu0  ;;  %3150 = vmatprep.mubr.bf16.mxu1 %v2927_v53 }
 0x219   : > { %v5703_v3 = vmul.f32 %v2675_v9, %v5580_v2  ;;  %v2677_v30 = vmul.f32 0.5, %v2549_v11  ;;  %v2171_v43 = vadd.f32 %v2043_v58, %v5662_v23  ;;  %v2172_v4 = vadd.f32 %v2044_v15, %v5666_v52  ;;  %v5707_v10 = vpop.f32.mrb[18].mxu0  ;;  %3151 = vmatmul.mubr.bf16.vlgmr.msra.gmra.mrb[64].mxu1 %v2926_v59 }
 0x21a   : > { %v5709_v51 = vpop.f32.mrb[52].mxu1  ;;  %v5712_v42 = vmul.f32 %v2676_v36, %v5585_v21  ;;  %v2298_v50 = vmul.f32 0.7978846, %v2170_v40  ;;  %v2045_v48 = vmul.f32 0.044715, %v1917_v41  ;;  %v1790_v49 = vmul.f32 %v5693_v60, %v5693_v60  ;;  %v5716_v2 = vpop.f32.mrb[19].mxu0 }
 0x21b   : > { %7352 = vst [vmem:[#allocation42_spill] sm:$0xff] %v5709_v51  ;;  %v5718_v11 = vpop.f32.mrb[53].mxu1  ;;  %v4482_v58 = vpop.eup %4481  ;;  %v5721_v16 = vmul.f32 %v2677_v30, %v5590_v39  ;;  %v2299_v22 = vmul.f32 0.7978846, %v2171_v43  ;;  %v2300_v59 = vmul.f32 0.7978846, %v2172_v4  ;;  %v1791_v47 = vmul.f32 %v5700_v34, %v5700_v34 }
 0x21c   : > { %7353 = vst [vmem:[#allocation43_spill] sm:$0xff] %v5718_v11  ;;  %v7354_v21 = vpack.c.bf16 %v5644_v38, %v5641_v37  ;;  %v5728_v41 = vpop.f32.mrb[54].mxu1  ;;  %v4484_v31 = vpop.eup %4483  ;;  %v2550_v53 = vadd.f32 1.0, %v4482_v58  ;;  %4489 = vtanh.f32 %v2298_v50  ;;  %v2173_v9 = vadd.f32 %v2045_v48, %v5669_v29 }
 0x21d   : > { %7355 = vst [vmem:[#allocation44_spill] sm:$0xff] %v5728_v41  ;;  %v1918_v15 = vmul.f32 %v1790_v49, %v5693_v60  ;;  %v5732_v39 = vpop.f32.mrb[55].mxu1  ;;  %v4486_v36 = vpop.eup %4485  ;;  %v2551_v40 = vadd.f32 1.0, %v4484_v31  ;;  %4491 = vtanh.f32 %v2299_v22  ;;  %v1919_v30 = vmul.f32 %v1791_v47, %v5700_v34 }
 0x21e   : > { %1764 = vmatmul.mubr.bf16.gmra.mrb[124].mxu0 %v7354_v21  ;;  %7356 = vst [vmem:[#allocation45_spill] sm:$0xff] %v5732_v39  ;;  %v1792_v37 = vmul.f32 %v5707_v10, %v5707_v10  ;;  %v4488_v38 = vpop.eup %4487  ;;  %v2678_v43 = vmul.f32 0.5, %v2550_v53  ;;  %v2552_v4 = vadd.f32 1.0, %v4486_v36  ;;  %4493 = vtanh.f32 %v2300_v59  ;;  %v5737_v50 = vpop.f32.mrb[20].mxu0 }
 0x21f   : > { %v2301_v58 = vmul.f32 0.7978846, %v2173_v9  ;;  %v2679_v48 = vmul.f32 0.5, %v2551_v40  ;;  %v2553_v21 = vadd.f32 1.0, %v4488_v38  ;;  %v2046_v49 = vmul.f32 0.044715, %v1918_v15 }
 0x220   : > { %v2047_v41 = vmul.f32 0.044715, %v1919_v30  ;;  %v5740_v39 = vmul.f32 %v2678_v43, %v5610_v46  ;;  %v2680_v22 = vmul.f32 0.5, %v2552_v4  ;;  %v1920_v47 = vmul.f32 %v1792_v37, %v5707_v10  ;;  %v5743_v31 = vpop.f32.mrb[21].mxu0 }
 0x221   : > { %4495 = vtanh.f32 %v2301_v58  ;;  %v5746_v53 = vmul.f32 %v2679_v48, %v5615_v44  ;;  %v2681_v59 = vmul.f32 0.5, %v2553_v21  ;;  %v2174_v9 = vadd.f32 %v2046_v49, %v5693_v60  ;;  %v5750_v40 = vpop.f32.mrb[22].mxu0 }
 0x222   : > { %v2175_v36 = vadd.f32 %v2047_v41, %v5700_v34  ;;  %v5752_v15 = vpop.f32.mrb[56].mxu1  ;;  %v5755_v46 = vmul.f32 %v2680_v22, %v5620_v1  ;;  %v2048_v30 = vmul.f32 0.044715, %v1920_v47  ;;  %v1793_v37 = vmul.f32 %v5716_v2, %v5716_v2  ;;  %v5761_v38 = vpop.f32.mrb[23].mxu0 }
 0x223   : > { %7357 = vst [vmem:[#allocation46_spill] sm:$0xff] %v5752_v15  ;;  %v1794_v44 = vmul.f32 %v5737_v50, %v5737_v50  ;;  %v5763_v43 = vpop.f32.mrb[57].mxu1  ;;  %v5766_v41 = vmul.f32 %v2681_v59, %v5631_v33  ;;  %v2302_v4 = vmul.f32 0.7978846, %v2174_v9  ;;  %v1795_v1 = vmul.f32 %v5743_v31, %v5743_v31 }
 0x224   : > { %7358 = vst [vmem:[#allocation47_spill] sm:$0xff] %v5763_v43  ;;  %v2303_v58 = vmul.f32 0.7978846, %v2175_v36  ;;  %v5770_v48 = vpop.f32.mrb[58].mxu1  ;;  %v2176_v21 = vadd.f32 %v2048_v30, %v5707_v10  ;;  %v1921_v49 = vmul.f32 %v1793_v37, %v5716_v2  ;;  %v2929_v47 = vpack.c.bf16 %v5721_v16, %v5703_v3 }
 0x225   : > { %7359 = vst [vmem:[#allocation48_spill] sm:$0xff] %v5770_v48  ;;  %v1922_v22 = vmul.f32 %v1794_v44, %v5737_v50  ;;  %v5777_v43 = vpop.f32.mrb[59].mxu1  ;;  %4497 = vtanh.f32 %v2302_v4  ;;  %v1923_v33 = vmul.f32 %v1795_v1, %v5743_v31  ;;  %v1796_v59 = vmul.f32 %v5750_v40, %v5750_v40 }
 0x226   : > { %7360 = vst [vmem:[#allocation49_spill] sm:$0xff] %v5777_v43  ;;  %v2928_v9 = vpack.c.bf16 %v5712_v42, %v5696_v35  ;;  %v4490_v36 = vpop.eup %4489  ;;  %4499 = vtanh.f32 %v2303_v58  ;;  %v2304_v30 = vmul.f32 0.7978846, %v2176_v21  ;;  %v2049_v37 = vmul.f32 0.044715, %v1921_v49  ;;  %3158 = vmatprep.mubr.bf16.mxu1 %v2929_v47  ;;  %v5787_v1 = vpop.f32.mrb[24].mxu0 }
 0x227   : > { %v2050_v48 = vmul.f32 0.044715, %v1922_v22  ;;  %v4492_v44 = vpop.eup %4491  ;;  %v2554_v15 = vadd.f32 1.0, %v4490_v36  ;;  %v2051_v3 = vmul.f32 0.044715, %v1923_v33  ;;  %v1924_v16 = vmul.f32 %v1796_v59, %v5750_v40  ;;  %v5791_v58 = vpop.f32.mrb[25].mxu0 }
 0x228   : > { %3159 = vmatmul.mubr.bf16.gmra.mrb[68].mxu1 %v2928_v9  ;;  %v1797_v4 = vmul.f32 %v5761_v38, %v5761_v38  ;;  %v4494_v43 = vpop.eup %4493  ;;  %v2555_v11 = vadd.f32 1.0, %v4492_v44  ;;  %4501 = vtanh.f32 %v2304_v30  ;;  %v2177_v35 = vadd.f32 %v2049_v37, %v5716_v2  ;;  %v5794_v33 = vpop.f32.mrb[26].mxu0 }
 0x229   : > { %v2178_v42 = vadd.f32 %v2050_v48, %v5737_v50  ;;  %v2682_v21 = vmul.f32 0.5, %v2554_v15  ;;  %v2556_v49 = vadd.f32 1.0, %v4494_v43  ;;  %v2179_v22 = vadd.f32 %v2051_v3, %v5743_v31  ;;  %v5799_v37 = vpop.f32.mrb[27].mxu0 }
 0x22a   : > { %v2052_v47 = vmul.f32 0.044715, %v1924_v16  ;;  %v5796_v59 = vpop.f32.mrb[60].mxu1  ;;  %v2683_v36 = vmul.f32 0.5, %v2555_v11  ;;  %v2305_v51 = vmul.f32 0.7978846, %v2177_v35  ;;  %v1925_v30 = vmul.f32 %v1797_v4, %v5761_v38 }
 0x22b   : > { %7361 = vst [vmem:[#allocation50_spill] sm:$0xff] %v5796_v59  ;;  %v4496_v9 = vpop.eup %4495  ;;  %v2306_v44 = vmul.f32 0.7978846, %v2178_v42  ;;  %v5802_v48 = vmul.f32 %v2682_v21, %v5659_v45  ;;  %v2684_v15 = vmul.f32 0.5, %v2556_v49  ;;  %v2307_v32 = vmul.f32 0.7978846, %v2179_v22 }
 0x22c   : > { %v2557_v43 = vadd.f32 1.0, %v4496_v9  ;;  %v5804_v3 = vpop.f32.mrb[61].mxu1  ;;  %v5807_v16 = vmul.f32 %v2683_v36, %v5662_v23  ;;  %4503 = vtanh.f32 %v2305_v51  ;;  %v2180_v11 = vadd.f32 %v2052_v47, %v5750_v40 }
 0x22d   : > { %7362 = vst [vmem:[#allocation51_spill] sm:$0xff] %v5804_v3  ;;  %v2053_v35 = vmul.f32 0.044715, %v1925_v30  ;;  %v5810_v42 = vpop.f32.mrb[62].mxu1  ;;  %v5813_v4 = vmul.f32 %v2684_v15, %v5666_v52  ;;  %4505 = vtanh.f32 %v2306_v44  ;;  %v1798_v45 = vmul.f32 %v5787_v1, %v5787_v1 }
 0x22e   : > { %7363 = vst [vmem:[#allocation52_spill] sm:$0xff] %v5810_v42  ;;  %v2685_v59 = vmul.f32 0.5, %v2557_v43  ;;  %v5817_v21 = vpop.f32.mrb[63].mxu1  ;;  %4507 = vtanh.f32 %v2307_v32  ;;  %v2308_v49 = vmul.f32 0.7978846, %v2180_v11  ;;  %v1799_v51 = vmul.f32 %v5791_v58, %v5791_v58  ;;  %v5822_v22 = vpop.f32.mrb[28].mxu0 }
 0x22f   : > { %7364 = vst [vmem:[#allocation53_spill] sm:$0xff] %v5817_v21  ;;  %v2181_v23 = vadd.f32 %v2053_v35, %v5761_v38  ;;  %v4498_v47 = vpop.eup %4497  ;;  %v1926_v9 = vmul.f32 %v1798_v45, %v5787_v1  ;;  %v2931_v36 = vpack.c.bf16 %v5766_v41, %v5746_v53  ;;  %v1800_v32 = vmul.f32 %v5794_v33, %v5794_v33  ;;  %v5832_v44 = vpop.f32.mrb[29].mxu0 }
 0x230   : > { %v5825_v52 = vmul.f32 %v2685_v59, %v5669_v29  ;;  %v4500_v30 = vpop.eup %4499  ;;  %v2558_v15 = vadd.f32 1.0, %v4498_v47  ;;  %4509 = vtanh.f32 %v2308_v49  ;;  %v1927_v11 = vmul.f32 %v1799_v51, %v5791_v58  ;;  %v5835_v35 = vpop.f32.mrb[30].mxu0 }
 0x231   : > { %v2309_v43 = vmul.f32 0.7978846, %v2181_v23  ;;  %v2559_v29 = vadd.f32 1.0, %v4500_v30  ;;  %v2054_v59 = vmul.f32 0.044715, %v1926_v9  ;;  %3166 = vmatprep.mubr.bf16.mxu1 %v2931_v36  ;;  %v1928_v45 = vmul.f32 %v1800_v32, %v5794_v33  ;;  %v5840_v41 = vpop.f32.mrb[31].mxu0 }
 0x232   : > { %v2930_v53 = vpack.c.bf16 %v5755_v46, %v5740_v39  ;;  %v4502_v21 = vpop.eup %4501  ;;  %v2686_v42 = vmul.f32 0.5, %v2558_v15  ;;  %v2055_v47 = vmul.f32 0.044715, %v1927_v11  ;;  %v1801_v49 = vmul.f32 %v5799_v37, %v5799_v37 }
 0x233   : > { %4511 = vtanh.f32 %v2309_v43  ;;  %v2687_v23 = vmul.f32 0.5, %v2559_v29  ;;  %v2560_v51 = vadd.f32 1.0, %v4502_v21  ;;  %v2182_v30 = vadd.f32 %v2054_v59, %v5787_v1 }
 0x234   : > { %v2056_v9 = vmul.f32 0.044715, %v1928_v45  ;;  %3167 = vmatmul.mubr.bf16.gmra.mrb[72].mxu1 %v2930_v53  ;;  %v5846_v36 = vmul.f32 %v2686_v42, %v5693_v60  ;;  %v2183_v39 = vadd.f32 %v2055_v47, %v5791_v58  ;;  %v1929_v46 = vmul.f32 %v1801_v49, %v5799_v37 }
 0x235   : > { %v1802_v32 = vmul.f32 %v5822_v22, %v5822_v22  ;;  %v5853_v15 = vmul.f32 %v2687_v23, %v5700_v34  ;;  %v2688_v43 = vmul.f32 0.5, %v2560_v51  ;;  %v2310_v11 = vmul.f32 0.7978846, %v2182_v30 }
 0x236   : > { %v2184_v21 = vadd.f32 %v2056_v9, %v5794_v33  ;;  %v4504_v29 = vpop.eup %4503  ;;  %v2311_v59 = vmul.f32 0.7978846, %v2183_v39  ;;  %v2057_v45 = vmul.f32 0.044715, %v1929_v46  ;;  %v1803_v42 = vmul.f32 %v5832_v44, %v5832_v44  ;;  %v5859_v53 = vpop.f32.mrb[32].mxu0 }
 0x237   : > { %v1930_v60 = vmul.f32 %v1802_v32, %v5822_v22  ;;  %v4506_v47 = vpop.eup %4505  ;;  %v5862_v49 = vmul.f32 %v2688_v43, %v5707_v10  ;;  %v2561_v34 = vadd.f32 1.0, %v4504_v29  ;;  %4513 = vtanh.f32 %v2310_v11  ;;  %v5864_v51 = vpop.f32.mrb[33].mxu0 }
 0x238   : > { %v2312_v23 = vmul.f32 0.7978846, %v2184_v21  ;;  %v4508_v30 = vpop.eup %4507  ;;  %v2562_v9 = vadd.f32 1.0, %v4506_v47  ;;  %4515 = vtanh.f32 %v2311_v59  ;;  %v2185_v39 = vadd.f32 %v2057_v45, %v5799_v37  ;;  %v5867_v32 = vpop.f32.mrb[34].mxu0 }
 0x239   : > { %v2058_v46 = vmul.f32 0.044715, %v1930_v60  ;;  %v2689_v3 = vmul.f32 0.5, %v2561_v34  ;;  %v2563_v28 = vadd.f32 1.0, %v4508_v30  ;;  %v1931_v27 = vmul.f32 %v1803_v42, %v5832_v44  ;;  %v5870_v10 = vpop.f32.mrb[35].mxu0 }
 0x23a   : > { %4517 = vtanh.f32 %v2312_v23  ;;  %v4510_v43 = vpop.eup %4509  ;;  %v2690_v11 = vmul.f32 0.5, %v2562_v9  ;;  %v2313_v21 = vmul.f32 0.7978846, %v2185_v39  ;;  %v2933_v59 = vpack.c.bf16 %v5825_v52, %v5807_v16 }
 0x23b   : > { %v2186_v29 = vadd.f32 %v2058_v46, %v5822_v22  ;;  %v2817_v45 = vmul.f32 %v2689_v3, %v5716_v2  ;;  %v2691_v60 = vmul.f32 0.5, %v2563_v28  ;;  %v2564_v47 = vadd.f32 1.0, %v4510_v43 }
 0x23c   : > { %v2059_v26 = vmul.f32 0.044715, %v1931_v27  ;;  %v5877_v23 = vmul.f32 %v2690_v11, %v5737_v50  ;;  %4519 = vtanh.f32 %v2313_v21  ;;  %3174 = vmatprep.mubr.bf16.mxu1 %v2933_v59  ;;  %v1804_v30 = vmul.f32 %v5835_v35, %v5835_v35 }
 0x23d   : > { %v4512_v34 = vpop.eup %4511  ;;  %v2314_v42 = vmul.f32 0.7978846, %v2186_v29  ;;  %v5882_v9 = vmul.f32 %v2691_v60, %v5743_v31  ;;  %v2692_v39 = vmul.f32 0.5, %v2564_v47  ;;  %v2932_v28 = vpack.c.bf16 %v5813_v4, %v5802_v48 }
 0x23e   : > { %v2565_v16 = vadd.f32 1.0, %v4512_v34  ;;  %v2187_v2 = vadd.f32 %v2059_v26, %v5832_v44  ;;  %v1932_v27 = vmul.f32 %v1804_v30, %v5835_v35  ;;  %v1805_v50 = vmul.f32 %v5840_v41, %v5840_v41  ;;  %v5890_v3 = vpop.f32.mrb[36].mxu0 }
 0x23f   : > { %4521 = vtanh.f32 %v2314_v42  ;;  %v5893_v52 = vmul.f32 %v2692_v39, %v5750_v40  ;;  %v1806_v43 = vmul.f32 %v5859_v53, %v5859_v53  ;;  %v5897_v26 = vpop.f32.mrb[37].mxu0  ;;  %3175 = vmatmul.mubr.bf16.gmra.mrb[76].mxu1 %v2932_v28  ;;  %v1807_v48 = vmul.f32 %v5864_v51, %v5864_v51 }
 0x240   : > { %v2693_v31 = vmul.f32 0.5, %v2565_v16  ;;  %v2315_v46 = vmul.f32 0.7978846, %v2187_v2  ;;  %v2060_v11 = vmul.f32 0.044715, %v1932_v27  ;;  %v1933_v21 = vmul.f32 %v1805_v50, %v5840_v41  ;;  %v5903_v29 = vpop.f32.mrb[38].mxu0 }
 0x241   : > { %v2935_v4 = vpack.c.bf16 %v2817_v45, %v5853_v15  ;;  %v4514_v40 = vpop.eup %4513  ;;  %v1934_v60 = vmul.f32 %v1806_v43, %v5859_v53  ;;  %v1808_v47 = vmul.f32 %v5867_v32, %v5867_v32  ;;  %v5909_v34 = vpop.f32.mrb[39].mxu0  ;;  %v1935_v15 = vmul.f32 %v1807_v48, %v5864_v51 }
 0x242   : > { %v2821_v59 = vmul.f32 %v2693_v31, %v5761_v38  ;;  %4523 = vtanh.f32 %v2315_v46  ;;  %v4516_v42 = vpop.eup %4515  ;;  %v2566_v30 = vadd.f32 1.0, %v4514_v40  ;;  %v2188_v39 = vadd.f32 %v2060_v11, %v5835_v35 }
 0x243   : > { %v2061_v16 = vmul.f32 0.044715, %v1933_v21  ;;  %3182 = vmatprep.mubr.bf16.mxu1 %v2935_v4  ;;  %v2567_v2 = vadd.f32 1.0, %v4516_v42  ;;  %v2062_v27 = vmul.f32 0.044715, %v1934_v60  ;;  %v1936_v38 = vmul.f32 %v1808_v47, %v5867_v32 }
 0x244   : > { %v4518_v45 = vpop.eup %4517  ;;  %v2934_v28 = vpack.c.bf16 %v5862_v49, %v5846_v36  ;;  %v2694_v50 = vmul.f32 0.5, %v2566_v30  ;;  %v2316_v46 = vmul.f32 0.7978846, %v2188_v39  ;;  %v2063_v21 = vmul.f32 0.044715, %v1935_v15 }
 0x245   : > { %v2568_v31 = vadd.f32 1.0, %v4518_v45  ;;  %v2189_v43 = vadd.f32 %v2061_v16, %v5840_v41  ;;  %v2695_v40 = vmul.f32 0.5, %v2567_v2  ;;  %v2190_v11 = vadd.f32 %v2062_v27, %v5859_v53 }
 0x246   : > { %v2064_v25 = vmul.f32 0.044715, %v1936_v38  ;;  %v4520_v48 = vpop.eup %4519  ;;  %v5919_v4 = vmul.f32 %v2694_v50, %v5787_v1  ;;  %4525 = vtanh.f32 %v2316_v46  ;;  %v5921_v42 = vpop.f32.mrb[40].mxu0  ;;  %v2191_v39 = vadd.f32 %v2063_v21, %v5864_v51 }
 0x247   : > { %v2696_v60 = vmul.f32 0.5, %v2568_v31  ;;  %v2317_v47 = vmul.f32 0.7978846, %v2189_v43  ;;  %v5924_v36 = vmul.f32 %v2695_v40, %v5791_v58  ;;  %v2569_v49 = vadd.f32 1.0, %v4520_v48  ;;  %v5927_v16 = vpop.f32.mrb[41].mxu0  ;;  %3183 = vmatmul.mubr.bf16.gmra.mrb[80].mxu1 %v2934_v28 }
 0x248   : > { %v2318_v30 = vmul.f32 0.7978846, %v2190_v11  ;;  %v2192_v1 = vadd.f32 %v2064_v25, %v5867_v32  ;;  %v1809_v2 = vmul.f32 %v5870_v10, %v5870_v10  ;;  %v5935_v27 = vpop.f32.mrb[42].mxu0  ;;  %v2319_v50 = vmul.f32 0.7978846, %v2191_v39 }
 0x249   : > { %v4522_v15 = vpop.eup %4521  ;;  %v5930_v45 = vmul.f32 %v2696_v60, %v5794_v33  ;;  %4527 = vtanh.f32 %v2317_v47  ;;  %v2697_v58 = vmul.f32 0.5, %v2569_v49  ;;  %v5937_v31 = vpop.f32.mrb[43].mxu0  ;;  %v1810_v33 = vmul.f32 %v5890_v3, %v5890_v3 }
 0x24a   : > { %v2570_v38 = vadd.f32 1.0, %v4522_v15  ;;  %4529 = vtanh.f32 %v2318_v30  ;;  %v2320_v46 = vmul.f32 0.7978846, %v2192_v1  ;;  %v1937_v43 = vmul.f32 %v1809_v2, %v5870_v10 }
 0x24b   : > { %v1811_v25 = vmul.f32 %v5897_v26, %v5897_v26  ;;  %v5945_v40 = vmul.f32 %v2697_v58, %v5799_v37  ;;  %4531 = vtanh.f32 %v2319_v50  ;;  %v2937_v21 = vpack.c.bf16 %v2821_v59, %v5882_v9 }
 0x24c   : > { %v4524_v28 = vpop.eup %4523  ;;  %v2698_v11 = vmul.f32 0.5, %v2570_v38  ;;  %4533 = vtanh.f32 %v2320_v46  ;;  %v2065_v60 = vmul.f32 0.044715, %v1937_v43  ;;  %v1938_v47 = vmul.f32 %v1810_v33, %v5890_v3 }
 0x24d   : > { %v2571_v48 = vadd.f32 1.0, %v4524_v28  ;;  %v1939_v30 = vmul.f32 %v1811_v25, %v5897_v26  ;;  %3190 = vmatprep.mubr.bf16.mxu1 %v2937_v21  ;;  %v1812_v39 = vmul.f32 %v5903_v29, %v5903_v29  ;;  %v2936_v37 = vpack.c.bf16 %v5893_v52, %v5877_v23 }
 0x24e   : > { %v5950_v49 = vmul.f32 %v2698_v11, %v5822_v22  ;;  %v2193_v9 = vadd.f32 %v2065_v60, %v5870_v10  ;;  %v2066_v59 = vmul.f32 0.044715, %v1938_v47  ;;  %v1813_v1 = vmul.f32 %v5909_v34, %v5909_v34  ;;  %v5960_v2 = vpop.f32.mrb[44].mxu0 }
 0x24f   : > { %v2699_v15 = vmul.f32 0.5, %v2571_v48  ;;  %v2067_v22 = vmul.f32 0.044715, %v1939_v30  ;;  %v1940_v58 = vmul.f32 %v1812_v39, %v5903_v29  ;;  %v1814_v38 = vmul.f32 %v5921_v42, %v5921_v42  ;;  %v5967_v46 = vpop.f32.mrb[45].mxu0  ;;  %3191 = vmatmul.mubr.bf16.gmra.mrb[84].mxu1 %v2936_v37 }
 0x250   : > { %v1815_v50 = vmul.f32 %v5927_v16, %v5927_v16  ;;  %v4526_v23 = vpop.eup %4525  ;;  %v2321_v43 = vmul.f32 0.7978846, %v2193_v9  ;;  %v2194_v33 = vadd.f32 %v2066_v59, %v5890_v3  ;;  %v1941_v25 = vmul.f32 %v1813_v1, %v5909_v34  ;;  %v5974_v28 = vpop.f32.mrb[46].mxu0 }
 0x251   : > { %v5970_v52 = vmul.f32 %v2699_v15, %v5832_v44  ;;  %v2572_v11 = vadd.f32 1.0, %v4526_v23  ;;  %v2195_v21 = vadd.f32 %v2067_v22, %v5897_v26  ;;  %v2068_v48 = vmul.f32 0.044715, %v1940_v58  ;;  %v5978_v47 = vpop.f32.mrb[47].mxu0 }
 0x252   : > { %v1942_v60 = vmul.f32 %v1814_v38, %v5921_v42  ;;  %4535 = vtanh.f32 %v2321_v43  ;;  %v2322_v44 = vmul.f32 0.7978846, %v2194_v33  ;;  %v2069_v39 = vmul.f32 0.044715, %v1941_v25 }
 0x253   : > { %v4528_v30 = vpop.eup %4527  ;;  %v1943_v15 = vmul.f32 %v1815_v50, %v5927_v16  ;;  %v2700_v37 = vmul.f32 0.5, %v2572_v11  ;;  %v2323_v1 = vmul.f32 0.7978846, %v2195_v21  ;;  %v2196_v20 = vadd.f32 %v2068_v48, %v5903_v29 }
 0x254   : > { %v4530_v9 = vpop.eup %4529  ;;  %v2573_v59 = vadd.f32 1.0, %v4528_v30  ;;  %4537 = vtanh.f32 %v2322_v44  ;;  %v2197_v22 = vadd.f32 %v2069_v39, %v5909_v34  ;;  %v2070_v58 = vmul.f32 0.044715, %v1942_v60 }
 0x255   : > { %v2574_v23 = vadd.f32 1.0, %v4530_v9  ;;  %v4532_v38 = vpop.eup %4531  ;;  %v5984_v19 = vmul.f32 %v2700_v37, %v5835_v35  ;;  %4539 = vtanh.f32 %v2323_v1  ;;  %v2324_v33 = vmul.f32 0.7978846, %v2196_v20 }
 0x256   : > { %v2701_v43 = vmul.f32 0.5, %v2573_v59  ;;  %v4534_v25 = vpop.eup %4533  ;;  %v2575_v18 = vadd.f32 1.0, %v4532_v38  ;;  %v2325_v11 = vmul.f32 0.7978846, %v2197_v22  ;;  %v2198_v21 = vadd.f32 %v2070_v58, %v5921_v42  ;;  %v5987_v30 = vpop.f32.mrb[48].mxu0 }
 0x257   : > { %v2702_v50 = vmul.f32 0.5, %v2574_v23  ;;  %v2576_v44 = vadd.f32 1.0, %v4534_v25  ;;  %4541 = vtanh.f32 %v2324_v33  ;;  %v2071_v60 = vmul.f32 0.044715, %v1943_v15  ;;  %v5990_v39 = vpop.f32.mrb[49].mxu0 }
 0x258   : > { %v2829_v48 = vmul.f32 %v2701_v43, %v5840_v41  ;;  %v2703_v9 = vmul.f32 0.5, %v2575_v18  ;;  %4543 = vtanh.f32 %v2325_v11  ;;  %v2326_v20 = vmul.f32 0.7978846, %v2198_v21  ;;  %v5995_v37 = vpop.f32.mrb[50].mxu0 }
 0x259   : > { %v5993_v35 = vmul.f32 %v2702_v50, %v5859_v53  ;;  %v2704_v59 = vmul.f32 0.5, %v2576_v44  ;;  %v2199_v1 = vadd.f32 %v2071_v60, %v5927_v16  ;;  %v2939_v23 = vpack.c.bf16 %v5945_v40, %v5924_v36  ;;  %v6002_v15 = vpop.f32.mrb[51].mxu0 }
 0x25a   : > { %v1816_v41 = vmul.f32 %v5935_v27, %v5935_v27  ;;  %v6005_v22 = vmul.f32 %v2703_v9, %v5864_v51  ;;  %4545 = vtanh.f32 %v2326_v20  ;;  %v2938_v18 = vpack.c.bf16 %v5930_v45, %v5919_v4 }
 0x25b   : > { %v1817_v53 = vmul.f32 %v5937_v31, %v5937_v31  ;;  %v6012_v58 = vmul.f32 %v2704_v59, %v5867_v32  ;;  %v2327_v38 = vmul.f32 0.7978846, %v2199_v1  ;;  %3198 = vmatprep.mubr.bf16.mxu1 %v2939_v23  ;;  %v1818_v40 = vmul.f32 %v5960_v2, %v5960_v2 }
 0x25c   : > { %v1944_v36 = vmul.f32 %v1816_v41, %v5935_v27  ;;  %v4536_v43 = vpop.eup %4535  ;;  %3199 = vmatmul.mubr.bf16.gmra.mrb[88].mxu1 %v2938_v18  ;;  %v1819_v4 = vmul.f32 %v5967_v46, %v5967_v46  ;;  %v2941_v45 = vpack.c.bf16 %v2829_v48, %v5970_v52  ;;  %v1820_v32 = vmul.f32 %v5974_v28, %v5974_v28 }
 0x25d   : > { %v1945_v51 = vmul.f32 %v1817_v53, %v5937_v31  ;;  %v2577_v33 = vadd.f32 1.0, %v4536_v43  ;;  %4547 = vtanh.f32 %v2327_v38  ;;  %v1946_v50 = vmul.f32 %v1818_v40, %v5960_v2 }
 0x25e   : > { %v2072_v25 = vmul.f32 0.044715, %v1944_v36  ;;  %v4538_v11 = vpop.eup %4537  ;;  %v1947_v44 = vmul.f32 %v1819_v4, %v5967_v46  ;;  %3206 = vmatprep.mubr.bf16.mxu1 %v2941_v45  ;;  %v1948_v60 = vmul.f32 %v1820_v32, %v5974_v28  ;;  %v2940_v9 = vpack.c.bf16 %v5984_v19, %v5950_v49  ;;  %v6028_v20 = vpop.f32.mrb[52].mxu0 }
 0x25f   : > { %v2073_v21 = vmul.f32 0.044715, %v1945_v51  ;;  %v4540_v52 = vpop.eup %4539  ;;  %v2705_v48 = vmul.f32 0.5, %v2577_v33  ;;  %v2578_v59 = vadd.f32 1.0, %v4538_v11  ;;  %v2074_v23 = vmul.f32 0.044715, %v1946_v50 }
 0x260   : > { %v2200_v1 = vadd.f32 %v2072_v25, %v5935_v27  ;;  %v6031_v41 = vpop.f32.mrb[53].mxu0  ;;  %v2579_v18 = vadd.f32 1.0, %v4540_v52  ;;  %v2075_v38 = vmul.f32 0.044715, %v1947_v44  ;;  %v2076_v36 = vmul.f32 0.044715, %v1948_v60 }
 0x261   : > { %v2201_v53 = vadd.f32 %v2073_v21, %v5937_v31  ;;  %v6034_v40 = vpop.f32.mrb[54].mxu0  ;;  %v4542_v43 = vpop.eup %4541  ;;  %v2833_v19 = vmul.f32 %v2705_v48, %v5870_v10  ;;  %v2706_v49 = vmul.f32 0.5, %v2578_v59  ;;  %v2202_v4 = vadd.f32 %v2074_v23, %v5960_v2 }
 0x262   : > { %v2328_v51 = vmul.f32 0.7978846, %v2200_v1  ;;  %v6038_v45 = vpop.f32.mrb[55].mxu0  ;;  %v4544_v32 = vpop.eup %4543  ;;  %v2707_v33 = vmul.f32 0.5, %v2579_v18  ;;  %v2580_v25 = vadd.f32 1.0, %v4542_v43  ;;  %v2203_v11 = vadd.f32 %v2075_v38, %v5967_v46 }
 0x263   : > { %v2329_v50 = vmul.f32 0.7978846, %v2201_v53  ;;  %v6042_v21 = vmul.f32 %v2706_v49, %v5890_v3  ;;  %v2581_v44 = vadd.f32 1.0, %v4544_v32  ;;  %v2330_v60 = vmul.f32 0.7978846, %v2202_v4 }
 0x264   : > { %4549 = vtanh.f32 %v2328_v51  ;;  %v4546_v52 = vpop.eup %4545  ;;  %v6045_v10 = vmul.f32 %v2707_v33, %v5897_v26  ;;  %v2708_v48 = vmul.f32 0.5, %v2580_v25  ;;  %v2331_v59 = vmul.f32 0.7978846, %v2203_v11  ;;  %3207 = vmatmul.mubr.bf16.gmra.mrb[92].mxu1 %v2940_v9 }
 0x265   : > { %4551 = vtanh.f32 %v2329_v50  ;;  %v2709_v1 = vmul.f32 0.5, %v2581_v44  ;;  %v2582_v23 = vadd.f32 1.0, %v4546_v52  ;;  %v2204_v18 = vadd.f32 %v2076_v36, %v5974_v28 }
 0x266   : > { %4553 = vtanh.f32 %v2330_v60  ;;  %v6049_v53 = vmul.f32 %v2708_v48, %v5903_v29  ;;  %v1821_v3 = vmul.f32 %v5978_v47, %v5978_v47  ;;  %v1822_v26 = vmul.f32 %v5987_v30, %v5987_v30  ;;  %v6055_v38 = vpop.f32.mrb[56].mxu0 }
 0x267   : > { %4555 = vtanh.f32 %v2331_v59  ;;  %v4548_v43 = vpop.eup %4547  ;;  %v6058_v9 = vmul.f32 %v2709_v1, %v5909_v34  ;;  %v2710_v49 = vmul.f32 0.5, %v2582_v23  ;;  %v2332_v51 = vmul.f32 0.7978846, %v2204_v18  ;;  %v6062_v29 = vpop.f32.mrb[57].mxu0 }
 0x268   : > { %v1823_v36 = vmul.f32 %v5990_v39, %v5990_v39  ;;  %v2583_v4 = vadd.f32 1.0, %v4548_v43  ;;  %v1949_v32 = vmul.f32 %v1821_v3, %v5978_v47  ;;  %v1950_v33 = vmul.f32 %v1822_v26, %v5987_v30  ;;  %v6067_v50 = vpop.f32.mrb[58].mxu0 }
 0x269   : > { %v2943_v25 = vpack.c.bf16 %v2833_v19, %v6005_v22  ;;  %v6070_v11 = vmul.f32 %v2710_v49, %v5921_v42  ;;  %4557 = vtanh.f32 %v2332_v51  ;;  %v1824_v44 = vmul.f32 %v5995_v37, %v5995_v37  ;;  %v6075_v60 = vpop.f32.mrb[59].mxu0 }
 0x26a   : > { %v1951_v34 = vmul.f32 %v1823_v36, %v5990_v39  ;;  %v2711_v52 = vmul.f32 0.5, %v2583_v4  ;;  %v2077_v48 = vmul.f32 0.044715, %v1949_v32  ;;  %v2078_v59 = vmul.f32 0.044715, %v1950_v33 }
 0x26b   : > { %3214 = vmatprep.mubr.bf16.mxu1 %v2943_v25  ;;  %v2942_v22 = vpack.c.bf16 %v6012_v58, %v5993_v35  ;;  %v1952_v1 = vmul.f32 %v1824_v44, %v5995_v37  ;;  %v1825_v42 = vmul.f32 %v6002_v15, %v6002_v15  ;;  %v1826_v23 = vmul.f32 %v6028_v20, %v6028_v20 }
 0x26c   : > { %v2079_v19 = vmul.f32 0.044715, %v1951_v34  ;;  %v6085_v18 = vmul.f32 %v2711_v52, %v5927_v16  ;;  %v2205_v3 = vadd.f32 %v2077_v48, %v5978_v47  ;;  %v2206_v26 = vadd.f32 %v2078_v59, %v5987_v30 }
 0x26d   : > { %3215 = vmatmul.mubr.bf16.gmra.mrb[96].mxu1 %v2942_v22  ;;  %v1827_v35 = vmul.f32 %v6031_v41, %v6031_v41  ;;  %v2080_v49 = vmul.f32 0.044715, %v1952_v1  ;;  %v1953_v51 = vmul.f32 %v1825_v42, %v6002_v15  ;;  %v1954_v36 = vmul.f32 %v1826_v23, %v6028_v20 }
 0x26e   : > { %v4550_v58 = vpop.eup %4549  ;;  %v2207_v43 = vadd.f32 %v2079_v19, %v5990_v39  ;;  %v2333_v16 = vmul.f32 0.7978846, %v2205_v3  ;;  %v2334_v33 = vmul.f32 0.7978846, %v2206_v26  ;;  %v6095_v34 = vpop.f32.mrb[60].mxu0 }
 0x26f   : > { %v4552_v4 = vpop.eup %4551  ;;  %v2584_v32 = vadd.f32 1.0, %v4550_v58  ;;  %v1955_v25 = vmul.f32 %v1827_v35, %v6031_v41  ;;  %v2208_v59 = vadd.f32 %v2080_v49, %v5995_v37  ;;  %v2081_v22 = vmul.f32 0.044715, %v1953_v51  ;;  %v6098_v19 = vpop.f32.mrb[61].mxu0 }
 0x270   : > { %v4554_v44 = vpop.eup %4553  ;;  %v2585_v52 = vadd.f32 1.0, %v4552_v4  ;;  %v2335_v48 = vmul.f32 0.7978846, %v2207_v43  ;;  %4559 = vtanh.f32 %v2333_v16  ;;  %v2082_v23 = vmul.f32 0.044715, %v1954_v36  ;;  %v6100_v58 = vpop.f32.mrb[62].mxu0 }
 0x271   : > { %v4556_v1 = vpop.eup %4555  ;;  %v2712_v42 = vmul.f32 0.5, %v2584_v32  ;;  %v2586_v17 = vadd.f32 1.0, %v4554_v44  ;;  %4561 = vtanh.f32 %v2334_v33  ;;  %v2336_v35 = vmul.f32 0.7978846, %v2208_v59  ;;  %v6102_v14 = vpop.f32.mrb[63].mxu0 }
 0x272   : > { %v2713_v3 = vmul.f32 0.5, %v2585_v52  ;;  %v2587_v26 = vadd.f32 1.0, %v4556_v1  ;;  %4563 = vtanh.f32 %v2335_v48  ;;  %v2209_v51 = vadd.f32 %v2081_v22, %v6002_v15 }
 0x273   : > { %v6105_v43 = vmul.f32 %v2712_v42, %v5935_v27  ;;  %v2714_v49 = vmul.f32 0.5, %v2586_v17  ;;  %v4558_v4 = vpop.eup %4557  ;;  %4565 = vtanh.f32 %v2336_v35  ;;  %v2210_v36 = vadd.f32 %v2082_v23, %v6028_v20 }
 0x274   : > { %v2841_v32 = vmul.f32 %v2713_v3, %v5937_v31  ;;  %v2715_v16 = vmul.f32 0.5, %v2587_v26  ;;  %v2588_v33 = vadd.f32 1.0, %v4558_v4  ;;  %v2337_v52 = vmul.f32 0.7978846, %v2209_v51 }
 0x275   : > { %v6111_v44 = vmul.f32 %v2714_v49, %v5960_v2  ;;  %v2083_v59 = vmul.f32 0.044715, %v1955_v25  ;;  %v2338_v17 = vmul.f32 0.7978846, %v2210_v36  ;;  %v2945_v48 = vpack.c.bf16 %v6058_v9, %v6045_v10 }
 0x276   : > { %v6114_v27 = vmul.f32 %v2715_v16, %v5967_v46  ;;  %v1828_v31 = vmul.f32 %v6034_v40, %v6034_v40  ;;  %v2716_v22 = vmul.f32 0.5, %v2588_v33  ;;  %4567 = vtanh.f32 %v2337_v52  ;;  %v6123_v42 = vpop.f32.mrb[64].mxu0 }
 0x277   : > { %v2211_v1 = vadd.f32 %v2083_v59, %v6031_v41  ;;  %v2944_v2 = vpack.c.bf16 %v6049_v53, %v6042_v21  ;;  %4569 = vtanh.f32 %v2338_v17  ;;  %3222 = vmatprep.mubr.bf16.mxu1 %v2945_v48  ;;  %v1829_v25 = vmul.f32 %v6038_v45, %v6038_v45  ;;  %v6130_v9 = vpop.f32.mrb[65].mxu0 }
 0x278   : > { %v1956_v46 = vmul.f32 %v1828_v31, %v6034_v40  ;;  %v1830_v10 = vmul.f32 %v6055_v38, %v6055_v38  ;;  %v6133_v23 = vmul.f32 %v2716_v22, %v5974_v28  ;;  %v1831_v21 = vmul.f32 %v6062_v29, %v6062_v29  ;;  %v6138_v26 = vpop.f32.mrb[66].mxu0 }
 0x279   : > { %v2339_v3 = vmul.f32 0.7978846, %v2211_v1  ;;  %3223 = vmatmul.mubr.bf16.gmra.mrb[100].mxu1 %v2944_v2  ;;  %v2947_v53 = vpack.c.bf16 %v2841_v32, %v6085_v18  ;;  %v1957_v49 = vmul.f32 %v1829_v25, %v6038_v45  ;;  %v1832_v4 = vmul.f32 %v6067_v50, %v6067_v50  ;;  %v6144_v16 = vpop.f32.mrb[67].mxu0 }
 0x27a   : > { %v2084_v35 = vmul.f32 0.044715, %v1956_v46  ;;  %v1958_v51 = vmul.f32 %v1830_v10, %v6055_v38  ;;  %v4560_v28 = vpop.eup %4559  ;;  %v1959_v36 = vmul.f32 %v1831_v21, %v6062_v29  ;;  %v2946_v18 = vpack.c.bf16 %v6105_v43, %v6070_v11 }
 0x27b   : > { %4571 = vtanh.f32 %v2339_v3  ;;  %3230 = vmatprep.mubr.bf16.mxu1 %v2947_v53  ;;  %v1833_v32 = vmul.f32 %v6075_v60, %v6075_v60  ;;  %v4562_v33 = vpop.eup %4561  ;;  %v2589_v52 = vadd.f32 1.0, %v4560_v28  ;;  %v2085_v17 = vmul.f32 0.044715, %v1957_v49 }
 0x27c   : > { %v2212_v59 = vadd.f32 %v2084_v35, %v6034_v40  ;;  %v2086_v48 = vmul.f32 0.044715, %v1958_v51  ;;  %v4564_v31 = vpop.eup %4563  ;;  %v2590_v22 = vadd.f32 1.0, %v4562_v33  ;;  %v2087_v1 = vmul.f32 0.044715, %v1959_v36 }
 0x27d   : > { %v1960_v2 = vmul.f32 %v1832_v4, %v6067_v50  ;;  %v1961_v46 = vmul.f32 %v1833_v32, %v6075_v60  ;;  %v4566_v25 = vpop.eup %4565  ;;  %v2717_v10 = vmul.f32 0.5, %v2589_v52  ;;  %v2591_v3 = vadd.f32 1.0, %v4564_v31 }
 0x27e   : > { %v2340_v11 = vmul.f32 0.7978846, %v2212_v59  ;;  %v2213_v43 = vadd.f32 %v2085_v17, %v6038_v45  ;;  %v2718_v21 = vmul.f32 0.5, %v2590_v22  ;;  %v2592_v53 = vadd.f32 1.0, %v4566_v25  ;;  %v6157_v49 = vpop.f32.mrb[68].mxu0 }
 0x27f   : > { %v2214_v28 = vadd.f32 %v2086_v48, %v6055_v38  ;;  %v2215_v35 = vadd.f32 %v2087_v1, %v6062_v29  ;;  %v2845_v51 = vmul.f32 %v2717_v10, %v5978_v47  ;;  %v2719_v36 = vmul.f32 0.5, %v2591_v3  ;;  %v6160_v32 = vpop.f32.mrb[69].mxu0 }
 0x280   : > { %4573 = vtanh.f32 %v2340_v11  ;;  %v2341_v4 = vmul.f32 0.7978846, %v2213_v43  ;;  %v4568_v33 = vpop.eup %4567  ;;  %v6163_v52 = vmul.f32 %v2718_v21, %v5987_v30  ;;  %v2720_v59 = vmul.f32 0.5, %v2592_v53  ;;  %v6165_v48 = vpop.f32.mrb[70].mxu0 }
 0x281   : > { %v2342_v17 = vmul.f32 0.7978846, %v2214_v28  ;;  %v2343_v31 = vmul.f32 0.7978846, %v2215_v35  ;;  %3231 = vmatmul.mubr.bf16.gmra.mrb[104].mxu1 %v2946_v18  ;;  %v4570_v22 = vpop.eup %4569  ;;  %v6168_v1 = vmul.f32 %v2719_v36, %v5990_v39  ;;  %v2593_v47 = vadd.f32 1.0, %v4568_v33  ;;  %v6170_v10 = vpop.f32.mrb[71].mxu0 }
 0x282   : > { %4575 = vtanh.f32 %v2341_v4  ;;  %v2088_v25 = vmul.f32 0.044715, %v1960_v2  ;;  %v6173_v3 = vmul.f32 %v2720_v59, %v5995_v37  ;;  %v2594_v30 = vadd.f32 1.0, %v4570_v22 }
 0x283   : > { %4577 = vtanh.f32 %v2342_v17  ;;  %v2089_v11 = vmul.f32 0.044715, %v1961_v46  ;;  %v2721_v43 = vmul.f32 0.5, %v2593_v47  ;;  %v1834_v21 = vmul.f32 %v6095_v34, %v6095_v34 }
 0x284   : > { %4579 = vtanh.f32 %v2343_v31  ;;  %v2216_v18 = vadd.f32 %v2088_v25, %v6067_v50  ;;  %v2722_v53 = vmul.f32 0.5, %v2594_v30  ;;  %v1835_v2 = vmul.f32 %v6098_v19, %v6098_v19 }
 0x285   : > { %v4572_v39 = vpop.eup %4571  ;;  %v2217_v28 = vadd.f32 %v2089_v11, %v6075_v60  ;;  %v2949_v37 = vpack.c.bf16 %v2845_v51, %v6114_v27  ;;  %v2849_v35 = vmul.f32 %v2721_v43, %v6002_v15  ;;  %v1962_v4 = vmul.f32 %v1834_v21, %v6095_v34 }
 0x286   : > { %v2595_v36 = vadd.f32 1.0, %v4572_v39  ;;  %v2344_v46 = vmul.f32 0.7978846, %v2216_v18  ;;  %v6185_v33 = vmul.f32 %v2722_v53, %v6028_v20  ;;  %v1963_v17 = vmul.f32 %v1835_v2, %v6098_v19  ;;  %v6190_v22 = vpop.f32.mrb[72].mxu0 }
 0x287   : > { %v2345_v59 = vmul.f32 0.7978846, %v2217_v28  ;;  %3238 = vmatprep.mubr.bf16.mxu1 %v2949_v37  ;;  %v1836_v31 = vmul.f32 %v6100_v58, %v6100_v58  ;;  %v2090_v27 = vmul.f32 0.044715, %v1962_v4  ;;  %v2948_v15 = vpack.c.bf16 %v6133_v23, %v6111_v44  ;;  %v6194_v51 = vpop.f32.mrb[73].mxu0 }
 0x288   : > { %v2723_v47 = vmul.f32 0.5, %v2595_v36  ;;  %4581 = vtanh.f32 %v2344_v46  ;;  %v2091_v20 = vmul.f32 0.044715, %v1963_v17  ;;  %v1837_v30 = vmul.f32 %v6102_v14, %v6102_v14  ;;  %v6199_v11 = vpop.f32.mrb[74].mxu0 }
 0x289   : > { %4583 = vtanh.f32 %v2345_v59  ;;  %v1964_v25 = vmul.f32 %v1836_v31, %v6100_v58  ;;  %v2218_v21 = vadd.f32 %v2090_v27, %v6095_v34  ;;  %3239 = vmatmul.mubr.bf16.gmra.mrb[108].mxu1 %v2948_v15  ;;  %v6207_v44 = vadd.f32 %v6123_v42, %v5443_v54  ;;  %v6213_v39 = vpop.f32.mrb[75].mxu0 }
 0x28a   : > { %v4574_v43 = vpop.eup %4573  ;;  %v6202_v18 = vmul.f32 %v2723_v47, %v6031_v41  ;;  %v6211_v23 = vadd.f32 %v6130_v9, %v5445_v55  ;;  %v2219_v28 = vadd.f32 %v2091_v20, %v6098_v19  ;;  %v1965_v41 = vmul.f32 %v1837_v30, %v6102_v14 }
 0x28b   : > { %v2596_v53 = vadd.f32 1.0, %v4574_v43  ;;  %v2092_v2 = vmul.f32 0.044715, %v1964_v25  ;;  %v2346_v36 = vmul.f32 0.7978846, %v2218_v21  ;;  %v1838_v46 = vmul.f32 %v6207_v44, %v6207_v44 }
 0x28c   : > { %v4576_v37 = vpop.eup %4575  ;;  %v1839_v54 = vmul.f32 %v6211_v23, %v6211_v23  ;;  %v2951_v42 = vpack.c.bf16 %v2849_v35, %v6168_v1  ;;  %v2347_v59 = vmul.f32 0.7978846, %v2219_v28  ;;  %v2093_v27 = vmul.f32 0.044715, %v1965_v41 }
 0x28d   : > { %v4578_v55 = vpop.eup %4577  ;;  %v2724_v9 = vmul.f32 0.5, %v2596_v53  ;;  %v2597_v4 = vadd.f32 1.0, %v4576_v37  ;;  %v2220_v17 = vadd.f32 %v2092_v2, %v6100_v58  ;;  %4585 = vtanh.f32 %v2346_v36 }
 0x28e   : > { %v4580_v31 = vpop.eup %4579  ;;  %v2598_v47 = vadd.f32 1.0, %v4578_v55  ;;  %v1966_v15 = vmul.f32 %v1838_v46, %v6207_v44  ;;  %3246 = vmatprep.mubr.bf16.mxu1 %v2951_v42  ;;  %4587 = vtanh.f32 %v2347_v59  ;;  %v6227_v1 = vpop.f32.mrb[76].mxu0  ;;  %v2221_v21 = vadd.f32 %v2093_v27, %v6102_v14 }
 0x28f   : > { %v6225_v20 = vmul.f32 %v2724_v9, %v6034_v40  ;;  %v2725_v25 = vmul.f32 0.5, %v2597_v4  ;;  %v2599_v30 = vadd.f32 1.0, %v4580_v31  ;;  %v2348_v43 = vmul.f32 0.7978846, %v2220_v17  ;;  %v6230_v28 = vpop.f32.mrb[77].mxu0 }
 0x290   : > { %v2726_v35 = vmul.f32 0.5, %v2598_v47  ;;  %v2094_v53 = vmul.f32 0.044715, %v1966_v15  ;;  %v1967_v37 = vmul.f32 %v1839_v54, %v6211_v23  ;;  %v6236_v40 = vadd.f32 %v6138_v26, %v5447_v56  ;;  %v6238_v36 = vpop.f32.mrb[78].mxu0 }
 0x291   : > { %v2853_v2 = vmul.f32 %v2725_v25, %v6038_v45  ;;  %v2727_v41 = vmul.f32 0.5, %v2599_v30  ;;  %4589 = vtanh.f32 %v2348_v43  ;;  %v2349_v55 = vmul.f32 0.7978846, %v2221_v21  ;;  %v6244_v4 = vpop.f32.mrb[79].mxu0 }
 0x292   : > { %v4582_v46 = vpop.eup %4581  ;;  %v6241_v42 = vmul.f32 %v2726_v35, %v6055_v38  ;;  %v2222_v9 = vadd.f32 %v2094_v53, %v6207_v44  ;;  %v2095_v17 = vmul.f32 0.044715, %v1967_v37  ;;  %v1840_v56 = vmul.f32 %v6236_v40, %v6236_v40 }
 0x293   : > { %v4584_v45 = vpop.eup %4583  ;;  %v6247_v59 = vmul.f32 %v2727_v41, %v6062_v29  ;;  %v2600_v54 = vadd.f32 1.0, %v4582_v46  ;;  %4591 = vtanh.f32 %v2349_v55  ;;  %v2950_v38 = vpack.c.bf16 %v6173_v3, %v6163_v52 }
 0x294   : > { %v2601_v26 = vadd.f32 1.0, %v4584_v45  ;;  %v2350_v31 = vmul.f32 0.7978846, %v2222_v9  ;;  %v2223_v27 = vadd.f32 %v2095_v17, %v6211_v23  ;;  %v1968_v15 = vmul.f32 %v1840_v56, %v6236_v40 }
 0x295   : > { %v2728_v47 = vmul.f32 0.5, %v2600_v54  ;;  %v6257_v29 = vadd.f32 %v6144_v16, %v5449_v57  ;;  %3247 = vmatmul.mubr.bf16.gmra.mrb[112].mxu1 %v2950_v38  ;;  %v6261_v30 = vadd.f32 %v6157_v49, %v5454_v61  ;;  %v6265_v35 = vadd.f32 %v6160_v32, %v5456_v62 }
 0x296   : > { %v2729_v25 = vmul.f32 0.5, %v2601_v26  ;;  %4593 = vtanh.f32 %v2350_v31  ;;  %v2351_v3 = vmul.f32 0.7978846, %v2223_v27  ;;  %v2096_v43 = vmul.f32 0.044715, %v1968_v15  ;;  %v6272_v16 = vpop.f32.mrb[80].mxu0 }
 0x297   : > { %v6268_v52 = vmul.f32 %v2728_v47, %v6067_v50  ;;  %v1841_v57 = vmul.f32 %v6257_v29, %v6257_v29  ;;  %v4586_v21 = vpop.eup %4585  ;;  %v1842_v61 = vmul.f32 %v6261_v30, %v6261_v30  ;;  %v1843_v62 = vmul.f32 %v6265_v35, %v6265_v35  ;;  %v6282_v49 = vpop.f32.mrb[81].mxu0 }
 0x298   : > { %v6275_v53 = vmul.f32 %v2729_v25, %v6075_v60  ;;  %v2953_v50 = vpack.c.bf16 %v2853_v2, %v6202_v18  ;;  %v4588_v32 = vpop.eup %4587  ;;  %v2602_v41 = vadd.f32 1.0, %v4586_v21  ;;  %4595 = vtanh.f32 %v2351_v3  ;;  %v6286_v55 = vpop.f32.mrb[82].mxu0 }
 0x299   : > { %v2224_v37 = vadd.f32 %v2096_v43, %v6236_v40  ;;  %v1969_v46 = vmul.f32 %v1841_v57, %v6257_v29  ;;  %v2603_v60 = vadd.f32 1.0, %v4588_v32  ;;  %v1970_v9 = vmul.f32 %v1842_v61, %v6261_v30  ;;  %v6294_v2 = vpop.f32.mrb[83].mxu0 }
 0x29a   : > { %v1971_v45 = vmul.f32 %v1843_v62, %v6265_v35  ;;  %3254 = vmatprep.mubr.bf16.mxu1 %v2953_v50  ;;  %v6292_v18 = vadd.f32 %v6165_v48, %v5458_v63  ;;  %v2730_v54 = vmul.f32 0.5, %v2602_v41  ;;  %v2952_v26 = vpack.c.bf16 %v6225_v20, %v6185_v33 }
 0x29b   : > { %v2352_v17 = vmul.f32 0.7978846, %v2224_v37  ;;  %v2097_v56 = vmul.f32 0.044715, %v1969_v46  ;;  %v4590_v31 = vpop.eup %4589  ;;  %v2731_v38 = vmul.f32 0.5, %v2603_v60  ;;  %v6320_v46 = vadd.f32 %v6190_v22, %v5465_v5 }
 0x29c   : > { %v2098_v47 = vmul.f32 0.044715, %v1970_v9  ;;  %v2099_v27 = vmul.f32 0.044715, %v1971_v45  ;;  %v1844_v15 = vmul.f32 %v6292_v18, %v6292_v18  ;;  %v6301_v25 = vmul.f32 %v2730_v54, %v6095_v34 }
 0x29d   : > { %v2604_v63 = vadd.f32 1.0, %v4590_v31  ;;  %4597 = vtanh.f32 %v2352_v17  ;;  %v2225_v48 = vadd.f32 %v2097_v56, %v6257_v29  ;;  %v4592_v3 = vpop.eup %4591  ;;  %v6305_v43 = vmul.f32 %v2731_v38, %v6098_v19  ;;  %3255 = vmatmul.mubr.bf16.gmra.mrb[116].mxu1 %v2952_v26 }
 0x29e   : > { %v2226_v33 = vadd.f32 %v2098_v47, %v6261_v30  ;;  %v2227_v20 = vadd.f32 %v2099_v27, %v6265_v35  ;;  %v1972_v57 = vmul.f32 %v1844_v15, %v6292_v18  ;;  %v2605_v61 = vadd.f32 1.0, %v4592_v3  ;;  %v6314_v50 = vpop.f32.mrb[84].mxu0 }
 0x29f   : > { %v2732_v21 = vmul.f32 0.5, %v2604_v63  ;;  %v2353_v62 = vmul.f32 0.7978846, %v2225_v48  ;;  %v6312_v34 = vadd.f32 %v6170_v10, %v5460_v0  ;;  %v6327_v10 = vpop.f32.mrb[85].mxu0  ;;  %v1846_v54 = vmul.f32 %v6320_v46, %v6320_v46 }
 0x2a0   : > { %v6316_v32 = vpop.eup %4593  ;;  %v2354_v19 = vmul.f32 0.7978846, %v2226_v33  ;;  %v2355_v41 = vmul.f32 0.7978846, %v2227_v20  ;;  %v2100_v37 = vmul.f32 0.044715, %v1972_v57  ;;  %v6334_v5 = vadd.f32 %v6194_v51, %v5467_v6 }
 0x2a1   : > { %v6323_v60 = vmul.f32 %v2732_v21, %v6100_v58  ;;  %v2733_v9 = vmul.f32 0.5, %v2605_v61  ;;  %4599 = vtanh.f32 %v2353_v62  ;;  %v1845_v0 = vmul.f32 %v6312_v34, %v6312_v34  ;;  %v6336_v22 = vpop.f32.mrb[86].mxu0 }
 0x2a2   : > { %4601 = vtanh.f32 %v2354_v19  ;;  %v2228_v45 = vadd.f32 %v2100_v37, %v6292_v18  ;;  %v6338_v58 = vpop.eup %4595  ;;  %v2955_v26 = vpack.c.bf16 %v6275_v53, %v6247_v59  ;;  %v6344_v31 = vpop.f32.mrb[87].mxu0  ;;  %v1974_v47 = vmul.f32 %v1846_v54, %v6320_v46 }
 0x2a3   : > { %v2861_v17 = vmul.f32 %v2733_v9, %v6102_v14  ;;  %4603 = vtanh.f32 %v2355_v41  ;;  %v1973_v56 = vmul.f32 %v1845_v0, %v6312_v34  ;;  %v1847_v6 = vmul.f32 %v6334_v5, %v6334_v5 }
 0x2a4   : > { %v2356_v38 = vmul.f32 0.7978846, %v2228_v45  ;;  %v6351_v51 = vadd.f32 %v6199_v11, %v5469_v7  ;;  %3262 = vmatprep.mubr.bf16.mxu1 %v2955_v26  ;;  %v2954_v14 = vpack.c.bf16 %v6268_v52, %v6241_v42  ;;  %v6357_v59 = vadd.f32 %v6213_v39, %v5471_v8 }
 0x2a5   : > { %v2101_v27 = vmul.f32 0.044715, %v1973_v56  ;;  %v6361_v53 = vadd.f32 %v6227_v1, %v5476_v12  ;;  %v2102_v15 = vmul.f32 0.044715, %v1974_v47  ;;  %v1975_v63 = vmul.f32 %v1847_v6, %v6334_v5 }
 0x2a6   : > { %4605 = vtanh.f32 %v2356_v38  ;;  %v1848_v7 = vmul.f32 %v6351_v51, %v6351_v51  ;;  %3263 = vmatmul.mubr.bf16.gmra.mrb[120].mxu1 %v2954_v14  ;;  %v1849_v8 = vmul.f32 %v6357_v59, %v6357_v59  ;;  %v6375_v12 = vadd.f32 %v6230_v28, %v5478_v13  ;;  %v6377_v1 = vpop.f32.mrb[88].mxu0 }
 0x2a7   : > { %v6366_v11 = vpop.eup %4597  ;;  %v2229_v48 = vadd.f32 %v2101_v27, %v6312_v34  ;;  %v1850_v39 = vmul.f32 %v6361_v53, %v6361_v53  ;;  %v2230_v42 = vadd.f32 %v2102_v15, %v6320_v46  ;;  %v2103_v52 = vmul.f32 0.044715, %v1975_v63  ;;  %v6382_v20 = vpop.f32.mrb[89].mxu0  ;;  %v7365_v63 = vld [vmem:[#allocation5_spill] sm:$0xff] }
 0x2a8   : > { %v1976_v3 = vmul.f32 %v1848_v7, %v6351_v51  ;;  %v2957_v33 = vpack.c.bf16 %v2861_v17, %v6305_v43  ;;  %v1977_v21 = vmul.f32 %v1849_v8, %v6357_v59  ;;  %v1851_v13 = vmul.f32 %v6375_v12, %v6375_v12  ;;  %v6388_v28 = vpop.f32.mrb[90].mxu0 }
 0x2a9   : > { %v2357_v57 = vmul.f32 0.7978846, %v2229_v48  ;;  %v1978_v61 = vmul.f32 %v1850_v39, %v6361_v53  ;;  %v2358_v62 = vmul.f32 0.7978846, %v2230_v42  ;;  %v2231_v19 = vadd.f32 %v2103_v52, %v6334_v5  ;;  %v6395_v37 = vpop.f32.mrb[91].mxu0  ;;  %v7366_v42 = vld [vmem:[#allocation6_spill] sm:$0xff] }
 0x2aa   : > { %v2104_v41 = vmul.f32 0.044715, %v1976_v3  ;;  %3270 = vmatprep.mubr.bf16.mxu1 %v2957_v33  ;;  %v6393_v43 = vadd.f32 %v6238_v36, %v5480_v24  ;;  %v2105_v0 = vmul.f32 0.044715, %v1977_v21  ;;  %v1979_v54 = vmul.f32 %v1851_v13, %v6375_v12  ;;  %v7368_v13 = vld [vmem:[#allocation8_spill] sm:$0xff] }
 0x2ab   : > { %v4600_v9 = vpop.eup %4599  ;;  %4607 = vtanh.f32 %v2357_v57  ;;  %v2106_v45 = vmul.f32 0.044715, %v1978_v61  ;;  %v2359_v56 = vmul.f32 0.7978846, %v2231_v19  ;;  %v2956_v27 = vpack.c.bf16 %v6323_v60, %v6301_v25 }
 0x2ac   : > { %v6398_v17 = vpop.eup %4601  ;;  %4609 = vtanh.f32 %v2358_v62  ;;  %v2232_v26 = vadd.f32 %v2104_v41, %v6351_v51  ;;  %v1852_v38 = vmul.f32 %v6393_v43, %v6393_v43  ;;  %v2233_v24 = vadd.f32 %v2105_v0, %v6357_v59 }
 0x2ad   : > { %v6403_v47 = vpop.eup %4603  ;;  %v2234_v36 = vadd.f32 %v2106_v45, %v6361_v53  ;;  %v2107_v6 = vmul.f32 0.044715, %v1979_v54  ;;  %4611 = vtanh.f32 %v2359_v56  ;;  %v6412_v7 = vadd.f32 %v6244_v4, %v7365_v63  ;;  %v7367_v4 = vld [vmem:[#allocation7_spill] sm:$0xff] }
 0x2ae   : > { %v2360_v14 = vmul.f32 0.7978846, %v2232_v26  ;;  %v1980_v15 = vmul.f32 %v1852_v38, %v6393_v43  ;;  %v2361_v48 = vmul.f32 0.7978846, %v2233_v24  ;;  %3271 = vmatmul.mubr.bf16.gmra.mrb[124].mxu1 %v2956_v27  ;;  %v6417_v52 = vadd.f32 %v6272_v16, %v7366_v42  ;;  %v6419_v3 = vpop.f32.mrb[92].mxu0 }
 0x2af   : > { %v2362_v8 = vmul.f32 0.7978846, %v2234_v36  ;;  %v2235_v39 = vadd.f32 %v2107_v6, %v6375_v12  ;;  %v1853_v33 = vmul.f32 %v6412_v7, %v6412_v7  ;;  %v6427_v57 = vadd.f32 %v6282_v49, %v7367_v4  ;;  %v6429_v21 = vpop.f32.mrb[93].mxu0 }
 0x2b0   : > { %v6421_v25 = vpop.eup %4605  ;;  %4613 = vtanh.f32 %v2360_v14  ;;  %v2108_v60 = vmul.f32 0.044715, %v1980_v15  ;;  %v1854_v16 = vmul.f32 %v6417_v52, %v6417_v52  ;;  %v6435_v62 = vadd.f32 %v6286_v55, %v7368_v13  ;;  %v6437_v19 = vpop.f32.mrb[94].mxu0  ;;  %v7369_v55 = vld [vmem:[#allocation9_spill] sm:$0xff] }
 0x2b1   : > { %4615 = vtanh.f32 %v2361_v48  ;;  %v2363_v61 = vmul.f32 0.7978846, %v2235_v39  ;;  %v1981_v0 = vmul.f32 %v1853_v33, %v6412_v7  ;;  %v1855_v49 = vmul.f32 %v6427_v57, %v6427_v57  ;;  %v6443_v45 = vpop.f32.mrb[95].mxu0 }
 0x2b2   : > { %4617 = vtanh.f32 %v2362_v8  ;;  %v2236_v41 = vadd.f32 %v2108_v60, %v6393_v43  ;;  %v1982_v54 = vmul.f32 %v1854_v16, %v6417_v52  ;;  %v1856_v56 = vmul.f32 %v6435_v62, %v6435_v62 }
 0x2b3   : > { %4619 = vtanh.f32 %v2363_v61  ;;  %v6450_v26 = vadd.f32 %v6294_v2, %v7369_v55  ;;  %v2109_v24 = vmul.f32 0.044715, %v1981_v0  ;;  %v1983_v36 = vmul.f32 %v1855_v49, %v6427_v57 }
 0x2b4   : > { %v2364_v38 = vmul.f32 0.7978846, %v2236_v41  ;;  %v2607_v6 = vadd.f32 1.0, %v6338_v58  ;;  %v2110_v14 = vmul.f32 0.044715, %v1982_v54  ;;  %v1984_v15 = vmul.f32 %v1856_v56, %v6435_v62 }
 0x2b5   : > { %v4608_v27 = vpop.eup %4607  ;;  %v1857_v63 = vmul.f32 %v6450_v26, %v6450_v26  ;;  %v2609_v48 = vadd.f32 1.0, %v4600_v9  ;;  %v2237_v2 = vadd.f32 %v2109_v24, %v6412_v7  ;;  %v2111_v39 = vmul.f32 0.044715, %v1983_v36 }
 0x2b6   : > { %v6457_v8 = vpop.eup %4609  ;;  %4621 = vtanh.f32 %v2364_v38  ;;  %v2735_v42 = vmul.f32 0.5, %v2607_v6  ;;  %v2238_v60 = vadd.f32 %v2110_v14, %v6417_v52  ;;  %v2112_v33 = vmul.f32 0.044715, %v1984_v15  ;;  %v6462_v61 = vpop.f32.mrb[96].mxu0 }
 0x2b7   : > { %v1985_v58 = vmul.f32 %v1857_v63, %v6450_v26  ;;  %v2737_v4 = vmul.f32 0.5, %v2609_v48  ;;  %v6464_v16 = vpop.eup %4611  ;;  %v2365_v13 = vmul.f32 0.7978846, %v2237_v2  ;;  %v2239_v9 = vadd.f32 %v2111_v39, %v6427_v57  ;;  %v6469_v49 = vpop.f32.mrb[97].mxu0 }
 0x2b8   : > { %v2863_v41 = vmul.f32 %v2735_v42, %v6211_v23  ;;  %v2606_v0 = vadd.f32 1.0, %v6316_v32  ;;  %v2366_v54 = vmul.f32 0.7978846, %v2238_v60  ;;  %v2240_v56 = vadd.f32 %v2112_v33, %v6435_v62  ;;  %v6473_v24 = vpop.f32.mrb[98].mxu0  ;;  %v7370_v60 = vld [vmem:[#allocation10_spill] sm:$0xff] }
 0x2b9   : > { %v2113_v55 = vmul.f32 0.044715, %v1985_v58  ;;  %v2865_v38 = vmul.f32 %v2737_v4, %v6257_v29  ;;  %4623 = vtanh.f32 %v2365_v13  ;;  %v2367_v6 = vmul.f32 0.7978846, %v2239_v9  ;;  %v6478_v23 = vpop.f32.mrb[99].mxu0  ;;  %v7371_v4 = vld [vmem:[#allocation11_spill] sm:$0xff] }
 0x2ba   : > { %v6475_v36 = vpop.eup %4613  ;;  %v2608_v14 = vadd.f32 1.0, %v6366_v11  ;;  %v2734_v15 = vmul.f32 0.5, %v2606_v0  ;;  %4625 = vtanh.f32 %v2366_v54  ;;  %v2368_v63 = vmul.f32 0.7978846, %v2240_v56  ;;  %v7372_v9 = vld [vmem:[#allocation12_spill] sm:$0xff] }
 0x2bb   : > { %v6480_v32 = vpop.eup %4615  ;;  %v2241_v48 = vadd.f32 %v2113_v55, %v6450_v26  ;;  %v2959_v2 = vpack.c.bf16 %v2865_v38, %v2863_v41  ;;  %4627 = vtanh.f32 %v2367_v6  ;;  %v6488_v33 = vadd.f32 %v6314_v50, %v7370_v60  ;;  %v7373_v50 = vld [vmem:[#allocation13_spill] sm:$0xff] }
 0x2bc   : > { %v6483_v39 = vpop.eup %4617  ;;  %v2736_v29 = vmul.f32 0.5, %v2608_v14  ;;  %v2862_v42 = vmul.f32 %v2734_v15, %v6207_v44  ;;  %4629 = vtanh.f32 %v2368_v63  ;;  %v6494_v13 = vadd.f32 %v6327_v10, %v7371_v4 }
 0x2bd   : > { %v6490_v11 = vpop.eup %4619  ;;  %v2369_v58 = vmul.f32 0.7978846, %v2241_v48  ;;  %3278 = vmatprep.mubr.bf16.mxu1 %v2959_v2  ;;  %v6498_v41 = vadd.f32 %v6336_v22, %v7372_v9  ;;  %v1858_v44 = vmul.f32 %v6488_v33, %v6488_v33  ;;  %v6505_v54 = vadd.f32 %v6344_v31, %v7373_v50 }
 0x2be   : > { %v2864_v0 = vmul.f32 %v2736_v29, %v6236_v40  ;;  %v2611_v56 = vadd.f32 1.0, %v6403_v47  ;;  %v1859_v10 = vmul.f32 %v6494_v13, %v6494_v13  ;;  %v2613_v22 = vadd.f32 1.0, %v4608_v27  ;;  %v6512_v38 = vpop.f32.mrb[100].mxu0 }
 0x2bf   : > { %4631 = vtanh.f32 %v2369_v58  ;;  %v1860_v55 = vmul.f32 %v6498_v41, %v6498_v41  ;;  %v1986_v14 = vmul.f32 %v1858_v44, %v6488_v33  ;;  %v1861_v31 = vmul.f32 %v6505_v54, %v6505_v54  ;;  %v6519_v47 = vpop.f32.mrb[101].mxu0 }
 0x2c0   : > { %v6514_v40 = vpop.eup %4621  ;;  %v2958_v6 = vpack.c.bf16 %v2864_v0, %v2862_v42  ;;  %v2739_v15 = vmul.f32 0.5, %v2611_v56  ;;  %v1987_v63 = vmul.f32 %v1859_v10, %v6494_v13  ;;  %v2741_v2 = vmul.f32 0.5, %v2613_v22  ;;  %v6524_v29 = vpop.f32.mrb[102].mxu0 }
 0x2c1   : > { %v1988_v48 = vmul.f32 %v1860_v55, %v6498_v41  ;;  %v2610_v27 = vadd.f32 1.0, %v6398_v17  ;;  %v2114_v60 = vmul.f32 0.044715, %v1986_v14  ;;  %v1989_v42 = vmul.f32 %v1861_v31, %v6505_v54  ;;  %v6529_v9 = vpop.f32.mrb[103].mxu0 }
 0x2c2   : > { %3279 = vmatmul.mubr.bf16.gmra.mrb[128].mxu1 %v2958_v6  ;;  %v2867_v58 = vmul.f32 %v2739_v15, %v6265_v35  ;;  %v2612_v4 = vadd.f32 1.0, %v6421_v25  ;;  %v2115_v0 = vmul.f32 0.044715, %v1987_v63  ;;  %v2869_v50 = vmul.f32 %v2741_v2, %v6312_v34  ;;  %v7374_v6 = vld [vmem:[#allocation14_spill] sm:$0xff] }
 0x2c3   : > { %v2116_v44 = vmul.f32 0.044715, %v1988_v48  ;;  %v2738_v56 = vmul.f32 0.5, %v2610_v27  ;;  %v6532_v10 = vpop.eup %4623  ;;  %v2242_v17 = vadd.f32 %v2114_v60, %v6488_v33  ;;  %v2117_v55 = vmul.f32 0.044715, %v1989_v42 }
 0x2c4   : > { %v2740_v22 = vmul.f32 0.5, %v2612_v4  ;;  %v6537_v14 = vadd.f32 %v6377_v1, %v7374_v6  ;;  %v6539_v35 = vpop.eup %4625  ;;  %v2243_v25 = vadd.f32 %v2115_v0, %v6494_v13  ;;  %v2961_v15 = vpack.c.bf16 %v2869_v50, %v2867_v58  ;;  %v7376_v0 = vld [vmem:[#allocation15_spill] sm:$0xff] }
 0x2c5   : > { %v2244_v31 = vadd.f32 %v2116_v44, %v6498_v41  ;;  %v2866_v34 = vmul.f32 %v2738_v56, %v6261_v30  ;;  %v6544_v63 = vpop.eup %4627  ;;  %v2370_v48 = vmul.f32 0.7978846, %v2242_v17  ;;  %v2245_v2 = vadd.f32 %v2117_v55, %v6505_v54  ;;  %v7377_v30 = vld [vmem:[#allocation16_spill] sm:$0xff] }
 0x2c6   : > { %7375 = vst [vmem:[#allocation5_spill] sm:$0xff] %v6537_v14  ;;  %v2868_v27 = vmul.f32 %v2740_v22, %v6292_v18  ;;  %v1862_v1 = vmul.f32 %v6537_v14, %v6537_v14  ;;  %v6550_v60 = vpop.eup %4629  ;;  %v2371_v42 = vmul.f32 0.7978846, %v2243_v25  ;;  %3286 = vmatprep.mubr.bf16.mxu1 %v2961_v15  ;;  %v6554_v58 = vadd.f32 %v6382_v20, %v7376_v0  ;;  %v6560_v50 = vpop.f32.mrb[104].mxu0 }
 0x2c7   : > { %v2372_v4 = vmul.f32 0.7978846, %v2244_v31  ;;  %v6558_v44 = vadd.f32 %v6388_v28, %v7377_v30  ;;  %4633 = vtanh.f32 %v2370_v48  ;;  %v2373_v18 = vmul.f32 0.7978846, %v2245_v2  ;;  %v6563_v55 = vpop.f32.mrb[105].mxu0  ;;  %v7378_v28 = vld [vmem:[#allocation17_spill] sm:$0xff] }
 0x2c8   : > { %v2960_v56 = vpack.c.bf16 %v2868_v27, %v2866_v34  ;;  %v1990_v17 = vmul.f32 %v1862_v1, %v6537_v14  ;;  %4635 = vtanh.f32 %v2371_v42  ;;  %v1863_v20 = vmul.f32 %v6554_v58, %v6554_v58  ;;  %v6575_v31 = vpop.f32.mrb[106].mxu0 }
 0x2c9   : > { %v6565_v22 = vpop.eup %4631  ;;  %v1864_v6 = vmul.f32 %v6558_v44, %v6558_v44  ;;  %v6573_v25 = vadd.f32 %v6395_v37, %v7378_v28  ;;  %4637 = vtanh.f32 %v2372_v4  ;;  %v2615_v34 = vadd.f32 1.0, %v6464_v16  ;;  %v6579_v2 = vpop.f32.mrb[107].mxu0 }
 0x2ca   : > { %3287 = vmatmul.mubr.bf16.gmra.mrb[132].mxu1 %v2960_v56  ;;  %v2118_v15 = vmul.f32 0.044715, %v1990_v17  ;;  %v2617_v48 = vadd.f32 1.0, %v6480_v32  ;;  %7379 = vst [vmem:[#allocation6_spill] sm:$0xff] %v6579_v2  ;;  %4639 = vtanh.f32 %v2373_v18  ;;  %v1991_v27 = vmul.f32 %v1863_v20, %v6554_v58 }
 0x2cb   : > { %v1992_v1 = vmul.f32 %v1864_v6, %v6558_v44  ;;  %v1865_v37 = vmul.f32 %v6573_v25, %v6573_v25  ;;  %v2743_v0 = vmul.f32 0.5, %v2615_v34  ;;  %v2614_v30 = vadd.f32 1.0, %v6457_v8 }
 0x2cc   : > { %v2246_v42 = vadd.f32 %v2118_v15, %v6537_v14  ;;  %v2745_v4 = vmul.f32 0.5, %v2617_v48  ;;  %v2119_v56 = vmul.f32 0.044715, %v1991_v27  ;;  %v2616_v17 = vadd.f32 1.0, %v6475_v36 }
 0x2cd   : > { %v2120_v16 = vmul.f32 0.044715, %v1992_v1  ;;  %v1993_v32 = vmul.f32 %v1865_v37, %v6573_v25  ;;  %v2871_v20 = vmul.f32 %v2743_v0, %v6334_v5  ;;  %v2742_v28 = vmul.f32 0.5, %v2614_v30  ;;  %v7380_v1 = vld [vmem:[#allocation18_spill] sm:$0xff] }
 0x2ce   : > { %v2374_v18 = vmul.f32 0.7978846, %v2246_v42  ;;  %v2873_v6 = vmul.f32 %v2745_v4, %v6357_v59  ;;  %v2247_v2 = vadd.f32 %v2119_v56, %v6554_v58  ;;  %v2744_v48 = vmul.f32 0.5, %v2616_v17  ;;  %v6593_v14 = vpop.f32.mrb[108].mxu0  ;;  %v7381_v56 = vld [vmem:[#allocation19_spill] sm:$0xff] }
 0x2cf   : > { %v2248_v15 = vadd.f32 %v2120_v16, %v6558_v44  ;;  %v2121_v34 = vmul.f32 0.044715, %v1993_v32  ;;  %v2870_v27 = vmul.f32 %v2742_v28, %v6320_v46  ;;  %v6598_v36 = vadd.f32 %v6419_v3, %v7380_v1  ;;  %v6600_v5 = vpop.f32.mrb[109].mxu0  ;;  %v7382_v16 = vld [vmem:[#allocation20_spill] sm:$0xff]  ;;  %v7383_v32 = vld [vmem:[#allocation21_spill] sm:$0xff] }
 0x2d0   : > { %4641 = vtanh.f32 %v2374_v18  ;;  %v2963_v8 = vpack.c.bf16 %v2873_v6, %v2871_v20  ;;  %v2375_v59 = vmul.f32 0.7978846, %v2247_v2  ;;  %v2872_v0 = vmul.f32 %v2744_v48, %v6351_v51  ;;  %v6604_v4 = vpop.f32.mrb[110].mxu0 }
 0x2d1   : > { %v2376_v37 = vmul.f32 0.7978846, %v2248_v15  ;;  %v2249_v42 = vadd.f32 %v2121_v34, %v6573_v25  ;;  %v6606_v30 = vpop.eup %4633  ;;  %v1866_v46 = vmul.f32 %v6598_v36, %v6598_v36  ;;  %v6612_v3 = vadd.f32 %v6429_v21, %v7381_v56  ;;  %v6622_v51 = vpop.f32.mrb[111].mxu0 }
 0x2d2   : > { %3294 = vmatprep.mubr.bf16.mxu1 %v2963_v8  ;;  %v6616_v2 = vadd.f32 %v6437_v19, %v7382_v16  ;;  %v6620_v17 = vadd.f32 %v6443_v45, %v7383_v32  ;;  %v6624_v18 = vpop.eup %4635  ;;  %4643 = vtanh.f32 %v2375_v59  ;;  %v2962_v6 = vpack.c.bf16 %v2872_v0, %v2870_v27 }
 0x2d3   : > { %v2377_v20 = vmul.f32 0.7978846, %v2249_v42  ;;  %v2619_v28 = vadd.f32 1.0, %v6490_v11  ;;  %v6627_v15 = vpop.eup %4637  ;;  %4645 = vtanh.f32 %v2376_v37  ;;  %v1994_v21 = vmul.f32 %v1866_v46, %v6598_v36 }
 0x2d4   : > { %v1867_v19 = vmul.f32 %v6612_v3, %v6612_v3  ;;  %v1868_v45 = vmul.f32 %v6616_v2, %v6616_v2  ;;  %v6634_v34 = vpop.eup %4639  ;;  %3295 = vmatmul.mubr.bf16.gmra.mrb[136].mxu1 %v2962_v6  ;;  %v1869_v48 = vmul.f32 %v6620_v17, %v6620_v17  ;;  %v2621_v11 = vadd.f32 1.0, %v6532_v10 }
 0x2d5   : > { %4647 = vtanh.f32 %v2377_v20  ;;  %v2747_v8 = vmul.f32 0.5, %v2619_v28  ;;  %v2122_v27 = vmul.f32 0.044715, %v1994_v21  ;;  %v2618_v37 = vadd.f32 1.0, %v6483_v39 }
 0x2d6   : > { %v1995_v1 = vmul.f32 %v1867_v19, %v6612_v3  ;;  %v1996_v59 = vmul.f32 %v1868_v45, %v6616_v2  ;;  %v1997_v42 = vmul.f32 %v1869_v48, %v6620_v17  ;;  %v2749_v0 = vmul.f32 0.5, %v2621_v11  ;;  %v6645_v16 = vpop.f32.mrb[112].mxu0  ;;  %v7384_v45 = vld [vmem:[#allocation22_spill] sm:$0xff] }
 0x2d7   : > { %v2875_v46 = vmul.f32 %v2747_v8, %v6375_v12  ;;  %v2620_v56 = vadd.f32 1.0, %v6514_v40  ;;  %v2250_v32 = vadd.f32 %v2122_v27, %v6598_v36  ;;  %v2746_v6 = vmul.f32 0.5, %v2618_v37  ;;  %v6648_v28 = vpop.f32.mrb[113].mxu0 }
 0x2d8   : > { %v2123_v10 = vmul.f32 0.044715, %v1995_v1  ;;  %v2124_v20 = vmul.f32 0.044715, %v1996_v59  ;;  %v2125_v21 = vmul.f32 0.044715, %v1997_v42  ;;  %v2877_v19 = vmul.f32 %v2749_v0, %v6412_v7 }
 0x2d9   : > { %v2748_v39 = vmul.f32 0.5, %v2620_v56  ;;  %v6653_v48 = vadd.f32 %v6462_v61, %v7384_v45  ;;  %v6655_v12 = vpop.f32.mrb[114].mxu0  ;;  %v2378_v11 = vmul.f32 0.7978846, %v2250_v32  ;;  %v2874_v1 = vmul.f32 %v2746_v6, %v6361_v53  ;;  %v7385_v32 = vld [vmem:[#allocation23_spill] sm:$0xff]  ;;  %v7387_v45 = vld [vmem:[#allocation25_spill] sm:$0xff] }
 0x2da   : > { %v6657_v40 = vpop.eup %4641  ;;  %v2251_v8 = vadd.f32 %v2123_v10, %v6612_v3  ;;  %v2252_v27 = vadd.f32 %v2124_v20, %v6616_v2  ;;  %v6662_v59 = vpop.f32.mrb[115].mxu0  ;;  %v2253_v7 = vadd.f32 %v2125_v21, %v6620_v17  ;;  %v2965_v37 = vpack.c.bf16 %v2877_v19, %v2875_v46  ;;  %v7386_v46 = vld [vmem:[#allocation24_spill] sm:$0xff] }
 0x2db   : > { %v2876_v42 = vmul.f32 %v2748_v39, %v6393_v43  ;;  %v1870_v61 = vmul.f32 %v6653_v48, %v6653_v48  ;;  %4649 = vtanh.f32 %v2378_v11  ;;  %v6670_v10 = vadd.f32 %v6469_v49, %v7385_v32 }
 0x2dc   : > { %v2379_v0 = vmul.f32 0.7978846, %v2251_v8  ;;  %v2380_v56 = vmul.f32 0.7978846, %v2252_v27  ;;  %v6672_v20 = vpop.eup %4643  ;;  %v2381_v53 = vmul.f32 0.7978846, %v2253_v7  ;;  %3302 = vmatprep.mubr.bf16.mxu1 %v2965_v37  ;;  %v6677_v43 = vadd.f32 %v6473_v24, %v7386_v46 }
 0x2dd   : > { %v2964_v6 = vpack.c.bf16 %v2876_v42, %v2874_v1  ;;  %v1998_v21 = vmul.f32 %v1870_v61, %v6653_v48  ;;  %v6679_v19 = vpop.eup %4645  ;;  %v1871_v39 = vmul.f32 %v6670_v10, %v6670_v10  ;;  %v6685_v49 = vadd.f32 %v6478_v23, %v7387_v45 }
 0x2de   : > { %4651 = vtanh.f32 %v2379_v0  ;;  %v2623_v11 = vadd.f32 1.0, %v6544_v63  ;;  %v1872_v24 = vmul.f32 %v6677_v43, %v6677_v43  ;;  %v2625_v1 = vadd.f32 1.0, %v6565_v22  ;;  %v6693_v7 = vpop.f32.mrb[116].mxu0 }
 0x2df   : > { %v6688_v8 = vpop.eup %4647  ;;  %4653 = vtanh.f32 %v2380_v56  ;;  %3303 = vmatmul.mubr.bf16.gmra.mrb[140].mxu1 %v2964_v6  ;;  %v2126_v27 = vmul.f32 0.044715, %v1998_v21  ;;  %7388 = vst [vmem:[#allocation7_spill] sm:$0xff] %v6693_v7  ;;  %v1999_v37 = vmul.f32 %v1871_v39, %v6670_v10  ;;  %v1873_v23 = vmul.f32 %v6685_v49, %v6685_v49  ;;  %v6698_v63 = vpop.f32.mrb[117].mxu0  ;;  %v7390_v7 = vld [vmem:[#allocation26_spill] sm:$0xff] }
 0x2e0   : > { %4655 = vtanh.f32 %v2381_v53  ;;  %v2751_v42 = vmul.f32 0.5, %v2623_v11  ;;  %7389 = vst [vmem:[#allocation8_spill] sm:$0xff] %v6698_v63  ;;  %v2000_v0 = vmul.f32 %v1872_v24, %v6677_v43  ;;  %v2753_v56 = vmul.f32 0.5, %v2625_v1  ;;  %v6703_v6 = vpop.f32.mrb[118].mxu0 }
 0x2e1   : > { %v2254_v61 = vadd.f32 %v2126_v27, %v6653_v48  ;;  %v2622_v32 = vadd.f32 1.0, %v6539_v35  ;;  %v2127_v22 = vmul.f32 0.044715, %v1999_v37  ;;  %v2001_v53 = vmul.f32 %v1873_v23, %v6685_v49  ;;  %v6708_v39 = vpop.f32.mrb[119].mxu0 }
 0x2e2   : > { %v2879_v21 = vmul.f32 %v2751_v42, %v6427_v57  ;;  %v2624_v46 = vadd.f32 1.0, %v6550_v60  ;;  %v2128_v11 = vmul.f32 0.044715, %v2000_v0  ;;  %v2881_v27 = vmul.f32 %v2753_v56, %v6450_v26 }
 0x2e3   : > { %v2382_v45 = vmul.f32 0.7978846, %v2254_v61  ;;  %v2750_v63 = vmul.f32 0.5, %v2622_v32  ;;  %v2255_v24 = vadd.f32 %v2127_v22, %v6670_v10  ;;  %v2129_v1 = vmul.f32 0.044715, %v2001_v53  ;;  %v7392_v22 = vld [vmem:[#allocation28_spill] sm:$0xff] }
 0x2e4   : > { %v2752_v35 = vmul.f32 0.5, %v2624_v46  ;;  %v6714_v37 = vadd.f32 %v6512_v38, %v7390_v7  ;;  %v2256_v57 = vadd.f32 %v2128_v11, %v6677_v43  ;;  %v2967_v23 = vpack.c.bf16 %v2881_v27, %v2879_v21  ;;  %v7391_v38 = vld [vmem:[#allocation27_spill] sm:$0xff] }
 0x2e5   : > { %4657 = vtanh.f32 %v2382_v45  ;;  %v2878_v60 = vmul.f32 %v2750_v63, %v6417_v52  ;;  %v6718_v42 = vpop.eup %4649  ;;  %v2383_v61 = vmul.f32 0.7978846, %v2255_v24  ;;  %v2257_v26 = vadd.f32 %v2129_v1, %v6685_v49  ;;  %v7393_v52 = vld [vmem:[#allocation29_spill] sm:$0xff] }
 0x2e6   : > { %v2880_v0 = vmul.f32 %v2752_v35, %v6435_v62  ;;  %v1874_v56 = vmul.f32 %v6714_v37, %v6714_v37  ;;  %v2384_v32 = vmul.f32 0.7978846, %v2256_v57  ;;  %3310 = vmatprep.mubr.bf16.mxu1 %v2967_v23  ;;  %v6726_v7 = vadd.f32 %v6519_v47, %v7391_v38  ;;  %v6736_v21 = vpop.f32.mrb[120].mxu0 }
 0x2e7   : > { %v6730_v53 = vadd.f32 %v6524_v29, %v7392_v22  ;;  %v6734_v63 = vadd.f32 %v6529_v9, %v7393_v52  ;;  %4659 = vtanh.f32 %v2383_v61  ;;  %v2385_v46 = vmul.f32 0.7978846, %v2257_v26  ;;  %v6741_v27 = vpop.f32.mrb[121].mxu0 }
 0x2e8   : > { %v6738_v62 = vpop.eup %4651  ;;  %v2966_v45 = vpack.c.bf16 %v2880_v0, %v2878_v60  ;;  %v2002_v11 = vmul.f32 %v1874_v56, %v6714_v37  ;;  %4661 = vtanh.f32 %v2384_v32  ;;  %v1875_v29 = vmul.f32 %v6726_v7, %v6726_v7  ;;  %v6751_v1 = vpop.f32.mrb[122].mxu0 }
 0x2e9   : > { %v6743_v47 = vpop.eup %4653  ;;  %v1876_v9 = vmul.f32 %v6730_v53, %v6730_v53  ;;  %v1877_v24 = vmul.f32 %v6734_v63, %v6734_v63  ;;  %7394 = vst [vmem:[#allocation9_spill] sm:$0xff] %v6751_v1  ;;  %4663 = vtanh.f32 %v2385_v46  ;;  %v2627_v23 = vadd.f32 1.0, %v6624_v18  ;;  %v6757_v61 = vpop.f32.mrb[123].mxu0 }
 0x2ea   : > { %v6753_v35 = vpop.eup %4655  ;;  %3311 = vmatmul.mubr.bf16.gmra.mrb[144].mxu1 %v2966_v45  ;;  %v2130_v57 = vmul.f32 0.044715, %v2002_v11  ;;  %v2629_v60 = vadd.f32 1.0, %v6634_v34  ;;  %7395 = vst [vmem:[#allocation10_spill] sm:$0xff] %v6757_v61  ;;  %v2003_v26 = vmul.f32 %v1875_v29, %v6726_v7  ;;  %v2626_v32 = vadd.f32 1.0, %v6606_v30  ;;  %v7396_v34 = vld [vmem:[#allocation30_spill] sm:$0xff] }
 0x2eb   : > { %v2004_v0 = vmul.f32 %v1876_v9, %v6730_v53  ;;  %v2005_v56 = vmul.f32 %v1877_v24, %v6734_v63  ;;  %v2755_v22 = vmul.f32 0.5, %v2627_v23  ;;  %v2628_v46 = vadd.f32 1.0, %v6627_v15 }
 0x2ec   : > { %v2258_v38 = vadd.f32 %v2130_v57, %v6714_v37  ;;  %v2757_v52 = vmul.f32 0.5, %v2629_v60  ;;  %v2131_v45 = vmul.f32 0.044715, %v2003_v26  ;;  %v6767_v61 = vadd.f32 %v6560_v50, %v7396_v34  ;;  %v6771_v30 = vpop.f32.mrb[64].mxu1  ;;  %v7398_v34 = vld [vmem:[#allocation31_spill] sm:$0xff] }
 0x2ed   : > { %v2132_v18 = vmul.f32 0.044715, %v2004_v0  ;;  %v2133_v11 = vmul.f32 0.044715, %v2005_v56  ;;  %v2883_v9 = vmul.f32 %v2755_v22, %v6494_v13  ;;  %v2754_v1 = vmul.f32 0.5, %v2626_v32  ;;  %v3154_v0 = vpop.f32.mrb[65].mxu1 }
 0x2ee   : > { %v2386_v29 = vmul.f32 0.7978846, %v2258_v38  ;;  %v2885_v24 = vmul.f32 %v2757_v52, %v6505_v54  ;;  %v2259_v23 = vadd.f32 %v2131_v45, %v6726_v7  ;;  %v2756_v26 = vmul.f32 0.5, %v2628_v46  ;;  %v6783_v32 = vpop.f32.mrb[66].mxu1 }
 0x2ef   : > { %v6773_v57 = vpop.eup %4657  ;;  %v2260_v15 = vadd.f32 %v2132_v18, %v6730_v53  ;;  %v2261_v60 = vadd.f32 %v2133_v11, %v6734_v63  ;;  %v2882_v13 = vmul.f32 %v2754_v1, %v6488_v33  ;;  %v1878_v54 = vmul.f32 %v6767_v61, %v6767_v61  ;;  %v7399_v1 = vld [vmem:[#allocation32_spill] sm:$0xff] }
 0x2f0   : > { %4665 = vtanh.f32 %v2386_v29  ;;  %v2969_v56 = vpack.c.bf16 %v2885_v24, %v2883_v9  ;;  %v2387_v22 = vmul.f32 0.7978846, %v2259_v23  ;;  %v2884_v18 = vmul.f32 %v2756_v26, %v6498_v41  ;;  %v7400_v9 = vld [vmem:[#allocation33_spill] sm:$0xff]  ;;  %v7401_v24 = vld [vmem:[#allocation6_spill] sm:$0xff] }
 0x2f1   : > { %v6778_v50 = vpop.f32.mrb[124].mxu0  ;;  %v2388_v52 = vmul.f32 0.7978846, %v2260_v15  ;;  %v2389_v45 = vmul.f32 0.7978846, %v2261_v60  ;;  %v6788_v46 = vpop.eup %4659  ;;  %v2006_v11 = vmul.f32 %v1878_v54, %v6767_v61  ;;  %v6793_v33 = vadd.f32 %v6563_v55, %v7398_v34 }
 0x2f2   : > { %v6785_v38 = vpop.f32.mrb[125].mxu0  ;;  %3318 = vmatprep.mubr.bf16.mxu1 %v2969_v56  ;;  %v6797_v29 = vadd.f32 %v6575_v31, %v7399_v1  ;;  %v6801_v23 = vadd.f32 %v7401_v24, %v7400_v9  ;;  %v3157_v15 = vpop.f32.mrb[67].mxu1  ;;  %4667 = vtanh.f32 %v2387_v22  ;;  %v2968_v26 = vpack.c.bf16 %v2884_v18, %v2882_v13 }
 0x2f3   : > { %7397 = vst [vmem:[#allocation11_spill] sm:$0xff] %v6785_v38  ;;  %v6803_v60 = vpop.f32.mrb[126].mxu0  ;;  %v6805_v41 = vpop.eup %4661  ;;  %v2631_v0 = vadd.f32 1.0, %v6672_v20  ;;  %v2633_v55 = vadd.f32 1.0, %v6688_v8  ;;  %4669 = vtanh.f32 %v2388_v52  ;;  %v2134_v31 = vmul.f32 0.044715, %v2006_v11 }
 0x2f4   : > { %7402 = vst [vmem:[#allocation12_spill] sm:$0xff] %v6803_v60  ;;  %v6809_v56 = vpop.f32.mrb[127].mxu0  ;;  %v6811_v54 = vpop.eup %4663  ;;  %v1879_v34 = vmul.f32 %v6793_v33, %v6793_v33  ;;  %v1880_v1 = vmul.f32 %v6797_v29, %v6797_v29  ;;  %4671 = vtanh.f32 %v2389_v45  ;;  %3319 = vmatmul.mubr.bf16.gmra.mrb[148].mxu1 %v2968_v26  ;;  %v1881_v13 = vmul.f32 %v6801_v23, %v6801_v23 }
 0x2f5   : > { %7403 = vst [vmem:[#allocation13_spill] sm:$0xff] %v6809_v56  ;;  %v2759_v20 = vmul.f32 0.5, %v2631_v0  ;;  %v2761_v22 = vmul.f32 0.5, %v2633_v55  ;;  %v2262_v8 = vadd.f32 %v2134_v31, %v6767_v61  ;;  %v2630_v11 = vadd.f32 1.0, %v6657_v40  ;;  %v7404_v55 = vld [vmem:[#allocation34_spill] sm:$0xff] }
 0x2f6   : > { %v2007_v18 = vmul.f32 %v1879_v34, %v6793_v33  ;;  %v2008_v52 = vmul.f32 %v1880_v1, %v6797_v29  ;;  %v2009_v9 = vmul.f32 %v1881_v13, %v6801_v23  ;;  %v2632_v15 = vadd.f32 1.0, %v6679_v19 }
 0x2f7   : > { %v2887_v24 = vmul.f32 %v2759_v20, %v6554_v58  ;;  %v2889_v45 = vmul.f32 %v2761_v22, %v6573_v25  ;;  %v2390_v26 = vmul.f32 0.7978846, %v2262_v8  ;;  %v6829_v31 = vadd.f32 %v6593_v14, %v7404_v55  ;;  %v7405_v20 = vld [vmem:[#allocation5_spill] sm:$0xff]  ;;  %v7406_v8 = vld [vmem:[#allocation35_spill] sm:$0xff] }
 0x2f8   : > { %v2135_v56 = vmul.f32 0.044715, %v2007_v18  ;;  %v2136_v0 = vmul.f32 0.044715, %v2008_v52  ;;  %v2137_v34 = vmul.f32 0.044715, %v2009_v9  ;;  %v6842_v18 = vadd.f32 %v6600_v5, %v7406_v8 }
 0x2f9   : > { %v2971_v60 = vpack.c.bf16 %v2889_v45, %v2887_v24  ;;  %v2758_v1 = vmul.f32 0.5, %v2630_v11  ;;  %v2760_v38 = vmul.f32 0.5, %v2632_v15  ;;  %4673 = vtanh.f32 %v2390_v26  ;;  %v7407_v24 = vld [vmem:[#allocation36_spill] sm:$0xff]  ;;  %v7408_v5 = vld [vmem:[#allocation37_spill] sm:$0xff] }
 0x2fa   : > { %v6831_v40 = vpop.eup %4665  ;;  %v2263_v58 = vadd.f32 %v2135_v56, %v6793_v33  ;;  %v2264_v25 = vadd.f32 %v2136_v0, %v6797_v29  ;;  %v1882_v19 = vmul.f32 %v6829_v31, %v6829_v31  ;;  %v2265_v13 = vadd.f32 %v2137_v34, %v6801_v23 }
 0x2fb   : > { %3326 = vmatprep.mubr.bf16.mxu1 %v2971_v60  ;;  %v2886_v14 = vmul.f32 %v2758_v1, %v7405_v20  ;;  %v2888_v22 = vmul.f32 %v2760_v38, %v6558_v44  ;;  %v6844_v52 = vpop.f32.mrb[68].mxu1  ;;  %v6849_v45 = vadd.f32 %v6604_v4, %v7407_v24  ;;  %v1883_v44 = vmul.f32 %v6842_v18, %v6842_v18 }
 0x2fc   : > { %v2391_v11 = vmul.f32 0.7978846, %v2263_v58  ;;  %v2392_v56 = vmul.f32 0.7978846, %v2264_v25  ;;  %v2010_v9 = vmul.f32 %v1882_v19, %v6829_v31  ;;  %v3162_v15 = vpop.f32.mrb[69].mxu1  ;;  %v6851_v60 = vpop.eup %4667  ;;  %v6857_v38 = vadd.f32 %v6622_v51, %v7408_v5 }
 0x2fd   : > { %v2393_v26 = vmul.f32 0.7978846, %v2265_v13  ;;  %v2970_v0 = vpack.c.bf16 %v2888_v22, %v2886_v14  ;;  %v6859_v55 = vpop.f32.mrb[70].mxu1  ;;  %v6861_v34 = vpop.eup %4669  ;;  %v1884_v4 = vmul.f32 %v6849_v45, %v6849_v45  ;;  %v2635_v58 = vadd.f32 1.0, %v6738_v62 }
 0x2fe   : > { %4675 = vtanh.f32 %v2391_v11  ;;  %v2138_v1 = vmul.f32 0.044715, %v2010_v9  ;;  %v3165_v25 = vpop.f32.mrb[71].mxu1  ;;  %v6866_v19 = vpop.eup %4671  ;;  %v2011_v13 = vmul.f32 %v1883_v44, %v6842_v18  ;;  %v1885_v51 = vmul.f32 %v6857_v38, %v6857_v38 }
 0x2ff   : > { %4677 = vtanh.f32 %v2392_v56  ;;  %3327 = vmatmul.mubr.bf16.gmra.mrb[152].mxu1 %v2970_v0  ;;  %v2637_v20 = vadd.f32 1.0, %v6753_v35  ;;  %v2012_v22 = vmul.f32 %v1884_v4, %v6849_v45  ;;  %v2763_v8 = vmul.f32 0.5, %v2635_v58 }
 0x300   : > { %4679 = vtanh.f32 %v2393_v26  ;;  %v2266_v14 = vadd.f32 %v2138_v1, %v6829_v31  ;;  %v2139_v11 = vmul.f32 0.044715, %v2011_v13  ;;  %v2013_v62 = vmul.f32 %v1885_v51, %v6857_v38  ;;  %v7409_v13 = vld [vmem:[#allocation38_spill] sm:$0xff] }
 0x301   : > { %v2765_v9 = vmul.f32 0.5, %v2637_v20  ;;  %v2634_v56 = vadd.f32 1.0, %v6718_v42  ;;  %v2140_v15 = vmul.f32 0.044715, %v2012_v22  ;;  %v2891_v0 = vmul.f32 %v2763_v8, %v6612_v3  ;;  %v7410_v8 = vld [vmem:[#allocation39_spill] sm:$0xff] }
 0x302   : > { %v2394_v24 = vmul.f32 0.7978846, %v2266_v14  ;;  %v2636_v44 = vadd.f32 1.0, %v6743_v47  ;;  %v2267_v35 = vadd.f32 %v2139_v11, %v6842_v18  ;;  %v2141_v26 = vmul.f32 0.044715, %v2013_v62 }
 0x303   : > { %v2893_v5 = vmul.f32 %v2765_v9, %v6620_v17  ;;  %v2762_v1 = vmul.f32 0.5, %v2634_v56  ;;  %v6880_v4 = vpop.eup %4673  ;;  %v2268_v58 = vadd.f32 %v2140_v15, %v6849_v45  ;;  %v6885_v42 = vadd.f32 %v6645_v16, %v7409_v13  ;;  %v7411_v16 = vld [vmem:[#allocation40_spill] sm:$0xff]  ;;  %v7412_v56 = vld [vmem:[#allocation41_spill] sm:$0xff] }
 0x304   : > { %4681 = vtanh.f32 %v2394_v24  ;;  %v2764_v25 = vmul.f32 0.5, %v2636_v44  ;;  %v2395_v51 = vmul.f32 0.7978846, %v2267_v35  ;;  %v2269_v3 = vadd.f32 %v2141_v26, %v6857_v38 }
 0x305   : > { %v2973_v47 = vpack.c.bf16 %v2893_v5, %v2891_v0  ;;  %v2890_v20 = vmul.f32 %v2762_v1, %v6598_v36  ;;  %v2396_v14 = vmul.f32 0.7978846, %v2268_v58  ;;  %v1886_v22 = vmul.f32 %v6885_v42, %v6885_v42 }
 0x306   : > { %v2892_v17 = vmul.f32 %v2764_v25, %v6616_v2  ;;  %v6894_v11 = vadd.f32 %v6648_v28, %v7410_v8  ;;  %4683 = vtanh.f32 %v2395_v51  ;;  %v2397_v62 = vmul.f32 0.7978846, %v2269_v3 }
 0x307   : > { %3334 = vmatprep.mubr.bf16.mxu1 %v2973_v47  ;;  %v6898_v9 = vadd.f32 %v6655_v12, %v7411_v16  ;;  %v6902_v36 = vadd.f32 %v6662_v59, %v7412_v56  ;;  %v6904_v24 = vpop.f32.mrb[72].mxu1  ;;  %4685 = vtanh.f32 %v2396_v14  ;;  %v2014_v28 = vmul.f32 %v1886_v22, %v6885_v42 }
 0x308   : > { %v6906_v2 = vpop.eup %4675  ;;  %v2972_v15 = vpack.c.bf16 %v2892_v17, %v2890_v20  ;;  %v1887_v0 = vmul.f32 %v6894_v11, %v6894_v11  ;;  %v3170_v44 = vpop.f32.mrb[73].mxu1  ;;  %4687 = vtanh.f32 %v2397_v62  ;;  %v2639_v26 = vadd.f32 1.0, %v6788_v46 }
 0x309   : > { %v6911_v35 = vpop.eup %4677  ;;  %v1888_v12 = vmul.f32 %v6898_v9, %v6898_v9  ;;  %v1889_v59 = vmul.f32 %v6902_v36, %v6902_v36  ;;  %v6918_v5 = vpop.f32.mrb[74].mxu1  ;;  %v2142_v58 = vmul.f32 0.044715, %v2014_v28  ;;  %v2641_v13 = vadd.f32 1.0, %v6811_v54 }
 0x30a   : > { %v6920_v1 = vpop.eup %4679  ;;  %3335 = vmatmul.mubr.bf16.gmra.mrb[156].mxu1 %v2972_v15  ;;  %v2015_v25 = vmul.f32 %v1887_v0, %v6894_v11  ;;  %v2638_v51 = vadd.f32 1.0, %v6773_v57  ;;  %v3173_v3 = vpop.f32.mrb[75].mxu1  ;;  %v2767_v14 = vmul.f32 0.5, %v2639_v26  ;;  %v2640_v46 = vadd.f32 1.0, %v6805_v41 }
 0x30b   : > { %v2016_v47 = vmul.f32 %v1888_v12, %v6898_v9  ;;  %v2017_v20 = vmul.f32 %v1889_v59, %v6902_v36  ;;  %v2270_v17 = vadd.f32 %v2142_v58, %v6885_v42  ;;  %v2769_v8 = vmul.f32 0.5, %v2641_v13  ;;  %v7413_v58 = vld [vmem:[#allocation42_spill] sm:$0xff]  ;;  %v7415_v3 = vld [vmem:[#allocation43_spill] sm:$0xff] }
 0x30c   : > { %v2143_v22 = vmul.f32 0.044715, %v2015_v25  ;;  %v2766_v62 = vmul.f32 0.5, %v2638_v51  ;;  %v2895_v15 = vmul.f32 %v2767_v14, %v6670_v10  ;;  %v2768_v54 = vmul.f32 0.5, %v2640_v46  ;;  %v7414_v25 = vld [vmem:[#allocation7_spill] sm:$0xff] }
 0x30d   : > { %v2144_v16 = vmul.f32 0.044715, %v2016_v47  ;;  %v2145_v56 = vmul.f32 0.044715, %v2017_v20  ;;  %v2398_v57 = vmul.f32 0.7978846, %v2270_v17  ;;  %v2897_v44 = vmul.f32 %v2769_v8, %v6685_v49  ;;  %v6954_v8 = vpop.permute.xlu1 %3478 }
 0x30e   : > { %v6930_v28 = vpop.eup %4681  ;;  %v2271_v0 = vadd.f32 %v2143_v22, %v6894_v11  ;;  %v2894_v12 = vmul.f32 %v2766_v62, %v6653_v48  ;;  %v2896_v26 = vmul.f32 %v2768_v54, %v6677_v43  ;;  %v6940_v13 = vadd.f32 %v7414_v25, %v7413_v58  ;;  %v7416_v47 = vld [vmem:[#allocation8_spill] sm:$0xff]  ;;  %v6948_v48 = vpop.permute.xlu0 %3473 }
 0x30f   : > { %v2272_v41 = vadd.f32 %v2144_v16, %v6898_v9  ;;  %v2273_v59 = vadd.f32 %v2145_v56, %v6902_v36  ;;  %4689 = vtanh.f32 %v2398_v57  ;;  %v2975_v51 = vpack.c.bf16 %v2897_v44, %v2895_v15  ;;  %v7417_v16 = vld [vmem:[#allocation44_spill] sm:$0xff]  ;;  %v7418_v15 = vld [vmem:[#allocation45_spill] sm:$0xff] }
 0x310   : > { %v2399_v10 = vmul.f32 0.7978846, %v2271_v0  ;;  %v6944_v20 = vadd.f32 %v7416_v47, %v7415_v3  ;;  %v6946_v49 = vpop.eup %4683  ;;  %v2974_v17 = vpack.c.bf16 %v2896_v26, %v2894_v12  ;;  %v1890_v43 = vmul.f32 %v6940_v13, %v6940_v13 }
 0x311   : > { %v2400_v14 = vmul.f32 0.7978846, %v2272_v41  ;;  %v2401_v46 = vmul.f32 0.7978846, %v2273_v59  ;;  %v6952_v22 = vpop.eup %4685  ;;  %3342 = vmatprep.mubr.bf16.mxu1 %v2975_v51  ;;  %v6960_v56 = vadd.f32 %v6703_v6, %v7417_v16  ;;  %v6964_v54 = vadd.f32 %v6708_v39, %v7418_v15  ;;  %v6989_v15 = vpop.permute.xlu1 %3488 }
 0x312   : > { %4691 = vtanh.f32 %v2399_v10  ;;  %v1891_v62 = vmul.f32 %v6944_v20, %v6944_v20  ;;  %v6966_v57 = vpop.eup %4687  ;;  %3343 = vmatmul.mubr.bf16.gmra.mrb[160].mxu1 %v2974_v17  ;;  %v2018_v0 = vmul.f32 %v1890_v43, %v6940_v13  ;;  %v2643_v44 = vadd.f32 1.0, %v6851_v60  ;;  %v6976_v59 = vpop.f32.mrb[76].mxu1 }
 0x313   : > { %4693 = vtanh.f32 %v2400_v14  ;;  %v2645_v12 = vadd.f32 1.0, %v6866_v19  ;;  %v1892_v6 = vmul.f32 %v6960_v56, %v6960_v56  ;;  %v1893_v39 = vmul.f32 %v6964_v54, %v6964_v54  ;;  %v3178_v51 = vpop.f32.mrb[77].mxu1 }
 0x314   : > { %4695 = vtanh.f32 %v2401_v46  ;;  %v2019_v41 = vmul.f32 %v1891_v62, %v6944_v20  ;;  %v2146_v26 = vmul.f32 0.044715, %v2018_v0  ;;  %v2771_v58 = vmul.f32 0.5, %v2643_v44  ;;  %v6982_v14 = vpop.f32.mrb[78].mxu1  ;;  %v6984_v46 = vpop.permute.xlu0 %3483  ;;  %v7419_v51 = vld [vmem:[#allocation46_spill] sm:$0xff] }
 0x315   : > { %v2773_v25 = vmul.f32 0.5, %v2645_v12  ;;  %v2642_v10 = vadd.f32 1.0, %v6831_v40  ;;  %v2020_v19 = vmul.f32 %v1892_v6, %v6960_v56  ;;  %v2021_v3 = vmul.f32 %v1893_v39, %v6964_v54  ;;  %v3181_v40 = vpop.f32.mrb[79].mxu1 }
 0x316   : > { %v2147_v60 = vmul.f32 0.044715, %v2019_v41  ;;  %v2644_v47 = vadd.f32 1.0, %v6861_v34  ;;  %v2274_v17 = vadd.f32 %v2146_v26, %v6940_v13  ;;  %v2899_v43 = vmul.f32 %v2771_v58, %v6726_v7 }
 0x317   : > { %v2901_v62 = vmul.f32 %v2773_v25, %v6734_v63  ;;  %v2770_v16 = vmul.f32 0.5, %v2642_v10  ;;  %v2148_v44 = vmul.f32 0.044715, %v2020_v19  ;;  %v2149_v12 = vmul.f32 0.044715, %v2021_v3  ;;  %v7422_v3 = vld [vmem:[#allocation9_spill] sm:$0xff] }
 0x318   : > { %v2275_v0 = vadd.f32 %v2147_v60, %v6944_v20  ;;  %v2772_v41 = vmul.f32 0.5, %v2644_v47  ;;  %v2402_v34 = vmul.f32 0.7978846, %v2274_v17  ;;  %v6995_v26 = vadd.f32 %v6736_v21, %v7419_v51  ;;  %v7421_v21 = vld [vmem:[#allocation48_spill] sm:$0xff] }
 0x319   : > { %v2977_v6 = vpack.c.bf16 %v2901_v62, %v2899_v43  ;;  %v2898_v39 = vmul.f32 %v2770_v16, %v6714_v37  ;;  %v6997_v7 = vpop.eup %4689  ;;  %v2276_v58 = vadd.f32 %v2148_v44, %v6960_v56  ;;  %v2277_v25 = vadd.f32 %v2149_v12, %v6964_v54  ;;  %v7420_v37 = vld [vmem:[#allocation47_spill] sm:$0xff] }
 0x31a   : > { %v2403_v63 = vmul.f32 0.7978846, %v2275_v0  ;;  %v2900_v10 = vmul.f32 %v2772_v41, %v6730_v53  ;;  %4697 = vtanh.f32 %v2402_v34  ;;  %v1894_v60 = vmul.f32 %v6995_v26, %v6995_v26  ;;  %v7014_v16 = vpop.f32.mrb[80].mxu1  ;;  %v7018_v0 = vpop.permute.xlu0 %3493  ;;  %v7424_v41 = vld [vmem:[#allocation49_spill] sm:$0xff]  ;;  %v7425_v34 = vld [vmem:[#allocation10_spill] sm:$0xff] }
 0x31b   : > { %3350 = vmatprep.mubr.bf16.mxu1 %v2977_v6  ;;  %v7006_v19 = vadd.f32 %v6741_v27, %v7420_v37  ;;  %v7010_v47 = vadd.f32 %v7422_v3, %v7421_v21  ;;  %v2404_v43 = vmul.f32 0.7978846, %v2276_v58  ;;  %v2405_v62 = vmul.f32 0.7978846, %v2277_v25  ;;  %7423 = vst [vmem:[#allocation14_spill] sm:$0xff] %v7014_v16 }
 0x31c   : > { %v7012_v17 = vpop.eup %4691  ;;  %4699 = vtanh.f32 %v2403_v63  ;;  %v2976_v53 = vpack.c.bf16 %v2900_v10, %v2898_v39  ;;  %v2022_v44 = vmul.f32 %v1894_v60, %v6995_v26  ;;  %v7027_v6 = vadd.f32 %v7425_v34, %v7424_v41  ;;  %v3186_v39 = vpop.f32.mrb[81].mxu1 }
 0x31d   : > { %v7016_v40 = vpop.eup %4693  ;;  %v1895_v27 = vmul.f32 %v7006_v19, %v7006_v19  ;;  %v1896_v12 = vmul.f32 %v7010_v47, %v7010_v47  ;;  %v7032_v63 = vpop.permute.xlu1 %3498  ;;  %4701 = vtanh.f32 %v2404_v43  ;;  %v2647_v58 = vadd.f32 1.0, %v6906_v2 }
 0x31e   : > { %v7030_v51 = vpop.eup %4695  ;;  %3351 = vmatmul.mubr.bf16.gmra.mrb[164].mxu1 %v2976_v53  ;;  %v2649_v25 = vadd.f32 1.0, %v6920_v1  ;;  %v2646_v10 = vadd.f32 1.0, %v6880_v4  ;;  %v7037_v60 = vpop.f32.mrb[82].mxu1  ;;  %4703 = vtanh.f32 %v2405_v62  ;;  %v2150_v37 = vmul.f32 0.044715, %v2022_v44 }
 0x31f   : > { %7426 = vst [vmem:[#allocation15_spill] sm:$0xff] %v7037_v60  ;;  %v2023_v21 = vmul.f32 %v1895_v27, %v7006_v19  ;;  %v2024_v3 = vmul.f32 %v1896_v12, %v7010_v47  ;;  %v3189_v41 = vpop.f32.mrb[83].mxu1  ;;  %v1897_v34 = vmul.f32 %v7027_v6, %v7027_v6  ;;  %v2775_v43 = vmul.f32 0.5, %v2647_v58  ;;  %v7050_v60 = vpop.permute.xlu0 %3503 }
 0x320   : > { %v2777_v53 = vmul.f32 0.5, %v2649_v25  ;;  %v2648_v2 = vadd.f32 1.0, %v6911_v35  ;;  %v2278_v4 = vadd.f32 %v2150_v37, %v6995_v26  ;;  %v2774_v62 = vmul.f32 0.5, %v2646_v10 }
 0x321   : > { %v2151_v1 = vmul.f32 0.044715, %v2023_v21  ;;  %v2152_v39 = vmul.f32 0.044715, %v2024_v3  ;;  %v2025_v44 = vmul.f32 %v1897_v34, %v7027_v6  ;;  %v2903_v27 = vmul.f32 %v2775_v43, %v6793_v33  ;;  %v7055_v37 = vpop.permute.xlu1 %3508 }
 0x322   : > { %v2905_v12 = vmul.f32 %v2777_v53, %v6801_v23  ;;  %v2776_v41 = vmul.f32 0.5, %v2648_v2  ;;  %v2406_v58 = vmul.f32 0.7978846, %v2278_v4  ;;  %v2902_v16 = vmul.f32 %v2774_v62, %v6767_v61  ;;  %v7060_v23 = vpop.f32.mrb[84].mxu1  ;;  %v7429_v62 = vld [vmem:[#allocation11_spill] sm:$0xff] }
 0x323   : > { %v2279_v25 = vadd.f32 %v2151_v1, %v7006_v19  ;;  %v2280_v35 = vadd.f32 %v2152_v39, %v7010_v47  ;;  %v2153_v21 = vmul.f32 0.044715, %v2025_v44  ;;  %v3791_v33 = vmul.f32 %v6948_v48, %v6771_v30  ;;  %v3194_v61 = vpop.f32.mrb[85].mxu1  ;;  %v7427_v30 = vld [vmem:[#allocation50_spill] sm:$0xff]  ;;  %v7428_v39 = vld [vmem:[#allocation51_spill] sm:$0xff] }
 0x324   : > { %v2979_v10 = vpack.c.bf16 %v2905_v12, %v2903_v27  ;;  %v2904_v3 = vmul.f32 %v2776_v41, %v6797_v29  ;;  %v7062_v34 = vpop.eup %4697  ;;  %4705 = vtanh.f32 %v2406_v58  ;;  %v3792_v2 = vmul.f32 %v6954_v8, %v6783_v32  ;;  %v7080_v32 = vpop.f32.mrb[86].mxu1  ;;  %v7431_v8 = vld [vmem:[#allocation52_spill] sm:$0xff]  ;;  %v7433_v12 = vld [vmem:[#allocation53_spill] sm:$0xff] }
 0x325   : > { %v2407_v43 = vmul.f32 0.7978846, %v2279_v25  ;;  %v2408_v53 = vmul.f32 0.7978846, %v2280_v35  ;;  %v2281_v1 = vadd.f32 %v2153_v21, %v7027_v6  ;;  %3855 = vst [vmem:[%s7069_s20] sm:$0xff] %v3791_v33  ;;  %v7074_v48 = vadd.f32 %v6778_v50, %v7427_v30  ;;  %7430 = vst [vmem:[#allocation16_spill] sm:$0xff] %v7080_v32  ;;  %v7432_v27 = vld [vmem:[#allocation12_spill] sm:$0xff] }
 0x326   : > { %v7066_v4 = vpop.eup %4699  ;;  %3358 = vmatprep.mubr.bf16.mxu1 %v2979_v10  ;;  %v2978_v29 = vpack.c.bf16 %v2904_v3, %v2902_v16  ;;  %v7078_v44 = vadd.f32 %v7429_v62, %v7428_v39  ;;  %3856 = vst [vmem:[%s7069_s20 + $0x8] sm:$0xff] %v3792_v2  ;;  %v7085_v16 = vadd.f32 %v7432_v27, %v7431_v8  ;;  %v7434_v41 = vld [vmem:[#allocation13_spill] sm:$0xff]  ;;  %v2651_v25 = vadd.f32 1.0, %v6946_v49  ;;  %v3197_v50 = vpop.f32.mrb[87].mxu1 }
 0x327   : > { %4707 = vtanh.f32 %v2407_v43  ;;  %v7089_v58 = vadd.f32 %v7434_v41, %v7433_v12  ;;  %v7092_v35 = vpop.eup %4701  ;;  %v2409_v21 = vmul.f32 0.7978846, %v2281_v1  ;;  %v1898_v10 = vmul.f32 %v7074_v48, %v7074_v48  ;;  %v7100_v43 = vpop.permute.xlu0 %3513 }
 0x328   : > { %4709 = vtanh.f32 %v2408_v53  ;;  %3359 = vmatmul.mubr.bf16.gmra.mrb[168].mxu1 %v2978_v29  ;;  %v1899_v3 = vmul.f32 %v7078_v44, %v7078_v44  ;;  %v7098_v33 = vpop.eup %4703  ;;  %v1900_v2 = vmul.f32 %v7085_v16, %v7085_v16  ;;  %v2653_v53 = vadd.f32 1.0, %v6966_v57  ;;  %v7107_v1 = vpop.permute.xlu1 %3518 }
 0x329   : > { %v1901_v49 = vmul.f32 %v7089_v58, %v7089_v58  ;;  %v2779_v61 = vmul.f32 0.5, %v2651_v25  ;;  %4711 = vtanh.f32 %v2409_v21  ;;  %v2026_v29 = vmul.f32 %v1898_v10, %v7074_v48 }
 0x32a   : > { %v2027_v30 = vmul.f32 %v1899_v3, %v7078_v44  ;;  %v2650_v39 = vadd.f32 1.0, %v6930_v28  ;;  %v2028_v62 = vmul.f32 %v1900_v2, %v7085_v16  ;;  %v2781_v27 = vmul.f32 0.5, %v2653_v53 }
 0x32b   : > { %v2029_v8 = vmul.f32 %v1901_v49, %v7089_v58  ;;  %v2907_v12 = vmul.f32 %v2779_v61, %v6842_v18  ;;  %v2154_v41 = vmul.f32 0.044715, %v2026_v29  ;;  %v2652_v57 = vadd.f32 1.0, %v6952_v22  ;;  %v7124_v61 = vpop.permute.xlu0 %3523 }
 0x32c   : > { %v2155_v50 = vmul.f32 0.044715, %v2027_v30  ;;  %v2778_v25 = vmul.f32 0.5, %v2650_v39  ;;  %v2156_v21 = vmul.f32 0.044715, %v2028_v62  ;;  %v2909_v10 = vmul.f32 %v2781_v27, %v6857_v38 }
 0x32d   : > { %v2157_v32 = vmul.f32 0.044715, %v2029_v8  ;;  %v3793_v28 = vmul.f32 %v6984_v46, %v6844_v52  ;;  %v2282_v3 = vadd.f32 %v2154_v41, %v7074_v48  ;;  %v2780_v49 = vmul.f32 0.5, %v2652_v57  ;;  %v7131_v46 = vpop.permute.xlu1 %3528 }
 0x32e   : > { %v2283_v2 = vadd.f32 %v2155_v50, %v7078_v44  ;;  %v2906_v18 = vmul.f32 %v2778_v25, %v6829_v31  ;;  %v7122_v53 = vpop.eup %4705  ;;  %v2284_v22 = vadd.f32 %v2156_v21, %v7085_v16  ;;  %v2981_v38 = vpack.c.bf16 %v2909_v10, %v2907_v12 }
 0x32f   : > { %v2285_v29 = vadd.f32 %v2157_v32, %v7089_v58  ;;  %3857 = vst [vmem:[%s7069_s20 + $0x10] sm:$0xff] %v3793_v28  ;;  %v3794_v52 = vmul.f32 %v6989_v15, %v6859_v55  ;;  %v2410_v30 = vmul.f32 0.7978846, %v2282_v3  ;;  %v2908_v31 = vmul.f32 %v2780_v49, %v6849_v45  ;;  %v7135_v8 = vpop.f32.mrb[88].mxu1  ;;  %v7148_v49 = vpop.permute.xlu0 %3533 }
 0x330   : > { %v2411_v39 = vmul.f32 0.7978846, %v2283_v2  ;;  %v2655_v62 = vadd.f32 1.0, %v7012_v17  ;;  %v2412_v41 = vmul.f32 0.7978846, %v2284_v22  ;;  %3366 = vmatprep.mubr.bf16.mxu1 %v2981_v38  ;;  %v2657_v32 = vadd.f32 1.0, %v7030_v51 }
 0x331   : > { %v4708_v27 = vpop.eup %4707  ;;  %v2413_v50 = vmul.f32 0.7978846, %v2285_v29  ;;  %3858 = vst [vmem:[%s7069_s20 + $0x18] sm:$0xff] %v3794_v52  ;;  %v2654_v12 = vadd.f32 1.0, %v6997_v7  ;;  %4713 = vtanh.f32 %v2410_v30  ;;  %v2980_v15 = vpack.c.bf16 %v2908_v31, %v2906_v18  ;;  %v3202_v45 = vpop.f32.mrb[89].mxu1 }
 0x332   : > { %v4710_v55 = vpop.eup %4709  ;;  %v2783_v57 = vmul.f32 0.5, %v2655_v62  ;;  %v2656_v25 = vadd.f32 1.0, %v7016_v40  ;;  %4715 = vtanh.f32 %v2411_v39  ;;  %v2785_v17 = vmul.f32 0.5, %v2657_v32  ;;  %v7143_v28 = vpop.f32.mrb[90].mxu1 }
 0x333   : > { %v2782_v21 = vmul.f32 0.5, %v2654_v12  ;;  %v3795_v10 = vmul.f32 %v7018_v0, %v6904_v24  ;;  %v4712_v51 = vpop.eup %4711  ;;  %4717 = vtanh.f32 %v2412_v41  ;;  %3367 = vmatmul.mubr.bf16.gmra.mrb[172].mxu1 %v2980_v15  ;;  %v3796_v40 = vmul.f32 %v7032_v63, %v6918_v5  ;;  %v3205_v2 = vpop.f32.mrb[91].mxu1 }
 0x334   : > { %v2911_v7 = vmul.f32 %v2783_v57, %v6894_v11  ;;  %v2784_v3 = vmul.f32 0.5, %v2656_v25  ;;  %4719 = vtanh.f32 %v2413_v50  ;;  %v2913_v18 = vmul.f32 %v2785_v17, %v6902_v36  ;;  %v7154_v22 = vpop.permute.xlu1 %3538  ;;  %v3544_v32 = vpop.permute.xlu0 %3543  ;;  %v7435_v57 = vld [vmem:[#allocation14_spill] sm:$0xff] }
 0x335   : > { %v2910_v24 = vmul.f32 %v2782_v21, %v6885_v42  ;;  %3859 = vst [vmem:[%s7069_s20 + $0x20] sm:$0xff] %v3795_v10  ;;  %v2659_v0 = vadd.f32 1.0, %v7066_v4  ;;  %3860 = vst [vmem:[%s7069_s20 + $0x28] sm:$0xff] %v3796_v40  ;;  %v2661_v11 = vadd.f32 1.0, %v7098_v33  ;;  %v2658_v5 = vadd.f32 1.0, %v7062_v34  ;;  %v7436_v21 = vld [vmem:[#allocation15_spill] sm:$0xff] }
 0x336   : > { %v2912_v29 = vmul.f32 %v2784_v3, %v6898_v9  ;;  %v2660_v63 = vadd.f32 1.0, %v7092_v35  ;;  %v2983_v38 = vpack.c.bf16 %v2913_v18, %v2911_v7  ;;  %v3797_v42 = vmul.f32 %v7050_v60, %v6976_v59  ;;  %v7437_v18 = vld [vmem:[#allocation16_spill] sm:$0xff] }
 0x337   : > { %v2787_v36 = vmul.f32 0.5, %v2659_v0  ;;  %v3798_v4 = vmul.f32 %v7055_v37, %v6982_v14  ;;  %v2789_v30 = vmul.f32 0.5, %v2661_v11  ;;  %v2786_v9 = vmul.f32 0.5, %v2658_v5  ;;  %v3208_v31 = vpop.f32.mrb[92].mxu1 }
 0x338   : > { %v2982_v52 = vpack.c.bf16 %v2912_v29, %v2910_v24  ;;  %v2788_v39 = vmul.f32 0.5, %v2660_v63  ;;  %3374 = vmatprep.mubr.bf16.mxu1 %v2983_v38  ;;  %3861 = vst [vmem:[%s7069_s20 + $0x30] sm:$0xff] %v3797_v42  ;;  %v2663_v34 = vadd.f32 1.0, %v4708_v27  ;;  %v2665_v35 = vadd.f32 1.0, %v4712_v51  ;;  %v3210_v41 = vpop.f32.mrb[93].mxu1 }
 0x339   : > { %v2915_v33 = vmul.f32 %v2787_v36, %v6944_v20  ;;  %3862 = vst [vmem:[%s7069_s20 + $0x38] sm:$0xff] %v3798_v4  ;;  %v2662_v62 = vadd.f32 1.0, %v7122_v53  ;;  %v2917_v59 = vmul.f32 %v2789_v30, %v6964_v54  ;;  %v2914_v60 = vmul.f32 %v2786_v9, %v6940_v13  ;;  %v3211_v50 = vpop.f32.mrb[94].mxu1  ;;  %v3549_v53 = vpop.permute.xlu1 %3548 }
 0x33a   : > { %v2916_v14 = vmul.f32 %v2788_v39, %v6960_v56  ;;  %v2664_v37 = vadd.f32 1.0, %v4710_v55  ;;  %v2791_v12 = vmul.f32 0.5, %v2663_v34  ;;  %v2793_v15 = vmul.f32 0.5, %v2665_v35  ;;  %v3213_v25 = vpop.f32.mrb[95].mxu1 }
 0x33b   : > { %v2790_v20 = vmul.f32 0.5, %v2662_v62  ;;  %v3799_v27 = vmul.f32 %v7100_v43, %v7435_v57  ;;  %v4714_v45 = vpop.eup %4713  ;;  %3375 = vmatmul.mubr.bf16.gmra.mrb[176].mxu1 %v2982_v52  ;;  %v2985_v54 = vpack.c.bf16 %v2917_v59, %v2915_v33  ;;  %v3800_v56 = vmul.f32 %v7107_v1, %v7436_v21 }
 0x33c   : > { %v2984_v17 = vpack.c.bf16 %v2916_v14, %v2914_v60  ;;  %v2792_v13 = vmul.f32 0.5, %v2664_v37  ;;  %v4716_v55 = vpop.eup %4715  ;;  %v2919_v10 = vmul.f32 %v2791_v12, %v7006_v19  ;;  %v2921_v51 = vmul.f32 %v2793_v15, %v7027_v6 }
 0x33d   : > { %v2918_v7 = vmul.f32 %v2790_v20, %v6995_v26  ;;  %3863 = vst [vmem:[%s7069_s20 + $0x40] sm:$0xff] %v3799_v27  ;;  %v2666_v43 = vadd.f32 1.0, %v4714_v45  ;;  %v4718_v3 = vpop.eup %4717  ;;  %3382 = vmatprep.mubr.bf16.mxu1 %v2985_v54  ;;  %3864 = vst [vmem:[%s7069_s20 + $0x48] sm:$0xff] %v3800_v56  ;;  %v2667_v2 = vadd.f32 1.0, %v4716_v55  ;;  %v3801_v1 = vmul.f32 %v7124_v61, %v7060_v23 }
 0x33e   : > { %v2920_v40 = vmul.f32 %v2792_v13, %v7010_v47  ;;  %v3802_v19 = vmul.f32 %v7131_v46, %v7437_v18  ;;  %v4720_v6 = vpop.eup %4719  ;;  %v2987_v24 = vpack.c.bf16 %v2921_v51, %v2919_v10  ;;  %v2668_v26 = vadd.f32 1.0, %v4718_v3  ;;  %v3554_v46 = vpop.permute.xlu0 %3553 }
 0x33f   : > { %v2794_v0 = vmul.f32 0.5, %v2666_v43  ;;  %v3803_v29 = vmul.f32 %v7148_v49, %v7135_v8  ;;  %v2669_v5 = vadd.f32 1.0, %v4720_v6  ;;  %v2795_v47 = vmul.f32 0.5, %v2667_v2  ;;  %3865 = vst [vmem:[%s7069_s20 + $0x50] sm:$0xff] %v3801_v1  ;;  %v3559_v8 = vpop.permute.xlu1 %3558 }
 0x340   : > { %v2986_v11 = vpack.c.bf16 %v2920_v40, %v2918_v7  ;;  %3866 = vst [vmem:[%s7069_s20 + $0x58] sm:$0xff] %v3802_v19  ;;  %v3804_v23 = vmul.f32 %v7154_v22, %v7143_v28  ;;  %v3216_v61 = vpop.f32.mrb[96].mxu1  ;;  %v2796_v63 = vmul.f32 0.5, %v2668_v26  ;;  %v3805_v38 = vmul.f32 %v3544_v32, %v3208_v31 }
 0x341   : > { %3867 = vst [vmem:[%s7069_s20 + $0x60] sm:$0xff] %v3803_v29  ;;  %v3806_v36 = vmul.f32 %v3549_v53, %v3211_v50  ;;  %v3218_v42 = vpop.f32.mrb[97].mxu1  ;;  %v2797_v49 = vmul.f32 0.5, %v2669_v5  ;;  %v3807_v4 = vmul.f32 %v3554_v46, %v3216_v61  ;;  %v2922_v30 = vmul.f32 %v2794_v0, %v7074_v48 }
 0x342   : > { %3868 = vst [vmem:[%s7069_s20 + $0x68] sm:$0xff] %v3804_v23  ;;  %v3219_v52 = vpop.f32.mrb[98].mxu1  ;;  %v2924_v9 = vmul.f32 %v2796_v63, %v7085_v16  ;;  %3869 = vst [vmem:[%s7069_s20 + $0x70] sm:$0xff] %v3805_v38  ;;  %v2923_v39 = vmul.f32 %v2795_v47, %v7078_v44  ;;  %v3564_v35 = vpop.permute.xlu0 %3563 }
 0x343   : > { %3870 = vst [vmem:[%s7069_s20 + $0x78] sm:$0xff] %v3806_v36  ;;  %v3808_v28 = vmul.f32 %v3559_v8, %v3219_v52  ;;  %v3221_v22 = vpop.f32.mrb[99].mxu1  ;;  %3383 = vmatmul.mubr.bf16.gmra.mrb[180].mxu1 %v2984_v17  ;;  %v2925_v31 = vmul.f32 %v2797_v49, %v7089_v58  ;;  %3871 = vst [vmem:[%s7069_s20 + $0x80] sm:$0xff] %v3807_v4  ;;  %v3569_v41 = vpop.permute.xlu1 %3568 }
 0x344   : > { %3390 = vmatprep.mubr.bf16.mxu1 %v2987_v24  ;;  %v2988_v33 = vpack.c.bf16 %v2924_v9, %v2922_v30 }
 0x345   : > { %3872 = vst [vmem:[%s7069_s20 + $0x88] sm:$0xff] %v3808_v28  ;;  %v2989_v34 = vpack.c.bf16 %v2925_v31, %v2923_v39 }
 0x346   : > { %v3574_v58 = vpop.permute.xlu0 %3573 }
 0x347   : > { %v3579_v32 = vpop.permute.xlu1 %3578 }
 0x34a   : > { %v3584_v57 = vpop.permute.xlu0 %3583 }
 0x34b   : > { %3391 = vmatmul.mubr.bf16.gmra.mrb[184].mxu1 %v2986_v11  ;;  %v3589_v53 = vpop.permute.xlu1 %3588 }
 0x34c   : > { %v3224_v48 = vpop.f32.mrb[100].mxu1  ;;  %3398 = vmatprep.mubr.bf16.mxu1 %v2989_v34 }
 0x34d   : > { %v3809_v16 = vmul.f32 %v3564_v35, %v3224_v48  ;;  %v3226_v62 = vpop.f32.mrb[101].mxu1 }
 0x34e   : > { %v3227_v59 = vpop.f32.mrb[102].mxu1  ;;  %v3594_v21 = vpop.permute.xlu0 %3593 }
 0x34f   : > { %3873 = vst [vmem:[%s7069_s20 + $0x90] sm:$0xff] %v3809_v16  ;;  %v3810_v44 = vmul.f32 %v3569_v41, %v3227_v59  ;;  %v3229_v60 = vpop.f32.mrb[103].mxu1  ;;  %v3599_v51 = vpop.permute.xlu1 %3598 }
 0x351   : > { %3874 = vst [vmem:[%s7069_s20 + $0x98] sm:$0xff] %v3810_v44 }
 0x352   : > { %v3604_v40 = vpop.permute.xlu0 %3603 }
 0x353   : > { %3399 = vmatmul.mubr.bf16.gmra.mrb[188].mxu1 %v2988_v33  ;;  %v3609_v19 = vpop.permute.xlu1 %3608 }
 0x354   : > { %v3232_v14 = vpop.f32.mrb[104].mxu1 }
 0x355   : > { %v3811_v37 = vmul.f32 %v3574_v58, %v3232_v14  ;;  %v3234_v50 = vpop.f32.mrb[105].mxu1 }
 0x356   : > { %v3235_v12 = vpop.f32.mrb[106].mxu1  ;;  %v3614_v0 = vpop.permute.xlu0 %3613 }
 0x357   : > { %3875 = vst [vmem:[%s7069_s20 + $0xa0] sm:$0xff] %v3811_v37  ;;  %v3812_v15 = vmul.f32 %v3579_v32, %v3235_v12  ;;  %v3237_v20 = vpop.f32.mrb[107].mxu1  ;;  %v3619_v47 = vpop.permute.xlu1 %3618 }
 0x359   : > { %3876 = vst [vmem:[%s7069_s20 + $0xa8] sm:$0xff] %v3812_v15 }
 0x35a   : > { %v3624_v63 = vpop.permute.xlu0 %3623 }
 0x35b   : > { %v3629_v8 = vpop.permute.xlu1 %3628 }
 0x35c   : > { %v3240_v27 = vpop.f32.mrb[108].mxu1 }
 0x35d   : > { %v3813_v25 = vmul.f32 %v3584_v57, %v3240_v27  ;;  %v3242_v45 = vpop.f32.mrb[109].mxu1 }
 0x35e   : > { %v3243_v54 = vpop.f32.mrb[110].mxu1  ;;  %v3634_v30 = vpop.permute.xlu0 %3633 }
 0x35f   : > { %3877 = vst [vmem:[%s7069_s20 + $0xb0] sm:$0xff] %v3813_v25  ;;  %v3814_v17 = vmul.f32 %v3589_v53, %v3243_v54  ;;  %v3245_v13 = vpop.f32.mrb[111].mxu1  ;;  %v3639_v39 = vpop.permute.xlu1 %3638 }
 0x361   : > { %3878 = vst [vmem:[%s7069_s20 + $0xb8] sm:$0xff] %v3814_v17 }
 0x362   : > { %v3644_v35 = vpop.permute.xlu0 %3643 }
 0x363   : > { %v3649_v41 = vpop.permute.xlu1 %3648 }
 0x366   : > { %v3654_v58 = vpop.permute.xlu0 %3653 }
 0x367   : > { %v3659_v32 = vpop.permute.xlu1 %3658 }
 0x368   : > { %v3248_v56 = vpop.f32.mrb[112].mxu1 }
 0x369   : > { %v3815_v55 = vmul.f32 %v3594_v21, %v3248_v56  ;;  %v3250_v10 = vpop.f32.mrb[113].mxu1 }
 0x36a   : > { %v3251_v7 = vpop.f32.mrb[114].mxu1  ;;  %v3664_v57 = vpop.permute.xlu0 %3663 }
 0x36b   : > { %3879 = vst [vmem:[%s7069_s20 + $0xc0] sm:$0xff] %v3815_v55  ;;  %v3816_v43 = vmul.f32 %v3599_v51, %v3251_v7  ;;  %v3253_v3 = vpop.f32.mrb[115].mxu1  ;;  %v3669_v53 = vpop.permute.xlu1 %3668 }
 0x36d   : > { %3880 = vst [vmem:[%s7069_s20 + $0xc8] sm:$0xff] %v3816_v43 }
 0x36e   : > { %v3674_v21 = vpop.permute.xlu0 %3673 }
 0x36f   : > { %v3679_v51 = vpop.permute.xlu1 %3678 }
 0x370   : > { %v3256_v2 = vpop.f32.mrb[116].mxu1 }
 0x371   : > { %v3817_v1 = vmul.f32 %v3604_v40, %v3256_v2  ;;  %v3258_v18 = vpop.f32.mrb[117].mxu1 }
 0x372   : > { %v3259_v6 = vpop.f32.mrb[118].mxu1  ;;  %v3684_v40 = vpop.permute.xlu0 %3683 }
 0x373   : > { %3881 = vst [vmem:[%s7069_s20 + $0xd0] sm:$0xff] %v3817_v1  ;;  %v3818_v24 = vmul.f32 %v3609_v19, %v3259_v6  ;;  %v3261_v26 = vpop.f32.mrb[119].mxu1  ;;  %v3689_v19 = vpop.permute.xlu1 %3688 }
 0x375   : > { %3882 = vst [vmem:[%s7069_s20 + $0xd8] sm:$0xff] %v3818_v24 }
 0x379   : > { %v3264_v29 = vpop.f32.mrb[120].mxu1 }
 0x37a   : > { %v3819_v11 = vmul.f32 %v3614_v0, %v3264_v29  ;;  %v3266_v5 = vpop.f32.mrb[121].mxu1  ;;  %v3694_v0 = vpop.permute.xlu0 %3693 }
 0x37b   : > { %v3267_v23 = vpop.f32.mrb[122].mxu1 }
 0x37c   : > { %3883 = vst [vmem:[%s7069_s20 + $0xe0] sm:$0xff] %v3819_v11  ;;  %v3820_v61 = vmul.f32 %v3619_v47, %v3267_v23  ;;  %v3269_v46 = vpop.f32.mrb[123].mxu1  ;;  %v3699_v47 = vpop.permute.xlu1 %3698 }
 0x37e   : > { %3884 = vst [vmem:[%s7069_s20 + $0xe8] sm:$0xff] %v3820_v61 }
 0x381   : > { %v3272_v38 = vpop.f32.mrb[124].mxu1 }
 0x382   : > { %v3821_v36 = vmul.f32 %v3624_v63, %v3272_v38  ;;  %v3274_v42 = vpop.f32.mrb[125].mxu1  ;;  %v3704_v63 = vpop.permute.xlu0 %3703 }
 0x383   : > { %v3275_v49 = vpop.f32.mrb[126].mxu1 }
 0x384   : > { %3885 = vst [vmem:[%s7069_s20 + $0xf0] sm:$0xff] %v3821_v36  ;;  %v3822_v4 = vmul.f32 %v3629_v8, %v3275_v49  ;;  %v3277_v52 = vpop.f32.mrb[127].mxu1  ;;  %v3709_v8 = vpop.permute.xlu1 %3708 }
 0x386   : > { %3886 = vst [vmem:[%s7069_s20 + $0xf8] sm:$0xff] %v3822_v4 }
 0x395   : > { %v3280_v9 = vpop.f32.mrb[128].mxu1 }
 0x396   : > { %v3823_v28 = vmul.f32 %v3634_v30, %v3280_v9  ;;  %v3282_v22 = vpop.f32.mrb[129].mxu1  ;;  %v3714_v30 = vpop.permute.xlu0 %3713 }
 0x397   : > { %v3283_v31 = vpop.f32.mrb[130].mxu1 }
 0x398   : > { %3887 = vst [vmem:[%s7069_s20 + $0x100] sm:$0xff] %v3823_v28  ;;  %v3824_v33 = vmul.f32 %v3639_v39, %v3283_v31  ;;  %v3285_v34 = vpop.f32.mrb[131].mxu1  ;;  %v3719_v39 = vpop.permute.xlu1 %3718 }
 0x39a   : > { %3888 = vst [vmem:[%s7069_s20 + $0x108] sm:$0xff] %v3824_v33 }
 0x39d   : > { %v3288_v48 = vpop.f32.mrb[132].mxu1 }
 0x39e   : > { %v3825_v16 = vmul.f32 %v3644_v35, %v3288_v48  ;;  %v3290_v62 = vpop.f32.mrb[133].mxu1  ;;  %v3724_v35 = vpop.permute.xlu0 %3723 }
 0x39f   : > { %v3291_v59 = vpop.f32.mrb[134].mxu1 }
 0x3a0   : > { %3889 = vst [vmem:[%s7069_s20 + $0x110] sm:$0xff] %v3825_v16  ;;  %v3826_v44 = vmul.f32 %v3649_v41, %v3291_v59  ;;  %v3293_v60 = vpop.f32.mrb[135].mxu1  ;;  %v3729_v41 = vpop.permute.xlu1 %3728 }
 0x3a2   : > { %3890 = vst [vmem:[%s7069_s20 + $0x118] sm:$0xff] %v3826_v44 }
 0x3a7   : > { %v3296_v14 = vpop.f32.mrb[136].mxu1 }
 0x3a8   : > { %v3827_v37 = vmul.f32 %v3654_v58, %v3296_v14  ;;  %v3298_v50 = vpop.f32.mrb[137].mxu1  ;;  %v3734_v58 = vpop.permute.xlu0 %3733 }
 0x3a9   : > { %v3299_v12 = vpop.f32.mrb[138].mxu1 }
 0x3aa   : > { %3891 = vst [vmem:[%s7069_s20 + $0x120] sm:$0xff] %v3827_v37  ;;  %v3828_v15 = vmul.f32 %v3659_v32, %v3299_v12  ;;  %v3301_v20 = vpop.f32.mrb[139].mxu1  ;;  %v3739_v32 = vpop.permute.xlu1 %3738 }
 0x3ac   : > { %3892 = vst [vmem:[%s7069_s20 + $0x128] sm:$0xff] %v3828_v15 }
 0x3b2   : > { %v3304_v27 = vpop.f32.mrb[140].mxu1 }
 0x3b3   : > { %v3829_v25 = vmul.f32 %v3664_v57, %v3304_v27  ;;  %v3306_v45 = vpop.f32.mrb[141].mxu1  ;;  %v3744_v57 = vpop.permute.xlu0 %3743 }
 0x3b4   : > { %v3307_v54 = vpop.f32.mrb[142].mxu1 }
 0x3b5   : > { %3893 = vst [vmem:[%s7069_s20 + $0x130] sm:$0xff] %v3829_v25  ;;  %v3830_v17 = vmul.f32 %v3669_v53, %v3307_v54  ;;  %v3309_v13 = vpop.f32.mrb[143].mxu1  ;;  %v3749_v53 = vpop.permute.xlu1 %3748 }
 0x3b7   : > { %3894 = vst [vmem:[%s7069_s20 + $0x138] sm:$0xff] %v3830_v17 }
 0x3bd   : > { %v3312_v56 = vpop.f32.mrb[144].mxu1 }
 0x3be   : > { %v3831_v55 = vmul.f32 %v3674_v21, %v3312_v56  ;;  %v3314_v10 = vpop.f32.mrb[145].mxu1  ;;  %v3754_v21 = vpop.permute.xlu0 %3753 }
 0x3bf   : > { %v3315_v7 = vpop.f32.mrb[146].mxu1 }
 0x3c0   : > { %3895 = vst [vmem:[%s7069_s20 + $0x140] sm:$0xff] %v3831_v55  ;;  %v3832_v43 = vmul.f32 %v3679_v51, %v3315_v7  ;;  %v3317_v3 = vpop.f32.mrb[147].mxu1  ;;  %v3759_v51 = vpop.permute.xlu1 %3758 }
 0x3c2   : > { %3896 = vst [vmem:[%s7069_s20 + $0x148] sm:$0xff] %v3832_v43 }
 0x3c7   : > { %v3320_v2 = vpop.f32.mrb[148].mxu1 }
 0x3c8   : > { %v3833_v1 = vmul.f32 %v3684_v40, %v3320_v2  ;;  %v3322_v18 = vpop.f32.mrb[149].mxu1  ;;  %v3764_v40 = vpop.permute.xlu0 %3763 }
 0x3c9   : > { %v3323_v6 = vpop.f32.mrb[150].mxu1 }
 0x3ca   : > { %3897 = vst [vmem:[%s7069_s20 + $0x150] sm:$0xff] %v3833_v1  ;;  %v3834_v24 = vmul.f32 %v3689_v19, %v3323_v6  ;;  %v3325_v26 = vpop.f32.mrb[151].mxu1  ;;  %v3769_v19 = vpop.permute.xlu1 %3768 }
 0x3cc   : > { %3898 = vst [vmem:[%s7069_s20 + $0x158] sm:$0xff] %v3834_v24 }
 0x3d2   : > { %v3328_v29 = vpop.f32.mrb[152].mxu1 }
 0x3d3   : > { %v3835_v11 = vmul.f32 %v3694_v0, %v3328_v29  ;;  %v3330_v5 = vpop.f32.mrb[153].mxu1  ;;  %v3774_v0 = vpop.permute.xlu0 %3773 }
 0x3d4   : > { %v3331_v23 = vpop.f32.mrb[154].mxu1 }
 0x3d5   : > { %3899 = vst [vmem:[%s7069_s20 + $0x160] sm:$0xff] %v3835_v11  ;;  %v3836_v61 = vmul.f32 %v3699_v47, %v3331_v23  ;;  %v3333_v46 = vpop.f32.mrb[155].mxu1  ;;  %v3779_v47 = vpop.permute.xlu1 %3778 }
 0x3d7   : > { %3900 = vst [vmem:[%s7069_s20 + $0x168] sm:$0xff] %v3836_v61 }
 0x3dd   : > { %v3336_v38 = vpop.f32.mrb[156].mxu1 }
 0x3de   : > { %v3837_v36 = vmul.f32 %v3704_v63, %v3336_v38  ;;  %v3338_v42 = vpop.f32.mrb[157].mxu1  ;;  %v3784_v63 = vpop.permute.xlu0 %3783 }
 0x3df   : > { %v3339_v49 = vpop.f32.mrb[158].mxu1 }
 0x3e0   : > { %3901 = vst [vmem:[%s7069_s20 + $0x170] sm:$0xff] %v3837_v36  ;;  %v3838_v4 = vmul.f32 %v3709_v8, %v3339_v49  ;;  %v3341_v52 = vpop.f32.mrb[159].mxu1  ;;  %v3789_v8 = vpop.permute.xlu1 %3788 }
 0x3e2   : > { %3902 = vst [vmem:[%s7069_s20 + $0x178] sm:$0xff] %v3838_v4 }
 0x3e5   : > { %v3344_v9 = vpop.f32.mrb[160].mxu1 }
 0x3e6   : > { %v3839_v28 = vmul.f32 %v3714_v30, %v3344_v9  ;;  %v3346_v22 = vpop.f32.mrb[161].mxu1 }
 0x3e7   : > { %v3347_v31 = vpop.f32.mrb[162].mxu1 }
 0x3e8   : > { %3903 = vst [vmem:[%s7069_s20 + $0x180] sm:$0xff] %v3839_v28  ;;  %v3840_v33 = vmul.f32 %v3719_v39, %v3347_v31  ;;  %v3349_v34 = vpop.f32.mrb[163].mxu1 }
 0x3ea   : > { %3904 = vst [vmem:[%s7069_s20 + $0x188] sm:$0xff] %v3840_v33 }
 0x3f1   : > { %v3352_v48 = vpop.f32.mrb[164].mxu1 }
 0x3f2   : > { %v3841_v16 = vmul.f32 %v3724_v35, %v3352_v48  ;;  %v3354_v62 = vpop.f32.mrb[165].mxu1 }
 0x3f3   : > { %v3355_v59 = vpop.f32.mrb[166].mxu1 }
 0x3f4   : > { %3905 = vst [vmem:[%s7069_s20 + $0x190] sm:$0xff] %v3841_v16  ;;  %v3842_v44 = vmul.f32 %v3729_v41, %v3355_v59  ;;  %v3357_v60 = vpop.f32.mrb[167].mxu1 }
 0x3f6   : > { %3906 = vst [vmem:[%s7069_s20 + $0x198] sm:$0xff] %v3842_v44 }
 0x3fb   : > { %v3360_v14 = vpop.f32.mrb[168].mxu1 }
 0x3fc   : > { %v3843_v37 = vmul.f32 %v3734_v58, %v3360_v14  ;;  %v3362_v50 = vpop.f32.mrb[169].mxu1 }
 0x3fd   : > { %v3363_v12 = vpop.f32.mrb[170].mxu1 }
 0x3fe   : > { %3907 = vst [vmem:[%s7069_s20 + $0x1a0] sm:$0xff] %v3843_v37  ;;  %v3844_v15 = vmul.f32 %v3739_v32, %v3363_v12  ;;  %v3365_v20 = vpop.f32.mrb[171].mxu1 }
 0x400   : > { %3908 = vst [vmem:[%s7069_s20 + $0x1a8] sm:$0xff] %v3844_v15 }
 0x406   : > { %v3368_v27 = vpop.f32.mrb[172].mxu1 }
 0x407   : > { %v3845_v25 = vmul.f32 %v3744_v57, %v3368_v27  ;;  %v3370_v45 = vpop.f32.mrb[173].mxu1 }
 0x408   : > { %v3371_v54 = vpop.f32.mrb[174].mxu1 }
 0x409   : > { %3909 = vst [vmem:[%s7069_s20 + $0x1b0] sm:$0xff] %v3845_v25  ;;  %v3846_v17 = vmul.f32 %v3749_v53, %v3371_v54  ;;  %v3373_v13 = vpop.f32.mrb[175].mxu1 }
 0x40b   : > { %3910 = vst [vmem:[%s7069_s20 + $0x1b8] sm:$0xff] %v3846_v17 }
 0x40e   : > { %v3376_v56 = vpop.f32.mrb[176].mxu1 }
 0x40f   : > { %v3847_v55 = vmul.f32 %v3754_v21, %v3376_v56  ;;  %v3378_v10 = vpop.f32.mrb[177].mxu1 }
 0x410   : > { %v3379_v7 = vpop.f32.mrb[178].mxu1 }
 0x411   : > { %3911 = vst [vmem:[%s7069_s20 + $0x1c0] sm:$0xff] %v3847_v55  ;;  %v3848_v43 = vmul.f32 %v3759_v51, %v3379_v7  ;;  %v3381_v3 = vpop.f32.mrb[179].mxu1 }
 0x413   : > { %3912 = vst [vmem:[%s7069_s20 + $0x1c8] sm:$0xff] %v3848_v43 }
 0x416   : > { %v3384_v2 = vpop.f32.mrb[180].mxu1 }
 0x417   : > { %v3849_v1 = vmul.f32 %v3764_v40, %v3384_v2  ;;  %v3386_v18 = vpop.f32.mrb[181].mxu1 }
 0x418   : > { %v3387_v6 = vpop.f32.mrb[182].mxu1 }
 0x419   : > { %3913 = vst [vmem:[%s7069_s20 + $0x1d0] sm:$0xff] %v3849_v1  ;;  %v3850_v24 = vmul.f32 %v3769_v19, %v3387_v6  ;;  %v3389_v26 = vpop.f32.mrb[183].mxu1 }
 0x41b   : > { %3914 = vst [vmem:[%s7069_s20 + $0x1d8] sm:$0xff] %v3850_v24 }
 0x41e   : > { %v3392_v29 = vpop.f32.mrb[184].mxu1 }
 0x41f   : > { %v3851_v11 = vmul.f32 %v3774_v0, %v3392_v29  ;;  %v3394_v5 = vpop.f32.mrb[185].mxu1 }
 0x420   : > { %v3395_v23 = vpop.f32.mrb[186].mxu1 }
 0x421   : > { %3915 = vst [vmem:[%s7069_s20 + $0x1e0] sm:$0xff] %v3851_v11  ;;  %v3852_v61 = vmul.f32 %v3779_v47, %v3395_v23  ;;  %v3397_v46 = vpop.f32.mrb[187].mxu1 }
 0x423   : > { %3916 = vst [vmem:[%s7069_s20 + $0x1e8] sm:$0xff] %v3852_v61 }
 0x426   : > { %v3400_v38 = vpop.f32.mrb[188].mxu1 }
 0x427   : > { %v3853_v36 = vmul.f32 %v3784_v63, %v3400_v38  ;;  %v3402_v42 = vpop.f32.mrb[189].mxu1 }
 0x428   : > { %v3403_v49 = vpop.f32.mrb[190].mxu1 }
 0x429   : > { %3917 = vst [vmem:[%s7069_s20 + $0x1f0] sm:$0xff] %v3853_v36  ;;  %v3854_v4 = vmul.f32 %v3789_v8, %v3403_v49  ;;  %v3405_v52 = vpop.f32.mrb[191].mxu1 }
 0x42b   : > { %3918 = vst [vmem:[%s7069_s20 + $0x1f8] sm:$0xff] %v3854_v4 }
 0x42c   : > { %4734 = shalt.err (!%p4731_p3)
}
 0x42d   : > { %s4735_s16 = scalar_lea.hbm %s7251_s11, 8192  ;;  %s4739_s17 = scalar_lea.hbm %s7306_s6, 65536 }
 0x42e   : > { %p4736_p4 = scmp.ne.s32.totalorder %s7251_s11, %s4735_s16  ;;  %p4740_p9 = scmp.lt.u32.totalorder %s7251_s11, %s7306_s6 }
 0x42f   : > { %p4741_p10 = scmp.lt.u32.totalorder %s4739_s17, %s4735_s16  ;;  %p4743_p12 = scmp.lt.u32.totalorder %s4735_s16, %s7251_s11 }
 0x430   : > { %p4737_p7 = pnand %p4736_p4, %p4863_p5 }
 0x431   : > { %p4742_p11 = por %p4741_p10, %p4740_p9 }
 0x432   : > { %p4738_p8 = pneg %p4737_p7 }
 0x433   : > { %p4744_p13 = por %p4743_p12, %p4742_p11 }
 0x435   : > { %p4745_p0 = pnand %p4744_p13, %p4738_p8 }
 0x437   : > { %4748 = shalt.err (!%p4745_p0)
}
 0x438   : > { %s4788_s26 = smov 128   ;;  %s4789_s29 = smov 8  }
 0x439   : > { %4356 = dma.vmem_to_hbm [thread:$0]  (%p4863_p5), %s7253_s28, 8192, %s7251_s11, %s7259_s25, %s4788_s26, %s4788_s26, %s4789_s29  }
 0x43a PF: > { %p4362_p1 = scmp.ge.s32.totalorder %s4783_s24, 2  ;;  %s3948_s10 = sand.u32 1, %s4771_s21  }
 0x43b   : > { %s3949_s12 = scalar_lea.sflag [#allocation3], %s3948_s10 }
 0x43c   : > { %p4359_p2 = pnand %p4362_p1, %p4867_p6 }
 0x43e   : > { %4766 = dma.done.wait (!%p4359_p2), %s3949_s12, 8192  }
 0x43f   : > { %4768 = vsyncadd (!%p4359_p2), %s3949_s12, 4294959104  ;;  %p16_p3 = scmp.ge.s32.totalorder %s4850_s27, 10   ;;  %s7438_s21 = smov %s4775_s22 }
 0x440   : > { %s7439_s22 = smov %s4779_s23  ;;  %s7440_s23 = smov %s4861_s30 }
 0x441   : > { %s7441_s24 = smov %s4850_s27  ;;  %18 = sbr.rel (!%p16_p3) target bundleno = 3 (0x3), region = 85 }
 0x448   :  { %3954 = vsyncpa [#allocation3], 1 }
 0x449   :  { %3956 = vsyncpa [#allocation3 + $0x1], 1 }

// kernel: tpu_custom_call.1
= control target key start
LH: loop header
LB: loop body
LE: loop exit
PB: predicated region body
PF: predicated region fallthrough
CT: control target
= control target key end

     0   :  { %11 = vsyncpa [#allocation3], 0  ;;  %s7300_s0 = inlined_call_operand.vmem [shape: f32[4096,128], index: 0, kind: input, shape index: {}]   ;;  %s7301_s1 = inlined_call_operand.vmem [shape: s32[4096,1], index: 1, kind: input, shape index: {}]   ;;  %s7302_s2 = inlined_call_operand.vmem [shape: f32[4096,1], index: 2, kind: input, shape index: {}]   ;;  %s7303_s3 = inlined_call_operand.vmem [shape: bf16[128,256], index: 3, kind: input, shape index: {}]   ;;  %s7304_s4 = inlined_call_operand.vmem [shape: bf16[128,256], index: 4, kind: input, shape index: {}]   ;;  %s7305_s5 = inlined_call_operand.vmem [shape: bf16[256,128], index: 5, kind: input, shape index: {}]   ;;  %s7306_s6 = inlined_call_operand.hbm [shape: f32[4096,128], index: 6, kind: output, shape index: {}]  }
   0x1   :  { %13 = vsyncpa [#allocation3 + $0x1], 0  ;;  %s4825_s21 = smov 0   ;;  %s4827_s22 = smov 0  }
   0x2   :  { %s4829_s23 = smov 0   ;;  %s4831_s24 = smov 0  }
   0x3 LB: > { %s4846_s25 = sadd.s32 4294967295, %s4783_s24   ;;  %s4019_s26 = sadd.s32 4294967294, %s4783_s24   ;;  %s4783_s24 = sphi %s4831_s24, %s7441_s24   ;;  %s4779_s23 = sphi %s4829_s23, %s7440_s23   ;;  %s4775_s22 = sphi %s4827_s22, %s7439_s22   ;;  %s4771_s21 = sphi %s4825_s21, %s7438_s21  }
   0x4   : > { %s4850_s27 = sadd.s32 1, %s4783_s24   ;;  %s167_s28 = sadd.s32 1, %s4779_s23 }
   0x5   : > { %s164_s29 = ssub.s32 %s4783_s24, %s4850_s27  ;;  %p177_p0 = scmp.ne.s32.totalorder %s4779_s23, %s4775_s22 }
   0x6   : > { %p165_p1 = scmp.eq.s32.totalorder %s164_s29, 0  ;;  %p178_p2 = scmp.eq.s32.totalorder %s4846_s25, 7 }
   0x7   : > { %p183_p3 = scmp.ne.s32.totalorder %s4775_s22, %s4771_s21  ;;  %p184_p4 = scmp.eq.s32.totalorder %s4019_s26, 7 }
   0x8   : > { %s4861_s30 = scalar_select %p165_p1, %s4779_s23, %s167_s28  }
   0x9   : > { %p4863_p5 = por %p178_p2, %p177_p0  ;;  %p4867_p6 = por %p184_p4, %p183_p3 }
   0xa   : > { %p4022_p7 = scmp.ge.s32.totalorder %s4783_s24, 1  ;;  %p238_p8 = scmp.lt.s32.totalorder %s4783_s24, 9 }
   0xc   : > { %p239_p9 = pnand %p4022_p7, %p238_p8 }
   0xe   : > { %242 = sbr.rel (%p239_p9) target bundleno = 1082 (0x43a), region = 44 }
  0x15   : > { %s4024_s9 = sshll.u32 %s4846_s25, 6  ;;  %v4401_v0 = vld [vmem:[%s7304_s4 + $0x4] ss:$8 sps:$4 sm:$0xff]   ;;  %v7307_v1 = vmov 0   ;;  %v4403_v2 = vld [vmem:[%s7304_s4] ss:$8 sps:$4 sm:$0xff]  }
  0x16   : > { %4400 = vset.pattern.permute.xlu1 %v7307_v1  ;;  %4399 = vset.pattern.permute.xlu0 %v7307_v1  ;;  %p279_p10 = scmp.lt.s32.totalorder %s4024_s9, 511  ;;  %v4404_v3 = vld [vmem:[%s7304_s4 + $0x14] ss:$8 sps:$4 sm:$0xff]   ;;  %v4406_v4 = vld [vmem:[%s7304_s4 + $0x10] ss:$8 sps:$4 sm:$0xff]   ;;  %s4211_s26 = sshll.u32 %s4846_s25, 13 }
  0x17   : > { %988 = vmatprep.subr.bf16.mxu0 %v4401_v0  ;;  %1020 = vmatprep.mubr.bf16.mxu0 %v7307_v1  ;;  %v4407_v5 = vld [vmem:[%s7304_s4 + $0x24] ss:$8 sps:$4 sm:$0xff]   ;;  %v4409_v8 = vld [vmem:[%s7304_s4 + $0x20] ss:$8 sps:$4 sm:$0xff]   ;;  %v4410_v11 = vld [vmem:[%s7304_s4 + $0x34] ss:$8 sps:$4 sm:$0xff]   ;;  %s7251_s11 = scalar_lea.hbm %s7306_s6, %s4211_s26 }
  0x18   : > { %s7443_s9 = smov (!%p279_p10, %s4024_s9), 511  ;;  %989 = vmatpush1.bf16.msra.mxu0 %v4403_v2  ;;  %4212 = vmatprep.subr.bf16.mxu1 %v4401_v0  ;;  %v4412_v12 = vld [vmem:[%s7304_s4 + $0x30] ss:$8 sps:$4 sm:$0xff]   ;;  %v4413_v15 = vld [vmem:[%s7304_s4 + $0x44] ss:$8 sps:$4 sm:$0xff]   ;;  %s4787_s13 = smov [#allocation2]  }
  0x19   : > { %990 = vmatprep.subr.bf16.mxu0 %v4404_v3  ;;  %4220 = vmatpush1.bf16.msra.mxu1 %v4403_v2  ;;  %s4889_s18 = sshll.u32 %s7443_s9, 3  ;;  %v4415_v16 = vld [vmem:[%s7304_s4 + $0x40] ss:$8 sps:$4 sm:$0xff]   ;;  %v4416_v24 = vld [vmem:[%s7304_s4 + $0x54] ss:$8 sps:$4 sm:$0xff]   ;;  %s4725_s14 = sshll.u32 %s4787_s13, 4  ;;  %s4726_s14 = int_to_ptr.vmem [resolvable:$false] %s4725_s14 }
  0x1a   : > { %4213 = vmatprep.subr.bf16.mxu1 %v4404_v3  ;;  %1180 = vmatprep.mubr.bf16.mxu1 %v7307_v1  ;;  %s4899_s29 = scalar_lea.vmem %s7301_s1, %s4889_s18  ;;  %v4418_v25 = vld [vmem:[%s7304_s4 + $0x50] ss:$8 sps:$4 sm:$0xff]   ;;  %v4419_v27 = vld [vmem:[%s7304_s4 + $0x64] ss:$8 sps:$4 sm:$0xff]   ;;  %v4421_v28 = vld [vmem:[%s7304_s4 + $0x60] ss:$8 sps:$4 sm:$0xff]   ;;  %s5006_s9 = scalar_lea.vmem %s7302_s2, %s4889_s18 }
  0x1b   : > { %v414_v6 = vld [vmem:[%s4899_s29 + $0x10] sm:$0xff]  ;;  %v412_v7 = vld [vmem:[%s4899_s29] sm:$0xff]  ;;  %v415_v9 = vld [vmem:[%s4899_s29 + $0x18] sm:$0xff]  ;;  %s5290_s17 = scalar_lea.vmem %s7300_s0, %s4889_s18  ;;  %s4727_s15 = scalar_lea.vmem %s4726_s14, 16384 }
  0x1c   : > { %991 = vmatpush1.bf16.msra.mxu0 %v4406_v4  ;;  %483 = vperm.xlu1 %4400, %v414_v6   ;;  %v413_v10 = vld [vmem:[%s4899_s29 + $0x8] sm:$0xff]  ;;  %v416_v14 = vld [vmem:[%s4899_s29 + $0x20] sm:$0xff]  ;;  %v419_v17 = vld [vmem:[%s4899_s29 + $0x38] sm:$0xff] }
  0x1d   : > { %477 = vperm.xlu0 %4399, %v412_v7   ;;  %992 = vmatprep.subr.bf16.mxu0 %v4407_v5  ;;  %v417_v13 = vld [vmem:[%s4899_s29 + $0x28] sm:$0xff]  ;;  %v418_v18 = vld [vmem:[%s4899_s29 + $0x30] sm:$0xff]  ;;  %v420_v20 = vld [vmem:[%s4899_s29 + $0x40] sm:$0xff] }
  0x1e   : > { %4221 = vmatpush1.bf16.msra.mxu1 %v4406_v4  ;;  %v421_v19 = vld [vmem:[%s4899_s29 + $0x48] sm:$0xff]  ;;  %v423_v21 = vld [vmem:[%s4899_s29 + $0x58] sm:$0xff]  ;;  %v422_v22 = vld [vmem:[%s4899_s29 + $0x50] sm:$0xff] }
  0x1f   : > { %4214 = vmatprep.subr.bf16.mxu1 %v4407_v5  ;;  %v425_v23 = vld [vmem:[%s4899_s29 + $0x68] sm:$0xff]  ;;  %v424_v26 = vld [vmem:[%s4899_s29 + $0x60] sm:$0xff]  ;;  %v427_v29 = vld [vmem:[%s4899_s29 + $0x78] sm:$0xff] }
  0x20   : > { %993 = vmatpush1.bf16.msra.mxu0 %v4409_v8  ;;  %486 = vperm.xlu1 %4400, %v415_v9   ;;  %v426_v30 = vld [vmem:[%s4899_s29 + $0x70] sm:$0xff]  ;;  %v429_v33 = vld [vmem:[%s4899_s29 + $0x88] sm:$0xff]  ;;  %v428_v34 = vld [vmem:[%s4899_s29 + $0x80] sm:$0xff] }
  0x21   : > { %480 = vperm.xlu0 %4399, %v413_v10   ;;  %994 = vmatprep.subr.bf16.mxu0 %v4410_v11  ;;  %v4422_v31 = vld [vmem:[%s7304_s4 + $0x74] ss:$8 sps:$4 sm:$0xff]   ;;  %v4424_v32 = vld [vmem:[%s7304_s4 + $0x70] ss:$8 sps:$4 sm:$0xff]   ;;  %v4427_v35 = vld [vmem:[%s7303_s3 + $0x4] ss:$8 sps:$4 sm:$0xff]  }
  0x22   : > { %4222 = vmatpush1.bf16.msra.mxu1 %v4409_v8  ;;  %v431_v36 = vld [vmem:[%s4899_s29 + $0x98] sm:$0xff]  ;;  %v430_v37 = vld [vmem:[%s4899_s29 + $0x90] sm:$0xff]  ;;  %v433_v38 = vld [vmem:[%s4899_s29 + $0xa8] sm:$0xff] }
  0x23   : > { %4215 = vmatprep.subr.bf16.mxu1 %v4410_v11  ;;  %v432_v39 = vld [vmem:[%s4899_s29 + $0xa0] sm:$0xff]  ;;  %v435_v40 = vld [vmem:[%s4899_s29 + $0xb8] sm:$0xff]  ;;  %v434_v41 = vld [vmem:[%s4899_s29 + $0xb0] sm:$0xff] }
  0x24   : > { %995 = vmatpush1.bf16.msra.mxu0 %v4412_v12  ;;  %492 = vperm.xlu1 %4400, %v417_v13   ;;  %v437_v42 = vld [vmem:[%s4899_s29 + $0xc8] sm:$0xff]  ;;  %v436_v43 = vld [vmem:[%s4899_s29 + $0xc0] sm:$0xff]  ;;  %v439_v44 = vld [vmem:[%s4899_s29 + $0xd8] sm:$0xff] }
  0x25   : > { %489 = vperm.xlu0 %4399, %v416_v14   ;;  %996 = vmatprep.subr.bf16.mxu0 %v4413_v15  ;;  %v438_v45 = vld [vmem:[%s4899_s29 + $0xd0] sm:$0xff]  ;;  %v441_v46 = vld [vmem:[%s4899_s29 + $0xe8] sm:$0xff]  ;;  %v440_v47 = vld [vmem:[%s4899_s29 + $0xe0] sm:$0xff] }
  0x26   : > { %4223 = vmatpush1.bf16.msra.mxu1 %v4412_v12  ;;  %v443_v48 = vld [vmem:[%s4899_s29 + $0xf8] sm:$0xff]  ;;  %v442_v49 = vld [vmem:[%s4899_s29 + $0xf0] sm:$0xff]  ;;  %v445_v50 = vld [vmem:[%s4899_s29 + $0x108] sm:$0xff] }
  0x27   : > { %4216 = vmatprep.subr.bf16.mxu1 %v4413_v15  ;;  %v444_v51 = vld [vmem:[%s4899_s29 + $0x100] sm:$0xff]  ;;  %v447_v52 = vld [vmem:[%s4899_s29 + $0x118] sm:$0xff]  ;;  %v446_v53 = vld [vmem:[%s4899_s29 + $0x110] sm:$0xff] }
  0x28   : > { %997 = vmatpush1.bf16.msra.mxu0 %v4415_v16  ;;  %498 = vperm.xlu1 %4400, %v419_v17   ;;  %v449_v54 = vld [vmem:[%s4899_s29 + $0x128] sm:$0xff]  ;;  %v448_v55 = vld [vmem:[%s4899_s29 + $0x120] sm:$0xff]  ;;  %v451_v56 = vld [vmem:[%s4899_s29 + $0x138] sm:$0xff] }
  0x29   : > { %495 = vperm.xlu0 %4399, %v418_v18   ;;  %998 = vmatprep.subr.bf16.mxu0 %v4416_v24  ;;  %v450_v57 = vld [vmem:[%s4899_s29 + $0x130] sm:$0xff]  ;;  %v453_v58 = vld [vmem:[%s4899_s29 + $0x148] sm:$0xff]  ;;  %v452_v59 = vld [vmem:[%s4899_s29 + $0x140] sm:$0xff] }
  0x2a   : > { %4224 = vmatpush1.bf16.msra.mxu1 %v4415_v16  ;;  %v455_v60 = vld [vmem:[%s4899_s29 + $0x158] sm:$0xff]  ;;  %v454_v61 = vld [vmem:[%s4899_s29 + $0x150] sm:$0xff]  ;;  %v457_v62 = vld [vmem:[%s4899_s29 + $0x168] sm:$0xff] }
  0x2b   : > { %4217 = vmatprep.subr.bf16.mxu1 %v4416_v24  ;;  %v456_v63 = vld [vmem:[%s4899_s29 + $0x160] sm:$0xff]  ;;  %v459_v0 = vld [vmem:[%s4899_s29 + $0x178] sm:$0xff]  ;;  %v458_v2 = vld [vmem:[%s4899_s29 + $0x170] sm:$0xff] }
  0x2c   : > { %504 = vperm.xlu1 %4400, %v421_v19   ;;  %999 = vmatpush1.bf16.msra.mxu0 %v4418_v25  ;;  %v461_v3 = vld [vmem:[%s4899_s29 + $0x188] sm:$0xff]  ;;  %v460_v4 = vld [vmem:[%s4899_s29 + $0x180] sm:$0xff]  ;;  %v463_v5 = vld [vmem:[%s4899_s29 + $0x198] sm:$0xff]  ;;  %v410_v19 = vlaneseq }
  0x2d   : > { %501 = vperm.xlu0 %4399, %v420_v20   ;;  %1000 = vmatprep.subr.bf16.mxu0 %v4419_v27  ;;  %v462_v6 = vld [vmem:[%s4899_s29 + $0x190] sm:$0xff]  ;;  %v465_v7 = vld [vmem:[%s4899_s29 + $0x1a8] sm:$0xff]  ;;  %v464_v8 = vld [vmem:[%s4899_s29 + $0x1a0] sm:$0xff] }
  0x2e   : > { %4225 = vmatpush1.bf16.msra.mxu1 %v4418_v25  ;;  %v467_v9 = vld [vmem:[%s4899_s29 + $0x1b8] sm:$0xff]  ;;  %v466_v10 = vld [vmem:[%s4899_s29 + $0x1b0] sm:$0xff]  ;;  %v469_v11 = vld [vmem:[%s4899_s29 + $0x1c8] sm:$0xff]  ;;  %v5010_v24 = vand.u32 127, %v410_v19 }
  0x2f   : > { %4218 = vmatprep.subr.bf16.mxu1 %v4419_v27  ;;  %v468_v12 = vld [vmem:[%s4899_s29 + $0x1c0] sm:$0xff]  ;;  %v471_v13 = vld [vmem:[%s4899_s29 + $0x1d8] sm:$0xff]  ;;  %v470_v14 = vld [vmem:[%s4899_s29 + $0x1d0] sm:$0xff] }
  0x30   : > { %510 = vperm.xlu1 %4400, %v423_v21   ;;  %1001 = vmatpush1.bf16.msra.mxu0 %v4421_v28  ;;  %v473_v15 = vld [vmem:[%s4899_s29 + $0x1e8] sm:$0xff]  ;;  %v472_v16 = vld [vmem:[%s4899_s29 + $0x1e0] sm:$0xff]  ;;  %v475_v17 = vld [vmem:[%s4899_s29 + $0x1f8] sm:$0xff] }
  0x31   : > { %507 = vperm.xlu0 %4399, %v422_v22   ;;  %1002 = vmatprep.subr.bf16.mxu0 %v4422_v31  ;;  %v474_v18 = vld [vmem:[%s4899_s29 + $0x1f0] sm:$0xff]  ;;  %v3408_v20 = vld [vmem:[%s5006_s9 + $0x8] sm:$0xff]  ;;  %v3407_v21 = vld [vmem:[%s5006_s9] sm:$0xff] }
  0x32   : > { %4226 = vmatpush1.bf16.msra.mxu1 %v4421_v28  ;;  %v3410_v25 = vld [vmem:[%s5006_s9 + $0x18] sm:$0xff]  ;;  %v3429_v19 = vld [vmem:[%s5006_s9 + $0xb0] sm:$0xff] }
  0x33   : > { %4219 = vmatprep.subr.bf16.mxu1 %v4422_v31  ;;  %v3411_v31 = vld [vmem:[%s5006_s9 + $0x20] sm:$0xff] }
  0x34   : > { %516 = vperm.xlu1 %4400, %v425_v23   ;;  %1003 = vmatpush1.bf16.msra.mxu0 %v4424_v32 }
  0x35   : > { %513 = vperm.xlu0 %4399, %v424_v26   ;;  %1421 = vmatprep.subr.bf16.mxu0 %v4427_v35  ;;  %v3409_v26 = vld [vmem:[%s5006_s9 + $0x10] sm:$0xff] }
  0x36   : > { %4227 = vmatpush1.bf16.msra.mxu1 %v4424_v32  ;;  %v4430_v32 = vld [vmem:[%s7303_s3 + $0x14] ss:$8 sps:$4 sm:$0xff]  }
  0x37   : > { %3118 = vmatprep.subr.bf16.mxu1 %v7307_v1 }
  0x38   : > { %522 = vperm.xlu1 %4400, %v427_v29   ;;  %v4425_v29 = vld [vmem:[%s7303_s3] ss:$8 sps:$4 sm:$0xff]  }
  0x39   : > { %519 = vperm.xlu0 %4399, %v426_v30   ;;  %v3412_v30 = vld [vmem:[%s5006_s9 + $0x28] sm:$0xff] }
  0x3c   : > { %528 = vperm.xlu1 %4400, %v429_v33   ;;  %v4786_v33 = vmov 1.0|1.0  }
  0x3d   : > { %525 = vperm.xlu0 %4399, %v428_v34  }
  0x40   : > { %534 = vperm.xlu1 %4400, %v431_v36   ;;  %v4428_v36 = vld [vmem:[%s7303_s3 + $0x10] ss:$8 sps:$4 sm:$0xff]  }
  0x41   : > { %531 = vperm.xlu0 %4399, %v430_v37   ;;  %v3414_v37 = vld [vmem:[%s5006_s9 + $0x38] sm:$0xff] }
  0x44   : > { %540 = vperm.xlu1 %4400, %v433_v38   ;;  %v4433_v38 = vld [vmem:[%s7303_s3 + $0x24] ss:$8 sps:$4 sm:$0xff]  }
  0x45   : > { %537 = vperm.xlu0 %4399, %v432_v39   ;;  %v3413_v39 = vld [vmem:[%s5006_s9 + $0x30] sm:$0xff] }
  0x48   : > { %546 = vperm.xlu1 %4400, %v435_v40  }
  0x49   : > { %543 = vperm.xlu0 %4399, %v434_v41  }
  0x4c   : > { %552 = vperm.xlu1 %4400, %v437_v42   ;;  %v3416_v42 = vld [vmem:[%s5006_s9 + $0x48] sm:$0xff] }
  0x4d   : > { %549 = vperm.xlu0 %4399, %v436_v43   ;;  %v4431_v43 = vld [vmem:[%s7303_s3 + $0x20] ss:$8 sps:$4 sm:$0xff]  }
  0x50   : > { %558 = vperm.xlu1 %4400, %v439_v44   ;;  %v3415_v44 = vld [vmem:[%s5006_s9 + $0x40] sm:$0xff] }
  0x51   : > { %555 = vperm.xlu0 %4399, %v438_v45   ;;  %v4436_v45 = vld [vmem:[%s7303_s3 + $0x34] ss:$8 sps:$4 sm:$0xff]  }
  0x54   : > { %564 = vperm.xlu1 %4400, %v441_v46  }
  0x55   : > { %561 = vperm.xlu0 %4399, %v440_v47  }
  0x58   : > { %570 = vperm.xlu1 %4400, %v443_v48   ;;  %v3418_v48 = vld [vmem:[%s5006_s9 + $0x58] sm:$0xff] }
  0x59   : > { %567 = vperm.xlu0 %4399, %v442_v49   ;;  %v4434_v49 = vld [vmem:[%s7303_s3 + $0x30] ss:$8 sps:$4 sm:$0xff]  }
  0x5c   : > { %576 = vperm.xlu1 %4400, %v445_v50   ;;  %v3417_v50 = vld [vmem:[%s5006_s9 + $0x50] sm:$0xff] }
  0x5d   : > { %573 = vperm.xlu0 %4399, %v444_v51   ;;  %v4439_v51 = vld [vmem:[%s7303_s3 + $0x44] ss:$8 sps:$4 sm:$0xff]  }
  0x60   : > { %582 = vperm.xlu1 %4400, %v447_v52  }
  0x61   : > { %579 = vperm.xlu0 %4399, %v446_v53  }
  0x64   : > { %588 = vperm.xlu1 %4400, %v449_v54   ;;  %v3420_v54 = vld [vmem:[%s5006_s9 + $0x68] sm:$0xff] }
  0x65   : > { %585 = vperm.xlu0 %4399, %v448_v55   ;;  %v4437_v55 = vld [vmem:[%s7303_s3 + $0x40] ss:$8 sps:$4 sm:$0xff]  }
  0x68   : > { %594 = vperm.xlu1 %4400, %v451_v56   ;;  %v3419_v56 = vld [vmem:[%s5006_s9 + $0x60] sm:$0xff] }
  0x69   : > { %591 = vperm.xlu0 %4399, %v450_v57   ;;  %v4442_v57 = vld [vmem:[%s7303_s3 + $0x54] ss:$8 sps:$4 sm:$0xff]  }
  0x6c   : > { %600 = vperm.xlu1 %4400, %v453_v58  }
  0x6d   : > { %597 = vperm.xlu0 %4399, %v452_v59  }
  0x70   : > { %606 = vperm.xlu1 %4400, %v455_v60   ;;  %v3422_v60 = vld [vmem:[%s5006_s9 + $0x78] sm:$0xff] }
  0x71   : > { %603 = vperm.xlu0 %4399, %v454_v61   ;;  %v4440_v61 = vld [vmem:[%s7303_s3 + $0x50] ss:$8 sps:$4 sm:$0xff]  }
  0x74   : > { %612 = vperm.xlu1 %4400, %v457_v62   ;;  %v3421_v62 = vld [vmem:[%s5006_s9 + $0x70] sm:$0xff] }
  0x75   : > { %609 = vperm.xlu0 %4399, %v456_v63   ;;  %v4445_v63 = vld [vmem:[%s7303_s3 + $0x64] ss:$8 sps:$4 sm:$0xff]  }
  0x78   : > { %618 = vperm.xlu1 %4400, %v459_v0  }
  0x79   : > { %615 = vperm.xlu0 %4399, %v458_v2  }
  0x7c   : > { %624 = vperm.xlu1 %4400, %v461_v3   ;;  %v3424_v3 = vld [vmem:[%s5006_s9 + $0x88] sm:$0xff] }
  0x7d   : > { %621 = vperm.xlu0 %4399, %v460_v4   ;;  %v4443_v4 = vld [vmem:[%s7303_s3 + $0x60] ss:$8 sps:$4 sm:$0xff]  }
  0x80   : > { %630 = vperm.xlu1 %4400, %v463_v5   ;;  %v3423_v5 = vld [vmem:[%s5006_s9 + $0x80] sm:$0xff] }
  0x81   : > { %627 = vperm.xlu0 %4399, %v462_v6   ;;  %v4448_v6 = vld [vmem:[%s7303_s3 + $0x74] ss:$8 sps:$4 sm:$0xff]  }
  0x84   : > { %636 = vperm.xlu1 %4400, %v465_v7  }
  0x85   : > { %633 = vperm.xlu0 %4399, %v464_v8  }
  0x88   : > { %642 = vperm.xlu1 %4400, %v467_v9   ;;  %v3426_v9 = vld [vmem:[%s5006_s9 + $0x98] sm:$0xff] }
  0x89   : > { %639 = vperm.xlu0 %4399, %v466_v10   ;;  %v4446_v10 = vld [vmem:[%s7303_s3 + $0x70] ss:$8 sps:$4 sm:$0xff]  }
  0x8c   : > { %648 = vperm.xlu1 %4400, %v469_v11   ;;  %v3425_v11 = vld [vmem:[%s5006_s9 + $0x90] sm:$0xff] }
  0x8d   : > { %645 = vperm.xlu0 %4399, %v468_v12  }
  0x90   : > { %654 = vperm.xlu1 %4400, %v471_v13  }
  0x91   : > { %651 = vperm.xlu0 %4399, %v470_v14   ;;  %v3428_v14 = vld [vmem:[%s5006_s9 + $0xa8] sm:$0xff] }
  0x94   : > { %660 = vperm.xlu1 %4400, %v473_v15   ;;  %v3427_v15 = vld [vmem:[%s5006_s9 + $0xa0] sm:$0xff] }
  0x95   : > { %657 = vperm.xlu0 %4399, %v472_v16  }
  0x98   : > { %666 = vperm.xlu1 %4400, %v475_v17  }
  0x99   : > { %663 = vperm.xlu0 %4399, %v474_v18   ;;  %v3430_v18 = vld [vmem:[%s5006_s9 + $0xb8] sm:$0xff] }
  0x9b   : > { %v484_v22 = vpop.permute.xlu1 %483 }
  0x9c   : > { %v478_v23 = vpop.permute.xlu0 %477  ;;  %3478 = vperm.xlu1 %4400, %v3408_v20   ;;  %vm670_vm3 = vcmp.eq.s32.totalorder %v484_v22, %v5010_v24  ;;  %v3432_v22 = vld [vmem:[%s5006_s9 + $0xc8] sm:$0xff] }
  0x9d   : > { %3473 = vperm.xlu0 %4399, %v3407_v21   ;;  %vm668_vm1 = vcmp.eq.s32.totalorder %v478_v23, %v5010_v24  ;;  %v3431_v23 = vld [vmem:[%s5006_s9 + $0xc0] sm:$0xff] }
  0x9f   : > { %v487_v27 = vpop.permute.xlu1 %486 }
  0xa0   : > { %v481_v28 = vpop.permute.xlu0 %480  ;;  %3488 = vperm.xlu1 %4400, %v3410_v25   ;;  %vm671_vm4 = vcmp.eq.s32.totalorder %v487_v27, %v5010_v24  ;;  %v3434_v27 = vld [vmem:[%s5006_s9 + $0xd8] sm:$0xff] }
  0xa1   : > { %vm669_vm0 = vcmp.eq.s32.totalorder %v481_v28, %v5010_v24  ;;  %3483 = vperm.xlu0 %4399, %v3409_v26   ;;  %vm4112_vm5 = vmpackc.low %vm671_vm4, %vm670_vm3  ;;  %v3433_v28 = vld [vmem:[%s5006_s9 + $0xd0] sm:$0xff] }
  0xa2   : > { %vm4110_vm2 = vmpackc.low %vm669_vm0, %vm668_vm1 }
  0xa3   : > { %4111 = vmatmul.mubr.msk.bf16.vlgmr.msra.gmra.mrb[0].mxu0 %vm4110_vm2, %v4786_v33  ;;  %v493_v34 = vpop.permute.xlu1 %492 }
  0xa4   : > { %v490_v35 = vpop.permute.xlu0 %489  ;;  %1422 = vmatpush1.bf16.msra.mxu0 %v4425_v29  ;;  %3498 = vperm.xlu1 %4400, %v3412_v30   ;;  %vm673_vm6 = vcmp.eq.s32.totalorder %v493_v34, %v5010_v24 }
  0xa5   : > { %3493 = vperm.xlu0 %4399, %v3411_v31   ;;  %1030 = vmatprep.mubr.bf16.mxu0 %v7307_v1  ;;  %vm672_vm7 = vcmp.eq.s32.totalorder %v490_v35, %v5010_v24  ;;  %v3436_v31 = vld [vmem:[%s5006_s9 + $0xe8] sm:$0xff] }
  0xa6   : > { %1423 = vmatprep.subr.bf16.mxu0 %v4430_v32  ;;  %vm4114_vm8 = vmpackc.low %vm673_vm6, %vm672_vm7  ;;  %v3435_v32 = vld [vmem:[%s5006_s9 + $0xe0] sm:$0xff] }
  0xa7   : > { %v499_v40 = vpop.permute.xlu1 %498 }
  0xa8   : > { %v496_v41 = vpop.permute.xlu0 %495  ;;  %3508 = vperm.xlu1 %4400, %v3414_v37   ;;  %1424 = vmatpush1.bf16.msra.mxu0 %v4428_v36  ;;  %vm675_vm9 = vcmp.eq.s32.totalorder %v499_v40, %v5010_v24  ;;  %v3438_v36 = vld [vmem:[%s5006_s9 + $0xf8] sm:$0xff]  ;;  %v3437_v37 = vld [vmem:[%s5006_s9 + $0xf0] sm:$0xff] }
  0xa9   : > { %3503 = vperm.xlu0 %4399, %v3413_v39   ;;  %1425 = vmatprep.subr.bf16.mxu0 %v4433_v38  ;;  %vm674_vm10 = vcmp.eq.s32.totalorder %v496_v41, %v5010_v24  ;;  %v3440_v41 = vld [vmem:[%s5006_s9 + $0x108] sm:$0xff] }
  0xaa   : > { %vm4116_vm11 = vmpackc.low %vm675_vm9, %vm674_vm10 }
  0xab   : > { %4113 = vmatmul.mubr.msk.bf16.gmra.mrb[4].mxu0 %vm4112_vm5, %v4786_v33  ;;  %v5045_v46 = vpop.permute.xlu1 %504 }
  0xac   : > { %v5047_v47 = vpop.permute.xlu0 %501  ;;  %3518 = vperm.xlu1 %4400, %v3416_v42   ;;  %1040 = vmatprep.mubr.bf16.mxu0 %v7307_v1  ;;  %vm677_vm12 = vcmp.eq.s32.totalorder %v5045_v46, %v5010_v24  ;;  %v3439_v42 = vld [vmem:[%s5006_s9 + $0x100] sm:$0xff]  ;;  %v3441_v46 = vld [vmem:[%s5006_s9 + $0x110] sm:$0xff] }
  0xad   : > { %3513 = vperm.xlu0 %4399, %v3415_v44   ;;  %1426 = vmatpush1.bf16.msra.mxu0 %v4431_v43  ;;  %vm676_vm13 = vcmp.eq.s32.totalorder %v5047_v47, %v5010_v24 }
  0xae   : > { %1427 = vmatprep.subr.bf16.mxu0 %v4436_v45  ;;  %vm4118_vm14 = vmpackc.low %vm677_vm12, %vm676_vm13  ;;  %v3442_v45 = vld [vmem:[%s5006_s9 + $0x118] sm:$0xff] }
  0xaf   : > { %v5060_v52 = vpop.permute.xlu1 %510 }
  0xb0   : > { %v5062_v53 = vpop.permute.xlu0 %507  ;;  %3528 = vperm.xlu1 %4400, %v3418_v48   ;;  %vm679_vm15 = vcmp.eq.s32.totalorder %v5060_v52, %v5010_v24  ;;  %v3445_v52 = vld [vmem:[%s5006_s9 + $0x130] sm:$0xff] }
  0xb1   : > { %3523 = vperm.xlu0 %4399, %v3417_v50   ;;  %1428 = vmatpush1.bf16.msra.mxu0 %v4434_v49  ;;  %vm678_vm0 = vcmp.eq.s32.totalorder %v5062_v53, %v5010_v24  ;;  %v3444_v49 = vld [vmem:[%s5006_s9 + $0x128] sm:$0xff]  ;;  %v3443_v50 = vld [vmem:[%s5006_s9 + $0x120] sm:$0xff] }
  0xb2   : > { %1429 = vmatprep.subr.bf16.mxu0 %v4439_v51  ;;  %vm4120_vm1 = vmpackc.low %vm679_vm15, %vm678_vm0  ;;  %v3446_v51 = vld [vmem:[%s5006_s9 + $0x138] sm:$0xff] }
  0xb3   : > { %4115 = vmatmul.mubr.msk.bf16.gmra.mrb[8].mxu0 %vm4114_vm8, %v4786_v33  ;;  %v5073_v58 = vpop.permute.xlu1 %516 }
  0xb4   : > { %v5075_v59 = vpop.permute.xlu0 %513  ;;  %3538 = vperm.xlu1 %4400, %v3420_v54   ;;  %1050 = vmatprep.mubr.bf16.mxu0 %v7307_v1  ;;  %vm681_vm2 = vcmp.eq.s32.totalorder %v5073_v58, %v5010_v24  ;;  %v3449_v58 = vld [vmem:[%s5006_s9 + $0x150] sm:$0xff] }
  0xb5   : > { %3533 = vperm.xlu0 %4399, %v3419_v56   ;;  %1430 = vmatpush1.bf16.msra.mxu0 %v4437_v55  ;;  %vm680_vm3 = vcmp.eq.s32.totalorder %v5075_v59, %v5010_v24  ;;  %v3448_v55 = vld [vmem:[%s5006_s9 + $0x148] sm:$0xff]  ;;  %v3447_v56 = vld [vmem:[%s5006_s9 + $0x140] sm:$0xff] }
  0xb6   : > { %1431 = vmatprep.subr.bf16.mxu0 %v4442_v57  ;;  %vm4122_vm4 = vmpackc.low %vm681_vm2, %vm680_vm3  ;;  %v3450_v57 = vld [vmem:[%s5006_s9 + $0x158] sm:$0xff] }
  0xb7   : > { %v5088_v0 = vpop.permute.xlu1 %522 }
  0xb8   : > { %v5090_v2 = vpop.permute.xlu0 %519  ;;  %3548 = vperm.xlu1 %4400, %v3422_v60   ;;  %vm683_vm5 = vcmp.eq.s32.totalorder %v5088_v0, %v5010_v24  ;;  %v3453_v0 = vld [vmem:[%s5006_s9 + $0x170] sm:$0xff] }
  0xb9   : > { %3543 = vperm.xlu0 %4399, %v3421_v62   ;;  %1432 = vmatpush1.bf16.msra.mxu0 %v4440_v61  ;;  %vm682_vm6 = vcmp.eq.s32.totalorder %v5090_v2, %v5010_v24  ;;  %v3452_v61 = vld [vmem:[%s5006_s9 + $0x168] sm:$0xff]  ;;  %v3451_v62 = vld [vmem:[%s5006_s9 + $0x160] sm:$0xff] }
  0xba   : > { %1433 = vmatprep.subr.bf16.mxu0 %v4445_v63  ;;  %vm4124_vm10 = vmpackc.low %vm683_vm5, %vm682_vm6  ;;  %v3454_v63 = vld [vmem:[%s5006_s9 + $0x178] sm:$0xff] }
  0xbb   : > { %4117 = vmatmul.mubr.msk.bf16.gmra.mrb[12].mxu0 %vm4116_vm11, %v4786_v33  ;;  %v5101_v7 = vpop.permute.xlu1 %528 }
  0xbc   : > { %v5103_v8 = vpop.permute.xlu0 %525  ;;  %3558 = vperm.xlu1 %4400, %v3424_v3   ;;  %1060 = vmatprep.mubr.bf16.mxu0 %v7307_v1 }
  0xbd   : > { %3553 = vperm.xlu0 %4399, %v3423_v5   ;;  %1434 = vmatpush1.bf16.msra.mxu0 %v4443_v4  ;;  %vm684_vm15 = vcmp.eq.s32.totalorder %v5103_v8, %v5010_v24  ;;  %v3456_v4 = vld [vmem:[%s5006_s9 + $0x188] sm:$0xff]  ;;  %v3455_v5 = vld [vmem:[%s5006_s9 + $0x180] sm:$0xff] }
  0xbe   : > { %1435 = vmatprep.subr.bf16.mxu0 %v4448_v6  ;;  %v3458_v6 = vld [vmem:[%s5006_s9 + $0x198] sm:$0xff] }
  0xbf   : > { %v5115_v12 = vpop.permute.xlu1 %534 }
  0xc0   : > { %v5117_v13 = vpop.permute.xlu0 %531  ;;  %3568 = vperm.xlu1 %4400, %v3426_v9  }
  0xc1   : > { %3563 = vperm.xlu0 %4399, %v3425_v11   ;;  %1436 = vmatpush1.bf16.msra.mxu0 %v4446_v10  ;;  %vm686_vm5 = vcmp.eq.s32.totalorder %v5117_v13, %v5010_v24  ;;  %v3460_v10 = vld [vmem:[%s5006_s9 + $0x1a8] sm:$0xff]  ;;  %v3459_v11 = vld [vmem:[%s5006_s9 + $0x1a0] sm:$0xff]  ;;  %v3461_v13 = vld [vmem:[%s5006_s9 + $0x1b0] sm:$0xff] }
  0xc3   : > { %4119 = vmatmul.mubr.msk.bf16.gmra.mrb[16].mxu0 %vm4118_vm14, %v4786_v33  ;;  %v5122_v16 = vpop.permute.xlu1 %540  ;;  %vm685_vm14 = vcmp.eq.s32.totalorder %v5101_v7, %v5010_v24  ;;  %v3457_v7 = vld [vmem:[%s5006_s9 + $0x190] sm:$0xff] }
  0xc4   : > { %v5124_v17 = vpop.permute.xlu0 %537  ;;  %3578 = vperm.xlu1 %4400, %v3428_v14   ;;  %1070 = vmatprep.mubr.bf16.mxu0 %v7307_v1  ;;  %vm4126_vm0 = vmpackc.low %vm685_vm14, %vm684_vm15 }
  0xc5   : > { %3573 = vperm.xlu0 %4399, %v3427_v15  }
  0xc7   : > { %v5133_v20 = vpop.permute.xlu1 %546 }
  0xc8   : > { %v5135_v21 = vpop.permute.xlu0 %543  ;;  %3588 = vperm.xlu1 %4400, %v3430_v18   ;;  %v3466_v18 = vld [vmem:[%s5006_s9 + $0x1d8] sm:$0xff] }
  0xc9   : > { %3583 = vperm.xlu0 %4399, %v3429_v19   ;;  %v3465_v19 = vld [vmem:[%s5006_s9 + $0x1d0] sm:$0xff] }
  0xcb   : > { %4121 = vmatmul.mubr.msk.bf16.gmra.mrb[20].mxu0 %vm4120_vm1, %v4786_v33  ;;  %v5140_v25 = vpop.permute.xlu1 %552 }
  0xcc   : > { %v5142_v26 = vpop.permute.xlu0 %549  ;;  %3598 = vperm.xlu1 %4400, %v3432_v22   ;;  %1080 = vmatprep.mubr.bf16.mxu0 %v7307_v1  ;;  %v3468_v22 = vld [vmem:[%s5006_s9 + $0x1e8] sm:$0xff] }
  0xcd   : > { %3593 = vperm.xlu0 %4399, %v3431_v23   ;;  %v3467_v23 = vld [vmem:[%s5006_s9 + $0x1e0] sm:$0xff] }
  0xcf   : > { %v5151_v29 = vpop.permute.xlu1 %558 }
  0xd0   : > { %v5153_v30 = vpop.permute.xlu0 %555  ;;  %3608 = vperm.xlu1 %4400, %v3434_v27  }
  0xd1   : > { %3603 = vperm.xlu0 %4399, %v3433_v28  }
  0xd3   : > { %4123 = vmatmul.mubr.msk.bf16.gmra.mrb[24].mxu0 %vm4122_vm4, %v4786_v33  ;;  %v5158_v34 = vpop.permute.xlu1 %564  ;;  %vm687_vm4 = vcmp.eq.s32.totalorder %v5115_v12, %v5010_v24  ;;  %v3462_v12 = vld [vmem:[%s5006_s9 + $0x1b8] sm:$0xff] }
  0xd4   : > { %v5160_v35 = vpop.permute.xlu0 %561  ;;  %3618 = vperm.xlu1 %4400, %v3436_v31   ;;  %1090 = vmatprep.mubr.bf16.mxu0 %v7307_v1  ;;  %vm4128_vm6 = vmpackc.low %vm687_vm4, %vm686_vm5  ;;  %v299_v31 = vld [vmem:[%s5290_s17 + $0x8] sm:$0xff] }
  0xd5   : > { %3613 = vperm.xlu0 %4399, %v3435_v32   ;;  %v4450_v32 = vld [vmem:[%s7305_s5 + $0x8] sm:$0xff]  }
  0xd7   : > { %v571_v38 = vpop.permute.xlu1 %570 }
  0xd8   : > { %v568_v39 = vpop.permute.xlu0 %567  ;;  %vm699_vm7 = vcmp.eq.s32.totalorder %v571_v38, %v5010_v24  ;;  %3628 = vperm.xlu1 %4400, %v3438_v36   ;;  %v301_v38 = vld [vmem:[%s5290_s17 + $0x18] sm:$0xff] }
  0xd9   : > { %vm698_vm8 = vcmp.eq.s32.totalorder %v568_v39, %v5010_v24  ;;  %3623 = vperm.xlu0 %4399, %v3437_v37   ;;  %v300_v37 = vld [vmem:[%s5290_s17 + $0x10] sm:$0xff] }
  0xda   : > { %vm5171_vm9 = vmpackc.low %vm699_vm7, %vm698_vm8  ;;  %v4451_v39 = vld [vmem:[%s7305_s5 + $0x10] sm:$0xff]  }
  0xdb   : > { %4125 = vmatmul.mubr.msk.bf16.gmra.mrb[28].mxu0 %vm4124_vm10, %v4786_v33  ;;  %v577_v43 = vpop.permute.xlu1 %576 }
  0xdc   : > { %v574_v44 = vpop.permute.xlu0 %573  ;;  %vm701_vm11 = vcmp.eq.s32.totalorder %v577_v43, %v5010_v24  ;;  %3638 = vperm.xlu1 %4400, %v3440_v41   ;;  %1100 = vmatprep.mubr.bf16.mxu0 %v7307_v1  ;;  %v302_v43 = vld [vmem:[%s5290_s17 + $0x20] sm:$0xff] }
  0xdd   : > { %vm700_vm12 = vcmp.eq.s32.totalorder %v574_v44, %v5010_v24  ;;  %3633 = vperm.xlu0 %4399, %v3439_v42   ;;  %v363_v42 = vpack.c.bf16 %v301_v38, %v300_v37  ;;  %v303_v44 = vld [vmem:[%s5290_s17 + $0x28] sm:$0xff]  ;;  %v326_v37 = vld [vmem:[%s5290_s17 + $0xe0] sm:$0xff] }
  0xde   : > { %vm4142_vm13 = vmpackc.low %vm701_vm11, %vm700_vm12  ;;  %vm689_vm11 = vcmp.eq.s32.totalorder %v5122_v16, %v5010_v24  ;;  %vm688_vm12 = vcmp.eq.s32.totalorder %v5124_v17, %v5010_v24  ;;  %v3464_v16 = vld [vmem:[%s5006_s9 + $0x1c8] sm:$0xff]  ;;  %v3463_v17 = vld [vmem:[%s5006_s9 + $0x1c0] sm:$0xff] }
  0xdf   : > { %4143 = vmatmul.mubr.msk.bf16.vlgmr.msra.gmra.mrb[0].mxu1 %vm4142_vm13, %v4786_v33  ;;  %v583_v47 = vpop.permute.xlu1 %582  ;;  %vm4130_vm13 = vmpackc.low %vm689_vm11, %vm688_vm12  ;;  %v327_v38 = vld [vmem:[%s5290_s17 + $0xe8] sm:$0xff] }
  0xe0   : > { %v580_v48 = vpop.permute.xlu0 %579  ;;  %1190 = vmatprep.mubr.bf16.mxu1 %v7307_v1  ;;  %3648 = vperm.xlu1 %4400, %v3442_v45   ;;  %vm703_vm1 = vcmp.eq.s32.totalorder %v583_v47, %v5010_v24  ;;  %v364_v47 = vpack.c.bf16 %v303_v44, %v302_v43  ;;  %v4464_v44 = vld [vmem:[%s7305_s5 + $0x78] sm:$0xff]  }
  0xe1   : > { %3643 = vperm.xlu0 %4399, %v3441_v46   ;;  %vm702_vm2 = vcmp.eq.s32.totalorder %v580_v48, %v5010_v24  ;;  %v4452_v48 = vld [vmem:[%s7305_s5 + $0x18] sm:$0xff]  }
  0xe2   : > { %vm4144_vm3 = vmpackc.low %vm703_vm1, %vm702_vm2  ;;  %vm691_vm1 = vcmp.eq.s32.totalorder %v5133_v20, %v5010_v24  ;;  %vm690_vm2 = vcmp.eq.s32.totalorder %v5135_v21, %v5010_v24 }
  0xe3   : > { %4127 = vmatmul.mubr.msk.bf16.gmra.mrb[32].mxu0 %vm4126_vm0, %v4786_v33  ;;  %v589_v53 = vpop.permute.xlu1 %588 }
  0xe4   : > { %3658 = vperm.xlu1 %4400, %v3444_v49   ;;  %1110 = vmatprep.mubr.bf16.mxu0 %v7307_v1  ;;  %v586_v54 = vpop.permute.xlu0 %585  ;;  %vm705_vm7 = vcmp.eq.s32.totalorder %v589_v53, %v5010_v24  ;;  %v304_v49 = vld [vmem:[%s5290_s17 + $0x30] sm:$0xff] }
  0xe5   : > { %3653 = vperm.xlu0 %4399, %v3443_v50   ;;  %vm704_vm8 = vcmp.eq.s32.totalorder %v586_v54, %v5010_v24  ;;  %v305_v50 = vld [vmem:[%s5290_s17 + $0x38] sm:$0xff]  ;;  %v4453_v54 = vld [vmem:[%s7305_s5 + $0x20] sm:$0xff]  }
  0xe6   : > { %vm4146_vm10 = vmpackc.low %vm705_vm7, %vm704_vm8  ;;  %vm693_vm7 = vcmp.eq.s32.totalorder %v5140_v25, %v5010_v24  ;;  %vm692_vm8 = vcmp.eq.s32.totalorder %v5142_v26, %v5010_v24  ;;  %v3470_v25 = vld [vmem:[%s5006_s9 + $0x1f8] sm:$0xff]  ;;  %v3469_v26 = vld [vmem:[%s5006_s9 + $0x1f0] sm:$0xff]  ;;  %v365_v53 = vpack.c.bf16 %v305_v50, %v304_v49 }
  0xe7   : > { %4145 = vmatmul.mubr.msk.bf16.gmra.mrb[4].mxu1 %vm4144_vm3, %v4786_v33  ;;  %v595_v59 = vpop.permute.xlu1 %594  ;;  %vm4132_vm3 = vmpackc.low %vm691_vm1, %vm690_vm2  ;;  %v333_v49 = vld [vmem:[%s5290_s17 + $0x118] sm:$0xff] }
  0xe8   : > { %1200 = vmatprep.mubr.bf16.mxu1 %v7307_v1  ;;  %3668 = vperm.xlu1 %4400, %v3446_v51   ;;  %v592_v60 = vpop.permute.xlu0 %591  ;;  %vm707_vm14 = vcmp.eq.s32.totalorder %v595_v59, %v5010_v24 }
  0xe9   : > { %3663 = vperm.xlu0 %4399, %v3445_v52   ;;  %vm706_vm15 = vcmp.eq.s32.totalorder %v592_v60, %v5010_v24  ;;  %v4454_v60 = vld [vmem:[%s7305_s5 + $0x28] sm:$0xff]  }
  0xea   : > { %vm4148_vm0 = vmpackc.low %vm707_vm14, %vm706_vm15  ;;  %vm695_vm14 = vcmp.eq.s32.totalorder %v5151_v29, %v5010_v24  ;;  %vm694_vm15 = vcmp.eq.s32.totalorder %v5153_v30, %v5010_v24  ;;  %v4449_v29 = vld [vmem:[%s7305_s5] sm:$0xff]  }
  0xeb   : > { %4129 = vmatmul.mubr.msk.bf16.gmra.mrb[36].mxu0 %vm4128_vm6, %v4786_v33  ;;  %v601_v2 = vpop.permute.xlu1 %600  ;;  %3119 = vmatpush1.bf16.msra.mxu1 %v4449_v29  ;;  %v298_v30 = vld [vmem:[%s5290_s17] sm:$0xff]  ;;  %v323_v29 = vld [vmem:[%s5290_s17 + $0xc8] sm:$0xff] }
  0xec   : > { %3678 = vperm.xlu1 %4400, %v3448_v55   ;;  %1120 = vmatprep.mubr.bf16.mxu0 %v7307_v1  ;;  %v598_v3 = vpop.permute.xlu0 %597  ;;  %vm709_vm4 = vcmp.eq.s32.totalorder %v601_v2, %v5010_v24  ;;  %v362_v36 = vpack.c.bf16 %v299_v31, %v298_v30  ;;  %v306_v55 = vld [vmem:[%s5290_s17 + $0x40] sm:$0xff]  ;;  %v324_v31 = vld [vmem:[%s5290_s17 + $0xd0] sm:$0xff] }
  0xed   : > { %3673 = vperm.xlu0 %4399, %v3447_v56   ;;  %vm708_vm5 = vcmp.eq.s32.totalorder %v598_v3, %v5010_v24  ;;  %3120 = vmatprep.subr.bf16.mxu1 %v7307_v1  ;;  %v307_v56 = vld [vmem:[%s5290_s17 + $0x48] sm:$0xff]  ;;  %v4455_v3 = vld [vmem:[%s7305_s5 + $0x30] sm:$0xff]  }
  0xee   : > { %vm4150_vm6 = vmpackc.low %vm709_vm4, %vm708_vm5  ;;  %vm697_vm4 = vcmp.eq.s32.totalorder %v5158_v34, %v5010_v24  ;;  %vm696_vm5 = vcmp.eq.s32.totalorder %v5160_v35, %v5010_v24  ;;  %v366_v59 = vpack.c.bf16 %v307_v56, %v306_v55 }
  0xef   : > { %4147 = vmatmul.mubr.msk.bf16.gmra.mrb[8].mxu1 %vm4146_vm10, %v4786_v33  ;;  %v607_v8 = vpop.permute.xlu1 %606  ;;  %vm4134_vm10 = vmpackc.low %vm693_vm7, %vm692_vm8 }
  0xf0   : > { %1210 = vmatprep.mubr.bf16.mxu1 %v7307_v1  ;;  %3688 = vperm.xlu1 %4400, %v3450_v57   ;;  %v604_v9 = vpop.permute.xlu0 %603  ;;  %vm711_vm11 = vcmp.eq.s32.totalorder %v607_v8, %v5010_v24 }
  0xf1   : > { %3683 = vperm.xlu0 %4399, %v3449_v58   ;;  %vm710_vm12 = vcmp.eq.s32.totalorder %v604_v9, %v5010_v24  ;;  %3121 = vmatpush1.bf16.msra.mxu1 %v4450_v32  ;;  %v4456_v9 = vld [vmem:[%s7305_s5 + $0x38] sm:$0xff]  }
  0xf2   : > { %3122 = vmatprep.subr.bf16.mxu1 %v7307_v1  ;;  %v325_v32 = vld [vmem:[%s5290_s17 + $0xd8] sm:$0xff] }
  0xf3   : > { %4131 = vmatmul.mubr.msk.bf16.gmra.mrb[40].mxu0 %vm4130_vm13, %v4786_v33  ;;  %vm4152_vm13 = vmpackc.low %vm711_vm11, %vm710_vm12  ;;  %v613_v14 = vpop.permute.xlu1 %612 }
  0xf4   : > { %3698 = vperm.xlu1 %4400, %v3452_v61   ;;  %1130 = vmatprep.mubr.bf16.mxu0 %v7307_v1  ;;  %v610_v15 = vpop.permute.xlu0 %609  ;;  %vm713_vm1 = vcmp.eq.s32.totalorder %v613_v14, %v5010_v24  ;;  %v308_v61 = vld [vmem:[%s5290_s17 + $0x50] sm:$0xff]  ;;  %v315_v14 = vld [vmem:[%s5290_s17 + $0x88] sm:$0xff] }
  0xf5   : > { %3693 = vperm.xlu0 %4399, %v3451_v62   ;;  %vm712_vm2 = vcmp.eq.s32.totalorder %v610_v15, %v5010_v24  ;;  %3123 = vmatpush1.bf16.msra.mxu1 %v4451_v39  ;;  %v309_v62 = vld [vmem:[%s5290_s17 + $0x58] sm:$0xff]  ;;  %v376_v39 = vpack.c.bf16 %v327_v38, %v326_v37  ;;  %v348_v37 = vld [vmem:[%s5290_s17 + $0x190] sm:$0xff] }
  0xf6   : > { %3124 = vmatprep.subr.bf16.mxu1 %v7307_v1  ;;  %v367_v2 = vpack.c.bf16 %v309_v62, %v308_v61  ;;  %v349_v38 = vld [vmem:[%s5290_s17 + $0x198] sm:$0xff] }
  0xf7   : > { %4149 = vmatmul.mubr.msk.bf16.gmra.mrb[12].mxu1 %vm4148_vm0, %v4786_v33  ;;  %vm4136_vm0 = vmpackc.low %vm695_vm14, %vm694_vm15  ;;  %v619_v20 = vpop.permute.xlu1 %618 }
  0xf8   : > { %1220 = vmatprep.mubr.bf16.mxu1 %v7307_v1  ;;  %3708 = vperm.xlu1 %4400, %v3454_v63   ;;  %v616_v21 = vpop.permute.xlu0 %615  ;;  %vm715_vm7 = vcmp.eq.s32.totalorder %v619_v20, %v5010_v24  ;;  %v318_v20 = vld [vmem:[%s5290_s17 + $0xa0] sm:$0xff] }
  0xf9   : > { %3703 = vperm.xlu0 %4399, %v3453_v0   ;;  %vm714_vm8 = vcmp.eq.s32.totalorder %v616_v21, %v5010_v24  ;;  %3125 = vmatpush1.bf16.msra.mxu1 %v4452_v48  ;;  %v319_v21 = vld [vmem:[%s5290_s17 + $0xa8] sm:$0xff]  ;;  %v332_v48 = vld [vmem:[%s5290_s17 + $0x110] sm:$0xff] }
  0xfa   : > { %3126 = vmatprep.subr.bf16.mxu1 %v7307_v1  ;;  %v379_v50 = vpack.c.bf16 %v333_v49, %v332_v48 }
  0xfb   : > { %4133 = vmatmul.mubr.msk.bf16.gmra.mrb[44].mxu0 %vm4132_vm3, %v4786_v33  ;;  %vm4154_vm3 = vmpackc.low %vm713_vm1, %vm712_vm2  ;;  %v625_v27 = vpop.permute.xlu1 %624 }
  0xfc   : > { %3718 = vperm.xlu1 %4400, %v3456_v4   ;;  %1140 = vmatprep.mubr.bf16.mxu0 %v7307_v1  ;;  %v622_v28 = vpop.permute.xlu0 %621  ;;  %vm717_vm11 = vcmp.eq.s32.totalorder %v625_v27, %v5010_v24  ;;  %v310_v4 = vld [vmem:[%s5290_s17 + $0x60] sm:$0xff] }
  0xfd   : > { %3713 = vperm.xlu0 %4399, %v3455_v5   ;;  %vm716_vm12 = vcmp.eq.s32.totalorder %v622_v28, %v5010_v24  ;;  %3127 = vmatpush1.bf16.msra.mxu1 %v4453_v54  ;;  %v311_v5 = vld [vmem:[%s5290_s17 + $0x68] sm:$0xff]  ;;  %v322_v28 = vld [vmem:[%s5290_s17 + $0xc0] sm:$0xff] }
  0xfe   : > { %3128 = vmatprep.subr.bf16.mxu1 %v7307_v1  ;;  %v368_v8 = vpack.c.bf16 %v311_v5, %v310_v4  ;;  %v374_v30 = vpack.c.bf16 %v323_v29, %v322_v28  ;;  %v346_v29 = vld [vmem:[%s5290_s17 + $0x180] sm:$0xff] }
  0xff   : > { %4151 = vmatmul.mubr.msk.bf16.gmra.mrb[16].mxu1 %vm4150_vm6, %v4786_v33  ;;  %vm4138_vm6 = vmpackc.low %vm697_vm4, %vm696_vm5  ;;  %v631_v34 = vpop.permute.xlu1 %630 }
 0x100   : > { %1230 = vmatprep.mubr.bf16.mxu1 %v7307_v1  ;;  %3728 = vperm.xlu1 %4400, %v3458_v6   ;;  %v628_v35 = vpop.permute.xlu0 %627 }
 0x101   : > { %3723 = vperm.xlu0 %4399, %v3457_v7   ;;  %vm718_vm14 = vcmp.eq.s32.totalorder %v628_v35, %v5010_v24  ;;  %3129 = vmatpush1.bf16.msra.mxu1 %v4454_v60  ;;  %v4461_v35 = vld [vmem:[%s7305_s5 + $0x60] sm:$0xff]  }
 0x102   : > { %3130 = vmatprep.subr.bf16.mxu1 %v7307_v1 }
 0x103   : > { %4135 = vmatmul.mubr.msk.bf16.gmra.mrb[48].mxu0 %vm4134_vm10, %v4786_v33  ;;  %vm4156_vm10 = vmpackc.low %vm715_vm7, %vm714_vm8  ;;  %v637_v40 = vpop.permute.xlu1 %636 }
 0x104   : > { %3738 = vperm.xlu1 %4400, %v3460_v10   ;;  %1150 = vmatprep.mubr.bf16.mxu0 %v7307_v1  ;;  %v634_v41 = vpop.permute.xlu0 %633  ;;  %v312_v10 = vld [vmem:[%s5290_s17 + $0x70] sm:$0xff] }
 0x105   : > { %3733 = vperm.xlu0 %4399, %v3459_v11   ;;  %vm720_vm1 = vcmp.eq.s32.totalorder %v634_v41, %v5010_v24  ;;  %3131 = vmatpush1.bf16.msra.mxu1 %v4455_v3  ;;  %v313_v11 = vld [vmem:[%s5290_s17 + $0x78] sm:$0xff]  ;;  %v328_v41 = vld [vmem:[%s5290_s17 + $0xf0] sm:$0xff]  ;;  %v339_v3 = vld [vmem:[%s5290_s17 + $0x148] sm:$0xff] }
 0x106   : > { %3132 = vmatprep.subr.bf16.mxu1 %v7307_v1 }
 0x107   : > { %4153 = vmatmul.mubr.msk.bf16.gmra.mrb[20].mxu1 %vm4152_vm13, %v4786_v33  ;;  %vm4158_vm13 = vmpackc.low %vm717_vm11, %vm716_vm12  ;;  %v643_v45 = vpop.permute.xlu1 %642 }
 0x108   : > { %1240 = vmatprep.mubr.bf16.mxu1 %v7307_v1  ;;  %3748 = vperm.xlu1 %4400, %v3462_v12   ;;  %v640_v46 = vpop.permute.xlu0 %639  ;;  %v369_v12 = vpack.c.bf16 %v313_v11, %v312_v10  ;;  %v341_v10 = vld [vmem:[%s5290_s17 + $0x158] sm:$0xff] }
 0x109   : > { %3743 = vperm.xlu0 %4399, %v3461_v13   ;;  %vm722_vm4 = vcmp.eq.s32.totalorder %v640_v46, %v5010_v24  ;;  %3133 = vmatpush1.bf16.msra.mxu1 %v4456_v9  ;;  %v4457_v13 = vld [vmem:[%s7305_s5 + $0x40] sm:$0xff]   ;;  %v331_v46 = vld [vmem:[%s5290_s17 + $0x108] sm:$0xff]  ;;  %v340_v9 = vld [vmem:[%s5290_s17 + $0x150] sm:$0xff] }
 0x10a   : > { %3134 = vmatprep.subr.bf16.mxu1 %v7307_v1  ;;  %v383_v11 = vpack.c.bf16 %v341_v10, %v340_v9 }
 0x10b   : > { %4137 = vmatmul.mubr.msk.bf16.gmra.mrb[52].mxu0 %vm4136_vm0, %v4786_v33  ;;  %vm721_vm0 = vcmp.eq.s32.totalorder %v637_v40, %v5010_v24  ;;  %v649_v51 = vpop.permute.xlu1 %648  ;;  %v4463_v40 = vld [vmem:[%s7305_s5 + $0x70] sm:$0xff]  }
 0x10c   : > { %3758 = vperm.xlu1 %4400, %v3464_v16   ;;  %1160 = vmatprep.mubr.bf16.mxu0 %v7307_v1  ;;  %vm4162_vm2 = vmpackc.low %vm721_vm0, %vm720_vm1  ;;  %v646_v52 = vpop.permute.xlu0 %645  ;;  %v316_v16 = vld [vmem:[%s5290_s17 + $0x90] sm:$0xff] }
 0x10d   : > { %3753 = vperm.xlu0 %4399, %v3463_v17   ;;  %vm724_vm7 = vcmp.eq.s32.totalorder %v646_v52, %v5010_v24  ;;  %3135 = vmatpush1.bf16.msra.mxu1 %v4457_v13  ;;  %v317_v17 = vld [vmem:[%s5290_s17 + $0x98] sm:$0xff]  ;;  %v335_v52 = vld [vmem:[%s5290_s17 + $0x128] sm:$0xff] }
 0x10e   : > { %3136 = vmatprep.subr.bf16.mxu1 %v7307_v1 }
 0x10f   : > { %4155 = vmatmul.mubr.msk.bf16.gmra.mrb[24].mxu1 %vm4154_vm3, %v4786_v33  ;;  %vm723_vm3 = vcmp.eq.s32.totalorder %v643_v45, %v5010_v24  ;;  %v655_v57 = vpop.permute.xlu1 %654  ;;  %v330_v45 = vld [vmem:[%s5290_s17 + $0x100] sm:$0xff] }
 0x110   : > { %1250 = vmatprep.mubr.bf16.mxu1 %v7307_v1  ;;  %3768 = vperm.xlu1 %4400, %v3466_v18   ;;  %vm4164_vm5 = vmpackc.low %vm723_vm3, %vm722_vm4  ;;  %v652_v58 = vpop.permute.xlu0 %651  ;;  %v371_v18 = vpack.c.bf16 %v317_v17, %v316_v16 }
 0x111   : > { %3763 = vperm.xlu0 %4399, %v3465_v19   ;;  %vm726_vm11 = vcmp.eq.s32.totalorder %v652_v58, %v5010_v24  ;;  %v4459_v19 = vld [vmem:[%s7305_s5 + $0x50] sm:$0xff]  }
 0x112   : > { %v336_v58 = vld [vmem:[%s5290_s17 + $0x130] sm:$0xff] }
 0x113   : > { %4139 = vmatmul.mubr.msk.bf16.gmra.mrb[56].mxu0 %vm4138_vm6, %v4786_v33  ;;  %vm725_vm6 = vcmp.eq.s32.totalorder %v649_v51, %v5010_v24  ;;  %v661_v63 = vpop.permute.xlu1 %660  ;;  %v334_v51 = vld [vmem:[%s5290_s17 + $0x120] sm:$0xff] }
 0x114   : > { %3778 = vperm.xlu1 %4400, %v3468_v22   ;;  %1170 = vmatprep.mubr.bf16.mxu0 %v7307_v1  ;;  %vm4166_vm8 = vmpackc.low %vm725_vm6, %vm724_vm7  ;;  %v658_v0 = vpop.permute.xlu0 %657  ;;  %v372_v22 = vpack.c.bf16 %v319_v21, %v318_v20  ;;  %v344_v21 = vld [vmem:[%s5290_s17 + $0x170] sm:$0xff] }
 0x115   : > { %3773 = vperm.xlu0 %4399, %v3467_v23   ;;  %v4460_v23 = vld [vmem:[%s7305_s5 + $0x58] sm:$0xff]  }
 0x117   : > { %4157 = vmatmul.mubr.msk.bf16.gmra.mrb[28].mxu1 %vm4156_vm10, %v4786_v33  ;;  %vm727_vm10 = vcmp.eq.s32.totalorder %v655_v57, %v5010_v24  ;;  %v667_v6 = vpop.permute.xlu1 %666 }
 0x118   : > { %1260 = vmatprep.mubr.bf16.mxu1 %v7307_v1  ;;  %3788 = vperm.xlu1 %4400, %v3470_v25   ;;  %vm4168_vm12 = vmpackc.low %vm727_vm10, %vm726_vm11  ;;  %v664_v7 = vpop.permute.xlu0 %663  ;;  %v320_v25 = vld [vmem:[%s5290_s17 + $0xb0] sm:$0xff] }
 0x119   : > { %3783 = vperm.xlu0 %4399, %v3469_v26   ;;  %vm730_vm0 = vcmp.eq.s32.totalorder %v664_v7, %v5010_v24  ;;  %v321_v26 = vld [vmem:[%s5290_s17 + $0xb8] sm:$0xff] }
 0x11a   : > { %v373_v27 = vpack.c.bf16 %v321_v26, %v320_v25 }
 0x11b   : > { %4141 = vmatmul.mubr.msk.bf16.gmra.mrb[60].mxu0 %vm5171_vm9, %v4786_v33  ;;  %vm719_vm9 = vcmp.eq.s32.totalorder %v631_v34, %v5010_v24  ;;  %v375_v34 = vpack.c.bf16 %v325_v32, %v324_v31 }
 0x11c   : > { %1453 = vmatprep.mubr.bf16.mxu0 %v7307_v1  ;;  %vm4160_vm15 = vmpackc.low %vm719_vm9, %vm718_vm14  ;;  %vm728_vm9 = vcmp.eq.s32.totalorder %v658_v0, %v5010_v24 }
 0x11f   : > { %4159 = vmatmul.mubr.msk.bf16.gmra.mrb[32].mxu1 %vm4158_vm13, %v4786_v33  ;;  %vm729_vm13 = vcmp.eq.s32.totalorder %v661_v63, %v5010_v24 }
 0x120   : > { %1270 = vmatprep.mubr.bf16.mxu1 %v7307_v1  ;;  %vm4170_vm14 = vmpackc.low %vm729_vm13, %vm728_vm9 }
 0x123   : > { %1454 = vmatmul.mubr.bf16.vlgmr.msra.gmra.mrb[0].mxu0 %v362_v36  ;;  %v4462_v36 = vld [vmem:[%s7305_s5 + $0x68] sm:$0xff]  }
 0x124   : > { %1463 = vmatprep.mubr.bf16.mxu0 %v7307_v1 }
 0x127   : > { %4161 = vmatmul.mubr.msk.bf16.gmra.mrb[36].mxu1 %vm4160_vm15, %v4786_v33  ;;  %vm731_vm15 = vcmp.eq.s32.totalorder %v667_v6, %v5010_v24  ;;  %v314_v24 = vld [vmem:[%s5290_s17 + $0x80] sm:$0xff] }
 0x128   : > { %1280 = vmatprep.mubr.bf16.mxu1 %v7307_v1  ;;  %vm4172_vm1 = vmpackc.low %vm731_vm15, %vm730_vm0  ;;  %v370_v15 = vpack.c.bf16 %v315_v14, %v314_v24 }
 0x12b   : > { %1464 = vmatmul.mubr.bf16.gmra.mrb[4].mxu0 %v363_v42  ;;  %v329_v42 = vld [vmem:[%s5290_s17 + $0xf8] sm:$0xff] }
 0x12c   : > { %1473 = vmatprep.mubr.bf16.mxu0 %v7307_v1  ;;  %v377_v43 = vpack.c.bf16 %v329_v42, %v328_v41 }
 0x12f   : > { %4163 = vmatmul.mubr.msk.bf16.gmra.mrb[40].mxu1 %vm4162_vm2, %v4786_v33 }
 0x130   : > { %1290 = vmatprep.mubr.bf16.mxu1 %v7307_v1 }
 0x133   : > { %1474 = vmatmul.mubr.bf16.gmra.mrb[8].mxu0 %v364_v47  ;;  %v378_v47 = vpack.c.bf16 %v331_v46, %v330_v45  ;;  %v351_v45 = vld [vmem:[%s5290_s17 + $0x1a8] sm:$0xff] }
 0x134   : > { %1483 = vmatprep.mubr.bf16.mxu0 %v7307_v1 }
 0x137   : > { %4165 = vmatmul.mubr.msk.bf16.gmra.mrb[44].mxu1 %vm4164_vm5, %v4786_v33 }
 0x138   : > { %1300 = vmatprep.mubr.bf16.mxu1 %v7307_v1 }
 0x13b   : > { %1484 = vmatmul.mubr.bf16.gmra.mrb[12].mxu0 %v365_v53  ;;  %v380_v53 = vpack.c.bf16 %v335_v52, %v334_v51  ;;  %v352_v51 = vld [vmem:[%s5290_s17 + $0x1b0] sm:$0xff]  ;;  %v353_v52 = vld [vmem:[%s5290_s17 + $0x1b8] sm:$0xff] }
 0x13c   : > { %1493 = vmatprep.mubr.bf16.mxu0 %v7307_v1 }
 0x13f   : > { %4167 = vmatmul.mubr.msk.bf16.gmra.mrb[48].mxu1 %vm4166_vm8, %v4786_v33 }
 0x140   : > { %1310 = vmatprep.mubr.bf16.mxu1 %v7307_v1 }
 0x143   : > { %1494 = vmatmul.mubr.bf16.gmra.mrb[16].mxu0 %v366_v59  ;;  %v337_v59 = vld [vmem:[%s5290_s17 + $0x138] sm:$0xff] }
 0x144   : > { %1503 = vmatprep.mubr.bf16.mxu0 %v7307_v1  ;;  %v381_v60 = vpack.c.bf16 %v337_v59, %v336_v58 }
 0x147   : > { %4169 = vmatmul.mubr.msk.bf16.gmra.mrb[52].mxu1 %vm4168_vm12, %v4786_v33 }
 0x148   : > { %1320 = vmatprep.mubr.bf16.mxu1 %v7307_v1 }
 0x14b   : > { %1504 = vmatmul.mubr.bf16.gmra.mrb[20].mxu0 %v367_v2  ;;  %v338_v2 = vld [vmem:[%s5290_s17 + $0x140] sm:$0xff] }
 0x14c   : > { %1513 = vmatprep.mubr.bf16.mxu0 %v7307_v1  ;;  %v382_v4 = vpack.c.bf16 %v339_v3, %v338_v2 }
 0x14f   : > { %4171 = vmatmul.mubr.msk.bf16.gmra.mrb[56].mxu1 %vm4170_vm14, %v4786_v33 }
 0x150   : > { %1330 = vmatprep.mubr.bf16.mxu1 %v7307_v1 }
 0x153   : > { %1514 = vmatmul.mubr.bf16.gmra.mrb[24].mxu0 %v368_v8 }
 0x154   : > { %1523 = vmatprep.mubr.bf16.mxu0 %v7307_v1 }
 0x157   : > { %4173 = vmatmul.mubr.msk.bf16.gmra.mrb[60].mxu1 %vm4172_vm1, %v4786_v33  ;;  %v4458_v33 = vld [vmem:[%s7305_s5 + $0x48] sm:$0xff]  }
 0x158   : > { %3137 = vmatpush1.bf16.msra.mxu1 %v4458_v33  ;;  %v343_v33 = vld [vmem:[%s5290_s17 + $0x168] sm:$0xff] }
 0x159   : > { %3138 = vmatprep.subr.bf16.mxu1 %v7307_v1 }
 0x15b   : > { %1524 = vmatmul.mubr.bf16.gmra.mrb[28].mxu0 %v369_v12 }
 0x15c   : > { %1533 = vmatprep.mubr.bf16.mxu0 %v7307_v1  ;;  %3139 = vmatpush1.bf16.msra.mxu1 %v4459_v19 }
 0x15d   : > { %3140 = vmatprep.subr.bf16.mxu1 %v7307_v1 }
 0x160   : > { %3141 = vmatpush1.bf16.msra.mxu1 %v4460_v23 }
 0x161   : > { %3142 = vmatprep.subr.bf16.mxu1 %v7307_v1 }
 0x163   : > { %1534 = vmatmul.mubr.bf16.gmra.mrb[32].mxu0 %v370_v15  ;;  %v342_v15 = vld [vmem:[%s5290_s17 + $0x160] sm:$0xff] }
 0x164   : > { %1543 = vmatprep.mubr.bf16.mxu0 %v7307_v1  ;;  %3143 = vmatpush1.bf16.msra.mxu1 %v4461_v35  ;;  %v384_v16 = vpack.c.bf16 %v343_v33, %v342_v15 }
 0x165   : > { %3144 = vmatprep.subr.bf16.mxu1 %v7307_v1 }
 0x168   : > { %3145 = vmatpush1.bf16.msra.mxu1 %v4462_v36 }
 0x169   : > { %3146 = vmatprep.subr.bf16.mxu1 %v7307_v1 }
 0x16b   : > { %1544 = vmatmul.mubr.bf16.gmra.mrb[36].mxu0 %v371_v18 }
 0x16c   : > { %1553 = vmatprep.mubr.bf16.mxu0 %v7307_v1  ;;  %3147 = vmatpush1.bf16.msra.mxu1 %v4463_v40 }
 0x16d   : > { %3148 = vmatprep.subr.bf16.mxu1 %v7307_v1 }
 0x170   : > { %3149 = vmatpush1.bf16.msra.mxu1 %v4464_v44  ;;  %v350_v44 = vld [vmem:[%s5290_s17 + $0x1a0] sm:$0xff] }
 0x171   : > { %v388_v46 = vpack.c.bf16 %v351_v45, %v350_v44 }
 0x173   : > { %1554 = vmatmul.mubr.bf16.gmra.mrb[40].mxu0 %v372_v22  ;;  %v345_v22 = vld [vmem:[%s5290_s17 + $0x178] sm:$0xff] }
 0x174   : > { %1563 = vmatprep.mubr.bf16.mxu0 %v7307_v1  ;;  %v385_v23 = vpack.c.bf16 %v345_v22, %v344_v21 }
 0x17b   : > { %1564 = vmatmul.mubr.bf16.gmra.mrb[44].mxu0 %v373_v27 }
 0x17c   : > { %1573 = vmatprep.mubr.bf16.mxu0 %v7307_v1 }
 0x183   : > { %1574 = vmatmul.mubr.bf16.gmra.mrb[48].mxu0 %v374_v30  ;;  %v347_v30 = vld [vmem:[%s5290_s17 + $0x188] sm:$0xff] }
 0x184   : > { %1583 = vmatprep.mubr.bf16.mxu0 %v7307_v1  ;;  %v386_v31 = vpack.c.bf16 %v347_v30, %v346_v29 }
 0x18b   : > { %1584 = vmatmul.mubr.bf16.gmra.mrb[52].mxu0 %v375_v34 }
 0x18c   : > { %1593 = vmatprep.mubr.bf16.mxu0 %v7307_v1 }
 0x193   : > { %1594 = vmatmul.mubr.bf16.gmra.mrb[56].mxu0 %v376_v39  ;;  %v387_v39 = vpack.c.bf16 %v349_v38, %v348_v37  ;;  %v354_v37 = vld [vmem:[%s5290_s17 + $0x1c0] sm:$0xff]  ;;  %v355_v38 = vld [vmem:[%s5290_s17 + $0x1c8] sm:$0xff] }
 0x194   : > { %1603 = vmatprep.mubr.bf16.mxu0 %v7307_v1 }
 0x19b   : > { %1604 = vmatmul.mubr.bf16.gmra.mrb[60].mxu0 %v377_v43 }
 0x19c   : > { %1613 = vmatprep.mubr.bf16.mxu0 %v7307_v1 }
 0x1a3   : > { %1614 = vmatmul.mubr.bf16.gmra.mrb[64].mxu0 %v378_v47 }
 0x1a4   : > { %1623 = vmatprep.mubr.bf16.mxu0 %v7307_v1 }
 0x1ab   : > { %1624 = vmatmul.mubr.bf16.gmra.mrb[68].mxu0 %v379_v50 }
 0x1ac   : > { %1633 = vmatprep.mubr.bf16.mxu0 %v7307_v1 }
 0x1b2   : > { %v5443_v54 = vpop.f32.mrb[0].mxu1 }
 0x1b3   : > { %v5445_v55 = vpop.f32.mrb[1].mxu1  ;;  %1634 = vmatmul.mubr.bf16.gmra.mrb[72].mxu0 %v380_v53 }
 0x1b4   : > { %v5447_v56 = vpop.f32.mrb[2].mxu1  ;;  %1643 = vmatprep.mubr.bf16.mxu0 %v7307_v1 }
 0x1b5   : > { %v5449_v57 = vpop.f32.mrb[3].mxu1 }
 0x1ba   : > { %v5454_v61 = vpop.f32.mrb[4].mxu1 }
 0x1bb   : > { %v5456_v62 = vpop.f32.mrb[5].mxu1  ;;  %1644 = vmatmul.mubr.bf16.gmra.mrb[76].mxu0 %v381_v60  ;;  %v389_v60 = vpack.c.bf16 %v353_v52, %v352_v51 }
 0x1bc   : > { %v5458_v63 = vpop.f32.mrb[6].mxu1  ;;  %1653 = vmatprep.mubr.bf16.mxu0 %v7307_v1 }
 0x1bd   : > { %v5460_v0 = vpop.f32.mrb[7].mxu1 }
 0x1c2   : > { %v5465_v5 = vpop.f32.mrb[8].mxu1 }
 0x1c3   : > { %v5467_v6 = vpop.f32.mrb[9].mxu1  ;;  %1654 = vmatmul.mubr.bf16.gmra.mrb[80].mxu0 %v382_v4 }
 0x1c4   : > { %v5469_v7 = vpop.f32.mrb[10].mxu1  ;;  %1663 = vmatprep.mubr.bf16.mxu0 %v7307_v1 }
 0x1c5   : > { %v5471_v8 = vpop.f32.mrb[11].mxu1 }
 0x1ca   : > { %v5476_v12 = vpop.f32.mrb[12].mxu1 }
 0x1cb   : > { %v5478_v13 = vpop.f32.mrb[13].mxu1  ;;  %1664 = vmatmul.mubr.bf16.gmra.mrb[84].mxu0 %v383_v11 }
 0x1cc   : > { %v5480_v24 = vpop.f32.mrb[14].mxu1  ;;  %1673 = vmatprep.mubr.bf16.mxu0 %v7307_v1 }
 0x1cd   : > { %v5482_v14 = vpop.f32.mrb[15].mxu1 }
 0x1ce   : > { %7314 = vst [vmem:[#allocation5_spill] sm:$0xff] %v5482_v14 }
 0x1d2   : > { %v5487_v17 = vpop.f32.mrb[16].mxu1 }
 0x1d3   : > { %7315 = vst [vmem:[#allocation6_spill] sm:$0xff] %v5487_v17  ;;  %v5489_v18 = vpop.f32.mrb[17].mxu1  ;;  %1674 = vmatmul.mubr.bf16.gmra.mrb[88].mxu0 %v384_v16 }
 0x1d4   : > { %7316 = vst [vmem:[#allocation7_spill] sm:$0xff] %v5489_v18  ;;  %v5491_v19 = vpop.f32.mrb[18].mxu1  ;;  %1683 = vmatprep.mubr.bf16.mxu0 %v7307_v1 }
 0x1d5   : > { %7317 = vst [vmem:[#allocation8_spill] sm:$0xff] %v5491_v19  ;;  %v5493_v20 = vpop.f32.mrb[19].mxu1 }
 0x1d6   : > { %7318 = vst [vmem:[#allocation9_spill] sm:$0xff] %v5493_v20 }
 0x1da   : > { %v5498_v25 = vpop.f32.mrb[20].mxu1 }
 0x1db   : > { %7319 = vst [vmem:[#allocation10_spill] sm:$0xff] %v5498_v25  ;;  %v5500_v26 = vpop.f32.mrb[21].mxu1  ;;  %1684 = vmatmul.mubr.bf16.gmra.mrb[92].mxu0 %v385_v23 }
 0x1dc   : > { %7320 = vst [vmem:[#allocation11_spill] sm:$0xff] %v5500_v26  ;;  %v5502_v27 = vpop.f32.mrb[22].mxu1  ;;  %1693 = vmatprep.mubr.bf16.mxu0 %v7307_v1 }
 0x1dd   : > { %7321 = vst [vmem:[#allocation12_spill] sm:$0xff] %v5502_v27  ;;  %v5504_v28 = vpop.f32.mrb[23].mxu1 }
 0x1de   : > { %7322 = vst [vmem:[#allocation13_spill] sm:$0xff] %v5504_v28 }
 0x1e2   : > { %v5509_v32 = vpop.f32.mrb[24].mxu1 }
 0x1e3   : > { %7323 = vst [vmem:[#allocation14_spill] sm:$0xff] %v5509_v32  ;;  %v5511_v34 = vpop.f32.mrb[25].mxu1  ;;  %1694 = vmatmul.mubr.bf16.gmra.mrb[96].mxu0 %v386_v31 }
 0x1e4   : > { %7324 = vst [vmem:[#allocation15_spill] sm:$0xff] %v5511_v34  ;;  %v5513_v35 = vpop.f32.mrb[26].mxu1  ;;  %1703 = vmatprep.mubr.bf16.mxu0 %v7307_v1 }
 0x1e5   : > { %7325 = vst [vmem:[#allocation16_spill] sm:$0xff] %v5513_v35  ;;  %v5515_v36 = vpop.f32.mrb[27].mxu1 }
 0x1e6   : > { %7326 = vst [vmem:[#allocation17_spill] sm:$0xff] %v5515_v36 }
 0x1ea   : > { %v5520_v40 = vpop.f32.mrb[28].mxu1 }
 0x1eb   : > { %7327 = vst [vmem:[#allocation18_spill] sm:$0xff] %v5520_v40  ;;  %v5522_v41 = vpop.f32.mrb[29].mxu1  ;;  %1704 = vmatmul.mubr.bf16.gmra.mrb[100].mxu0 %v387_v39 }
 0x1ec   : > { %7328 = vst [vmem:[#allocation19_spill] sm:$0xff] %v5522_v41  ;;  %v5524_v42 = vpop.f32.mrb[30].mxu1  ;;  %1713 = vmatprep.mubr.bf16.mxu0 %v7307_v1 }
 0x1ed   : > { %7329 = vst [vmem:[#allocation20_spill] sm:$0xff] %v5524_v42  ;;  %v5526_v43 = vpop.f32.mrb[31].mxu1 }
 0x1ee   : > { %7330 = vst [vmem:[#allocation21_spill] sm:$0xff] %v5526_v43 }
 0x1f2   : > { %v5531_v47 = vpop.f32.mrb[32].mxu1 }
 0x1f3   : > { %7331 = vst [vmem:[#allocation22_spill] sm:$0xff] %v5531_v47  ;;  %v5533_v48 = vpop.f32.mrb[33].mxu1  ;;  %1714 = vmatmul.mubr.bf16.gmra.mrb[104].mxu0 %v388_v46 }
 0x1f4   : > { %7332 = vst [vmem:[#allocation23_spill] sm:$0xff] %v5533_v48  ;;  %v5535_v49 = vpop.f32.mrb[34].mxu1  ;;  %1723 = vmatprep.mubr.bf16.mxu0 %v7307_v1 }
 0x1f5   : > { %7333 = vst [vmem:[#allocation24_spill] sm:$0xff] %v5535_v49  ;;  %v5537_v50 = vpop.f32.mrb[35].mxu1 }
 0x1f6   : > { %7334 = vst [vmem:[#allocation25_spill] sm:$0xff] %v5537_v50  ;;  %v5542_v53 = vpop.f32.mrb[0].mxu0 }
 0x1f7   : > { %v1774_v58 = vmul.f32 %v5542_v53, %v5542_v53  ;;  %v5546_v59 = vpop.f32.mrb[1].mxu0 }
 0x1f8   : > { %v1775_v2 = vmul.f32 %v5546_v59, %v5546_v59  ;;  %v5550_v3 = vpop.f32.mrb[2].mxu0 }
 0x1f9   : > { %v1902_v4 = vmul.f32 %v1774_v58, %v5542_v53  ;;  %v1776_v9 = vmul.f32 %v5550_v3, %v5550_v3  ;;  %v5555_v10 = vpop.f32.mrb[3].mxu0 }
 0x1fa   : > { %v5557_v11 = vpop.f32.mrb[36].mxu1  ;;  %v1903_v15 = vmul.f32 %v1775_v2, %v5546_v59  ;;  %v1777_v33 = vmul.f32 %v5555_v10, %v5555_v10 }
 0x1fb   : > { %7335 = vst [vmem:[#allocation26_spill] sm:$0xff] %v5557_v11  ;;  %v5562_v16 = vpop.f32.mrb[37].mxu1  ;;  %v2030_v21 = vmul.f32 0.044715, %v1902_v4  ;;  %v1904_v22 = vmul.f32 %v1776_v9, %v5550_v3  ;;  %1724 = vmatmul.mubr.bf16.gmra.mrb[108].mxu0 %v389_v60  ;;  %v390_v4 = vpack.c.bf16 %v355_v38, %v354_v37 }
 0x1fc   : > { %7336 = vst [vmem:[#allocation27_spill] sm:$0xff] %v5562_v16  ;;  %v5565_v23 = vpop.f32.mrb[38].mxu1  ;;  %v2031_v29 = vmul.f32 0.044715, %v1903_v15  ;;  %v1905_v30 = vmul.f32 %v1777_v33, %v5555_v10  ;;  %1733 = vmatprep.mubr.bf16.mxu0 %v7307_v1 }
 0x1fd   : > { %7337 = vst [vmem:[#allocation28_spill] sm:$0xff] %v5565_v23  ;;  %v5568_v31 = vpop.f32.mrb[39].mxu1  ;;  %v2158_v39 = vadd.f32 %v2030_v21, %v5542_v53  ;;  %v2032_v44 = vmul.f32 0.044715, %v1904_v22 }
 0x1fe   : > { %7338 = vst [vmem:[#allocation29_spill] sm:$0xff] %v5568_v31  ;;  %v2159_v45 = vadd.f32 %v2031_v29, %v5546_v59  ;;  %v2033_v46 = vmul.f32 0.044715, %v1905_v30  ;;  %v5575_v51 = vpop.f32.mrb[4].mxu0  ;;  %v357_v31 = vld [vmem:[%s5290_s17 + $0x1d8] sm:$0xff] }
 0x1ff   : > { %v2286_v52 = vmul.f32 0.7978846, %v2158_v39  ;;  %v2160_v58 = vadd.f32 %v2032_v44, %v5550_v3  ;;  %v1778_v60 = vmul.f32 %v5575_v51, %v5575_v51  ;;  %v5580_v2 = vpop.f32.mrb[5].mxu0 }
 0x200   : > { %v2287_v9 = vmul.f32 0.7978846, %v2159_v45  ;;  %v2161_v15 = vadd.f32 %v2033_v46, %v5555_v10  ;;  %v1779_v33 = vmul.f32 %v5580_v2, %v5580_v2  ;;  %v5585_v21 = vpop.f32.mrb[6].mxu0 }
 0x201   : > { %4465 = vtanh.f32 %v2286_v52  ;;  %v2288_v22 = vmul.f32 0.7978846, %v2160_v58  ;;  %v1906_v29 = vmul.f32 %v1778_v60, %v5575_v51  ;;  %v1780_v30 = vmul.f32 %v5585_v21, %v5585_v21  ;;  %v5590_v39 = vpop.f32.mrb[7].mxu0 }
 0x202   : > { %v5592_v44 = vpop.f32.mrb[40].mxu1  ;;  %4467 = vtanh.f32 %v2287_v9  ;;  %v2289_v37 = vmul.f32 0.7978846, %v2161_v15  ;;  %v1907_v38 = vmul.f32 %v1779_v33, %v5580_v2  ;;  %v1781_v45 = vmul.f32 %v5590_v39, %v5590_v39  ;;  %v356_v33 = vld [vmem:[%s5290_s17 + $0x1d0] sm:$0xff] }
 0x203   : > { %7339 = vst [vmem:[#allocation30_spill] sm:$0xff] %v5592_v44  ;;  %v5597_v46 = vpop.f32.mrb[41].mxu1  ;;  %4469 = vtanh.f32 %v2288_v22  ;;  %v2034_v52 = vmul.f32 0.044715, %v1906_v29  ;;  %v1908_v58 = vmul.f32 %v1780_v30, %v5585_v21  ;;  %1734 = vmatmul.mubr.bf16.gmra.mrb[112].mxu0 %v390_v4  ;;  %v7343_v15 = vmov 0  }
 0x204   : > { %7340 = vst [vmem:[#allocation31_spill] sm:$0xff] %v5597_v46  ;;  %v5600_v60 = vpop.f32.mrb[42].mxu1  ;;  %4471 = vtanh.f32 %v2289_v37  ;;  %v2035_v1 = vmul.f32 0.044715, %v1907_v38  ;;  %v1909_v9 = vmul.f32 %v1781_v45, %v5590_v39  ;;  %1743 = vmatprep.mubr.bf16.mxu0 %v7343_v15 }
 0x205   : > { %7341 = vst [vmem:[#allocation32_spill] sm:$0xff] %v5600_v60  ;;  %v5603_v44 = vpop.f32.mrb[43].mxu1  ;;  %v2162_v22 = vadd.f32 %v2034_v52, %v5575_v51  ;;  %v2036_v29 = vmul.f32 0.044715, %v1908_v58  ;;  %v391_v60 = vpack.c.bf16 %v357_v31, %v356_v33  ;;  %v5623_v58 = vld [vmem:[%s5290_s17 + $0x1e0] sm:$0xff] }
 0x206   : > { %7342 = vst [vmem:[#allocation33_spill] sm:$0xff] %v5603_v44  ;;  %v2163_v30 = vadd.f32 %v2035_v1, %v5580_v2  ;;  %v2037_v4 = vmul.f32 0.044715, %v1909_v9  ;;  %v5610_v46 = vpop.f32.mrb[8].mxu0  ;;  %v5626_v9 = vld [vmem:[%s5290_s17 + $0x1e8] sm:$0xff] }
 0x207   : > { %v2290_v37 = vmul.f32 0.7978846, %v2162_v22  ;;  %v2164_v38 = vadd.f32 %v2036_v29, %v5585_v21  ;;  %v1782_v45 = vmul.f32 %v5610_v46, %v5610_v46  ;;  %v5615_v44 = vpop.f32.mrb[9].mxu0 }
 0x208   : > { %v2291_v23 = vmul.f32 0.7978846, %v2163_v30  ;;  %v2165_v16 = vadd.f32 %v2037_v4, %v5590_v39  ;;  %v1783_v52 = vmul.f32 %v5615_v44, %v5615_v44  ;;  %v5620_v1 = vpop.f32.mrb[10].mxu0 }
 0x209   : > { %4473 = vtanh.f32 %v2290_v37  ;;  %v2292_v22 = vmul.f32 0.7978846, %v2164_v38  ;;  %v1910_v29 = vmul.f32 %v1782_v45, %v5610_v46  ;;  %v1784_v31 = vmul.f32 %v5620_v1, %v5620_v1  ;;  %v5631_v33 = vpop.f32.mrb[11].mxu0  ;;  %v5641_v37 = vld [vmem:[%s5290_s17 + $0x1f0] sm:$0xff]  ;;  %v5644_v38 = vld [vmem:[%s5290_s17 + $0x1f8] sm:$0xff]  ;;  %s275_s17 = sand.u32 1, %s4775_s22  }
 0x20a   : > { %v5633_v30 = vpop.f32.mrb[44].mxu1  ;;  %4475 = vtanh.f32 %v2291_v23  ;;  %v2293_v4 = vmul.f32 0.7978846, %v2165_v16  ;;  %v1911_v11 = vmul.f32 %v1783_v52, %v5615_v44  ;;  %v1785_v50 = vmul.f32 %v5631_v33, %v5631_v33  ;;  %s4023_s19 = sshll.u32 %s275_s17, 9  ;;  %s7259_s25 = scalar_lea.sflag [#allocation3], %s275_s17 }
 0x20b   : > { %7344 = vst [vmem:[#allocation34_spill] sm:$0xff] %v5633_v30  ;;  %v5638_v49 = vpop.f32.mrb[45].mxu1  ;;  %v4466_v45 = vpop.eup %4465  ;;  %4477 = vtanh.f32 %v2292_v22  ;;  %v2038_v48 = vmul.f32 0.044715, %v1910_v29  ;;  %v1912_v47 = vmul.f32 %v1784_v31, %v5620_v1  ;;  %1744 = vmatmul.mubr.bf16.gmra.mrb[116].mxu0 %v391_v60  ;;  %v392_v16 = vpack.c.bf16 %v5626_v9, %v5623_v58  ;;  %s7069_s20 = scalar_lea.vmem [#allocation2], %s4023_s19 }
 0x20c   : > { %7345 = vst [vmem:[#allocation35_spill] sm:$0xff] %v5638_v49  ;;  %v5647_v30 = vpop.f32.mrb[46].mxu1  ;;  %v4468_v23 = vpop.eup %4467  ;;  %v2542_v52 = vadd.f32 1.0, %v4466_v45  ;;  %4479 = vtanh.f32 %v2293_v4  ;;  %v2039_v43 = vmul.f32 0.044715, %v1911_v11  ;;  %v1913_v49 = vmul.f32 %v1785_v50, %v5631_v33  ;;  %1753 = vmatprep.mubr.bf16.mxu0 %v7343_v15  ;;  %s3933_s28 = sshll.u32 %s7069_s20, 4  ;;  %s7253_s28 = int_to_ptr.vmem [resolvable:$true] %s3933_s28 }
 0x20d   : > { %7346 = vst [vmem:[#allocation36_spill] sm:$0xff] %v5647_v30  ;;  %v5652_v42 = vpop.f32.mrb[47].mxu1  ;;  %v4470_v22 = vpop.eup %4469  ;;  %v2543_v29 = vadd.f32 1.0, %v4468_v23  ;;  %v2166_v31 = vadd.f32 %v2038_v48, %v5610_v46  ;;  %v2040_v60 = vmul.f32 0.044715, %v1912_v47  ;;  %s4721_s12 = scalar_lea.vmem %s7253_s28, 8192  ;;  %p4728_p0 = scmp.lt.s32.totalorder %s7253_s28, %s4726_s14 }
 0x20e   : > { %7347 = vst [vmem:[#allocation37_spill] sm:$0xff] %v5652_v42  ;;  %v4472_v41 = vpop.eup %4471  ;;  %v2670_v58 = vmul.f32 0.5, %v2542_v52  ;;  %v2544_v9 = vadd.f32 1.0, %v4470_v22  ;;  %v2167_v4 = vadd.f32 %v2039_v43, %v5615_v44  ;;  %v2041_v11 = vmul.f32 0.044715, %v1913_v49  ;;  %v5659_v45 = vpop.f32.mrb[12].mxu0  ;;  %p4722_p11 = scmp.ne.s32.totalorder %s7253_s28, %s4721_s12  ;;  %p4729_p1 = scmp.lt.s32.totalorder %s4727_s15, %s4721_s12 }
 0x20f   : > { %v2671_v50 = vmul.f32 0.5, %v2543_v29  ;;  %v2545_v42 = vadd.f32 1.0, %v4472_v41  ;;  %v2294_v40 = vmul.f32 0.7978846, %v2166_v31  ;;  %v2168_v36 = vadd.f32 %v2040_v60, %v5620_v1  ;;  %v5662_v23 = vpop.f32.mrb[13].mxu0 }
 0x210   : > { %v2798_v47 = vmul.f32 %v2670_v58, %v5542_v53  ;;  %v2672_v48 = vmul.f32 0.5, %v2544_v9  ;;  %v2295_v35 = vmul.f32 0.7978846, %v2167_v4  ;;  %v2169_v30 = vadd.f32 %v2041_v11, %v5631_v33  ;;  %v5666_v52 = vpop.f32.mrb[14].mxu0  ;;  %p4723_p12 = pnand %p4722_p11, %p4863_p5  ;;  %p4730_p2 = por %p4729_p1, %p4728_p0 }
 0x211   : > { %v2799_v43 = vmul.f32 %v2671_v50, %v5546_v59  ;;  %v2673_v49 = vmul.f32 0.5, %v2545_v42  ;;  %4481 = vtanh.f32 %v2294_v40  ;;  %v2296_v22 = vmul.f32 0.7978846, %v2168_v36  ;;  %v5669_v29 = vpop.f32.mrb[15].mxu0 }
 0x212   : > { %v5671_v41 = vpop.f32.mrb[48].mxu1  ;;  %v2800_v31 = vmul.f32 %v2672_v48, %v5550_v3  ;;  %4483 = vtanh.f32 %v2295_v35  ;;  %v2297_v60 = vmul.f32 0.7978846, %v2169_v30  ;;  %v1786_v53 = vmul.f32 %v5659_v45, %v5659_v45  ;;  %p4724_p13 = pneg %p4723_p12 }
 0x213   : > { %7348 = vst [vmem:[#allocation38_spill] sm:$0xff] %v5671_v41  ;;  %v5676_v58 = vpop.f32.mrb[49].mxu1  ;;  %v4474_v9 = vpop.eup %4473  ;;  %v2801_v4 = vmul.f32 %v2673_v49, %v5555_v10  ;;  %4485 = vtanh.f32 %v2296_v22  ;;  %v1787_v36 = vmul.f32 %v5662_v23, %v5662_v23  ;;  %v1788_v40 = vmul.f32 %v5666_v52, %v5666_v52  ;;  %1754 = vmatmul.mubr.bf16.gmra.mrb[120].mxu0 %v392_v16 }
 0x214   : > { %7349 = vst [vmem:[#allocation39_spill] sm:$0xff] %v5676_v58  ;;  %v5683_v42 = vpop.f32.mrb[50].mxu1  ;;  %v4476_v35 = vpop.eup %4475  ;;  %v2926_v59 = vpack.c.bf16 %v2800_v31, %v2798_v47  ;;  %v2546_v3 = vadd.f32 1.0, %v4474_v9  ;;  %4487 = vtanh.f32 %v2297_v60  ;;  %v1914_v30 = vmul.f32 %v1786_v53, %v5659_v45  ;;  %1763 = vmatprep.mubr.bf16.mxu0 %v7343_v15  ;;  %p4731_p3 = pnand %p4730_p2, %p4724_p13 }
 0x215   : > { %7350 = vst [vmem:[#allocation40_spill] sm:$0xff] %v5683_v42  ;;  %v5686_v11 = vpop.f32.mrb[51].mxu1  ;;  %v4478_v10 = vpop.eup %4477  ;;  %v2547_v50 = vadd.f32 1.0, %v4476_v35  ;;  %v1915_v48 = vmul.f32 %v1787_v36, %v5662_v23  ;;  %v1916_v49 = vmul.f32 %v1788_v40, %v5666_v52  ;;  %v1789_v16 = vmul.f32 %v5669_v29, %v5669_v29 }
 0x216   : > { %7351 = vst [vmem:[#allocation41_spill] sm:$0xff] %v5686_v11  ;;  %v4480_v22 = vpop.eup %4479  ;;  %v2674_v42 = vmul.f32 0.5, %v2546_v3  ;;  %v2548_v47 = vadd.f32 1.0, %v4478_v10  ;;  %v2042_v31 = vmul.f32 0.044715, %v1914_v30  ;;  %v5693_v60 = vpop.f32.mrb[16].mxu0  ;;  %v2927_v53 = vpack.c.bf16 %v2801_v4, %v2799_v43 }
 0x217   : > { %v2675_v9 = vmul.f32 0.5, %v2547_v50  ;;  %v2549_v11 = vadd.f32 1.0, %v4480_v22  ;;  %v2043_v58 = vmul.f32 0.044715, %v1915_v48  ;;  %v2044_v15 = vmul.f32 0.044715, %v1916_v49 }
 0x218   : > { %v5696_v35 = vmul.f32 %v2674_v42, %v5575_v51  ;;  %v2676_v36 = vmul.f32 0.5, %v2548_v47  ;;  %v2170_v40 = vadd.f32 %v2042_v31, %v5659_v45  ;;  %v1917_v41 = vmul.f32 %v1789_v16, %v5669_v29  ;;  %v5700_v34 = vpop.f32.mrb[17].mxu0  ;;  %3150 = vmatprep.mubr.bf16.mxu1 %v2927_v53 }
 0x219   : > { %v5703_v3 = vmul.f32 %v2675_v9, %v5580_v2  ;;  %v2677_v30 = vmul.f32 0.5, %v2549_v11  ;;  %v2171_v43 = vadd.f32 %v2043_v58, %v5662_v23  ;;  %v2172_v4 = vadd.f32 %v2044_v15, %v5666_v52  ;;  %v5707_v10 = vpop.f32.mrb[18].mxu0  ;;  %3151 = vmatmul.mubr.bf16.vlgmr.msra.gmra.mrb[64].mxu1 %v2926_v59 }
 0x21a   : > { %v5709_v51 = vpop.f32.mrb[52].mxu1  ;;  %v5712_v42 = vmul.f32 %v2676_v36, %v5585_v21  ;;  %v2298_v50 = vmul.f32 0.7978846, %v2170_v40  ;;  %v2045_v48 = vmul.f32 0.044715, %v1917_v41  ;;  %v1790_v49 = vmul.f32 %v5693_v60, %v5693_v60  ;;  %v5716_v2 = vpop.f32.mrb[19].mxu0 }
 0x21b   : > { %7352 = vst [vmem:[#allocation42_spill] sm:$0xff] %v5709_v51  ;;  %v5718_v11 = vpop.f32.mrb[53].mxu1  ;;  %v4482_v58 = vpop.eup %4481  ;;  %v5721_v16 = vmul.f32 %v2677_v30, %v5590_v39  ;;  %v2299_v22 = vmul.f32 0.7978846, %v2171_v43  ;;  %v2300_v59 = vmul.f32 0.7978846, %v2172_v4  ;;  %v1791_v47 = vmul.f32 %v5700_v34, %v5700_v34 }
 0x21c   : > { %7353 = vst [vmem:[#allocation43_spill] sm:$0xff] %v5718_v11  ;;  %v7354_v21 = vpack.c.bf16 %v5644_v38, %v5641_v37  ;;  %v5728_v41 = vpop.f32.mrb[54].mxu1  ;;  %v4484_v31 = vpop.eup %4483  ;;  %v2550_v53 = vadd.f32 1.0, %v4482_v58  ;;  %4489 = vtanh.f32 %v2298_v50  ;;  %v2173_v9 = vadd.f32 %v2045_v48, %v5669_v29 }
 0x21d   : > { %7355 = vst [vmem:[#allocation44_spill] sm:$0xff] %v5728_v41  ;;  %v1918_v15 = vmul.f32 %v1790_v49, %v5693_v60  ;;  %v5732_v39 = vpop.f32.mrb[55].mxu1  ;;  %v4486_v36 = vpop.eup %4485  ;;  %v2551_v40 = vadd.f32 1.0, %v4484_v31  ;;  %4491 = vtanh.f32 %v2299_v22  ;;  %v1919_v30 = vmul.f32 %v1791_v47, %v5700_v34 }
 0x21e   : > { %1764 = vmatmul.mubr.bf16.gmra.mrb[124].mxu0 %v7354_v21  ;;  %7356 = vst [vmem:[#allocation45_spill] sm:$0xff] %v5732_v39  ;;  %v1792_v37 = vmul.f32 %v5707_v10, %v5707_v10  ;;  %v4488_v38 = vpop.eup %4487  ;;  %v2678_v43 = vmul.f32 0.5, %v2550_v53  ;;  %v2552_v4 = vadd.f32 1.0, %v4486_v36  ;;  %4493 = vtanh.f32 %v2300_v59  ;;  %v5737_v50 = vpop.f32.mrb[20].mxu0 }
 0x21f   : > { %v2301_v58 = vmul.f32 0.7978846, %v2173_v9  ;;  %v2679_v48 = vmul.f32 0.5, %v2551_v40  ;;  %v2553_v21 = vadd.f32 1.0, %v4488_v38  ;;  %v2046_v49 = vmul.f32 0.044715, %v1918_v15 }
 0x220   : > { %v2047_v41 = vmul.f32 0.044715, %v1919_v30  ;;  %v5740_v39 = vmul.f32 %v2678_v43, %v5610_v46  ;;  %v2680_v22 = vmul.f32 0.5, %v2552_v4  ;;  %v1920_v47 = vmul.f32 %v1792_v37, %v5707_v10  ;;  %v5743_v31 = vpop.f32.mrb[21].mxu0 }
 0x221   : > { %4495 = vtanh.f32 %v2301_v58  ;;  %v5746_v53 = vmul.f32 %v2679_v48, %v5615_v44  ;;  %v2681_v59 = vmul.f32 0.5, %v2553_v21  ;;  %v2174_v9 = vadd.f32 %v2046_v49, %v5693_v60  ;;  %v5750_v40 = vpop.f32.mrb[22].mxu0 }
 0x222   : > { %v2175_v36 = vadd.f32 %v2047_v41, %v5700_v34  ;;  %v5752_v15 = vpop.f32.mrb[56].mxu1  ;;  %v5755_v46 = vmul.f32 %v2680_v22, %v5620_v1  ;;  %v2048_v30 = vmul.f32 0.044715, %v1920_v47  ;;  %v1793_v37 = vmul.f32 %v5716_v2, %v5716_v2  ;;  %v5761_v38 = vpop.f32.mrb[23].mxu0 }
 0x223   : > { %7357 = vst [vmem:[#allocation46_spill] sm:$0xff] %v5752_v15  ;;  %v1794_v44 = vmul.f32 %v5737_v50, %v5737_v50  ;;  %v5763_v43 = vpop.f32.mrb[57].mxu1  ;;  %v5766_v41 = vmul.f32 %v2681_v59, %v5631_v33  ;;  %v2302_v4 = vmul.f32 0.7978846, %v2174_v9  ;;  %v1795_v1 = vmul.f32 %v5743_v31, %v5743_v31 }
 0x224   : > { %7358 = vst [vmem:[#allocation47_spill] sm:$0xff] %v5763_v43  ;;  %v2303_v58 = vmul.f32 0.7978846, %v2175_v36  ;;  %v5770_v48 = vpop.f32.mrb[58].mxu1  ;;  %v2176_v21 = vadd.f32 %v2048_v30, %v5707_v10  ;;  %v1921_v49 = vmul.f32 %v1793_v37, %v5716_v2  ;;  %v2929_v47 = vpack.c.bf16 %v5721_v16, %v5703_v3 }
 0x225   : > { %7359 = vst [vmem:[#allocation48_spill] sm:$0xff] %v5770_v48  ;;  %v1922_v22 = vmul.f32 %v1794_v44, %v5737_v50  ;;  %v5777_v43 = vpop.f32.mrb[59].mxu1  ;;  %4497 = vtanh.f32 %v2302_v4  ;;  %v1923_v33 = vmul.f32 %v1795_v1, %v5743_v31  ;;  %v1796_v59 = vmul.f32 %v5750_v40, %v5750_v40 }
 0x226   : > { %7360 = vst [vmem:[#allocation49_spill] sm:$0xff] %v5777_v43  ;;  %v2928_v9 = vpack.c.bf16 %v5712_v42, %v5696_v35  ;;  %v4490_v36 = vpop.eup %4489  ;;  %4499 = vtanh.f32 %v2303_v58  ;;  %v2304_v30 = vmul.f32 0.7978846, %v2176_v21  ;;  %v2049_v37 = vmul.f32 0.044715, %v1921_v49  ;;  %3158 = vmatprep.mubr.bf16.mxu1 %v2929_v47  ;;  %v5787_v1 = vpop.f32.mrb[24].mxu0 }
 0x227   : > { %v2050_v48 = vmul.f32 0.044715, %v1922_v22  ;;  %v4492_v44 = vpop.eup %4491  ;;  %v2554_v15 = vadd.f32 1.0, %v4490_v36  ;;  %v2051_v3 = vmul.f32 0.044715, %v1923_v33  ;;  %v1924_v16 = vmul.f32 %v1796_v59, %v5750_v40  ;;  %v5791_v58 = vpop.f32.mrb[25].mxu0 }
 0x228   : > { %3159 = vmatmul.mubr.bf16.gmra.mrb[68].mxu1 %v2928_v9  ;;  %v1797_v4 = vmul.f32 %v5761_v38, %v5761_v38  ;;  %v4494_v43 = vpop.eup %4493  ;;  %v2555_v11 = vadd.f32 1.0, %v4492_v44  ;;  %4501 = vtanh.f32 %v2304_v30  ;;  %v2177_v35 = vadd.f32 %v2049_v37, %v5716_v2  ;;  %v5794_v33 = vpop.f32.mrb[26].mxu0 }
 0x229   : > { %v2178_v42 = vadd.f32 %v2050_v48, %v5737_v50  ;;  %v2682_v21 = vmul.f32 0.5, %v2554_v15  ;;  %v2556_v49 = vadd.f32 1.0, %v4494_v43  ;;  %v2179_v22 = vadd.f32 %v2051_v3, %v5743_v31  ;;  %v5799_v37 = vpop.f32.mrb[27].mxu0 }
 0x22a   : > { %v2052_v47 = vmul.f32 0.044715, %v1924_v16  ;;  %v5796_v59 = vpop.f32.mrb[60].mxu1  ;;  %v2683_v36 = vmul.f32 0.5, %v2555_v11  ;;  %v2305_v51 = vmul.f32 0.7978846, %v2177_v35  ;;  %v1925_v30 = vmul.f32 %v1797_v4, %v5761_v38 }
 0x22b   : > { %7361 = vst [vmem:[#allocation50_spill] sm:$0xff] %v5796_v59  ;;  %v4496_v9 = vpop.eup %4495  ;;  %v2306_v44 = vmul.f32 0.7978846, %v2178_v42  ;;  %v5802_v48 = vmul.f32 %v2682_v21, %v5659_v45  ;;  %v2684_v15 = vmul.f32 0.5, %v2556_v49  ;;  %v2307_v32 = vmul.f32 0.7978846, %v2179_v22 }
 0x22c   : > { %v2557_v43 = vadd.f32 1.0, %v4496_v9  ;;  %v5804_v3 = vpop.f32.mrb[61].mxu1  ;;  %v5807_v16 = vmul.f32 %v2683_v36, %v5662_v23  ;;  %4503 = vtanh.f32 %v2305_v51  ;;  %v2180_v11 = vadd.f32 %v2052_v47, %v5750_v40 }
 0x22d   : > { %7362 = vst [vmem:[#allocation51_spill] sm:$0xff] %v5804_v3  ;;  %v2053_v35 = vmul.f32 0.044715, %v1925_v30  ;;  %v5810_v42 = vpop.f32.mrb[62].mxu1  ;;  %v5813_v4 = vmul.f32 %v2684_v15, %v5666_v52  ;;  %4505 = vtanh.f32 %v2306_v44  ;;  %v1798_v45 = vmul.f32 %v5787_v1, %v5787_v1 }
 0x22e   : > { %7363 = vst [vmem:[#allocation52_spill] sm:$0xff] %v5810_v42  ;;  %v2685_v59 = vmul.f32 0.5, %v2557_v43  ;;  %v5817_v21 = vpop.f32.mrb[63].mxu1  ;;  %4507 = vtanh.f32 %v2307_v32  ;;  %v2308_v49 = vmul.f32 0.7978846, %v2180_v11  ;;  %v1799_v51 = vmul.f32 %v5791_v58, %v5791_v58  ;;  %v5822_v22 = vpop.f32.mrb[28].mxu0 }
 0x22f   : > { %7364 = vst [vmem:[#allocation53_spill] sm:$0xff] %v5817_v21  ;;  %v2181_v23 = vadd.f32 %v2053_v35, %v5761_v38  ;;  %v4498_v47 = vpop.eup %4497  ;;  %v1926_v9 = vmul.f32 %v1798_v45, %v5787_v1  ;;  %v2931_v36 = vpack.c.bf16 %v5766_v41, %v5746_v53  ;;  %v1800_v32 = vmul.f32 %v5794_v33, %v5794_v33  ;;  %v5832_v44 = vpop.f32.mrb[29].mxu0 }
 0x230   : > { %v5825_v52 = vmul.f32 %v2685_v59, %v5669_v29  ;;  %v4500_v30 = vpop.eup %4499  ;;  %v2558_v15 = vadd.f32 1.0, %v4498_v47  ;;  %4509 = vtanh.f32 %v2308_v49  ;;  %v1927_v11 = vmul.f32 %v1799_v51, %v5791_v58  ;;  %v5835_v35 = vpop.f32.mrb[30].mxu0 }
 0x231   : > { %v2309_v43 = vmul.f32 0.7978846, %v2181_v23  ;;  %v2559_v29 = vadd.f32 1.0, %v4500_v30  ;;  %v2054_v59 = vmul.f32 0.044715, %v1926_v9  ;;  %3166 = vmatprep.mubr.bf16.mxu1 %v2931_v36  ;;  %v1928_v45 = vmul.f32 %v1800_v32, %v5794_v33  ;;  %v5840_v41 = vpop.f32.mrb[31].mxu0 }
 0x232   : > { %v2930_v53 = vpack.c.bf16 %v5755_v46, %v5740_v39  ;;  %v4502_v21 = vpop.eup %4501  ;;  %v2686_v42 = vmul.f32 0.5, %v2558_v15  ;;  %v2055_v47 = vmul.f32 0.044715, %v1927_v11  ;;  %v1801_v49 = vmul.f32 %v5799_v37, %v5799_v37 }
 0x233   : > { %4511 = vtanh.f32 %v2309_v43  ;;  %v2687_v23 = vmul.f32 0.5, %v2559_v29  ;;  %v2560_v51 = vadd.f32 1.0, %v4502_v21  ;;  %v2182_v30 = vadd.f32 %v2054_v59, %v5787_v1 }
 0x234   : > { %v2056_v9 = vmul.f32 0.044715, %v1928_v45  ;;  %3167 = vmatmul.mubr.bf16.gmra.mrb[72].mxu1 %v2930_v53  ;;  %v5846_v36 = vmul.f32 %v2686_v42, %v5693_v60  ;;  %v2183_v39 = vadd.f32 %v2055_v47, %v5791_v58  ;;  %v1929_v46 = vmul.f32 %v1801_v49, %v5799_v37 }
 0x235   : > { %v1802_v32 = vmul.f32 %v5822_v22, %v5822_v22  ;;  %v5853_v15 = vmul.f32 %v2687_v23, %v5700_v34  ;;  %v2688_v43 = vmul.f32 0.5, %v2560_v51  ;;  %v2310_v11 = vmul.f32 0.7978846, %v2182_v30 }
 0x236   : > { %v2184_v21 = vadd.f32 %v2056_v9, %v5794_v33  ;;  %v4504_v29 = vpop.eup %4503  ;;  %v2311_v59 = vmul.f32 0.7978846, %v2183_v39  ;;  %v2057_v45 = vmul.f32 0.044715, %v1929_v46  ;;  %v1803_v42 = vmul.f32 %v5832_v44, %v5832_v44  ;;  %v5859_v53 = vpop.f32.mrb[32].mxu0 }
 0x237   : > { %v1930_v60 = vmul.f32 %v1802_v32, %v5822_v22  ;;  %v4506_v47 = vpop.eup %4505  ;;  %v5862_v49 = vmul.f32 %v2688_v43, %v5707_v10  ;;  %v2561_v34 = vadd.f32 1.0, %v4504_v29  ;;  %4513 = vtanh.f32 %v2310_v11  ;;  %v5864_v51 = vpop.f32.mrb[33].mxu0 }
 0x238   : > { %v2312_v23 = vmul.f32 0.7978846, %v2184_v21  ;;  %v4508_v30 = vpop.eup %4507  ;;  %v2562_v9 = vadd.f32 1.0, %v4506_v47  ;;  %4515 = vtanh.f32 %v2311_v59  ;;  %v2185_v39 = vadd.f32 %v2057_v45, %v5799_v37  ;;  %v5867_v32 = vpop.f32.mrb[34].mxu0 }
 0x239   : > { %v2058_v46 = vmul.f32 0.044715, %v1930_v60  ;;  %v2689_v3 = vmul.f32 0.5, %v2561_v34  ;;  %v2563_v28 = vadd.f32 1.0, %v4508_v30  ;;  %v1931_v27 = vmul.f32 %v1803_v42, %v5832_v44  ;;  %v5870_v10 = vpop.f32.mrb[35].mxu0 }
 0x23a   : > { %4517 = vtanh.f32 %v2312_v23  ;;  %v4510_v43 = vpop.eup %4509  ;;  %v2690_v11 = vmul.f32 0.5, %v2562_v9  ;;  %v2313_v21 = vmul.f32 0.7978846, %v2185_v39  ;;  %v2933_v59 = vpack.c.bf16 %v5825_v52, %v5807_v16 }
 0x23b   : > { %v2186_v29 = vadd.f32 %v2058_v46, %v5822_v22  ;;  %v2817_v45 = vmul.f32 %v2689_v3, %v5716_v2  ;;  %v2691_v60 = vmul.f32 0.5, %v2563_v28  ;;  %v2564_v47 = vadd.f32 1.0, %v4510_v43 }
 0x23c   : > { %v2059_v26 = vmul.f32 0.044715, %v1931_v27  ;;  %v5877_v23 = vmul.f32 %v2690_v11, %v5737_v50  ;;  %4519 = vtanh.f32 %v2313_v21  ;;  %3174 = vmatprep.mubr.bf16.mxu1 %v2933_v59  ;;  %v1804_v30 = vmul.f32 %v5835_v35, %v5835_v35 }
 0x23d   : > { %v4512_v34 = vpop.eup %4511  ;;  %v2314_v42 = vmul.f32 0.7978846, %v2186_v29  ;;  %v5882_v9 = vmul.f32 %v2691_v60, %v5743_v31  ;;  %v2692_v39 = vmul.f32 0.5, %v2564_v47  ;;  %v2932_v28 = vpack.c.bf16 %v5813_v4, %v5802_v48 }
 0x23e   : > { %v2565_v16 = vadd.f32 1.0, %v4512_v34  ;;  %v2187_v2 = vadd.f32 %v2059_v26, %v5832_v44  ;;  %v1932_v27 = vmul.f32 %v1804_v30, %v5835_v35  ;;  %v1805_v50 = vmul.f32 %v5840_v41, %v5840_v41  ;;  %v5890_v3 = vpop.f32.mrb[36].mxu0 }
 0x23f   : > { %4521 = vtanh.f32 %v2314_v42  ;;  %v5893_v52 = vmul.f32 %v2692_v39, %v5750_v40  ;;  %v1806_v43 = vmul.f32 %v5859_v53, %v5859_v53  ;;  %v5897_v26 = vpop.f32.mrb[37].mxu0  ;;  %3175 = vmatmul.mubr.bf16.gmra.mrb[76].mxu1 %v2932_v28  ;;  %v1807_v48 = vmul.f32 %v5864_v51, %v5864_v51 }
 0x240   : > { %v2693_v31 = vmul.f32 0.5, %v2565_v16  ;;  %v2315_v46 = vmul.f32 0.7978846, %v2187_v2  ;;  %v2060_v11 = vmul.f32 0.044715, %v1932_v27  ;;  %v1933_v21 = vmul.f32 %v1805_v50, %v5840_v41  ;;  %v5903_v29 = vpop.f32.mrb[38].mxu0 }
 0x241   : > { %v2935_v4 = vpack.c.bf16 %v2817_v45, %v5853_v15  ;;  %v4514_v40 = vpop.eup %4513  ;;  %v1934_v60 = vmul.f32 %v1806_v43, %v5859_v53  ;;  %v1808_v47 = vmul.f32 %v5867_v32, %v5867_v32  ;;  %v5909_v34 = vpop.f32.mrb[39].mxu0  ;;  %v1935_v15 = vmul.f32 %v1807_v48, %v5864_v51 }
 0x242   : > { %v2821_v59 = vmul.f32 %v2693_v31, %v5761_v38  ;;  %4523 = vtanh.f32 %v2315_v46  ;;  %v4516_v42 = vpop.eup %4515  ;;  %v2566_v30 = vadd.f32 1.0, %v4514_v40  ;;  %v2188_v39 = vadd.f32 %v2060_v11, %v5835_v35 }
 0x243   : > { %v2061_v16 = vmul.f32 0.044715, %v1933_v21  ;;  %3182 = vmatprep.mubr.bf16.mxu1 %v2935_v4  ;;  %v2567_v2 = vadd.f32 1.0, %v4516_v42  ;;  %v2062_v27 = vmul.f32 0.044715, %v1934_v60  ;;  %v1936_v38 = vmul.f32 %v1808_v47, %v5867_v32 }
 0x244   : > { %v4518_v45 = vpop.eup %4517  ;;  %v2934_v28 = vpack.c.bf16 %v5862_v49, %v5846_v36  ;;  %v2694_v50 = vmul.f32 0.5, %v2566_v30  ;;  %v2316_v46 = vmul.f32 0.7978846, %v2188_v39  ;;  %v2063_v21 = vmul.f32 0.044715, %v1935_v15 }
 0x245   : > { %v2568_v31 = vadd.f32 1.0, %v4518_v45  ;;  %v2189_v43 = vadd.f32 %v2061_v16, %v5840_v41  ;;  %v2695_v40 = vmul.f32 0.5, %v2567_v2  ;;  %v2190_v11 = vadd.f32 %v2062_v27, %v5859_v53 }
 0x246   : > { %v2064_v25 = vmul.f32 0.044715, %v1936_v38  ;;  %v4520_v48 = vpop.eup %4519  ;;  %v5919_v4 = vmul.f32 %v2694_v50, %v5787_v1  ;;  %4525 = vtanh.f32 %v2316_v46  ;;  %v5921_v42 = vpop.f32.mrb[40].mxu0  ;;  %v2191_v39 = vadd.f32 %v2063_v21, %v5864_v51 }
 0x247   : > { %v2696_v60 = vmul.f32 0.5, %v2568_v31  ;;  %v2317_v47 = vmul.f32 0.7978846, %v2189_v43  ;;  %v5924_v36 = vmul.f32 %v2695_v40, %v5791_v58  ;;  %v2569_v49 = vadd.f32 1.0, %v4520_v48  ;;  %v5927_v16 = vpop.f32.mrb[41].mxu0  ;;  %3183 = vmatmul.mubr.bf16.gmra.mrb[80].mxu1 %v2934_v28 }
 0x248   : > { %v2318_v30 = vmul.f32 0.7978846, %v2190_v11  ;;  %v2192_v1 = vadd.f32 %v2064_v25, %v5867_v32  ;;  %v1809_v2 = vmul.f32 %v5870_v10, %v5870_v10  ;;  %v5935_v27 = vpop.f32.mrb[42].mxu0  ;;  %v2319_v50 = vmul.f32 0.7978846, %v2191_v39 }
 0x249   : > { %v4522_v15 = vpop.eup %4521  ;;  %v5930_v45 = vmul.f32 %v2696_v60, %v5794_v33  ;;  %4527 = vtanh.f32 %v2317_v47  ;;  %v2697_v58 = vmul.f32 0.5, %v2569_v49  ;;  %v5937_v31 = vpop.f32.mrb[43].mxu0  ;;  %v1810_v33 = vmul.f32 %v5890_v3, %v5890_v3 }
 0x24a   : > { %v2570_v38 = vadd.f32 1.0, %v4522_v15  ;;  %4529 = vtanh.f32 %v2318_v30  ;;  %v2320_v46 = vmul.f32 0.7978846, %v2192_v1  ;;  %v1937_v43 = vmul.f32 %v1809_v2, %v5870_v10 }
 0x24b   : > { %v1811_v25 = vmul.f32 %v5897_v26, %v5897_v26  ;;  %v5945_v40 = vmul.f32 %v2697_v58, %v5799_v37  ;;  %4531 = vtanh.f32 %v2319_v50  ;;  %v2937_v21 = vpack.c.bf16 %v2821_v59, %v5882_v9 }
 0x24c   : > { %v4524_v28 = vpop.eup %4523  ;;  %v2698_v11 = vmul.f32 0.5, %v2570_v38  ;;  %4533 = vtanh.f32 %v2320_v46  ;;  %v2065_v60 = vmul.f32 0.044715, %v1937_v43  ;;  %v1938_v47 = vmul.f32 %v1810_v33, %v5890_v3 }
 0x24d   : > { %v2571_v48 = vadd.f32 1.0, %v4524_v28  ;;  %v1939_v30 = vmul.f32 %v1811_v25, %v5897_v26  ;;  %3190 = vmatprep.mubr.bf16.mxu1 %v2937_v21  ;;  %v1812_v39 = vmul.f32 %v5903_v29, %v5903_v29  ;;  %v2936_v37 = vpack.c.bf16 %v5893_v52, %v5877_v23 }
 0x24e   : > { %v5950_v49 = vmul.f32 %v2698_v11, %v5822_v22  ;;  %v2193_v9 = vadd.f32 %v2065_v60, %v5870_v10  ;;  %v2066_v59 = vmul.f32 0.044715, %v1938_v47  ;;  %v1813_v1 = vmul.f32 %v5909_v34, %v5909_v34  ;;  %v5960_v2 = vpop.f32.mrb[44].mxu0 }
 0x24f   : > { %v2699_v15 = vmul.f32 0.5, %v2571_v48  ;;  %v2067_v22 = vmul.f32 0.044715, %v1939_v30  ;;  %v1940_v58 = vmul.f32 %v1812_v39, %v5903_v29  ;;  %v1814_v38 = vmul.f32 %v5921_v42, %v5921_v42  ;;  %v5967_v46 = vpop.f32.mrb[45].mxu0  ;;  %3191 = vmatmul.mubr.bf16.gmra.mrb[84].mxu1 %v2936_v37 }
 0x250   : > { %v1815_v50 = vmul.f32 %v5927_v16, %v5927_v16  ;;  %v4526_v23 = vpop.eup %4525  ;;  %v2321_v43 = vmul.f32 0.7978846, %v2193_v9  ;;  %v2194_v33 = vadd.f32 %v2066_v59, %v5890_v3  ;;  %v1941_v25 = vmul.f32 %v1813_v1, %v5909_v34  ;;  %v5974_v28 = vpop.f32.mrb[46].mxu0 }
 0x251   : > { %v5970_v52 = vmul.f32 %v2699_v15, %v5832_v44  ;;  %v2572_v11 = vadd.f32 1.0, %v4526_v23  ;;  %v2195_v21 = vadd.f32 %v2067_v22, %v5897_v26  ;;  %v2068_v48 = vmul.f32 0.044715, %v1940_v58  ;;  %v5978_v47 = vpop.f32.mrb[47].mxu0 }
 0x252   : > { %v1942_v60 = vmul.f32 %v1814_v38, %v5921_v42  ;;  %4535 = vtanh.f32 %v2321_v43  ;;  %v2322_v44 = vmul.f32 0.7978846, %v2194_v33  ;;  %v2069_v39 = vmul.f32 0.044715, %v1941_v25 }
 0x253   : > { %v4528_v30 = vpop.eup %4527  ;;  %v1943_v15 = vmul.f32 %v1815_v50, %v5927_v16  ;;  %v2700_v37 = vmul.f32 0.5, %v2572_v11  ;;  %v2323_v1 = vmul.f32 0.7978846, %v2195_v21  ;;  %v2196_v20 = vadd.f32 %v2068_v48, %v5903_v29 }
 0x254   : > { %v4530_v9 = vpop.eup %4529  ;;  %v2573_v59 = vadd.f32 1.0, %v4528_v30  ;;  %4537 = vtanh.f32 %v2322_v44  ;;  %v2197_v22 = vadd.f32 %v2069_v39, %v5909_v34  ;;  %v2070_v58 = vmul.f32 0.044715, %v1942_v60 }
 0x255   : > { %v2574_v23 = vadd.f32 1.0, %v4530_v9  ;;  %v4532_v38 = vpop.eup %4531  ;;  %v5984_v19 = vmul.f32 %v2700_v37, %v5835_v35  ;;  %4539 = vtanh.f32 %v2323_v1  ;;  %v2324_v33 = vmul.f32 0.7978846, %v2196_v20 }
 0x256   : > { %v2701_v43 = vmul.f32 0.5, %v2573_v59  ;;  %v4534_v25 = vpop.eup %4533  ;;  %v2575_v18 = vadd.f32 1.0, %v4532_v38  ;;  %v2325_v11 = vmul.f32 0.7978846, %v2197_v22  ;;  %v2198_v21 = vadd.f32 %v2070_v58, %v5921_v42  ;;  %v5987_v30 = vpop.f32.mrb[48].mxu0 }
 0x257   : > { %v2702_v50 = vmul.f32 0.5, %v2574_v23  ;;  %v2576_v44 = vadd.f32 1.0, %v4534_v25  ;;  %4541 = vtanh.f32 %v2324_v33  ;;  %v2071_v60 = vmul.f32 0.044715, %v1943_v15  ;;  %v5990_v39 = vpop.f32.mrb[49].mxu0 }
 0x258   : > { %v2829_v48 = vmul.f32 %v2701_v43, %v5840_v41  ;;  %v2703_v9 = vmul.f32 0.5, %v2575_v18  ;;  %4543 = vtanh.f32 %v2325_v11  ;;  %v2326_v20 = vmul.f32 0.7978846, %v2198_v21  ;;  %v5995_v37 = vpop.f32.mrb[50].mxu0 }
 0x259   : > { %v5993_v35 = vmul.f32 %v2702_v50, %v5859_v53  ;;  %v2704_v59 = vmul.f32 0.5, %v2576_v44  ;;  %v2199_v1 = vadd.f32 %v2071_v60, %v5927_v16  ;;  %v2939_v23 = vpack.c.bf16 %v5945_v40, %v5924_v36  ;;  %v6002_v15 = vpop.f32.mrb[51].mxu0 }
 0x25a   : > { %v1816_v41 = vmul.f32 %v5935_v27, %v5935_v27  ;;  %v6005_v22 = vmul.f32 %v2703_v9, %v5864_v51  ;;  %4545 = vtanh.f32 %v2326_v20  ;;  %v2938_v18 = vpack.c.bf16 %v5930_v45, %v5919_v4 }
 0x25b   : > { %v1817_v53 = vmul.f32 %v5937_v31, %v5937_v31  ;;  %v6012_v58 = vmul.f32 %v2704_v59, %v5867_v32  ;;  %v2327_v38 = vmul.f32 0.7978846, %v2199_v1  ;;  %3198 = vmatprep.mubr.bf16.mxu1 %v2939_v23  ;;  %v1818_v40 = vmul.f32 %v5960_v2, %v5960_v2 }
 0x25c   : > { %v1944_v36 = vmul.f32 %v1816_v41, %v5935_v27  ;;  %v4536_v43 = vpop.eup %4535  ;;  %3199 = vmatmul.mubr.bf16.gmra.mrb[88].mxu1 %v2938_v18  ;;  %v1819_v4 = vmul.f32 %v5967_v46, %v5967_v46  ;;  %v2941_v45 = vpack.c.bf16 %v2829_v48, %v5970_v52  ;;  %v1820_v32 = vmul.f32 %v5974_v28, %v5974_v28 }
 0x25d   : > { %v1945_v51 = vmul.f32 %v1817_v53, %v5937_v31  ;;  %v2577_v33 = vadd.f32 1.0, %v4536_v43  ;;  %4547 = vtanh.f32 %v2327_v38  ;;  %v1946_v50 = vmul.f32 %v1818_v40, %v5960_v2 }
 0x25e   : > { %v2072_v25 = vmul.f32 0.044715, %v1944_v36  ;;  %v4538_v11 = vpop.eup %4537  ;;  %v1947_v44 = vmul.f32 %v1819_v4, %v5967_v46  ;;  %3206 = vmatprep.mubr.bf16.mxu1 %v2941_v45  ;;  %v1948_v60 = vmul.f32 %v1820_v32, %v5974_v28  ;;  %v2940_v9 = vpack.c.bf16 %v5984_v19, %v5950_v49  ;;  %v6028_v20 = vpop.f32.mrb[52].mxu0 }
 0x25f   : > { %v2073_v21 = vmul.f32 0.044715, %v1945_v51  ;;  %v4540_v52 = vpop.eup %4539  ;;  %v2705_v48 = vmul.f32 0.5, %v2577_v33  ;;  %v2578_v59 = vadd.f32 1.0, %v4538_v11  ;;  %v2074_v23 = vmul.f32 0.044715, %v1946_v50 }
 0x260   : > { %v2200_v1 = vadd.f32 %v2072_v25, %v5935_v27  ;;  %v6031_v41 = vpop.f32.mrb[53].mxu0  ;;  %v2579_v18 = vadd.f32 1.0, %v4540_v52  ;;  %v2075_v38 = vmul.f32 0.044715, %v1947_v44  ;;  %v2076_v36 = vmul.f32 0.044715, %v1948_v60 }
 0x261   : > { %v2201_v53 = vadd.f32 %v2073_v21, %v5937_v31  ;;  %v6034_v40 = vpop.f32.mrb[54].mxu0  ;;  %v4542_v43 = vpop.eup %4541  ;;  %v2833_v19 = vmul.f32 %v2705_v48, %v5870_v10  ;;  %v2706_v49 = vmul.f32 0.5, %v2578_v59  ;;  %v2202_v4 = vadd.f32 %v2074_v23, %v5960_v2 }
 0x262   : > { %v2328_v51 = vmul.f32 0.7978846, %v2200_v1  ;;  %v6038_v45 = vpop.f32.mrb[55].mxu0  ;;  %v4544_v32 = vpop.eup %4543  ;;  %v2707_v33 = vmul.f32 0.5, %v2579_v18  ;;  %v2580_v25 = vadd.f32 1.0, %v4542_v43  ;;  %v2203_v11 = vadd.f32 %v2075_v38, %v5967_v46 }
 0x263   : > { %v2329_v50 = vmul.f32 0.7978846, %v2201_v53  ;;  %v6042_v21 = vmul.f32 %v2706_v49, %v5890_v3  ;;  %v2581_v44 = vadd.f32 1.0, %v4544_v32  ;;  %v2330_v60 = vmul.f32 0.7978846, %v2202_v4 }
 0x264   : > { %4549 = vtanh.f32 %v2328_v51  ;;  %v4546_v52 = vpop.eup %4545  ;;  %v6045_v10 = vmul.f32 %v2707_v33, %v5897_v26  ;;  %v2708_v48 = vmul.f32 0.5, %v2580_v25  ;;  %v2331_v59 = vmul.f32 0.7978846, %v2203_v11  ;;  %3207 = vmatmul.mubr.bf16.gmra.mrb[92].mxu1 %v2940_v9 }
 0x265   : > { %4551 = vtanh.f32 %v2329_v50  ;;  %v2709_v1 = vmul.f32 0.5, %v2581_v44  ;;  %v2582_v23 = vadd.f32 1.0, %v4546_v52  ;;  %v2204_v18 = vadd.f32 %v2076_v36, %v5974_v28 }
 0x266   : > { %4553 = vtanh.f32 %v2330_v60  ;;  %v6049_v53 = vmul.f32 %v2708_v48, %v5903_v29  ;;  %v1821_v3 = vmul.f32 %v5978_v47, %v5978_v47  ;;  %v1822_v26 = vmul.f32 %v5987_v30, %v5987_v30  ;;  %v6055_v38 = vpop.f32.mrb[56].mxu0 }
 0x267   : > { %4555 = vtanh.f32 %v2331_v59  ;;  %v4548_v43 = vpop.eup %4547  ;;  %v6058_v9 = vmul.f32 %v2709_v1, %v5909_v34  ;;  %v2710_v49 = vmul.f32 0.5, %v2582_v23  ;;  %v2332_v51 = vmul.f32 0.7978846, %v2204_v18  ;;  %v6062_v29 = vpop.f32.mrb[57].mxu0 }
 0x268   : > { %v1823_v36 = vmul.f32 %v5990_v39, %v5990_v39  ;;  %v2583_v4 = vadd.f32 1.0, %v4548_v43  ;;  %v1949_v32 = vmul.f32 %v1821_v3, %v5978_v47  ;;  %v1950_v33 = vmul.f32 %v1822_v26, %v5987_v30  ;;  %v6067_v50 = vpop.f32.mrb[58].mxu0 }
 0x269   : > { %v2943_v25 = vpack.c.bf16 %v2833_v19, %v6005_v22  ;;  %v6070_v11 = vmul.f32 %v2710_v49, %v5921_v42  ;;  %4557 = vtanh.f32 %v2332_v51  ;;  %v1824_v44 = vmul.f32 %v5995_v37, %v5995_v37  ;;  %v6075_v60 = vpop.f32.mrb[59].mxu0 }
 0x26a   : > { %v1951_v34 = vmul.f32 %v1823_v36, %v5990_v39  ;;  %v2711_v52 = vmul.f32 0.5, %v2583_v4  ;;  %v2077_v48 = vmul.f32 0.044715, %v1949_v32  ;;  %v2078_v59 = vmul.f32 0.044715, %v1950_v33 }
 0x26b   : > { %3214 = vmatprep.mubr.bf16.mxu1 %v2943_v25  ;;  %v2942_v22 = vpack.c.bf16 %v6012_v58, %v5993_v35  ;;  %v1952_v1 = vmul.f32 %v1824_v44, %v5995_v37  ;;  %v1825_v42 = vmul.f32 %v6002_v15, %v6002_v15  ;;  %v1826_v23 = vmul.f32 %v6028_v20, %v6028_v20 }
 0x26c   : > { %v2079_v19 = vmul.f32 0.044715, %v1951_v34  ;;  %v6085_v18 = vmul.f32 %v2711_v52, %v5927_v16  ;;  %v2205_v3 = vadd.f32 %v2077_v48, %v5978_v47  ;;  %v2206_v26 = vadd.f32 %v2078_v59, %v5987_v30 }
 0x26d   : > { %3215 = vmatmul.mubr.bf16.gmra.mrb[96].mxu1 %v2942_v22  ;;  %v1827_v35 = vmul.f32 %v6031_v41, %v6031_v41  ;;  %v2080_v49 = vmul.f32 0.044715, %v1952_v1  ;;  %v1953_v51 = vmul.f32 %v1825_v42, %v6002_v15  ;;  %v1954_v36 = vmul.f32 %v1826_v23, %v6028_v20 }
 0x26e   : > { %v4550_v58 = vpop.eup %4549  ;;  %v2207_v43 = vadd.f32 %v2079_v19, %v5990_v39  ;;  %v2333_v16 = vmul.f32 0.7978846, %v2205_v3  ;;  %v2334_v33 = vmul.f32 0.7978846, %v2206_v26  ;;  %v6095_v34 = vpop.f32.mrb[60].mxu0 }
 0x26f   : > { %v4552_v4 = vpop.eup %4551  ;;  %v2584_v32 = vadd.f32 1.0, %v4550_v58  ;;  %v1955_v25 = vmul.f32 %v1827_v35, %v6031_v41  ;;  %v2208_v59 = vadd.f32 %v2080_v49, %v5995_v37  ;;  %v2081_v22 = vmul.f32 0.044715, %v1953_v51  ;;  %v6098_v19 = vpop.f32.mrb[61].mxu0 }
 0x270   : > { %v4554_v44 = vpop.eup %4553  ;;  %v2585_v52 = vadd.f32 1.0, %v4552_v4  ;;  %v2335_v48 = vmul.f32 0.7978846, %v2207_v43  ;;  %4559 = vtanh.f32 %v2333_v16  ;;  %v2082_v23 = vmul.f32 0.044715, %v1954_v36  ;;  %v6100_v58 = vpop.f32.mrb[62].mxu0 }
 0x271   : > { %v4556_v1 = vpop.eup %4555  ;;  %v2712_v42 = vmul.f32 0.5, %v2584_v32  ;;  %v2586_v17 = vadd.f32 1.0, %v4554_v44  ;;  %4561 = vtanh.f32 %v2334_v33  ;;  %v2336_v35 = vmul.f32 0.7978846, %v2208_v59  ;;  %v6102_v14 = vpop.f32.mrb[63].mxu0 }
 0x272   : > { %v2713_v3 = vmul.f32 0.5, %v2585_v52  ;;  %v2587_v26 = vadd.f32 1.0, %v4556_v1  ;;  %4563 = vtanh.f32 %v2335_v48  ;;  %v2209_v51 = vadd.f32 %v2081_v22, %v6002_v15 }
 0x273   : > { %v6105_v43 = vmul.f32 %v2712_v42, %v5935_v27  ;;  %v2714_v49 = vmul.f32 0.5, %v2586_v17  ;;  %v4558_v4 = vpop.eup %4557  ;;  %4565 = vtanh.f32 %v2336_v35  ;;  %v2210_v36 = vadd.f32 %v2082_v23, %v6028_v20 }
 0x274   : > { %v2841_v32 = vmul.f32 %v2713_v3, %v5937_v31  ;;  %v2715_v16 = vmul.f32 0.5, %v2587_v26  ;;  %v2588_v33 = vadd.f32 1.0, %v4558_v4  ;;  %v2337_v52 = vmul.f32 0.7978846, %v2209_v51 }
 0x275   : > { %v6111_v44 = vmul.f32 %v2714_v49, %v5960_v2  ;;  %v2083_v59 = vmul.f32 0.044715, %v1955_v25  ;;  %v2338_v17 = vmul.f32 0.7978846, %v2210_v36  ;;  %v2945_v48 = vpack.c.bf16 %v6058_v9, %v6045_v10 }
 0x276   : > { %v6114_v27 = vmul.f32 %v2715_v16, %v5967_v46  ;;  %v1828_v31 = vmul.f32 %v6034_v40, %v6034_v40  ;;  %v2716_v22 = vmul.f32 0.5, %v2588_v33  ;;  %4567 = vtanh.f32 %v2337_v52  ;;  %v6123_v42 = vpop.f32.mrb[64].mxu0 }
 0x277   : > { %v2211_v1 = vadd.f32 %v2083_v59, %v6031_v41  ;;  %v2944_v2 = vpack.c.bf16 %v6049_v53, %v6042_v21  ;;  %4569 = vtanh.f32 %v2338_v17  ;;  %3222 = vmatprep.mubr.bf16.mxu1 %v2945_v48  ;;  %v1829_v25 = vmul.f32 %v6038_v45, %v6038_v45  ;;  %v6130_v9 = vpop.f32.mrb[65].mxu0 }
 0x278   : > { %v1956_v46 = vmul.f32 %v1828_v31, %v6034_v40  ;;  %v1830_v10 = vmul.f32 %v6055_v38, %v6055_v38  ;;  %v6133_v23 = vmul.f32 %v2716_v22, %v5974_v28  ;;  %v1831_v21 = vmul.f32 %v6062_v29, %v6062_v29  ;;  %v6138_v26 = vpop.f32.mrb[66].mxu0 }
 0x279   : > { %v2339_v3 = vmul.f32 0.7978846, %v2211_v1  ;;  %3223 = vmatmul.mubr.bf16.gmra.mrb[100].mxu1 %v2944_v2  ;;  %v2947_v53 = vpack.c.bf16 %v2841_v32, %v6085_v18  ;;  %v1957_v49 = vmul.f32 %v1829_v25, %v6038_v45  ;;  %v1832_v4 = vmul.f32 %v6067_v50, %v6067_v50  ;;  %v6144_v16 = vpop.f32.mrb[67].mxu0 }
 0x27a   : > { %v2084_v35 = vmul.f32 0.044715, %v1956_v46  ;;  %v1958_v51 = vmul.f32 %v1830_v10, %v6055_v38  ;;  %v4560_v28 = vpop.eup %4559  ;;  %v1959_v36 = vmul.f32 %v1831_v21, %v6062_v29  ;;  %v2946_v18 = vpack.c.bf16 %v6105_v43, %v6070_v11 }
 0x27b   : > { %4571 = vtanh.f32 %v2339_v3  ;;  %3230 = vmatprep.mubr.bf16.mxu1 %v2947_v53  ;;  %v1833_v32 = vmul.f32 %v6075_v60, %v6075_v60  ;;  %v4562_v33 = vpop.eup %4561  ;;  %v2589_v52 = vadd.f32 1.0, %v4560_v28  ;;  %v2085_v17 = vmul.f32 0.044715, %v1957_v49 }
 0x27c   : > { %v2212_v59 = vadd.f32 %v2084_v35, %v6034_v40  ;;  %v2086_v48 = vmul.f32 0.044715, %v1958_v51  ;;  %v4564_v31 = vpop.eup %4563  ;;  %v2590_v22 = vadd.f32 1.0, %v4562_v33  ;;  %v2087_v1 = vmul.f32 0.044715, %v1959_v36 }
 0x27d   : > { %v1960_v2 = vmul.f32 %v1832_v4, %v6067_v50  ;;  %v1961_v46 = vmul.f32 %v1833_v32, %v6075_v60  ;;  %v4566_v25 = vpop.eup %4565  ;;  %v2717_v10 = vmul.f32 0.5, %v2589_v52  ;;  %v2591_v3 = vadd.f32 1.0, %v4564_v31 }
 0x27e   : > { %v2340_v11 = vmul.f32 0.7978846, %v2212_v59  ;;  %v2213_v43 = vadd.f32 %v2085_v17, %v6038_v45  ;;  %v2718_v21 = vmul.f32 0.5, %v2590_v22  ;;  %v2592_v53 = vadd.f32 1.0, %v4566_v25  ;;  %v6157_v49 = vpop.f32.mrb[68].mxu0 }
 0x27f   : > { %v2214_v28 = vadd.f32 %v2086_v48, %v6055_v38  ;;  %v2215_v35 = vadd.f32 %v2087_v1, %v6062_v29  ;;  %v2845_v51 = vmul.f32 %v2717_v10, %v5978_v47  ;;  %v2719_v36 = vmul.f32 0.5, %v2591_v3  ;;  %v6160_v32 = vpop.f32.mrb[69].mxu0 }
 0x280   : > { %4573 = vtanh.f32 %v2340_v11  ;;  %v2341_v4 = vmul.f32 0.7978846, %v2213_v43  ;;  %v4568_v33 = vpop.eup %4567  ;;  %v6163_v52 = vmul.f32 %v2718_v21, %v5987_v30  ;;  %v2720_v59 = vmul.f32 0.5, %v2592_v53  ;;  %v6165_v48 = vpop.f32.mrb[70].mxu0 }
 0x281   : > { %v2342_v17 = vmul.f32 0.7978846, %v2214_v28  ;;  %v2343_v31 = vmul.f32 0.7978846, %v2215_v35  ;;  %3231 = vmatmul.mubr.bf16.gmra.mrb[104].mxu1 %v2946_v18  ;;  %v4570_v22 = vpop.eup %4569  ;;  %v6168_v1 = vmul.f32 %v2719_v36, %v5990_v39  ;;  %v2593_v47 = vadd.f32 1.0, %v4568_v33  ;;  %v6170_v10 = vpop.f32.mrb[71].mxu0 }
 0x282   : > { %4575 = vtanh.f32 %v2341_v4  ;;  %v2088_v25 = vmul.f32 0.044715, %v1960_v2  ;;  %v6173_v3 = vmul.f32 %v2720_v59, %v5995_v37  ;;  %v2594_v30 = vadd.f32 1.0, %v4570_v22 }
 0x283   : > { %4577 = vtanh.f32 %v2342_v17  ;;  %v2089_v11 = vmul.f32 0.044715, %v1961_v46  ;;  %v2721_v43 = vmul.f32 0.5, %v2593_v47  ;;  %v1834_v21 = vmul.f32 %v6095_v34, %v6095_v34 }
 0x284   : > { %4579 = vtanh.f32 %v2343_v31  ;;  %v2216_v18 = vadd.f32 %v2088_v25, %v6067_v50  ;;  %v2722_v53 = vmul.f32 0.5, %v2594_v30  ;;  %v1835_v2 = vmul.f32 %v6098_v19, %v6098_v19 }
 0x285   : > { %v4572_v39 = vpop.eup %4571  ;;  %v2217_v28 = vadd.f32 %v2089_v11, %v6075_v60  ;;  %v2949_v37 = vpack.c.bf16 %v2845_v51, %v6114_v27  ;;  %v2849_v35 = vmul.f32 %v2721_v43, %v6002_v15  ;;  %v1962_v4 = vmul.f32 %v1834_v21, %v6095_v34 }
 0x286   : > { %v2595_v36 = vadd.f32 1.0, %v4572_v39  ;;  %v2344_v46 = vmul.f32 0.7978846, %v2216_v18  ;;  %v6185_v33 = vmul.f32 %v2722_v53, %v6028_v20  ;;  %v1963_v17 = vmul.f32 %v1835_v2, %v6098_v19  ;;  %v6190_v22 = vpop.f32.mrb[72].mxu0 }
 0x287   : > { %v2345_v59 = vmul.f32 0.7978846, %v2217_v28  ;;  %3238 = vmatprep.mubr.bf16.mxu1 %v2949_v37  ;;  %v1836_v31 = vmul.f32 %v6100_v58, %v6100_v58  ;;  %v2090_v27 = vmul.f32 0.044715, %v1962_v4  ;;  %v2948_v15 = vpack.c.bf16 %v6133_v23, %v6111_v44  ;;  %v6194_v51 = vpop.f32.mrb[73].mxu0 }
 0x288   : > { %v2723_v47 = vmul.f32 0.5, %v2595_v36  ;;  %4581 = vtanh.f32 %v2344_v46  ;;  %v2091_v20 = vmul.f32 0.044715, %v1963_v17  ;;  %v1837_v30 = vmul.f32 %v6102_v14, %v6102_v14  ;;  %v6199_v11 = vpop.f32.mrb[74].mxu0 }
 0x289   : > { %4583 = vtanh.f32 %v2345_v59  ;;  %v1964_v25 = vmul.f32 %v1836_v31, %v6100_v58  ;;  %v2218_v21 = vadd.f32 %v2090_v27, %v6095_v34  ;;  %3239 = vmatmul.mubr.bf16.gmra.mrb[108].mxu1 %v2948_v15  ;;  %v6207_v44 = vadd.f32 %v6123_v42, %v5443_v54  ;;  %v6213_v39 = vpop.f32.mrb[75].mxu0 }
 0x28a   : > { %v4574_v43 = vpop.eup %4573  ;;  %v6202_v18 = vmul.f32 %v2723_v47, %v6031_v41  ;;  %v6211_v23 = vadd.f32 %v6130_v9, %v5445_v55  ;;  %v2219_v28 = vadd.f32 %v2091_v20, %v6098_v19  ;;  %v1965_v41 = vmul.f32 %v1837_v30, %v6102_v14 }
 0x28b   : > { %v2596_v53 = vadd.f32 1.0, %v4574_v43  ;;  %v2092_v2 = vmul.f32 0.044715, %v1964_v25  ;;  %v2346_v36 = vmul.f32 0.7978846, %v2218_v21  ;;  %v1838_v46 = vmul.f32 %v6207_v44, %v6207_v44 }
 0x28c   : > { %v4576_v37 = vpop.eup %4575  ;;  %v1839_v54 = vmul.f32 %v6211_v23, %v6211_v23  ;;  %v2951_v42 = vpack.c.bf16 %v2849_v35, %v6168_v1  ;;  %v2347_v59 = vmul.f32 0.7978846, %v2219_v28  ;;  %v2093_v27 = vmul.f32 0.044715, %v1965_v41 }
 0x28d   : > { %v4578_v55 = vpop.eup %4577  ;;  %v2724_v9 = vmul.f32 0.5, %v2596_v53  ;;  %v2597_v4 = vadd.f32 1.0, %v4576_v37  ;;  %v2220_v17 = vadd.f32 %v2092_v2, %v6100_v58  ;;  %4585 = vtanh.f32 %v2346_v36 }
 0x28e   : > { %v4580_v31 = vpop.eup %4579  ;;  %v2598_v47 = vadd.f32 1.0, %v4578_v55  ;;  %v1966_v15 = vmul.f32 %v1838_v46, %v6207_v44  ;;  %3246 = vmatprep.mubr.bf16.mxu1 %v2951_v42  ;;  %4587 = vtanh.f32 %v2347_v59  ;;  %v6227_v1 = vpop.f32.mrb[76].mxu0  ;;  %v2221_v21 = vadd.f32 %v2093_v27, %v6102_v14 }
 0x28f   : > { %v6225_v20 = vmul.f32 %v2724_v9, %v6034_v40  ;;  %v2725_v25 = vmul.f32 0.5, %v2597_v4  ;;  %v2599_v30 = vadd.f32 1.0, %v4580_v31  ;;  %v2348_v43 = vmul.f32 0.7978846, %v2220_v17  ;;  %v6230_v28 = vpop.f32.mrb[77].mxu0 }
 0x290   : > { %v2726_v35 = vmul.f32 0.5, %v2598_v47  ;;  %v2094_v53 = vmul.f32 0.044715, %v1966_v15  ;;  %v1967_v37 = vmul.f32 %v1839_v54, %v6211_v23  ;;  %v6236_v40 = vadd.f32 %v6138_v26, %v5447_v56  ;;  %v6238_v36 = vpop.f32.mrb[78].mxu0 }
 0x291   : > { %v2853_v2 = vmul.f32 %v2725_v25, %v6038_v45  ;;  %v2727_v41 = vmul.f32 0.5, %v2599_v30  ;;  %4589 = vtanh.f32 %v2348_v43  ;;  %v2349_v55 = vmul.f32 0.7978846, %v2221_v21  ;;  %v6244_v4 = vpop.f32.mrb[79].mxu0 }
 0x292   : > { %v4582_v46 = vpop.eup %4581  ;;  %v6241_v42 = vmul.f32 %v2726_v35, %v6055_v38  ;;  %v2222_v9 = vadd.f32 %v2094_v53, %v6207_v44  ;;  %v2095_v17 = vmul.f32 0.044715, %v1967_v37  ;;  %v1840_v56 = vmul.f32 %v6236_v40, %v6236_v40 }
 0x293   : > { %v4584_v45 = vpop.eup %4583  ;;  %v6247_v59 = vmul.f32 %v2727_v41, %v6062_v29  ;;  %v2600_v54 = vadd.f32 1.0, %v4582_v46  ;;  %4591 = vtanh.f32 %v2349_v55  ;;  %v2950_v38 = vpack.c.bf16 %v6173_v3, %v6163_v52 }
 0x294   : > { %v2601_v26 = vadd.f32 1.0, %v4584_v45  ;;  %v2350_v31 = vmul.f32 0.7978846, %v2222_v9  ;;  %v2223_v27 = vadd.f32 %v2095_v17, %v6211_v23  ;;  %v1968_v15 = vmul.f32 %v1840_v56, %v6236_v40 }
 0x295   : > { %v2728_v47 = vmul.f32 0.5, %v2600_v54  ;;  %v6257_v29 = vadd.f32 %v6144_v16, %v5449_v57  ;;  %3247 = vmatmul.mubr.bf16.gmra.mrb[112].mxu1 %v2950_v38  ;;  %v6261_v30 = vadd.f32 %v6157_v49, %v5454_v61  ;;  %v6265_v35 = vadd.f32 %v6160_v32, %v5456_v62 }
 0x296   : > { %v2729_v25 = vmul.f32 0.5, %v2601_v26  ;;  %4593 = vtanh.f32 %v2350_v31  ;;  %v2351_v3 = vmul.f32 0.7978846, %v2223_v27  ;;  %v2096_v43 = vmul.f32 0.044715, %v1968_v15  ;;  %v6272_v16 = vpop.f32.mrb[80].mxu0 }
 0x297   : > { %v6268_v52 = vmul.f32 %v2728_v47, %v6067_v50  ;;  %v1841_v57 = vmul.f32 %v6257_v29, %v6257_v29  ;;  %v4586_v21 = vpop.eup %4585  ;;  %v1842_v61 = vmul.f32 %v6261_v30, %v6261_v30  ;;  %v1843_v62 = vmul.f32 %v6265_v35, %v6265_v35  ;;  %v6282_v49 = vpop.f32.mrb[81].mxu0 }
 0x298   : > { %v6275_v53 = vmul.f32 %v2729_v25, %v6075_v60  ;;  %v2953_v50 = vpack.c.bf16 %v2853_v2, %v6202_v18  ;;  %v4588_v32 = vpop.eup %4587  ;;  %v2602_v41 = vadd.f32 1.0, %v4586_v21  ;;  %4595 = vtanh.f32 %v2351_v3  ;;  %v6286_v55 = vpop.f32.mrb[82].mxu0 }
 0x299   : > { %v2224_v37 = vadd.f32 %v2096_v43, %v6236_v40  ;;  %v1969_v46 = vmul.f32 %v1841_v57, %v6257_v29  ;;  %v2603_v60 = vadd.f32 1.0, %v4588_v32  ;;  %v1970_v9 = vmul.f32 %v1842_v61, %v6261_v30  ;;  %v6294_v2 = vpop.f32.mrb[83].mxu0 }
 0x29a   : > { %v1971_v45 = vmul.f32 %v1843_v62, %v6265_v35  ;;  %3254 = vmatprep.mubr.bf16.mxu1 %v2953_v50  ;;  %v6292_v18 = vadd.f32 %v6165_v48, %v5458_v63  ;;  %v2730_v54 = vmul.f32 0.5, %v2602_v41  ;;  %v2952_v26 = vpack.c.bf16 %v6225_v20, %v6185_v33 }
 0x29b   : > { %v2352_v17 = vmul.f32 0.7978846, %v2224_v37  ;;  %v2097_v56 = vmul.f32 0.044715, %v1969_v46  ;;  %v4590_v31 = vpop.eup %4589  ;;  %v2731_v38 = vmul.f32 0.5, %v2603_v60  ;;  %v6320_v46 = vadd.f32 %v6190_v22, %v5465_v5 }
 0x29c   : > { %v2098_v47 = vmul.f32 0.044715, %v1970_v9  ;;  %v2099_v27 = vmul.f32 0.044715, %v1971_v45  ;;  %v1844_v15 = vmul.f32 %v6292_v18, %v6292_v18  ;;  %v6301_v25 = vmul.f32 %v2730_v54, %v6095_v34 }
 0x29d   : > { %v2604_v63 = vadd.f32 1.0, %v4590_v31  ;;  %4597 = vtanh.f32 %v2352_v17  ;;  %v2225_v48 = vadd.f32 %v2097_v56, %v6257_v29  ;;  %v4592_v3 = vpop.eup %4591  ;;  %v6305_v43 = vmul.f32 %v2731_v38, %v6098_v19  ;;  %3255 = vmatmul.mubr.bf16.gmra.mrb[116].mxu1 %v2952_v26 }
 0x29e   : > { %v2226_v33 = vadd.f32 %v2098_v47, %v6261_v30  ;;  %v2227_v20 = vadd.f32 %v2099_v27, %v6265_v35  ;;  %v1972_v57 = vmul.f32 %v1844_v15, %v6292_v18  ;;  %v2605_v61 = vadd.f32 1.0, %v4592_v3  ;;  %v6314_v50 = vpop.f32.mrb[84].mxu0 }
 0x29f   : > { %v2732_v21 = vmul.f32 0.5, %v2604_v63  ;;  %v2353_v62 = vmul.f32 0.7978846, %v2225_v48  ;;  %v6312_v34 = vadd.f32 %v6170_v10, %v5460_v0  ;;  %v6327_v10 = vpop.f32.mrb[85].mxu0  ;;  %v1846_v54 = vmul.f32 %v6320_v46, %v6320_v46 }
 0x2a0   : > { %v6316_v32 = vpop.eup %4593  ;;  %v2354_v19 = vmul.f32 0.7978846, %v2226_v33  ;;  %v2355_v41 = vmul.f32 0.7978846, %v2227_v20  ;;  %v2100_v37 = vmul.f32 0.044715, %v1972_v57  ;;  %v6334_v5 = vadd.f32 %v6194_v51, %v5467_v6 }
 0x2a1   : > { %v6323_v60 = vmul.f32 %v2732_v21, %v6100_v58  ;;  %v2733_v9 = vmul.f32 0.5, %v2605_v61  ;;  %4599 = vtanh.f32 %v2353_v62  ;;  %v1845_v0 = vmul.f32 %v6312_v34, %v6312_v34  ;;  %v6336_v22 = vpop.f32.mrb[86].mxu0 }
 0x2a2   : > { %4601 = vtanh.f32 %v2354_v19  ;;  %v2228_v45 = vadd.f32 %v2100_v37, %v6292_v18  ;;  %v6338_v58 = vpop.eup %4595  ;;  %v2955_v26 = vpack.c.bf16 %v6275_v53, %v6247_v59  ;;  %v6344_v31 = vpop.f32.mrb[87].mxu0  ;;  %v1974_v47 = vmul.f32 %v1846_v54, %v6320_v46 }
 0x2a3   : > { %v2861_v17 = vmul.f32 %v2733_v9, %v6102_v14  ;;  %4603 = vtanh.f32 %v2355_v41  ;;  %v1973_v56 = vmul.f32 %v1845_v0, %v6312_v34  ;;  %v1847_v6 = vmul.f32 %v6334_v5, %v6334_v5 }
 0x2a4   : > { %v2356_v38 = vmul.f32 0.7978846, %v2228_v45  ;;  %v6351_v51 = vadd.f32 %v6199_v11, %v5469_v7  ;;  %3262 = vmatprep.mubr.bf16.mxu1 %v2955_v26  ;;  %v2954_v14 = vpack.c.bf16 %v6268_v52, %v6241_v42  ;;  %v6357_v59 = vadd.f32 %v6213_v39, %v5471_v8 }
 0x2a5   : > { %v2101_v27 = vmul.f32 0.044715, %v1973_v56  ;;  %v6361_v53 = vadd.f32 %v6227_v1, %v5476_v12  ;;  %v2102_v15 = vmul.f32 0.044715, %v1974_v47  ;;  %v1975_v63 = vmul.f32 %v1847_v6, %v6334_v5 }
 0x2a6   : > { %4605 = vtanh.f32 %v2356_v38  ;;  %v1848_v7 = vmul.f32 %v6351_v51, %v6351_v51  ;;  %3263 = vmatmul.mubr.bf16.gmra.mrb[120].mxu1 %v2954_v14  ;;  %v1849_v8 = vmul.f32 %v6357_v59, %v6357_v59  ;;  %v6375_v12 = vadd.f32 %v6230_v28, %v5478_v13  ;;  %v6377_v1 = vpop.f32.mrb[88].mxu0 }
 0x2a7   : > { %v6366_v11 = vpop.eup %4597  ;;  %v2229_v48 = vadd.f32 %v2101_v27, %v6312_v34  ;;  %v1850_v39 = vmul.f32 %v6361_v53, %v6361_v53  ;;  %v2230_v42 = vadd.f32 %v2102_v15, %v6320_v46  ;;  %v2103_v52 = vmul.f32 0.044715, %v1975_v63  ;;  %v6382_v20 = vpop.f32.mrb[89].mxu0  ;;  %v7365_v63 = vld [vmem:[#allocation5_spill] sm:$0xff] }
 0x2a8   : > { %v1976_v3 = vmul.f32 %v1848_v7, %v6351_v51  ;;  %v2957_v33 = vpack.c.bf16 %v2861_v17, %v6305_v43  ;;  %v1977_v21 = vmul.f32 %v1849_v8, %v6357_v59  ;;  %v1851_v13 = vmul.f32 %v6375_v12, %v6375_v12  ;;  %v6388_v28 = vpop.f32.mrb[90].mxu0 }
 0x2a9   : > { %v2357_v57 = vmul.f32 0.7978846, %v2229_v48  ;;  %v1978_v61 = vmul.f32 %v1850_v39, %v6361_v53  ;;  %v2358_v62 = vmul.f32 0.7978846, %v2230_v42  ;;  %v2231_v19 = vadd.f32 %v2103_v52, %v6334_v5  ;;  %v6395_v37 = vpop.f32.mrb[91].mxu0  ;;  %v7366_v42 = vld [vmem:[#allocation6_spill] sm:$0xff] }
 0x2aa   : > { %v2104_v41 = vmul.f32 0.044715, %v1976_v3  ;;  %3270 = vmatprep.mubr.bf16.mxu1 %v2957_v33  ;;  %v6393_v43 = vadd.f32 %v6238_v36, %v5480_v24  ;;  %v2105_v0 = vmul.f32 0.044715, %v1977_v21  ;;  %v1979_v54 = vmul.f32 %v1851_v13, %v6375_v12  ;;  %v7368_v13 = vld [vmem:[#allocation8_spill] sm:$0xff] }
 0x2ab   : > { %v4600_v9 = vpop.eup %4599  ;;  %4607 = vtanh.f32 %v2357_v57  ;;  %v2106_v45 = vmul.f32 0.044715, %v1978_v61  ;;  %v2359_v56 = vmul.f32 0.7978846, %v2231_v19  ;;  %v2956_v27 = vpack.c.bf16 %v6323_v60, %v6301_v25 }
 0x2ac   : > { %v6398_v17 = vpop.eup %4601  ;;  %4609 = vtanh.f32 %v2358_v62  ;;  %v2232_v26 = vadd.f32 %v2104_v41, %v6351_v51  ;;  %v1852_v38 = vmul.f32 %v6393_v43, %v6393_v43  ;;  %v2233_v24 = vadd.f32 %v2105_v0, %v6357_v59 }
 0x2ad   : > { %v6403_v47 = vpop.eup %4603  ;;  %v2234_v36 = vadd.f32 %v2106_v45, %v6361_v53  ;;  %v2107_v6 = vmul.f32 0.044715, %v1979_v54  ;;  %4611 = vtanh.f32 %v2359_v56  ;;  %v6412_v7 = vadd.f32 %v6244_v4, %v7365_v63  ;;  %v7367_v4 = vld [vmem:[#allocation7_spill] sm:$0xff] }
 0x2ae   : > { %v2360_v14 = vmul.f32 0.7978846, %v2232_v26  ;;  %v1980_v15 = vmul.f32 %v1852_v38, %v6393_v43  ;;  %v2361_v48 = vmul.f32 0.7978846, %v2233_v24  ;;  %3271 = vmatmul.mubr.bf16.gmra.mrb[124].mxu1 %v2956_v27  ;;  %v6417_v52 = vadd.f32 %v6272_v16, %v7366_v42  ;;  %v6419_v3 = vpop.f32.mrb[92].mxu0 }
 0x2af   : > { %v2362_v8 = vmul.f32 0.7978846, %v2234_v36  ;;  %v2235_v39 = vadd.f32 %v2107_v6, %v6375_v12  ;;  %v1853_v33 = vmul.f32 %v6412_v7, %v6412_v7  ;;  %v6427_v57 = vadd.f32 %v6282_v49, %v7367_v4  ;;  %v6429_v21 = vpop.f32.mrb[93].mxu0 }
 0x2b0   : > { %v6421_v25 = vpop.eup %4605  ;;  %4613 = vtanh.f32 %v2360_v14  ;;  %v2108_v60 = vmul.f32 0.044715, %v1980_v15  ;;  %v1854_v16 = vmul.f32 %v6417_v52, %v6417_v52  ;;  %v6435_v62 = vadd.f32 %v6286_v55, %v7368_v13  ;;  %v6437_v19 = vpop.f32.mrb[94].mxu0  ;;  %v7369_v55 = vld [vmem:[#allocation9_spill] sm:$0xff] }
 0x2b1   : > { %4615 = vtanh.f32 %v2361_v48  ;;  %v2363_v61 = vmul.f32 0.7978846, %v2235_v39  ;;  %v1981_v0 = vmul.f32 %v1853_v33, %v6412_v7  ;;  %v1855_v49 = vmul.f32 %v6427_v57, %v6427_v57  ;;  %v6443_v45 = vpop.f32.mrb[95].mxu0 }
 0x2b2   : > { %4617 = vtanh.f32 %v2362_v8  ;;  %v2236_v41 = vadd.f32 %v2108_v60, %v6393_v43  ;;  %v1982_v54 = vmul.f32 %v1854_v16, %v6417_v52  ;;  %v1856_v56 = vmul.f32 %v6435_v62, %v6435_v62 }
 0x2b3   : > { %4619 = vtanh.f32 %v2363_v61  ;;  %v6450_v26 = vadd.f32 %v6294_v2, %v7369_v55  ;;  %v2109_v24 = vmul.f32 0.044715, %v1981_v0  ;;  %v1983_v36 = vmul.f32 %v1855_v49, %v6427_v57 }
 0x2b4   : > { %v2364_v38 = vmul.f32 0.7978846, %v2236_v41  ;;  %v2607_v6 = vadd.f32 1.0, %v6338_v58  ;;  %v2110_v14 = vmul.f32 0.044715, %v1982_v54  ;;  %v1984_v15 = vmul.f32 %v1856_v56, %v6435_v62 }
 0x2b5   : > { %v4608_v27 = vpop.eup %4607  ;;  %v1857_v63 = vmul.f32 %v6450_v26, %v6450_v26  ;;  %v2609_v48 = vadd.f32 1.0, %v4600_v9  ;;  %v2237_v2 = vadd.f32 %v2109_v24, %v6412_v7  ;;  %v2111_v39 = vmul.f32 0.044715, %v1983_v36 }
 0x2b6   : > { %v6457_v8 = vpop.eup %4609  ;;  %4621 = vtanh.f32 %v2364_v38  ;;  %v2735_v42 = vmul.f32 0.5, %v2607_v6  ;;  %v2238_v60 = vadd.f32 %v2110_v14, %v6417_v52  ;;  %v2112_v33 = vmul.f32 0.044715, %v1984_v15  ;;  %v6462_v61 = vpop.f32.mrb[96].mxu0 }
 0x2b7   : > { %v1985_v58 = vmul.f32 %v1857_v63, %v6450_v26  ;;  %v2737_v4 = vmul.f32 0.5, %v2609_v48  ;;  %v6464_v16 = vpop.eup %4611  ;;  %v2365_v13 = vmul.f32 0.7978846, %v2237_v2  ;;  %v2239_v9 = vadd.f32 %v2111_v39, %v6427_v57  ;;  %v6469_v49 = vpop.f32.mrb[97].mxu0 }
 0x2b8   : > { %v2863_v41 = vmul.f32 %v2735_v42, %v6211_v23  ;;  %v2606_v0 = vadd.f32 1.0, %v6316_v32  ;;  %v2366_v54 = vmul.f32 0.7978846, %v2238_v60  ;;  %v2240_v56 = vadd.f32 %v2112_v33, %v6435_v62  ;;  %v6473_v24 = vpop.f32.mrb[98].mxu0  ;;  %v7370_v60 = vld [vmem:[#allocation10_spill] sm:$0xff] }
 0x2b9   : > { %v2113_v55 = vmul.f32 0.044715, %v1985_v58  ;;  %v2865_v38 = vmul.f32 %v2737_v4, %v6257_v29  ;;  %4623 = vtanh.f32 %v2365_v13  ;;  %v2367_v6 = vmul.f32 0.7978846, %v2239_v9  ;;  %v6478_v23 = vpop.f32.mrb[99].mxu0  ;;  %v7371_v4 = vld [vmem:[#allocation11_spill] sm:$0xff] }
 0x2ba   : > { %v6475_v36 = vpop.eup %4613  ;;  %v2608_v14 = vadd.f32 1.0, %v6366_v11  ;;  %v2734_v15 = vmul.f32 0.5, %v2606_v0  ;;  %4625 = vtanh.f32 %v2366_v54  ;;  %v2368_v63 = vmul.f32 0.7978846, %v2240_v56  ;;  %v7372_v9 = vld [vmem:[#allocation12_spill] sm:$0xff] }
 0x2bb   : > { %v6480_v32 = vpop.eup %4615  ;;  %v2241_v48 = vadd.f32 %v2113_v55, %v6450_v26  ;;  %v2959_v2 = vpack.c.bf16 %v2865_v38, %v2863_v41  ;;  %4627 = vtanh.f32 %v2367_v6  ;;  %v6488_v33 = vadd.f32 %v6314_v50, %v7370_v60  ;;  %v7373_v50 = vld [vmem:[#allocation13_spill] sm:$0xff] }
 0x2bc   : > { %v6483_v39 = vpop.eup %4617  ;;  %v2736_v29 = vmul.f32 0.5, %v2608_v14  ;;  %v2862_v42 = vmul.f32 %v2734_v15, %v6207_v44  ;;  %4629 = vtanh.f32 %v2368_v63  ;;  %v6494_v13 = vadd.f32 %v6327_v10, %v7371_v4 }
 0x2bd   : > { %v6490_v11 = vpop.eup %4619  ;;  %v2369_v58 = vmul.f32 0.7978846, %v2241_v48  ;;  %3278 = vmatprep.mubr.bf16.mxu1 %v2959_v2  ;;  %v6498_v41 = vadd.f32 %v6336_v22, %v7372_v9  ;;  %v1858_v44 = vmul.f32 %v6488_v33, %v6488_v33  ;;  %v6505_v54 = vadd.f32 %v6344_v31, %v7373_v50 }
 0x2be   : > { %v2864_v0 = vmul.f32 %v2736_v29, %v6236_v40  ;;  %v2611_v56 = vadd.f32 1.0, %v6403_v47  ;;  %v1859_v10 = vmul.f32 %v6494_v13, %v6494_v13  ;;  %v2613_v22 = vadd.f32 1.0, %v4608_v27  ;;  %v6512_v38 = vpop.f32.mrb[100].mxu0 }
 0x2bf   : > { %4631 = vtanh.f32 %v2369_v58  ;;  %v1860_v55 = vmul.f32 %v6498_v41, %v6498_v41  ;;  %v1986_v14 = vmul.f32 %v1858_v44, %v6488_v33  ;;  %v1861_v31 = vmul.f32 %v6505_v54, %v6505_v54  ;;  %v6519_v47 = vpop.f32.mrb[101].mxu0 }
 0x2c0   : > { %v6514_v40 = vpop.eup %4621  ;;  %v2958_v6 = vpack.c.bf16 %v2864_v0, %v2862_v42  ;;  %v2739_v15 = vmul.f32 0.5, %v2611_v56  ;;  %v1987_v63 = vmul.f32 %v1859_v10, %v6494_v13  ;;  %v2741_v2 = vmul.f32 0.5, %v2613_v22  ;;  %v6524_v29 = vpop.f32.mrb[102].mxu0 }
 0x2c1   : > { %v1988_v48 = vmul.f32 %v1860_v55, %v6498_v41  ;;  %v2610_v27 = vadd.f32 1.0, %v6398_v17  ;;  %v2114_v60 = vmul.f32 0.044715, %v1986_v14  ;;  %v1989_v42 = vmul.f32 %v1861_v31, %v6505_v54  ;;  %v6529_v9 = vpop.f32.mrb[103].mxu0 }
 0x2c2   : > { %3279 = vmatmul.mubr.bf16.gmra.mrb[128].mxu1 %v2958_v6  ;;  %v2867_v58 = vmul.f32 %v2739_v15, %v6265_v35  ;;  %v2612_v4 = vadd.f32 1.0, %v6421_v25  ;;  %v2115_v0 = vmul.f32 0.044715, %v1987_v63  ;;  %v2869_v50 = vmul.f32 %v2741_v2, %v6312_v34  ;;  %v7374_v6 = vld [vmem:[#allocation14_spill] sm:$0xff] }
 0x2c3   : > { %v2116_v44 = vmul.f32 0.044715, %v1988_v48  ;;  %v2738_v56 = vmul.f32 0.5, %v2610_v27  ;;  %v6532_v10 = vpop.eup %4623  ;;  %v2242_v17 = vadd.f32 %v2114_v60, %v6488_v33  ;;  %v2117_v55 = vmul.f32 0.044715, %v1989_v42 }
 0x2c4   : > { %v2740_v22 = vmul.f32 0.5, %v2612_v4  ;;  %v6537_v14 = vadd.f32 %v6377_v1, %v7374_v6  ;;  %v6539_v35 = vpop.eup %4625  ;;  %v2243_v25 = vadd.f32 %v2115_v0, %v6494_v13  ;;  %v2961_v15 = vpack.c.bf16 %v2869_v50, %v2867_v58  ;;  %v7376_v0 = vld [vmem:[#allocation15_spill] sm:$0xff] }
 0x2c5   : > { %v2244_v31 = vadd.f32 %v2116_v44, %v6498_v41  ;;  %v2866_v34 = vmul.f32 %v2738_v56, %v6261_v30  ;;  %v6544_v63 = vpop.eup %4627  ;;  %v2370_v48 = vmul.f32 0.7978846, %v2242_v17  ;;  %v2245_v2 = vadd.f32 %v2117_v55, %v6505_v54  ;;  %v7377_v30 = vld [vmem:[#allocation16_spill] sm:$0xff] }
 0x2c6   : > { %7375 = vst [vmem:[#allocation5_spill] sm:$0xff] %v6537_v14  ;;  %v2868_v27 = vmul.f32 %v2740_v22, %v6292_v18  ;;  %v1862_v1 = vmul.f32 %v6537_v14, %v6537_v14  ;;  %v6550_v60 = vpop.eup %4629  ;;  %v2371_v42 = vmul.f32 0.7978846, %v2243_v25  ;;  %3286 = vmatprep.mubr.bf16.mxu1 %v2961_v15  ;;  %v6554_v58 = vadd.f32 %v6382_v20, %v7376_v0  ;;  %v6560_v50 = vpop.f32.mrb[104].mxu0 }
 0x2c7   : > { %v2372_v4 = vmul.f32 0.7978846, %v2244_v31  ;;  %v6558_v44 = vadd.f32 %v6388_v28, %v7377_v30  ;;  %4633 = vtanh.f32 %v2370_v48  ;;  %v2373_v18 = vmul.f32 0.7978846, %v2245_v2  ;;  %v6563_v55 = vpop.f32.mrb[105].mxu0  ;;  %v7378_v28 = vld [vmem:[#allocation17_spill] sm:$0xff] }
 0x2c8   : > { %v2960_v56 = vpack.c.bf16 %v2868_v27, %v2866_v34  ;;  %v1990_v17 = vmul.f32 %v1862_v1, %v6537_v14  ;;  %4635 = vtanh.f32 %v2371_v42  ;;  %v1863_v20 = vmul.f32 %v6554_v58, %v6554_v58  ;;  %v6575_v31 = vpop.f32.mrb[106].mxu0 }
 0x2c9   : > { %v6565_v22 = vpop.eup %4631  ;;  %v1864_v6 = vmul.f32 %v6558_v44, %v6558_v44  ;;  %v6573_v25 = vadd.f32 %v6395_v37, %v7378_v28  ;;  %4637 = vtanh.f32 %v2372_v4  ;;  %v2615_v34 = vadd.f32 1.0, %v6464_v16  ;;  %v6579_v2 = vpop.f32.mrb[107].mxu0 }
 0x2ca   : > { %3287 = vmatmul.mubr.bf16.gmra.mrb[132].mxu1 %v2960_v56  ;;  %v2118_v15 = vmul.f32 0.044715, %v1990_v17  ;;  %v2617_v48 = vadd.f32 1.0, %v6480_v32  ;;  %7379 = vst [vmem:[#allocation6_spill] sm:$0xff] %v6579_v2  ;;  %4639 = vtanh.f32 %v2373_v18  ;;  %v1991_v27 = vmul.f32 %v1863_v20, %v6554_v58 }
 0x2cb   : > { %v1992_v1 = vmul.f32 %v1864_v6, %v6558_v44  ;;  %v1865_v37 = vmul.f32 %v6573_v25, %v6573_v25  ;;  %v2743_v0 = vmul.f32 0.5, %v2615_v34  ;;  %v2614_v30 = vadd.f32 1.0, %v6457_v8 }
 0x2cc   : > { %v2246_v42 = vadd.f32 %v2118_v15, %v6537_v14  ;;  %v2745_v4 = vmul.f32 0.5, %v2617_v48  ;;  %v2119_v56 = vmul.f32 0.044715, %v1991_v27  ;;  %v2616_v17 = vadd.f32 1.0, %v6475_v36 }
 0x2cd   : > { %v2120_v16 = vmul.f32 0.044715, %v1992_v1  ;;  %v1993_v32 = vmul.f32 %v1865_v37, %v6573_v25  ;;  %v2871_v20 = vmul.f32 %v2743_v0, %v6334_v5  ;;  %v2742_v28 = vmul.f32 0.5, %v2614_v30  ;;  %v7380_v1 = vld [vmem:[#allocation18_spill] sm:$0xff] }
 0x2ce   : > { %v2374_v18 = vmul.f32 0.7978846, %v2246_v42  ;;  %v2873_v6 = vmul.f32 %v2745_v4, %v6357_v59  ;;  %v2247_v2 = vadd.f32 %v2119_v56, %v6554_v58  ;;  %v2744_v48 = vmul.f32 0.5, %v2616_v17  ;;  %v6593_v14 = vpop.f32.mrb[108].mxu0  ;;  %v7381_v56 = vld [vmem:[#allocation19_spill] sm:$0xff] }
 0x2cf   : > { %v2248_v15 = vadd.f32 %v2120_v16, %v6558_v44  ;;  %v2121_v34 = vmul.f32 0.044715, %v1993_v32  ;;  %v2870_v27 = vmul.f32 %v2742_v28, %v6320_v46  ;;  %v6598_v36 = vadd.f32 %v6419_v3, %v7380_v1  ;;  %v6600_v5 = vpop.f32.mrb[109].mxu0  ;;  %v7382_v16 = vld [vmem:[#allocation20_spill] sm:$0xff]  ;;  %v7383_v32 = vld [vmem:[#allocation21_spill] sm:$0xff] }
 0x2d0   : > { %4641 = vtanh.f32 %v2374_v18  ;;  %v2963_v8 = vpack.c.bf16 %v2873_v6, %v2871_v20  ;;  %v2375_v59 = vmul.f32 0.7978846, %v2247_v2  ;;  %v2872_v0 = vmul.f32 %v2744_v48, %v6351_v51  ;;  %v6604_v4 = vpop.f32.mrb[110].mxu0 }
 0x2d1   : > { %v2376_v37 = vmul.f32 0.7978846, %v2248_v15  ;;  %v2249_v42 = vadd.f32 %v2121_v34, %v6573_v25  ;;  %v6606_v30 = vpop.eup %4633  ;;  %v1866_v46 = vmul.f32 %v6598_v36, %v6598_v36  ;;  %v6612_v3 = vadd.f32 %v6429_v21, %v7381_v56  ;;  %v6622_v51 = vpop.f32.mrb[111].mxu0 }
 0x2d2   : > { %3294 = vmatprep.mubr.bf16.mxu1 %v2963_v8  ;;  %v6616_v2 = vadd.f32 %v6437_v19, %v7382_v16  ;;  %v6620_v17 = vadd.f32 %v6443_v45, %v7383_v32  ;;  %v6624_v18 = vpop.eup %4635  ;;  %4643 = vtanh.f32 %v2375_v59  ;;  %v2962_v6 = vpack.c.bf16 %v2872_v0, %v2870_v27 }
 0x2d3   : > { %v2377_v20 = vmul.f32 0.7978846, %v2249_v42  ;;  %v2619_v28 = vadd.f32 1.0, %v6490_v11  ;;  %v6627_v15 = vpop.eup %4637  ;;  %4645 = vtanh.f32 %v2376_v37  ;;  %v1994_v21 = vmul.f32 %v1866_v46, %v6598_v36 }
 0x2d4   : > { %v1867_v19 = vmul.f32 %v6612_v3, %v6612_v3  ;;  %v1868_v45 = vmul.f32 %v6616_v2, %v6616_v2  ;;  %v6634_v34 = vpop.eup %4639  ;;  %3295 = vmatmul.mubr.bf16.gmra.mrb[136].mxu1 %v2962_v6  ;;  %v1869_v48 = vmul.f32 %v6620_v17, %v6620_v17  ;;  %v2621_v11 = vadd.f32 1.0, %v6532_v10 }
 0x2d5   : > { %4647 = vtanh.f32 %v2377_v20  ;;  %v2747_v8 = vmul.f32 0.5, %v2619_v28  ;;  %v2122_v27 = vmul.f32 0.044715, %v1994_v21  ;;  %v2618_v37 = vadd.f32 1.0, %v6483_v39 }
 0x2d6   : > { %v1995_v1 = vmul.f32 %v1867_v19, %v6612_v3  ;;  %v1996_v59 = vmul.f32 %v1868_v45, %v6616_v2  ;;  %v1997_v42 = vmul.f32 %v1869_v48, %v6620_v17  ;;  %v2749_v0 = vmul.f32 0.5, %v2621_v11  ;;  %v6645_v16 = vpop.f32.mrb[112].mxu0  ;;  %v7384_v45 = vld [vmem:[#allocation22_spill] sm:$0xff] }
 0x2d7   : > { %v2875_v46 = vmul.f32 %v2747_v8, %v6375_v12  ;;  %v2620_v56 = vadd.f32 1.0, %v6514_v40  ;;  %v2250_v32 = vadd.f32 %v2122_v27, %v6598_v36  ;;  %v2746_v6 = vmul.f32 0.5, %v2618_v37  ;;  %v6648_v28 = vpop.f32.mrb[113].mxu0 }
 0x2d8   : > { %v2123_v10 = vmul.f32 0.044715, %v1995_v1  ;;  %v2124_v20 = vmul.f32 0.044715, %v1996_v59  ;;  %v2125_v21 = vmul.f32 0.044715, %v1997_v42  ;;  %v2877_v19 = vmul.f32 %v2749_v0, %v6412_v7 }
 0x2d9   : > { %v2748_v39 = vmul.f32 0.5, %v2620_v56  ;;  %v6653_v48 = vadd.f32 %v6462_v61, %v7384_v45  ;;  %v6655_v12 = vpop.f32.mrb[114].mxu0  ;;  %v2378_v11 = vmul.f32 0.7978846, %v2250_v32  ;;  %v2874_v1 = vmul.f32 %v2746_v6, %v6361_v53  ;;  %v7385_v32 = vld [vmem:[#allocation23_spill] sm:$0xff]  ;;  %v7387_v45 = vld [vmem:[#allocation25_spill] sm:$0xff] }
 0x2da   : > { %v6657_v40 = vpop.eup %4641  ;;  %v2251_v8 = vadd.f32 %v2123_v10, %v6612_v3  ;;  %v2252_v27 = vadd.f32 %v2124_v20, %v6616_v2  ;;  %v6662_v59 = vpop.f32.mrb[115].mxu0  ;;  %v2253_v7 = vadd.f32 %v2125_v21, %v6620_v17  ;;  %v2965_v37 = vpack.c.bf16 %v2877_v19, %v2875_v46  ;;  %v7386_v46 = vld [vmem:[#allocation24_spill] sm:$0xff] }
 0x2db   : > { %v2876_v42 = vmul.f32 %v2748_v39, %v6393_v43  ;;  %v1870_v61 = vmul.f32 %v6653_v48, %v6653_v48  ;;  %4649 = vtanh.f32 %v2378_v11  ;;  %v6670_v10 = vadd.f32 %v6469_v49, %v7385_v32 }
 0x2dc   : > { %v2379_v0 = vmul.f32 0.7978846, %v2251_v8  ;;  %v2380_v56 = vmul.f32 0.7978846, %v2252_v27  ;;  %v6672_v20 = vpop.eup %4643  ;;  %v2381_v53 = vmul.f32 0.7978846, %v2253_v7  ;;  %3302 = vmatprep.mubr.bf16.mxu1 %v2965_v37  ;;  %v6677_v43 = vadd.f32 %v6473_v24, %v7386_v46 }
 0x2dd   : > { %v2964_v6 = vpack.c.bf16 %v2876_v42, %v2874_v1  ;;  %v1998_v21 = vmul.f32 %v1870_v61, %v6653_v48  ;;  %v6679_v19 = vpop.eup %4645  ;;  %v1871_v39 = vmul.f32 %v6670_v10, %v6670_v10  ;;  %v6685_v49 = vadd.f32 %v6478_v23, %v7387_v45 }
 0x2de   : > { %4651 = vtanh.f32 %v2379_v0  ;;  %v2623_v11 = vadd.f32 1.0, %v6544_v63  ;;  %v1872_v24 = vmul.f32 %v6677_v43, %v6677_v43  ;;  %v2625_v1 = vadd.f32 1.0, %v6565_v22  ;;  %v6693_v7 = vpop.f32.mrb[116].mxu0 }
 0x2df   : > { %v6688_v8 = vpop.eup %4647  ;;  %4653 = vtanh.f32 %v2380_v56  ;;  %3303 = vmatmul.mubr.bf16.gmra.mrb[140].mxu1 %v2964_v6  ;;  %v2126_v27 = vmul.f32 0.044715, %v1998_v21  ;;  %7388 = vst [vmem:[#allocation7_spill] sm:$0xff] %v6693_v7  ;;  %v1999_v37 = vmul.f32 %v1871_v39, %v6670_v10  ;;  %v1873_v23 = vmul.f32 %v6685_v49, %v6685_v49  ;;  %v6698_v63 = vpop.f32.mrb[117].mxu0  ;;  %v7390_v7 = vld [vmem:[#allocation26_spill] sm:$0xff] }
 0x2e0   : > { %4655 = vtanh.f32 %v2381_v53  ;;  %v2751_v42 = vmul.f32 0.5, %v2623_v11  ;;  %7389 = vst [vmem:[#allocation8_spill] sm:$0xff] %v6698_v63  ;;  %v2000_v0 = vmul.f32 %v1872_v24, %v6677_v43  ;;  %v2753_v56 = vmul.f32 0.5, %v2625_v1  ;;  %v6703_v6 = vpop.f32.mrb[118].mxu0 }
 0x2e1   : > { %v2254_v61 = vadd.f32 %v2126_v27, %v6653_v48  ;;  %v2622_v32 = vadd.f32 1.0, %v6539_v35  ;;  %v2127_v22 = vmul.f32 0.044715, %v1999_v37  ;;  %v2001_v53 = vmul.f32 %v1873_v23, %v6685_v49  ;;  %v6708_v39 = vpop.f32.mrb[119].mxu0 }
 0x2e2   : > { %v2879_v21 = vmul.f32 %v2751_v42, %v6427_v57  ;;  %v2624_v46 = vadd.f32 1.0, %v6550_v60  ;;  %v2128_v11 = vmul.f32 0.044715, %v2000_v0  ;;  %v2881_v27 = vmul.f32 %v2753_v56, %v6450_v26 }
 0x2e3   : > { %v2382_v45 = vmul.f32 0.7978846, %v2254_v61  ;;  %v2750_v63 = vmul.f32 0.5, %v2622_v32  ;;  %v2255_v24 = vadd.f32 %v2127_v22, %v6670_v10  ;;  %v2129_v1 = vmul.f32 0.044715, %v2001_v53  ;;  %v7392_v22 = vld [vmem:[#allocation28_spill] sm:$0xff] }
 0x2e4   : > { %v2752_v35 = vmul.f32 0.5, %v2624_v46  ;;  %v6714_v37 = vadd.f32 %v6512_v38, %v7390_v7  ;;  %v2256_v57 = vadd.f32 %v2128_v11, %v6677_v43  ;;  %v2967_v23 = vpack.c.bf16 %v2881_v27, %v2879_v21  ;;  %v7391_v38 = vld [vmem:[#allocation27_spill] sm:$0xff] }
 0x2e5   : > { %4657 = vtanh.f32 %v2382_v45  ;;  %v2878_v60 = vmul.f32 %v2750_v63, %v6417_v52  ;;  %v6718_v42 = vpop.eup %4649  ;;  %v2383_v61 = vmul.f32 0.7978846, %v2255_v24  ;;  %v2257_v26 = vadd.f32 %v2129_v1, %v6685_v49  ;;  %v7393_v52 = vld [vmem:[#allocation29_spill] sm:$0xff] }
 0x2e6   : > { %v2880_v0 = vmul.f32 %v2752_v35, %v6435_v62  ;;  %v1874_v56 = vmul.f32 %v6714_v37, %v6714_v37  ;;  %v2384_v32 = vmul.f32 0.7978846, %v2256_v57  ;;  %3310 = vmatprep.mubr.bf16.mxu1 %v2967_v23  ;;  %v6726_v7 = vadd.f32 %v6519_v47, %v7391_v38  ;;  %v6736_v21 = vpop.f32.mrb[120].mxu0 }
 0x2e7   : > { %v6730_v53 = vadd.f32 %v6524_v29, %v7392_v22  ;;  %v6734_v63 = vadd.f32 %v6529_v9, %v7393_v52  ;;  %4659 = vtanh.f32 %v2383_v61  ;;  %v2385_v46 = vmul.f32 0.7978846, %v2257_v26  ;;  %v6741_v27 = vpop.f32.mrb[121].mxu0 }
 0x2e8   : > { %v6738_v62 = vpop.eup %4651  ;;  %v2966_v45 = vpack.c.bf16 %v2880_v0, %v2878_v60  ;;  %v2002_v11 = vmul.f32 %v1874_v56, %v6714_v37  ;;  %4661 = vtanh.f32 %v2384_v32  ;;  %v1875_v29 = vmul.f32 %v6726_v7, %v6726_v7  ;;  %v6751_v1 = vpop.f32.mrb[122].mxu0 }
 0x2e9   : > { %v6743_v47 = vpop.eup %4653  ;;  %v1876_v9 = vmul.f32 %v6730_v53, %v6730_v53  ;;  %v1877_v24 = vmul.f32 %v6734_v63, %v6734_v63  ;;  %7394 = vst [vmem:[#allocation9_spill] sm:$0xff] %v6751_v1  ;;  %4663 = vtanh.f32 %v2385_v46  ;;  %v2627_v23 = vadd.f32 1.0, %v6624_v18  ;;  %v6757_v61 = vpop.f32.mrb[123].mxu0 }
 0x2ea   : > { %v6753_v35 = vpop.eup %4655  ;;  %3311 = vmatmul.mubr.bf16.gmra.mrb[144].mxu1 %v2966_v45  ;;  %v2130_v57 = vmul.f32 0.044715, %v2002_v11  ;;  %v2629_v60 = vadd.f32 1.0, %v6634_v34  ;;  %7395 = vst [vmem:[#allocation10_spill] sm:$0xff] %v6757_v61  ;;  %v2003_v26 = vmul.f32 %v1875_v29, %v6726_v7  ;;  %v2626_v32 = vadd.f32 1.0, %v6606_v30  ;;  %v7396_v34 = vld [vmem:[#allocation30_spill] sm:$0xff] }
 0x2eb   : > { %v2004_v0 = vmul.f32 %v1876_v9, %v6730_v53  ;;  %v2005_v56 = vmul.f32 %v1877_v24, %v6734_v63  ;;  %v2755_v22 = vmul.f32 0.5, %v2627_v23  ;;  %v2628_v46 = vadd.f32 1.0, %v6627_v15 }
 0x2ec   : > { %v2258_v38 = vadd.f32 %v2130_v57, %v6714_v37  ;;  %v2757_v52 = vmul.f32 0.5, %v2629_v60  ;;  %v2131_v45 = vmul.f32 0.044715, %v2003_v26  ;;  %v6767_v61 = vadd.f32 %v6560_v50, %v7396_v34  ;;  %v6771_v30 = vpop.f32.mrb[64].mxu1  ;;  %v7398_v34 = vld [vmem:[#allocation31_spill] sm:$0xff] }
 0x2ed   : > { %v2132_v18 = vmul.f32 0.044715, %v2004_v0  ;;  %v2133_v11 = vmul.f32 0.044715, %v2005_v56  ;;  %v2883_v9 = vmul.f32 %v2755_v22, %v6494_v13  ;;  %v2754_v1 = vmul.f32 0.5, %v2626_v32  ;;  %v3154_v0 = vpop.f32.mrb[65].mxu1 }
 0x2ee   : > { %v2386_v29 = vmul.f32 0.7978846, %v2258_v38  ;;  %v2885_v24 = vmul.f32 %v2757_v52, %v6505_v54  ;;  %v2259_v23 = vadd.f32 %v2131_v45, %v6726_v7  ;;  %v2756_v26 = vmul.f32 0.5, %v2628_v46  ;;  %v6783_v32 = vpop.f32.mrb[66].mxu1 }
 0x2ef   : > { %v6773_v57 = vpop.eup %4657  ;;  %v2260_v15 = vadd.f32 %v2132_v18, %v6730_v53  ;;  %v2261_v60 = vadd.f32 %v2133_v11, %v6734_v63  ;;  %v2882_v13 = vmul.f32 %v2754_v1, %v6488_v33  ;;  %v1878_v54 = vmul.f32 %v6767_v61, %v6767_v61  ;;  %v7399_v1 = vld [vmem:[#allocation32_spill] sm:$0xff] }
 0x2f0   : > { %4665 = vtanh.f32 %v2386_v29  ;;  %v2969_v56 = vpack.c.bf16 %v2885_v24, %v2883_v9  ;;  %v2387_v22 = vmul.f32 0.7978846, %v2259_v23  ;;  %v2884_v18 = vmul.f32 %v2756_v26, %v6498_v41  ;;  %v7400_v9 = vld [vmem:[#allocation33_spill] sm:$0xff]  ;;  %v7401_v24 = vld [vmem:[#allocation6_spill] sm:$0xff] }
 0x2f1   : > { %v6778_v50 = vpop.f32.mrb[124].mxu0  ;;  %v2388_v52 = vmul.f32 0.7978846, %v2260_v15  ;;  %v2389_v45 = vmul.f32 0.7978846, %v2261_v60  ;;  %v6788_v46 = vpop.eup %4659  ;;  %v2006_v11 = vmul.f32 %v1878_v54, %v6767_v61  ;;  %v6793_v33 = vadd.f32 %v6563_v55, %v7398_v34 }
 0x2f2   : > { %v6785_v38 = vpop.f32.mrb[125].mxu0  ;;  %3318 = vmatprep.mubr.bf16.mxu1 %v2969_v56  ;;  %v6797_v29 = vadd.f32 %v6575_v31, %v7399_v1  ;;  %v6801_v23 = vadd.f32 %v7401_v24, %v7400_v9  ;;  %v3157_v15 = vpop.f32.mrb[67].mxu1  ;;  %4667 = vtanh.f32 %v2387_v22  ;;  %v2968_v26 = vpack.c.bf16 %v2884_v18, %v2882_v13 }
 0x2f3   : > { %7397 = vst [vmem:[#allocation11_spill] sm:$0xff] %v6785_v38  ;;  %v6803_v60 = vpop.f32.mrb[126].mxu0  ;;  %v6805_v41 = vpop.eup %4661  ;;  %v2631_v0 = vadd.f32 1.0, %v6672_v20  ;;  %v2633_v55 = vadd.f32 1.0, %v6688_v8  ;;  %4669 = vtanh.f32 %v2388_v52  ;;  %v2134_v31 = vmul.f32 0.044715, %v2006_v11 }
 0x2f4   : > { %7402 = vst [vmem:[#allocation12_spill] sm:$0xff] %v6803_v60  ;;  %v6809_v56 = vpop.f32.mrb[127].mxu0  ;;  %v6811_v54 = vpop.eup %4663  ;;  %v1879_v34 = vmul.f32 %v6793_v33, %v6793_v33  ;;  %v1880_v1 = vmul.f32 %v6797_v29, %v6797_v29  ;;  %4671 = vtanh.f32 %v2389_v45  ;;  %3319 = vmatmul.mubr.bf16.gmra.mrb[148].mxu1 %v2968_v26  ;;  %v1881_v13 = vmul.f32 %v6801_v23, %v6801_v23 }
 0x2f5   : > { %7403 = vst [vmem:[#allocation13_spill] sm:$0xff] %v6809_v56  ;;  %v2759_v20 = vmul.f32 0.5, %v2631_v0  ;;  %v2761_v22 = vmul.f32 0.5, %v2633_v55  ;;  %v2262_v8 = vadd.f32 %v2134_v31, %v6767_v61  ;;  %v2630_v11 = vadd.f32 1.0, %v6657_v40  ;;  %v7404_v55 = vld [vmem:[#allocation34_spill] sm:$0xff] }
 0x2f6   : > { %v2007_v18 = vmul.f32 %v1879_v34, %v6793_v33  ;;  %v2008_v52 = vmul.f32 %v1880_v1, %v6797_v29  ;;  %v2009_v9 = vmul.f32 %v1881_v13, %v6801_v23  ;;  %v2632_v15 = vadd.f32 1.0, %v6679_v19 }
 0x2f7   : > { %v2887_v24 = vmul.f32 %v2759_v20, %v6554_v58  ;;  %v2889_v45 = vmul.f32 %v2761_v22, %v6573_v25  ;;  %v2390_v26 = vmul.f32 0.7978846, %v2262_v8  ;;  %v6829_v31 = vadd.f32 %v6593_v14, %v7404_v55  ;;  %v7405_v20 = vld [vmem:[#allocation5_spill] sm:$0xff]  ;;  %v7406_v8 = vld [vmem:[#allocation35_spill] sm:$0xff] }
 0x2f8   : > { %v2135_v56 = vmul.f32 0.044715, %v2007_v18  ;;  %v2136_v0 = vmul.f32 0.044715, %v2008_v52  ;;  %v2137_v34 = vmul.f32 0.044715, %v2009_v9  ;;  %v6842_v18 = vadd.f32 %v6600_v5, %v7406_v8 }
 0x2f9   : > { %v2971_v60 = vpack.c.bf16 %v2889_v45, %v2887_v24  ;;  %v2758_v1 = vmul.f32 0.5, %v2630_v11  ;;  %v2760_v38 = vmul.f32 0.5, %v2632_v15  ;;  %4673 = vtanh.f32 %v2390_v26  ;;  %v7407_v24 = vld [vmem:[#allocation36_spill] sm:$0xff]  ;;  %v7408_v5 = vld [vmem:[#allocation37_spill] sm:$0xff] }
 0x2fa   : > { %v6831_v40 = vpop.eup %4665  ;;  %v2263_v58 = vadd.f32 %v2135_v56, %v6793_v33  ;;  %v2264_v25 = vadd.f32 %v2136_v0, %v6797_v29  ;;  %v1882_v19 = vmul.f32 %v6829_v31, %v6829_v31  ;;  %v2265_v13 = vadd.f32 %v2137_v34, %v6801_v23 }
 0x2fb   : > { %3326 = vmatprep.mubr.bf16.mxu1 %v2971_v60  ;;  %v2886_v14 = vmul.f32 %v2758_v1, %v7405_v20  ;;  %v2888_v22 = vmul.f32 %v2760_v38, %v6558_v44  ;;  %v6844_v52 = vpop.f32.mrb[68].mxu1  ;;  %v6849_v45 = vadd.f32 %v6604_v4, %v7407_v24  ;;  %v1883_v44 = vmul.f32 %v6842_v18, %v6842_v18 }
 0x2fc   : > { %v2391_v11 = vmul.f32 0.7978846, %v2263_v58  ;;  %v2392_v56 = vmul.f32 0.7978846, %v2264_v25  ;;  %v2010_v9 = vmul.f32 %v1882_v19, %v6829_v31  ;;  %v3162_v15 = vpop.f32.mrb[69].mxu1  ;;  %v6851_v60 = vpop.eup %4667  ;;  %v6857_v38 = vadd.f32 %v6622_v51, %v7408_v5 }
 0x2fd   : > { %v2393_v26 = vmul.f32 0.7978846, %v2265_v13  ;;  %v2970_v0 = vpack.c.bf16 %v2888_v22, %v2886_v14  ;;  %v6859_v55 = vpop.f32.mrb[70].mxu1  ;;  %v6861_v34 = vpop.eup %4669  ;;  %v1884_v4 = vmul.f32 %v6849_v45, %v6849_v45  ;;  %v2635_v58 = vadd.f32 1.0, %v6738_v62 }
 0x2fe   : > { %4675 = vtanh.f32 %v2391_v11  ;;  %v2138_v1 = vmul.f32 0.044715, %v2010_v9  ;;  %v3165_v25 = vpop.f32.mrb[71].mxu1  ;;  %v6866_v19 = vpop.eup %4671  ;;  %v2011_v13 = vmul.f32 %v1883_v44, %v6842_v18  ;;  %v1885_v51 = vmul.f32 %v6857_v38, %v6857_v38 }
 0x2ff   : > { %4677 = vtanh.f32 %v2392_v56  ;;  %3327 = vmatmul.mubr.bf16.gmra.mrb[152].mxu1 %v2970_v0  ;;  %v2637_v20 = vadd.f32 1.0, %v6753_v35  ;;  %v2012_v22 = vmul.f32 %v1884_v4, %v6849_v45  ;;  %v2763_v8 = vmul.f32 0.5, %v2635_v58 }
 0x300   : > { %4679 = vtanh.f32 %v2393_v26  ;;  %v2266_v14 = vadd.f32 %v2138_v1, %v6829_v31  ;;  %v2139_v11 = vmul.f32 0.044715, %v2011_v13  ;;  %v2013_v62 = vmul.f32 %v1885_v51, %v6857_v38  ;;  %v7409_v13 = vld [vmem:[#allocation38_spill] sm:$0xff] }
 0x301   : > { %v2765_v9 = vmul.f32 0.5, %v2637_v20  ;;  %v2634_v56 = vadd.f32 1.0, %v6718_v42  ;;  %v2140_v15 = vmul.f32 0.044715, %v2012_v22  ;;  %v2891_v0 = vmul.f32 %v2763_v8, %v6612_v3  ;;  %v7410_v8 = vld [vmem:[#allocation39_spill] sm:$0xff] }
 0x302   : > { %v2394_v24 = vmul.f32 0.7978846, %v2266_v14  ;;  %v2636_v44 = vadd.f32 1.0, %v6743_v47  ;;  %v2267_v35 = vadd.f32 %v2139_v11, %v6842_v18  ;;  %v2141_v26 = vmul.f32 0.044715, %v2013_v62 }
 0x303   : > { %v2893_v5 = vmul.f32 %v2765_v9, %v6620_v17  ;;  %v2762_v1 = vmul.f32 0.5, %v2634_v56  ;;  %v6880_v4 = vpop.eup %4673  ;;  %v2268_v58 = vadd.f32 %v2140_v15, %v6849_v45  ;;  %v6885_v42 = vadd.f32 %v6645_v16, %v7409_v13  ;;  %v7411_v16 = vld [vmem:[#allocation40_spill] sm:$0xff]  ;;  %v7412_v56 = vld [vmem:[#allocation41_spill] sm:$0xff] }
 0x304   : > { %4681 = vtanh.f32 %v2394_v24  ;;  %v2764_v25 = vmul.f32 0.5, %v2636_v44  ;;  %v2395_v51 = vmul.f32 0.7978846, %v2267_v35  ;;  %v2269_v3 = vadd.f32 %v2141_v26, %v6857_v38 }
 0x305   : > { %v2973_v47 = vpack.c.bf16 %v2893_v5, %v2891_v0  ;;  %v2890_v20 = vmul.f32 %v2762_v1, %v6598_v36  ;;  %v2396_v14 = vmul.f32 0.7978846, %v2268_v58  ;;  %v1886_v22 = vmul.f32 %v6885_v42, %v6885_v42 }
 0x306   : > { %v2892_v17 = vmul.f32 %v2764_v25, %v6616_v2  ;;  %v6894_v11 = vadd.f32 %v6648_v28, %v7410_v8  ;;  %4683 = vtanh.f32 %v2395_v51  ;;  %v2397_v62 = vmul.f32 0.7978846, %v2269_v3 }
 0x307   : > { %3334 = vmatprep.mubr.bf16.mxu1 %v2973_v47  ;;  %v6898_v9 = vadd.f32 %v6655_v12, %v7411_v16  ;;  %v6902_v36 = vadd.f32 %v6662_v59, %v7412_v56  ;;  %v6904_v24 = vpop.f32.mrb[72].mxu1  ;;  %4685 = vtanh.f32 %v2396_v14  ;;  %v2014_v28 = vmul.f32 %v1886_v22, %v6885_v42 }
 0x308   : > { %v6906_v2 = vpop.eup %4675  ;;  %v2972_v15 = vpack.c.bf16 %v2892_v17, %v2890_v20  ;;  %v1887_v0 = vmul.f32 %v6894_v11, %v6894_v11  ;;  %v3170_v44 = vpop.f32.mrb[73].mxu1  ;;  %4687 = vtanh.f32 %v2397_v62  ;;  %v2639_v26 = vadd.f32 1.0, %v6788_v46 }
 0x309   : > { %v6911_v35 = vpop.eup %4677  ;;  %v1888_v12 = vmul.f32 %v6898_v9, %v6898_v9  ;;  %v1889_v59 = vmul.f32 %v6902_v36, %v6902_v36  ;;  %v6918_v5 = vpop.f32.mrb[74].mxu1  ;;  %v2142_v58 = vmul.f32 0.044715, %v2014_v28  ;;  %v2641_v13 = vadd.f32 1.0, %v6811_v54 }
 0x30a   : > { %v6920_v1 = vpop.eup %4679  ;;  %3335 = vmatmul.mubr.bf16.gmra.mrb[156].mxu1 %v2972_v15  ;;  %v2015_v25 = vmul.f32 %v1887_v0, %v6894_v11  ;;  %v2638_v51 = vadd.f32 1.0, %v6773_v57  ;;  %v3173_v3 = vpop.f32.mrb[75].mxu1  ;;  %v2767_v14 = vmul.f32 0.5, %v2639_v26  ;;  %v2640_v46 = vadd.f32 1.0, %v6805_v41 }
 0x30b   : > { %v2016_v47 = vmul.f32 %v1888_v12, %v6898_v9  ;;  %v2017_v20 = vmul.f32 %v1889_v59, %v6902_v36  ;;  %v2270_v17 = vadd.f32 %v2142_v58, %v6885_v42  ;;  %v2769_v8 = vmul.f32 0.5, %v2641_v13  ;;  %v7413_v58 = vld [vmem:[#allocation42_spill] sm:$0xff]  ;;  %v7415_v3 = vld [vmem:[#allocation43_spill] sm:$0xff] }
 0x30c   : > { %v2143_v22 = vmul.f32 0.044715, %v2015_v25  ;;  %v2766_v62 = vmul.f32 0.5, %v2638_v51  ;;  %v2895_v15 = vmul.f32 %v2767_v14, %v6670_v10  ;;  %v2768_v54 = vmul.f32 0.5, %v2640_v46  ;;  %v7414_v25 = vld [vmem:[#allocation7_spill] sm:$0xff] }
 0x30d   : > { %v2144_v16 = vmul.f32 0.044715, %v2016_v47  ;;  %v2145_v56 = vmul.f32 0.044715, %v2017_v20  ;;  %v2398_v57 = vmul.f32 0.7978846, %v2270_v17  ;;  %v2897_v44 = vmul.f32 %v2769_v8, %v6685_v49  ;;  %v6954_v8 = vpop.permute.xlu1 %3478 }
 0x30e   : > { %v6930_v28 = vpop.eup %4681  ;;  %v2271_v0 = vadd.f32 %v2143_v22, %v6894_v11  ;;  %v2894_v12 = vmul.f32 %v2766_v62, %v6653_v48  ;;  %v2896_v26 = vmul.f32 %v2768_v54, %v6677_v43  ;;  %v6940_v13 = vadd.f32 %v7414_v25, %v7413_v58  ;;  %v7416_v47 = vld [vmem:[#allocation8_spill] sm:$0xff]  ;;  %v6948_v48 = vpop.permute.xlu0 %3473 }
 0x30f   : > { %v2272_v41 = vadd.f32 %v2144_v16, %v6898_v9  ;;  %v2273_v59 = vadd.f32 %v2145_v56, %v6902_v36  ;;  %4689 = vtanh.f32 %v2398_v57  ;;  %v2975_v51 = vpack.c.bf16 %v2897_v44, %v2895_v15  ;;  %v7417_v16 = vld [vmem:[#allocation44_spill] sm:$0xff]  ;;  %v7418_v15 = vld [vmem:[#allocation45_spill] sm:$0xff] }
 0x310   : > { %v2399_v10 = vmul.f32 0.7978846, %v2271_v0  ;;  %v6944_v20 = vadd.f32 %v7416_v47, %v7415_v3  ;;  %v6946_v49 = vpop.eup %4683  ;;  %v2974_v17 = vpack.c.bf16 %v2896_v26, %v2894_v12  ;;  %v1890_v43 = vmul.f32 %v6940_v13, %v6940_v13 }
 0x311   : > { %v2400_v14 = vmul.f32 0.7978846, %v2272_v41  ;;  %v2401_v46 = vmul.f32 0.7978846, %v2273_v59  ;;  %v6952_v22 = vpop.eup %4685  ;;  %3342 = vmatprep.mubr.bf16.mxu1 %v2975_v51  ;;  %v6960_v56 = vadd.f32 %v6703_v6, %v7417_v16  ;;  %v6964_v54 = vadd.f32 %v6708_v39, %v7418_v15  ;;  %v6989_v15 = vpop.permute.xlu1 %3488 }
 0x312   : > { %4691 = vtanh.f32 %v2399_v10  ;;  %v1891_v62 = vmul.f32 %v6944_v20, %v6944_v20  ;;  %v6966_v57 = vpop.eup %4687  ;;  %3343 = vmatmul.mubr.bf16.gmra.mrb[160].mxu1 %v2974_v17  ;;  %v2018_v0 = vmul.f32 %v1890_v43, %v6940_v13  ;;  %v2643_v44 = vadd.f32 1.0, %v6851_v60  ;;  %v6976_v59 = vpop.f32.mrb[76].mxu1 }
 0x313   : > { %4693 = vtanh.f32 %v2400_v14  ;;  %v2645_v12 = vadd.f32 1.0, %v6866_v19  ;;  %v1892_v6 = vmul.f32 %v6960_v56, %v6960_v56  ;;  %v1893_v39 = vmul.f32 %v6964_v54, %v6964_v54  ;;  %v3178_v51 = vpop.f32.mrb[77].mxu1 }
 0x314   : > { %4695 = vtanh.f32 %v2401_v46  ;;  %v2019_v41 = vmul.f32 %v1891_v62, %v6944_v20  ;;  %v2146_v26 = vmul.f32 0.044715, %v2018_v0  ;;  %v2771_v58 = vmul.f32 0.5, %v2643_v44  ;;  %v6982_v14 = vpop.f32.mrb[78].mxu1  ;;  %v6984_v46 = vpop.permute.xlu0 %3483  ;;  %v7419_v51 = vld [vmem:[#allocation46_spill] sm:$0xff] }
 0x315   : > { %v2773_v25 = vmul.f32 0.5, %v2645_v12  ;;  %v2642_v10 = vadd.f32 1.0, %v6831_v40  ;;  %v2020_v19 = vmul.f32 %v1892_v6, %v6960_v56  ;;  %v2021_v3 = vmul.f32 %v1893_v39, %v6964_v54  ;;  %v3181_v40 = vpop.f32.mrb[79].mxu1 }
 0x316   : > { %v2147_v60 = vmul.f32 0.044715, %v2019_v41  ;;  %v2644_v47 = vadd.f32 1.0, %v6861_v34  ;;  %v2274_v17 = vadd.f32 %v2146_v26, %v6940_v13  ;;  %v2899_v43 = vmul.f32 %v2771_v58, %v6726_v7 }
 0x317   : > { %v2901_v62 = vmul.f32 %v2773_v25, %v6734_v63  ;;  %v2770_v16 = vmul.f32 0.5, %v2642_v10  ;;  %v2148_v44 = vmul.f32 0.044715, %v2020_v19  ;;  %v2149_v12 = vmul.f32 0.044715, %v2021_v3  ;;  %v7422_v3 = vld [vmem:[#allocation9_spill] sm:$0xff] }
 0x318   : > { %v2275_v0 = vadd.f32 %v2147_v60, %v6944_v20  ;;  %v2772_v41 = vmul.f32 0.5, %v2644_v47  ;;  %v2402_v34 = vmul.f32 0.7978846, %v2274_v17  ;;  %v6995_v26 = vadd.f32 %v6736_v21, %v7419_v51  ;;  %v7421_v21 = vld [vmem:[#allocation48_spill] sm:$0xff] }
 0x319   : > { %v2977_v6 = vpack.c.bf16 %v2901_v62, %v2899_v43  ;;  %v2898_v39 = vmul.f32 %v2770_v16, %v6714_v37  ;;  %v6997_v7 = vpop.eup %4689  ;;  %v2276_v58 = vadd.f32 %v2148_v44, %v6960_v56  ;;  %v2277_v25 = vadd.f32 %v2149_v12, %v6964_v54  ;;  %v7420_v37 = vld [vmem:[#allocation47_spill] sm:$0xff] }
 0x31a   : > { %v2403_v63 = vmul.f32 0.7978846, %v2275_v0  ;;  %v2900_v10 = vmul.f32 %v2772_v41, %v6730_v53  ;;  %4697 = vtanh.f32 %v2402_v34  ;;  %v1894_v60 = vmul.f32 %v6995_v26, %v6995_v26  ;;  %v7014_v16 = vpop.f32.mrb[80].mxu1  ;;  %v7018_v0 = vpop.permute.xlu0 %3493  ;;  %v7424_v41 = vld [vmem:[#allocation49_spill] sm:$0xff]  ;;  %v7425_v34 = vld [vmem:[#allocation10_spill] sm:$0xff] }
 0x31b   : > { %3350 = vmatprep.mubr.bf16.mxu1 %v2977_v6  ;;  %v7006_v19 = vadd.f32 %v6741_v27, %v7420_v37  ;;  %v7010_v47 = vadd.f32 %v7422_v3, %v7421_v21  ;;  %v2404_v43 = vmul.f32 0.7978846, %v2276_v58  ;;  %v2405_v62 = vmul.f32 0.7978846, %v2277_v25  ;;  %7423 = vst [vmem:[#allocation14_spill] sm:$0xff] %v7014_v16 }
 0x31c   : > { %v7012_v17 = vpop.eup %4691  ;;  %4699 = vtanh.f32 %v2403_v63  ;;  %v2976_v53 = vpack.c.bf16 %v2900_v10, %v2898_v39  ;;  %v2022_v44 = vmul.f32 %v1894_v60, %v6995_v26  ;;  %v7027_v6 = vadd.f32 %v7425_v34, %v7424_v41  ;;  %v3186_v39 = vpop.f32.mrb[81].mxu1 }
 0x31d   : > { %v7016_v40 = vpop.eup %4693  ;;  %v1895_v27 = vmul.f32 %v7006_v19, %v7006_v19  ;;  %v1896_v12 = vmul.f32 %v7010_v47, %v7010_v47  ;;  %v7032_v63 = vpop.permute.xlu1 %3498  ;;  %4701 = vtanh.f32 %v2404_v43  ;;  %v2647_v58 = vadd.f32 1.0, %v6906_v2 }
 0x31e   : > { %v7030_v51 = vpop.eup %4695  ;;  %3351 = vmatmul.mubr.bf16.gmra.mrb[164].mxu1 %v2976_v53  ;;  %v2649_v25 = vadd.f32 1.0, %v6920_v1  ;;  %v2646_v10 = vadd.f32 1.0, %v6880_v4  ;;  %v7037_v60 = vpop.f32.mrb[82].mxu1  ;;  %4703 = vtanh.f32 %v2405_v62  ;;  %v2150_v37 = vmul.f32 0.044715, %v2022_v44 }
 0x31f   : > { %7426 = vst [vmem:[#allocation15_spill] sm:$0xff] %v7037_v60  ;;  %v2023_v21 = vmul.f32 %v1895_v27, %v7006_v19  ;;  %v2024_v3 = vmul.f32 %v1896_v12, %v7010_v47  ;;  %v3189_v41 = vpop.f32.mrb[83].mxu1  ;;  %v1897_v34 = vmul.f32 %v7027_v6, %v7027_v6  ;;  %v2775_v43 = vmul.f32 0.5, %v2647_v58  ;;  %v7050_v60 = vpop.permute.xlu0 %3503 }
 0x320   : > { %v2777_v53 = vmul.f32 0.5, %v2649_v25  ;;  %v2648_v2 = vadd.f32 1.0, %v6911_v35  ;;  %v2278_v4 = vadd.f32 %v2150_v37, %v6995_v26  ;;  %v2774_v62 = vmul.f32 0.5, %v2646_v10 }
 0x321   : > { %v2151_v1 = vmul.f32 0.044715, %v2023_v21  ;;  %v2152_v39 = vmul.f32 0.044715, %v2024_v3  ;;  %v2025_v44 = vmul.f32 %v1897_v34, %v7027_v6  ;;  %v2903_v27 = vmul.f32 %v2775_v43, %v6793_v33  ;;  %v7055_v37 = vpop.permute.xlu1 %3508 }
 0x322   : > { %v2905_v12 = vmul.f32 %v2777_v53, %v6801_v23  ;;  %v2776_v41 = vmul.f32 0.5, %v2648_v2  ;;  %v2406_v58 = vmul.f32 0.7978846, %v2278_v4  ;;  %v2902_v16 = vmul.f32 %v2774_v62, %v6767_v61  ;;  %v7060_v23 = vpop.f32.mrb[84].mxu1  ;;  %v7429_v62 = vld [vmem:[#allocation11_spill] sm:$0xff] }
 0x323   : > { %v2279_v25 = vadd.f32 %v2151_v1, %v7006_v19  ;;  %v2280_v35 = vadd.f32 %v2152_v39, %v7010_v47  ;;  %v2153_v21 = vmul.f32 0.044715, %v2025_v44  ;;  %v3791_v33 = vmul.f32 %v6948_v48, %v6771_v30  ;;  %v3194_v61 = vpop.f32.mrb[85].mxu1  ;;  %v7427_v30 = vld [vmem:[#allocation50_spill] sm:$0xff]  ;;  %v7428_v39 = vld [vmem:[#allocation51_spill] sm:$0xff] }
 0x324   : > { %v2979_v10 = vpack.c.bf16 %v2905_v12, %v2903_v27  ;;  %v2904_v3 = vmul.f32 %v2776_v41, %v6797_v29  ;;  %v7062_v34 = vpop.eup %4697  ;;  %4705 = vtanh.f32 %v2406_v58  ;;  %v3792_v2 = vmul.f32 %v6954_v8, %v6783_v32  ;;  %v7080_v32 = vpop.f32.mrb[86].mxu1  ;;  %v7431_v8 = vld [vmem:[#allocation52_spill] sm:$0xff]  ;;  %v7433_v12 = vld [vmem:[#allocation53_spill] sm:$0xff] }
 0x325   : > { %v2407_v43 = vmul.f32 0.7978846, %v2279_v25  ;;  %v2408_v53 = vmul.f32 0.7978846, %v2280_v35  ;;  %v2281_v1 = vadd.f32 %v2153_v21, %v7027_v6  ;;  %3855 = vst [vmem:[%s7069_s20] sm:$0xff] %v3791_v33  ;;  %v7074_v48 = vadd.f32 %v6778_v50, %v7427_v30  ;;  %7430 = vst [vmem:[#allocation16_spill] sm:$0xff] %v7080_v32  ;;  %v7432_v27 = vld [vmem:[#allocation12_spill] sm:$0xff] }
 0x326   : > { %v7066_v4 = vpop.eup %4699  ;;  %3358 = vmatprep.mubr.bf16.mxu1 %v2979_v10  ;;  %v2978_v29 = vpack.c.bf16 %v2904_v3, %v2902_v16  ;;  %v7078_v44 = vadd.f32 %v7429_v62, %v7428_v39  ;;  %3856 = vst [vmem:[%s7069_s20 + $0x8] sm:$0xff] %v3792_v2  ;;  %v7085_v16 = vadd.f32 %v7432_v27, %v7431_v8  ;;  %v7434_v41 = vld [vmem:[#allocation13_spill] sm:$0xff]  ;;  %v2651_v25 = vadd.f32 1.0, %v6946_v49  ;;  %v3197_v50 = vpop.f32.mrb[87].mxu1 }
 0x327   : > { %4707 = vtanh.f32 %v2407_v43  ;;  %v7089_v58 = vadd.f32 %v7434_v41, %v7433_v12  ;;  %v7092_v35 = vpop.eup %4701  ;;  %v2409_v21 = vmul.f32 0.7978846, %v2281_v1  ;;  %v1898_v10 = vmul.f32 %v7074_v48, %v7074_v48  ;;  %v7100_v43 = vpop.permute.xlu0 %3513 }
 0x328   : > { %4709 = vtanh.f32 %v2408_v53  ;;  %3359 = vmatmul.mubr.bf16.gmra.mrb[168].mxu1 %v2978_v29  ;;  %v1899_v3 = vmul.f32 %v7078_v44, %v7078_v44  ;;  %v7098_v33 = vpop.eup %4703  ;;  %v1900_v2 = vmul.f32 %v7085_v16, %v7085_v16  ;;  %v2653_v53 = vadd.f32 1.0, %v6966_v57  ;;  %v7107_v1 = vpop.permute.xlu1 %3518 }
 0x329   : > { %v1901_v49 = vmul.f32 %v7089_v58, %v7089_v58  ;;  %v2779_v61 = vmul.f32 0.5, %v2651_v25  ;;  %4711 = vtanh.f32 %v2409_v21  ;;  %v2026_v29 = vmul.f32 %v1898_v10, %v7074_v48 }
 0x32a   : > { %v2027_v30 = vmul.f32 %v1899_v3, %v7078_v44  ;;  %v2650_v39 = vadd.f32 1.0, %v6930_v28  ;;  %v2028_v62 = vmul.f32 %v1900_v2, %v7085_v16  ;;  %v2781_v27 = vmul.f32 0.5, %v2653_v53 }
 0x32b   : > { %v2029_v8 = vmul.f32 %v1901_v49, %v7089_v58  ;;  %v2907_v12 = vmul.f32 %v2779_v61, %v6842_v18  ;;  %v2154_v41 = vmul.f32 0.044715, %v2026_v29  ;;  %v2652_v57 = vadd.f32 1.0, %v6952_v22  ;;  %v7124_v61 = vpop.permute.xlu0 %3523 }
 0x32c   : > { %v2155_v50 = vmul.f32 0.044715, %v2027_v30  ;;  %v2778_v25 = vmul.f32 0.5, %v2650_v39  ;;  %v2156_v21 = vmul.f32 0.044715, %v2028_v62  ;;  %v2909_v10 = vmul.f32 %v2781_v27, %v6857_v38 }
 0x32d   : > { %v2157_v32 = vmul.f32 0.044715, %v2029_v8  ;;  %v3793_v28 = vmul.f32 %v6984_v46, %v6844_v52  ;;  %v2282_v3 = vadd.f32 %v2154_v41, %v7074_v48  ;;  %v2780_v49 = vmul.f32 0.5, %v2652_v57  ;;  %v7131_v46 = vpop.permute.xlu1 %3528 }
 0x32e   : > { %v2283_v2 = vadd.f32 %v2155_v50, %v7078_v44  ;;  %v2906_v18 = vmul.f32 %v2778_v25, %v6829_v31  ;;  %v7122_v53 = vpop.eup %4705  ;;  %v2284_v22 = vadd.f32 %v2156_v21, %v7085_v16  ;;  %v2981_v38 = vpack.c.bf16 %v2909_v10, %v2907_v12 }
 0x32f   : > { %v2285_v29 = vadd.f32 %v2157_v32, %v7089_v58  ;;  %3857 = vst [vmem:[%s7069_s20 + $0x10] sm:$0xff] %v3793_v28  ;;  %v3794_v52 = vmul.f32 %v6989_v15, %v6859_v55  ;;  %v2410_v30 = vmul.f32 0.7978846, %v2282_v3  ;;  %v2908_v31 = vmul.f32 %v2780_v49, %v6849_v45  ;;  %v7135_v8 = vpop.f32.mrb[88].mxu1  ;;  %v7148_v49 = vpop.permute.xlu0 %3533 }
 0x330   : > { %v2411_v39 = vmul.f32 0.7978846, %v2283_v2  ;;  %v2655_v62 = vadd.f32 1.0, %v7012_v17  ;;  %v2412_v41 = vmul.f32 0.7978846, %v2284_v22  ;;  %3366 = vmatprep.mubr.bf16.mxu1 %v2981_v38  ;;  %v2657_v32 = vadd.f32 1.0, %v7030_v51 }
 0x331   : > { %v4708_v27 = vpop.eup %4707  ;;  %v2413_v50 = vmul.f32 0.7978846, %v2285_v29  ;;  %3858 = vst [vmem:[%s7069_s20 + $0x18] sm:$0xff] %v3794_v52  ;;  %v2654_v12 = vadd.f32 1.0, %v6997_v7  ;;  %4713 = vtanh.f32 %v2410_v30  ;;  %v2980_v15 = vpack.c.bf16 %v2908_v31, %v2906_v18  ;;  %v3202_v45 = vpop.f32.mrb[89].mxu1 }
 0x332   : > { %v4710_v55 = vpop.eup %4709  ;;  %v2783_v57 = vmul.f32 0.5, %v2655_v62  ;;  %v2656_v25 = vadd.f32 1.0, %v7016_v40  ;;  %4715 = vtanh.f32 %v2411_v39  ;;  %v2785_v17 = vmul.f32 0.5, %v2657_v32  ;;  %v7143_v28 = vpop.f32.mrb[90].mxu1 }
 0x333   : > { %v2782_v21 = vmul.f32 0.5, %v2654_v12  ;;  %v3795_v10 = vmul.f32 %v7018_v0, %v6904_v24  ;;  %v4712_v51 = vpop.eup %4711  ;;  %4717 = vtanh.f32 %v2412_v41  ;;  %3367 = vmatmul.mubr.bf16.gmra.mrb[172].mxu1 %v2980_v15  ;;  %v3796_v40 = vmul.f32 %v7032_v63, %v6918_v5  ;;  %v3205_v2 = vpop.f32.mrb[91].mxu1 }
 0x334   : > { %v2911_v7 = vmul.f32 %v2783_v57, %v6894_v11  ;;  %v2784_v3 = vmul.f32 0.5, %v2656_v25  ;;  %4719 = vtanh.f32 %v2413_v50  ;;  %v2913_v18 = vmul.f32 %v2785_v17, %v6902_v36  ;;  %v7154_v22 = vpop.permute.xlu1 %3538  ;;  %v3544_v32 = vpop.permute.xlu0 %3543  ;;  %v7435_v57 = vld [vmem:[#allocation14_spill] sm:$0xff] }
 0x335   : > { %v2910_v24 = vmul.f32 %v2782_v21, %v6885_v42  ;;  %3859 = vst [vmem:[%s7069_s20 + $0x20] sm:$0xff] %v3795_v10  ;;  %v2659_v0 = vadd.f32 1.0, %v7066_v4  ;;  %3860 = vst [vmem:[%s7069_s20 + $0x28] sm:$0xff] %v3796_v40  ;;  %v2661_v11 = vadd.f32 1.0, %v7098_v33  ;;  %v2658_v5 = vadd.f32 1.0, %v7062_v34  ;;  %v7436_v21 = vld [vmem:[#allocation15_spill] sm:$0xff] }
 0x336   : > { %v2912_v29 = vmul.f32 %v2784_v3, %v6898_v9  ;;  %v2660_v63 = vadd.f32 1.0, %v7092_v35  ;;  %v2983_v38 = vpack.c.bf16 %v2913_v18, %v2911_v7  ;;  %v3797_v42 = vmul.f32 %v7050_v60, %v6976_v59  ;;  %v7437_v18 = vld [vmem:[#allocation16_spill] sm:$0xff] }
 0x337   : > { %v2787_v36 = vmul.f32 0.5, %v2659_v0  ;;  %v3798_v4 = vmul.f32 %v7055_v37, %v6982_v14  ;;  %v2789_v30 = vmul.f32 0.5, %v2661_v11  ;;  %v2786_v9 = vmul.f32 0.5, %v2658_v5  ;;  %v3208_v31 = vpop.f32.mrb[92].mxu1 }
 0x338   : > { %v2982_v52 = vpack.c.bf16 %v2912_v29, %v2910_v24  ;;  %v2788_v39 = vmul.f32 0.5, %v2660_v63  ;;  %3374 = vmatprep.mubr.bf16.mxu1 %v2983_v38  ;;  %3861 = vst [vmem:[%s7069_s20 + $0x30] sm:$0xff] %v3797_v42  ;;  %v2663_v34 = vadd.f32 1.0, %v4708_v27  ;;  %v2665_v35 = vadd.f32 1.0, %v4712_v51  ;;  %v3210_v41 = vpop.f32.mrb[93].mxu1 }
 0x339   : > { %v2915_v33 = vmul.f32 %v2787_v36, %v6944_v20  ;;  %3862 = vst [vmem:[%s7069_s20 + $0x38] sm:$0xff] %v3798_v4  ;;  %v2662_v62 = vadd.f32 1.0, %v7122_v53  ;;  %v2917_v59 = vmul.f32 %v2789_v30, %v6964_v54  ;;  %v2914_v60 = vmul.f32 %v2786_v9, %v6940_v13  ;;  %v3211_v50 = vpop.f32.mrb[94].mxu1  ;;  %v3549_v53 = vpop.permute.xlu1 %3548 }
 0x33a   : > { %v2916_v14 = vmul.f32 %v2788_v39, %v6960_v56  ;;  %v2664_v37 = vadd.f32 1.0, %v4710_v55  ;;  %v2791_v12 = vmul.f32 0.5, %v2663_v34  ;;  %v2793_v15 = vmul.f32 0.5, %v2665_v35  ;;  %v3213_v25 = vpop.f32.mrb[95].mxu1 }
 0x33b   : > { %v2790_v20 = vmul.f32 0.5, %v2662_v62  ;;  %v3799_v27 = vmul.f32 %v7100_v43, %v7435_v57  ;;  %v4714_v45 = vpop.eup %4713  ;;  %3375 = vmatmul.mubr.bf16.gmra.mrb[176].mxu1 %v2982_v52  ;;  %v2985_v54 = vpack.c.bf16 %v2917_v59, %v2915_v33  ;;  %v3800_v56 = vmul.f32 %v7107_v1, %v7436_v21 }
 0x33c   : > { %v2984_v17 = vpack.c.bf16 %v2916_v14, %v2914_v60  ;;  %v2792_v13 = vmul.f32 0.5, %v2664_v37  ;;  %v4716_v55 = vpop.eup %4715  ;;  %v2919_v10 = vmul.f32 %v2791_v12, %v7006_v19  ;;  %v2921_v51 = vmul.f32 %v2793_v15, %v7027_v6 }
 0x33d   : > { %v2918_v7 = vmul.f32 %v2790_v20, %v6995_v26  ;;  %3863 = vst [vmem:[%s7069_s20 + $0x40] sm:$0xff] %v3799_v27  ;;  %v2666_v43 = vadd.f32 1.0, %v4714_v45  ;;  %v4718_v3 = vpop.eup %4717  ;;  %3382 = vmatprep.mubr.bf16.mxu1 %v2985_v54  ;;  %3864 = vst [vmem:[%s7069_s20 + $0x48] sm:$0xff] %v3800_v56  ;;  %v2667_v2 = vadd.f32 1.0, %v4716_v55  ;;  %v3801_v1 = vmul.f32 %v7124_v61, %v7060_v23 }
 0x33e   : > { %v2920_v40 = vmul.f32 %v2792_v13, %v7010_v47  ;;  %v3802_v19 = vmul.f32 %v7131_v46, %v7437_v18  ;;  %v4720_v6 = vpop.eup %4719  ;;  %v2987_v24 = vpack.c.bf16 %v2921_v51, %v2919_v10  ;;  %v2668_v26 = vadd.f32 1.0, %v4718_v3  ;;  %v3554_v46 = vpop.permute.xlu0 %3553 }
 0x33f   : > { %v2794_v0 = vmul.f32 0.5, %v2666_v43  ;;  %v3803_v29 = vmul.f32 %v7148_v49, %v7135_v8  ;;  %v2669_v5 = vadd.f32 1.0, %v4720_v6  ;;  %v2795_v47 = vmul.f32 0.5, %v2667_v2  ;;  %3865 = vst [vmem:[%s7069_s20 + $0x50] sm:$0xff] %v3801_v1  ;;  %v3559_v8 = vpop.permute.xlu1 %3558 }
 0x340   : > { %v2986_v11 = vpack.c.bf16 %v2920_v40, %v2918_v7  ;;  %3866 = vst [vmem:[%s7069_s20 + $0x58] sm:$0xff] %v3802_v19  ;;  %v3804_v23 = vmul.f32 %v7154_v22, %v7143_v28  ;;  %v3216_v61 = vpop.f32.mrb[96].mxu1  ;;  %v2796_v63 = vmul.f32 0.5, %v2668_v26  ;;  %v3805_v38 = vmul.f32 %v3544_v32, %v3208_v31 }
 0x341   : > { %3867 = vst [vmem:[%s7069_s20 + $0x60] sm:$0xff] %v3803_v29  ;;  %v3806_v36 = vmul.f32 %v3549_v53, %v3211_v50  ;;  %v3218_v42 = vpop.f32.mrb[97].mxu1  ;;  %v2797_v49 = vmul.f32 0.5, %v2669_v5  ;;  %v3807_v4 = vmul.f32 %v3554_v46, %v3216_v61  ;;  %v2922_v30 = vmul.f32 %v2794_v0, %v7074_v48 }
 0x342   : > { %3868 = vst [vmem:[%s7069_s20 + $0x68] sm:$0xff] %v3804_v23  ;;  %v3219_v52 = vpop.f32.mrb[98].mxu1  ;;  %v2924_v9 = vmul.f32 %v2796_v63, %v7085_v16  ;;  %3869 = vst [vmem:[%s7069_s20 + $0x70] sm:$0xff] %v3805_v38  ;;  %v2923_v39 = vmul.f32 %v2795_v47, %v7078_v44  ;;  %v3564_v35 = vpop.permute.xlu0 %3563 }
 0x343   : > { %3870 = vst [vmem:[%s7069_s20 + $0x78] sm:$0xff] %v3806_v36  ;;  %v3808_v28 = vmul.f32 %v3559_v8, %v3219_v52  ;;  %v3221_v22 = vpop.f32.mrb[99].mxu1  ;;  %3383 = vmatmul.mubr.bf16.gmra.mrb[180].mxu1 %v2984_v17  ;;  %v2925_v31 = vmul.f32 %v2797_v49, %v7089_v58  ;;  %3871 = vst [vmem:[%s7069_s20 + $0x80] sm:$0xff] %v3807_v4  ;;  %v3569_v41 = vpop.permute.xlu1 %3568 }
 0x344   : > { %3390 = vmatprep.mubr.bf16.mxu1 %v2987_v24  ;;  %v2988_v33 = vpack.c.bf16 %v2924_v9, %v2922_v30 }
 0x345   : > { %3872 = vst [vmem:[%s7069_s20 + $0x88] sm:$0xff] %v3808_v28  ;;  %v2989_v34 = vpack.c.bf16 %v2925_v31, %v2923_v39 }
 0x346   : > { %v3574_v58 = vpop.permute.xlu0 %3573 }
 0x347   : > { %v3579_v32 = vpop.permute.xlu1 %3578 }
 0x34a   : > { %v3584_v57 = vpop.permute.xlu0 %3583 }
 0x34b   : > { %3391 = vmatmul.mubr.bf16.gmra.mrb[184].mxu1 %v2986_v11  ;;  %v3589_v53 = vpop.permute.xlu1 %3588 }
 0x34c   : > { %v3224_v48 = vpop.f32.mrb[100].mxu1  ;;  %3398 = vmatprep.mubr.bf16.mxu1 %v2989_v34 }
 0x34d   : > { %v3809_v16 = vmul.f32 %v3564_v35, %v3224_v48  ;;  %v3226_v62 = vpop.f32.mrb[101].mxu1 }
 0x34e   : > { %v3227_v59 = vpop.f32.mrb[102].mxu1  ;;  %v3594_v21 = vpop.permute.xlu0 %3593 }
 0x34f   : > { %3873 = vst [vmem:[%s7069_s20 + $0x90] sm:$0xff] %v3809_v16  ;;  %v3810_v44 = vmul.f32 %v3569_v41, %v3227_v59  ;;  %v3229_v60 = vpop.f32.mrb[103].mxu1  ;;  %v3599_v51 = vpop.permute.xlu1 %3598 }
 0x351   : > { %3874 = vst [vmem:[%s7069_s20 + $0x98] sm:$0xff] %v3810_v44 }
 0x352   : > { %v3604_v40 = vpop.permute.xlu0 %3603 }
 0x353   : > { %3399 = vmatmul.mubr.bf16.gmra.mrb[188].mxu1 %v2988_v33  ;;  %v3609_v19 = vpop.permute.xlu1 %3608 }
 0x354   : > { %v3232_v14 = vpop.f32.mrb[104].mxu1 }
 0x355   : > { %v3811_v37 = vmul.f32 %v3574_v58, %v3232_v14  ;;  %v3234_v50 = vpop.f32.mrb[105].mxu1 }
 0x356   : > { %v3235_v12 = vpop.f32.mrb[106].mxu1  ;;  %v3614_v0 = vpop.permute.xlu0 %3613 }
 0x357   : > { %3875 = vst [vmem:[%s7069_s20 + $0xa0] sm:$0xff] %v3811_v37  ;;  %v3812_v15 = vmul.f32 %v3579_v32, %v3235_v12  ;;  %v3237_v20 = vpop.f32.mrb[107].mxu1  ;;  %v3619_v47 = vpop.permute.xlu1 %3618 }
 0x359   : > { %3876 = vst [vmem:[%s7069_s20 + $0xa8] sm:$0xff] %v3812_v15 }
 0x35a   : > { %v3624_v63 = vpop.permute.xlu0 %3623 }
 0x35b   : > { %v3629_v8 = vpop.permute.xlu1 %3628 }
 0x35c   : > { %v3240_v27 = vpop.f32.mrb[108].mxu1 }
 0x35d   : > { %v3813_v25 = vmul.f32 %v3584_v57, %v3240_v27  ;;  %v3242_v45 = vpop.f32.mrb[109].mxu1 }
 0x35e   : > { %v3243_v54 = vpop.f32.mrb[110].mxu1  ;;  %v3634_v30 = vpop.permute.xlu0 %3633 }
 0x35f   : > { %3877 = vst [vmem:[%s7069_s20 + $0xb0] sm:$0xff] %v3813_v25  ;;  %v3814_v17 = vmul.f32 %v3589_v53, %v3243_v54  ;;  %v3245_v13 = vpop.f32.mrb[111].mxu1  ;;  %v3639_v39 = vpop.permute.xlu1 %3638 }
 0x361   : > { %3878 = vst [vmem:[%s7069_s20 + $0xb8] sm:$0xff] %v3814_v17 }
 0x362   : > { %v3644_v35 = vpop.permute.xlu0 %3643 }
 0x363   : > { %v3649_v41 = vpop.permute.xlu1 %3648 }
 0x366   : > { %v3654_v58 = vpop.permute.xlu0 %3653 }
 0x367   : > { %v3659_v32 = vpop.permute.xlu1 %3658 }
 0x368   : > { %v3248_v56 = vpop.f32.mrb[112].mxu1 }
 0x369   : > { %v3815_v55 = vmul.f32 %v3594_v21, %v3248_v56  ;;  %v3250_v10 = vpop.f32.mrb[113].mxu1 }
 0x36a   : > { %v3251_v7 = vpop.f32.mrb[114].mxu1  ;;  %v3664_v57 = vpop.permute.xlu0 %3663 }
 0x36b   : > { %3879 = vst [vmem:[%s7069_s20 + $0xc0] sm:$0xff] %v3815_v55  ;;  %v3816_v43 = vmul.f32 %v3599_v51, %v3251_v7  ;;  %v3253_v3 = vpop.f32.mrb[115].mxu1  ;;  %v3669_v53 = vpop.permute.xlu1 %3668 }
 0x36d   : > { %3880 = vst [vmem:[%s7069_s20 + $0xc8] sm:$0xff] %v3816_v43 }
 0x36e   : > { %v3674_v21 = vpop.permute.xlu0 %3673 }
 0x36f   : > { %v3679_v51 = vpop.permute.xlu1 %3678 }
 0x370   : > { %v3256_v2 = vpop.f32.mrb[116].mxu1 }
 0x371   : > { %v3817_v1 = vmul.f32 %v3604_v40, %v3256_v2  ;;  %v3258_v18 = vpop.f32.mrb[117].mxu1 }
 0x372   : > { %v3259_v6 = vpop.f32.mrb[118].mxu1  ;;  %v3684_v40 = vpop.permute.xlu0 %3683 }
 0x373   : > { %3881 = vst [vmem:[%s7069_s20 + $0xd0] sm:$0xff] %v3817_v1  ;;  %v3818_v24 = vmul.f32 %v3609_v19, %v3259_v6  ;;  %v3261_v26 = vpop.f32.mrb[119].mxu1  ;;  %v3689_v19 = vpop.permute.xlu1 %3688 }
 0x375   : > { %3882 = vst [vmem:[%s7069_s20 + $0xd8] sm:$0xff] %v3818_v24 }
 0x379   : > { %v3264_v29 = vpop.f32.mrb[120].mxu1 }
 0x37a   : > { %v3819_v11 = vmul.f32 %v3614_v0, %v3264_v29  ;;  %v3266_v5 = vpop.f32.mrb[121].mxu1  ;;  %v3694_v0 = vpop.permute.xlu0 %3693 }
 0x37b   : > { %v3267_v23 = vpop.f32.mrb[122].mxu1 }
 0x37c   : > { %3883 = vst [vmem:[%s7069_s20 + $0xe0] sm:$0xff] %v3819_v11  ;;  %v3820_v61 = vmul.f32 %v3619_v47, %v3267_v23  ;;  %v3269_v46 = vpop.f32.mrb[123].mxu1  ;;  %v3699_v47 = vpop.permute.xlu1 %3698 }
 0x37e   : > { %3884 = vst [vmem:[%s7069_s20 + $0xe8] sm:$0xff] %v3820_v61 }
 0x381   : > { %v3272_v38 = vpop.f32.mrb[124].mxu1 }
 0x382   : > { %v3821_v36 = vmul.f32 %v3624_v63, %v3272_v38  ;;  %v3274_v42 = vpop.f32.mrb[125].mxu1  ;;  %v3704_v63 = vpop.permute.xlu0 %3703 }
 0x383   : > { %v3275_v49 = vpop.f32.mrb[126].mxu1 }
 0x384   : > { %3885 = vst [vmem:[%s7069_s20 + $0xf0] sm:$0xff] %v3821_v36  ;;  %v3822_v4 = vmul.f32 %v3629_v8, %v3275_v49  ;;  %v3277_v52 = vpop.f32.mrb[127].mxu1  ;;  %v3709_v8 = vpop.permute.xlu1 %3708 }
 0x386   : > { %3886 = vst [vmem:[%s7069_s20 + $0xf8] sm:$0xff] %v3822_v4 }
 0x395   : > { %v3280_v9 = vpop.f32.mrb[128].mxu1 }
 0x396   : > { %v3823_v28 = vmul.f32 %v3634_v30, %v3280_v9  ;;  %v3282_v22 = vpop.f32.mrb[129].mxu1  ;;  %v3714_v30 = vpop.permute.xlu0 %3713 }
 0x397   : > { %v3283_v31 = vpop.f32.mrb[130].mxu1 }
 0x398   : > { %3887 = vst [vmem:[%s7069_s20 + $0x100] sm:$0xff] %v3823_v28  ;;  %v3824_v33 = vmul.f32 %v3639_v39, %v3283_v31  ;;  %v3285_v34 = vpop.f32.mrb[131].mxu1  ;;  %v3719_v39 = vpop.permute.xlu1 %3718 }
 0x39a   : > { %3888 = vst [vmem:[%s7069_s20 + $0x108] sm:$0xff] %v3824_v33 }
 0x39d   : > { %v3288_v48 = vpop.f32.mrb[132].mxu1 }
 0x39e   : > { %v3825_v16 = vmul.f32 %v3644_v35, %v3288_v48  ;;  %v3290_v62 = vpop.f32.mrb[133].mxu1  ;;  %v3724_v35 = vpop.permute.xlu0 %3723 }
 0x39f   : > { %v3291_v59 = vpop.f32.mrb[134].mxu1 }
 0x3a0   : > { %3889 = vst [vmem:[%s7069_s20 + $0x110] sm:$0xff] %v3825_v16  ;;  %v3826_v44 = vmul.f32 %v3649_v41, %v3291_v59  ;;  %v3293_v60 = vpop.f32.mrb[135].mxu1  ;;  %v3729_v41 = vpop.permute.xlu1 %3728 }
 0x3a2   : > { %3890 = vst [vmem:[%s7069_s20 + $0x118] sm:$0xff] %v3826_v44 }
 0x3a7   : > { %v3296_v14 = vpop.f32.mrb[136].mxu1 }
 0x3a8   : > { %v3827_v37 = vmul.f32 %v3654_v58, %v3296_v14  ;;  %v3298_v50 = vpop.f32.mrb[137].mxu1  ;;  %v3734_v58 = vpop.permute.xlu0 %3733 }
 0x3a9   : > { %v3299_v12 = vpop.f32.mrb[138].mxu1 }
 0x3aa   : > { %3891 = vst [vmem:[%s7069_s20 + $0x120] sm:$0xff] %v3827_v37  ;;  %v3828_v15 = vmul.f32 %v3659_v32, %v3299_v12  ;;  %v3301_v20 = vpop.f32.mrb[139].mxu1  ;;  %v3739_v32 = vpop.permute.xlu1 %3738 }
 0x3ac   : > { %3892 = vst [vmem:[%s7069_s20 + $0x128] sm:$0xff] %v3828_v15 }
 0x3b2   : > { %v3304_v27 = vpop.f32.mrb[140].mxu1 }
 0x3b3   : > { %v3829_v25 = vmul.f32 %v3664_v57, %v3304_v27  ;;  %v3306_v45 = vpop.f32.mrb[141].mxu1  ;;  %v3744_v57 = vpop.permute.xlu0 %3743 }
 0x3b4   : > { %v3307_v54 = vpop.f32.mrb[142].mxu1 }
 0x3b5   : > { %3893 = vst [vmem:[%s7069_s20 + $0x130] sm:$0xff] %v3829_v25  ;;  %v3830_v17 = vmul.f32 %v3669_v53, %v3307_v54  ;;  %v3309_v13 = vpop.f32.mrb[143].mxu1  ;;  %v3749_v53 = vpop.permute.xlu1 %3748 }
 0x3b7   : > { %3894 = vst [vmem:[%s7069_s20 + $0x138] sm:$0xff] %v3830_v17 }
 0x3bd   : > { %v3312_v56 = vpop.f32.mrb[144].mxu1 }
 0x3be   : > { %v3831_v55 = vmul.f32 %v3674_v21, %v3312_v56  ;;  %v3314_v10 = vpop.f32.mrb[145].mxu1  ;;  %v3754_v21 = vpop.permute.xlu0 %3753 }
 0x3bf   : > { %v3315_v7 = vpop.f32.mrb[146].mxu1 }
 0x3c0   : > { %3895 = vst [vmem:[%s7069_s20 + $0x140] sm:$0xff] %v3831_v55  ;;  %v3832_v43 = vmul.f32 %v3679_v51, %v3315_v7  ;;  %v3317_v3 = vpop.f32.mrb[147].mxu1  ;;  %v3759_v51 = vpop.permute.xlu1 %3758 }
 0x3c2   : > { %3896 = vst [vmem:[%s7069_s20 + $0x148] sm:$0xff] %v3832_v43 }
 0x3c7   : > { %v3320_v2 = vpop.f32.mrb[148].mxu1 }
 0x3c8   : > { %v3833_v1 = vmul.f32 %v3684_v40, %v3320_v2  ;;  %v3322_v18 = vpop.f32.mrb[149].mxu1  ;;  %v3764_v40 = vpop.permute.xlu0 %3763 }
 0x3c9   : > { %v3323_v6 = vpop.f32.mrb[150].mxu1 }
 0x3ca   : > { %3897 = vst [vmem:[%s7069_s20 + $0x150] sm:$0xff] %v3833_v1  ;;  %v3834_v24 = vmul.f32 %v3689_v19, %v3323_v6  ;;  %v3325_v26 = vpop.f32.mrb[151].mxu1  ;;  %v3769_v19 = vpop.permute.xlu1 %3768 }
 0x3cc   : > { %3898 = vst [vmem:[%s7069_s20 + $0x158] sm:$0xff] %v3834_v24 }
 0x3d2   : > { %v3328_v29 = vpop.f32.mrb[152].mxu1 }
 0x3d3   : > { %v3835_v11 = vmul.f32 %v3694_v0, %v3328_v29  ;;  %v3330_v5 = vpop.f32.mrb[153].mxu1  ;;  %v3774_v0 = vpop.permute.xlu0 %3773 }
 0x3d4   : > { %v3331_v23 = vpop.f32.mrb[154].mxu1 }
 0x3d5   : > { %3899 = vst [vmem:[%s7069_s20 + $0x160] sm:$0xff] %v3835_v11  ;;  %v3836_v61 = vmul.f32 %v3699_v47, %v3331_v23  ;;  %v3333_v46 = vpop.f32.mrb[155].mxu1  ;;  %v3779_v47 = vpop.permute.xlu1 %3778 }
 0x3d7   : > { %3900 = vst [vmem:[%s7069_s20 + $0x168] sm:$0xff] %v3836_v61 }
 0x3dd   : > { %v3336_v38 = vpop.f32.mrb[156].mxu1 }
 0x3de   : > { %v3837_v36 = vmul.f32 %v3704_v63, %v3336_v38  ;;  %v3338_v42 = vpop.f32.mrb[157].mxu1  ;;  %v3784_v63 = vpop.permute.xlu0 %3783 }
 0x3df   : > { %v3339_v49 = vpop.f32.mrb[158].mxu1 }
 0x3e0   : > { %3901 = vst [vmem:[%s7069_s20 + $0x170] sm:$0xff] %v3837_v36  ;;  %v3838_v4 = vmul.f32 %v3709_v8, %v3339_v49  ;;  %v3341_v52 = vpop.f32.mrb[159].mxu1  ;;  %v3789_v8 = vpop.permute.xlu1 %3788 }
 0x3e2   : > { %3902 = vst [vmem:[%s7069_s20 + $0x178] sm:$0xff] %v3838_v4 }
 0x3e5   : > { %v3344_v9 = vpop.f32.mrb[160].mxu1 }
 0x3e6   : > { %v3839_v28 = vmul.f32 %v3714_v30, %v3344_v9  ;;  %v3346_v22 = vpop.f32.mrb[161].mxu1 }
 0x3e7   : > { %v3347_v31 = vpop.f32.mrb[162].mxu1 }
 0x3e8   : > { %3903 = vst [vmem:[%s7069_s20 + $0x180] sm:$0xff] %v3839_v28  ;;  %v3840_v33 = vmul.f32 %v3719_v39, %v3347_v31  ;;  %v3349_v34 = vpop.f32.mrb[163].mxu1 }
 0x3ea   : > { %3904 = vst [vmem:[%s7069_s20 + $0x188] sm:$0xff] %v3840_v33 }
 0x3f1   : > { %v3352_v48 = vpop.f32.mrb[164].mxu1 }
 0x3f2   : > { %v3841_v16 = vmul.f32 %v3724_v35, %v3352_v48  ;;  %v3354_v62 = vpop.f32.mrb[165].mxu1 }
 0x3f3   : > { %v3355_v59 = vpop.f32.mrb[166].mxu1 }
 0x3f4   : > { %3905 = vst [vmem:[%s7069_s20 + $0x190] sm:$0xff] %v3841_v16  ;;  %v3842_v44 = vmul.f32 %v3729_v41, %v3355_v59  ;;  %v3357_v60 = vpop.f32.mrb[167].mxu1 }
 0x3f6   : > { %3906 = vst [vmem:[%s7069_s20 + $0x198] sm:$0xff] %v3842_v44 }
 0x3fb   : > { %v3360_v14 = vpop.f32.mrb[168].mxu1 }
 0x3fc   : > { %v3843_v37 = vmul.f32 %v3734_v58, %v3360_v14  ;;  %v3362_v50 = vpop.f32.mrb[169].mxu1 }
 0x3fd   : > { %v3363_v12 = vpop.f32.mrb[170].mxu1 }
 0x3fe   : > { %3907 = vst [vmem:[%s7069_s20 + $0x1a0] sm:$0xff] %v3843_v37  ;;  %v3844_v15 = vmul.f32 %v3739_v32, %v3363_v12  ;;  %v3365_v20 = vpop.f32.mrb[171].mxu1 }
 0x400   : > { %3908 = vst [vmem:[%s7069_s20 + $0x1a8] sm:$0xff] %v3844_v15 }
 0x406   : > { %v3368_v27 = vpop.f32.mrb[172].mxu1 }
 0x407   : > { %v3845_v25 = vmul.f32 %v3744_v57, %v3368_v27  ;;  %v3370_v45 = vpop.f32.mrb[173].mxu1 }
 0x408   : > { %v3371_v54 = vpop.f32.mrb[174].mxu1 }
 0x409   : > { %3909 = vst [vmem:[%s7069_s20 + $0x1b0] sm:$0xff] %v3845_v25  ;;  %v3846_v17 = vmul.f32 %v3749_v53, %v3371_v54  ;;  %v3373_v13 = vpop.f32.mrb[175].mxu1 }
 0x40b   : > { %3910 = vst [vmem:[%s7069_s20 + $0x1b8] sm:$0xff] %v3846_v17 }
 0x40e   : > { %v3376_v56 = vpop.f32.mrb[176].mxu1 }
 0x40f   : > { %v3847_v55 = vmul.f32 %v3754_v21, %v3376_v56  ;;  %v3378_v10 = vpop.f32.mrb[177].mxu1 }
 0x410   : > { %v3379_v7 = vpop.f32.mrb[178].mxu1 }
 0x411   : > { %3911 = vst [vmem:[%s7069_s20 + $0x1c0] sm:$0xff] %v3847_v55  ;;  %v3848_v43 = vmul.f32 %v3759_v51, %v3379_v7  ;;  %v3381_v3 = vpop.f32.mrb[179].mxu1 }
 0x413   : > { %3912 = vst [vmem:[%s7069_s20 + $0x1c8] sm:$0xff] %v3848_v43 }
 0x416   : > { %v3384_v2 = vpop.f32.mrb[180].mxu1 }
 0x417   : > { %v3849_v1 = vmul.f32 %v3764_v40, %v3384_v2  ;;  %v3386_v18 = vpop.f32.mrb[181].mxu1 }
 0x418   : > { %v3387_v6 = vpop.f32.mrb[182].mxu1 }
 0x419   : > { %3913 = vst [vmem:[%s7069_s20 + $0x1d0] sm:$0xff] %v3849_v1  ;;  %v3850_v24 = vmul.f32 %v3769_v19, %v3387_v6  ;;  %v3389_v26 = vpop.f32.mrb[183].mxu1 }
 0x41b   : > { %3914 = vst [vmem:[%s7069_s20 + $0x1d8] sm:$0xff] %v3850_v24 }
 0x41e   : > { %v3392_v29 = vpop.f32.mrb[184].mxu1 }
 0x41f   : > { %v3851_v11 = vmul.f32 %v3774_v0, %v3392_v29  ;;  %v3394_v5 = vpop.f32.mrb[185].mxu1 }
 0x420   : > { %v3395_v23 = vpop.f32.mrb[186].mxu1 }
 0x421   : > { %3915 = vst [vmem:[%s7069_s20 + $0x1e0] sm:$0xff] %v3851_v11  ;;  %v3852_v61 = vmul.f32 %v3779_v47, %v3395_v23  ;;  %v3397_v46 = vpop.f32.mrb[187].mxu1 }
 0x423   : > { %3916 = vst [vmem:[%s7069_s20 + $0x1e8] sm:$0xff] %v3852_v61 }
 0x426   : > { %v3400_v38 = vpop.f32.mrb[188].mxu1 }
 0x427   : > { %v3853_v36 = vmul.f32 %v3784_v63, %v3400_v38  ;;  %v3402_v42 = vpop.f32.mrb[189].mxu1 }
 0x428   : > { %v3403_v49 = vpop.f32.mrb[190].mxu1 }
 0x429   : > { %3917 = vst [vmem:[%s7069_s20 + $0x1f0] sm:$0xff] %v3853_v36  ;;  %v3854_v4 = vmul.f32 %v3789_v8, %v3403_v49  ;;  %v3405_v52 = vpop.f32.mrb[191].mxu1 }
 0x42b   : > { %3918 = vst [vmem:[%s7069_s20 + $0x1f8] sm:$0xff] %v3854_v4 }
 0x42c   : > { %4734 = shalt.err (!%p4731_p3)
}
 0x42d   : > { %s4735_s16 = scalar_lea.hbm %s7251_s11, 8192  ;;  %s4739_s17 = scalar_lea.hbm %s7306_s6, 65536 }
 0x42e   : > { %p4736_p4 = scmp.ne.s32.totalorder %s7251_s11, %s4735_s16  ;;  %p4740_p9 = scmp.lt.u32.totalorder %s7251_s11, %s7306_s6 }
 0x42f   : > { %p4741_p10 = scmp.lt.u32.totalorder %s4739_s17, %s4735_s16  ;;  %p4743_p12 = scmp.lt.u32.totalorder %s4735_s16, %s7251_s11 }
 0x430   : > { %p4737_p7 = pnand %p4736_p4, %p4863_p5 }
 0x431   : > { %p4742_p11 = por %p4741_p10, %p4740_p9 }
 0x432   : > { %p4738_p8 = pneg %p4737_p7 }
 0x433   : > { %p4744_p13 = por %p4743_p12, %p4742_p11 }
 0x435   : > { %p4745_p0 = pnand %p4744_p13, %p4738_p8 }
 0x437   : > { %4748 = shalt.err (!%p4745_p0)
}
 0x438   : > { %s4788_s26 = smov 128   ;;  %s4789_s29 = smov 8  }
 0x439   : > { %4356 = dma.vmem_to_hbm [thread:$0]  (%p4863_p5), %s7253_s28, 8192, %s7251_s11, %s7259_s25, %s4788_s26, %s4788_s26, %s4789_s29  }
 0x43a PF: > { %p4362_p1 = scmp.ge.s32.totalorder %s4783_s24, 2  ;;  %s3948_s10 = sand.u32 1, %s4771_s21  }
 0x43b   : > { %s3949_s12 = scalar_lea.sflag [#allocation3], %s3948_s10 }
 0x43c   : > { %p4359_p2 = pnand %p4362_p1, %p4867_p6 }
 0x43e   : > { %4766 = dma.done.wait (!%p4359_p2), %s3949_s12, 8192  }
 0x43f   : > { %4768 = vsyncadd (!%p4359_p2), %s3949_s12, 4294959104  ;;  %p16_p3 = scmp.ge.s32.totalorder %s4850_s27, 10   ;;  %s7438_s21 = smov %s4775_s22 }
 0x440   : > { %s7439_s22 = smov %s4779_s23  ;;  %s7440_s23 = smov %s4861_s30 }
 0x441   : > { %s7441_s24 = smov %s4850_s27  ;;  %18 = sbr.rel (!%p16_p3) target bundleno = 3 (0x3), region = 85 }
 0x448   :  { %3954 = vsyncpa [#allocation3], 1 }
 0x449   :  { %3956 = vsyncpa [#allocation3 + $0x1], 1 }

</bundles_post_ra>
